<compile_context>
chip_gen: v7x
topology: tpu7x:2x2x1
jax: 0.10.0
libtpu: 0.0.40
codegen_flags: <defaults>
</compile_context>

<pallas_src>
import jax
import jax.numpy as jnp
from jax.experimental import pallas as pl
from jax.experimental.pallas import tpu as pltpu


# ---------------------------------------------------------------------------
# Fused kernel
# ---------------------------------------------------------------------------
# Internal layout per batch element:
#   layer-1 padded input : (32, 32)            [h_pad, w_pad]           (Cin=1)
#   conv1/relu output    : (28, 448)           [h, w*16 + c_out]
#   layer-2 padded input : (18, 288)           [h_pad, w_pad*16 + c_in]
#   conv2/relu output    : (14, 448)           [h, w*32 + c_out]
#   pooled2 (fc input)   : (7, 224)            [h, w*32 + c]
# Conv = sum_i  A_pad[i:i+H, :] @ G[i]   (G[i] = banded/block weight matrix)
# Pool = (even/odd row-select matmuls -> max) then
#        (adjacent column-block max    -> even-block select matmul)

def _cnn_kernel(x_ref, g1_ref, b1_ref, g2_ref, b2_ref,
                she1_ref, sho1_ref, sw1_ref,
                she2_ref, sho2_ref, sw2_ref,
                w3_ref, b3_ref,
                out_ref, pad1_ref, pad2_ref):
    f32 = jnp.float32

    # Zero the padded-activation scratch buffers (the zero border is the
    # conv padding=2); interiors are overwritten per batch element below.
    pad1_ref[...] = jnp.zeros(pad1_ref.shape, f32)
    pad2_ref[...] = jnp.zeros(pad2_ref.shape, f32)

    B = x_ref.shape[0]
    for b in range(B):  # B=2, static unroll
        # ---------------- layer 1: Conv2d(1,16,5,pad=2) + ReLU --------------
        pad1_ref[b, 2:30, 2:30] = x_ref[b, 0]                    # (28, 28)
        acc1 = jnp.zeros((28, 448), f32)
        for i in range(5):
            acc1 = acc1 + jnp.dot(pad1_ref[b, i:i + 28, :],       # (28, 32)
                                  g1_ref[i],                      # (32, 448)
                                  preferred_element_type=f32)
        a1 = jnp.maximum(acc1 + b1_ref[...], 0.0)                 # (28, 448)

        # ---------------- MaxPool2d(2) --------------------------------------
        rows_e = jnp.dot(she1_ref[...], a1, preferred_element_type=f32)  # (14,448)
        rows_o = jnp.dot(sho1_ref[...], a1, preferred_element_type=f32)
        mh = jnp.maximum(rows_e, rows_o)                          # max over h-pairs
        mw = jnp.maximum(mh[:, 0:432], mh[:, 16:448])             # max over w-pairs
        pooled1 = jnp.dot(mw, sw1_ref[...],                       # (14, 224)
                          preferred_element_type=f32)

        # ---------------- layer 2: Conv2d(16,32,5,pad=2) + ReLU -------------
        pad2_ref[b, 2:16, 32:256] = pooled1                       # interior write
        acc2 = jnp.zeros((14, 448), f32)
        for i in range(5):
            acc2 = acc2 + jnp.dot(pad2_ref[b, i:i + 14, :],       # (14, 288)
                                  g2_ref[i],                      # (288, 448)
                                  preferred_element_type=f32)
        a2 = jnp.maximum(acc2 + b2_ref[...], 0.0)                 # (14, 448)

        # ---------------- MaxPool2d(2) --------------------------------------
        rows_e2 = jnp.dot(she2_ref[...], a2, preferred_element_type=f32)  # (7,448)
        rows_o2 = jnp.dot(sho2_ref[...], a2, preferred_element_type=f32)
        mh2 = jnp.maximum(rows_e2, rows_o2)
        mw2 = jnp.maximum(mh2[:, 0:416], mh2[:, 32:448])
        pooled2 = jnp.dot(mw2, sw2_ref[...],                      # (7, 224)
                          preferred_element_type=f32)

        # ---------------- fc: Linear(32*7*7 -> 10) --------------------------
        acc = b3_ref[...]                                         # (1, 10)
        for h in range(7):
            acc = acc + jnp.dot(pooled2[h:h + 1, :],              # (1, 224)
                                w3_ref[h],                        # (224, 10)
                                preferred_element_type=f32)
        out_ref[b:b + 1, :] = acc


def cnn_forward(x, prep):
    """Fused CNN forward.  `prep` = prepare_params(params) (one-time packing)."""
    (g1, b1t, g2, b2t, she1, sho1, sw1, she2, sho2, sw2, w3r, b3v) = prep
    B = x.shape[0]
    vmem = pl.BlockSpec(memory_space=pltpu.MemorySpace.VMEM)
    return pl.pallas_call(
        _cnn_kernel,
        out_shape=jax.ShapeDtypeStruct((B, 10), jnp.float32),
        in_specs=[vmem] * 13,
        out_specs=vmem,
        scratch_shapes=[
            pltpu.VMEM((B, 32, 32), jnp.float32),    # padded layer-1 input
            pltpu.VMEM((B, 18, 288), jnp.float32),   # padded layer-2 input
        ],
    )(x, g1, b1t, g2, b2t, she1, sho1, sw1, she2, sho2, sw2, w3r, b3v)


# ---------------------------------------------------------------------------
# One-time parameter packing (hoisted off the per-forward path)
# ---------------------------------------------------------------------------
def prepare_params(params):
    w1, b1, w2, b2, w3, b3 = params
    f32 = jnp.float32

    # conv1 banded matrices: g1[i, wp, w*16+co] = w1[co, 0, i, wp-w], 0<=wp-w<5
    w1a = jnp.transpose(w1[:, 0, :, :], (1, 2, 0)).astype(f32)      # (5,5,16) [i,j,co]
    wp = jnp.arange(32)
    wc = jnp.arange(28)
    joff = wp[:, None] - wc[None, :]                                # (32,28)
    valid = (joff >= 0) & (joff <= 4)
    jc = jnp.clip(joff, 0, 4)
    g1 = jnp.where(valid[None, :, :, None], w1a[:, jc, :], 0.0)     # (5,32,28,16)
    g1 = g1.reshape(5, 32, 28 * 16)

    # conv2 banded matrices: g2[i, wp*16+ci, w*32+co] = w2[co, ci, i, wp-w]
    w2a = jnp.transpose(w2, (2, 3, 1, 0)).astype(f32)               # (5,5,16,32) [i,j,ci,co]
    wp2 = jnp.arange(18)
    wc2 = jnp.arange(14)
    joff2 = wp2[:, None] - wc2[None, :]                             # (18,14)
    valid2 = (joff2 >= 0) & (joff2 <= 4)
    jc2 = jnp.clip(joff2, 0, 4)
    g2 = jnp.where(valid2[None, :, :, None, None], w2a[:, jc2, :, :], 0.0)  # (5,18,14,16,32)
    g2 = jnp.transpose(g2, (0, 1, 3, 2, 4)).reshape(5, 18 * 16, 14 * 32)

    # biases tiled over the flattened (w, c) column axis
    b1t = jnp.tile(b1.astype(f32), 28).reshape(1, 448)
    b2t = jnp.tile(b2.astype(f32), 14).reshape(1, 448)

    # max-pool helpers (exact 0/1 selection matrices)
    def row_select(n_out, n_in, offset):
        return (jnp.arange(n_in)[None, :]
                == (2 * jnp.arange(n_out)[:, None] + offset)).astype(f32)

    she1, sho1 = row_select(14, 28, 0), row_select(14, 28, 1)       # (14,28)
    she2, sho2 = row_select(7, 14, 0), row_select(7, 14, 1)         # (7,14)

    def col_block_select(n_w_in, n_w_out, blk):
        r = jnp.arange(n_w_in * blk)
        q = jnp.arange(n_w_out * blk)
        return (((r[:, None] // blk) == 2 * (q[None, :] // blk))
                & ((r[:, None] % blk) == (q[None, :] % blk))).astype(f32)

    sw1 = col_block_select(27, 14, 16)                              # (432,224)
    sw2 = col_block_select(13, 7, 32)                               # (416,224)

    # fc weights permuted to the internal (h, w*32+c) flatten order
    w3r = (w3.astype(f32).reshape(10, 32, 7, 7)
           .transpose(2, 3, 1, 0).reshape(7, 224, 10))
    b3v = b3.astype(f32).reshape(1, 10)

    return (g1, b1t, g2, b2t, she1, sho1, sw1, she2, sho2, sw2, w3r, b3v)


# ---------------------------------------------------------------------------
# Reference (pure JAX / XLA) and parameter init
# ---------------------------------------------------------------------------
def cnn_reference(x, params):
    w1, b1, w2, b2, w3, b3 = params
    dn = ("NCHW", "OIHW", "NCHW")
    y = jax.lax.conv_general_dilated(x, w1, (1, 1), ((2, 2), (2, 2)),
                                     dimension_numbers=dn)
    y = jax.nn.relu(y + b1[None, :, None, None])
    y = jax.lax.reduce_window(y, -jnp.inf, jax.lax.max,
                              (1, 1, 2, 2), (1, 1, 2, 2), "VALID")
    y = jax.lax.conv_general_dilated(y, w2, (1, 1), ((2, 2), (2, 2)),
                                     dimension_numbers=dn)
    y = jax.nn.relu(y + b2[None, :, None, None])
    y = jax.lax.reduce_window(y, -jnp.inf, jax.lax.max,
                              (1, 1, 2, 2), (1, 1, 2, 2), "VALID")
    y = y.reshape(y.shape[0], -1)
    return y @ w3.T + b3[None, :]


def init_params(key):
    k1, k2, k3, k4, k5, k6 = jax.random.split(key, 6)
    w1 = jax.random.normal(k1, (16, 1, 5, 5), jnp.float32) * 0.1
    b1 = jax.random.normal(k2, (16,), jnp.float32) * 0.1
    w2 = jax.random.normal(k3, (32, 16, 5, 5), jnp.float32) * 0.05
    b2 = jax.random.normal(k4, (32,), jnp.float32) * 0.05
    w3 = jax.random.normal(k5, (10, 32 * 7 * 7), jnp.float32) * 0.02
    b3 = jax.random.normal(k6, (10,), jnp.float32) * 0.02
    return (w1, b1, w2, b2, w3, b3)


if __name__ == "__main__":
    key = jax.random.PRNGKey(0)
    kx, kp = jax.random.split(key)
    # Input implied by the module: (B, 1, 28, 28) so that flatten -> 32*7*7.
    x = jax.random.normal(kx, (2, 1, 28, 28), jnp.float32)
    params = init_params(kp)

    prep = prepare_params(params)          # one-time weight packing
    fwd = jax.jit(cnn_forward)
    out = jax.block_until_ready(fwd(x, prep))

    assert out.shape == (2, 10) and out.dtype == jnp.float32

    # Sanity check against a plain-XLA reference (loose tol: MXU rounding).
    ref = cnn_reference(x, params)
    max_err = float(jnp.max(jnp.abs(out - ref)))
    assert max_err < 5e-2, f"mismatch vs reference: max |err| = {max_err}"

    print("KERNEL_OK")
</pallas_src>

<mosaic_0001>
module attributes {stable_mosaic.version = 11 : i64} {
  func.func @_cnn_kernel(%arg0: memref<2x1x28x28xf32, #tpu.memory_space<vmem>>, %arg1: memref<5x32x448xf32, #tpu.memory_space<vmem>>, %arg2: memref<1x448xf32, #tpu.memory_space<vmem>>, %arg3: memref<5x288x448xf32, #tpu.memory_space<vmem>>, %arg4: memref<1x448xf32, #tpu.memory_space<vmem>>, %arg5: memref<14x28xf32, #tpu.memory_space<vmem>>, %arg6: memref<14x28xf32, #tpu.memory_space<vmem>>, %arg7: memref<432x224xf32, #tpu.memory_space<vmem>>, %arg8: memref<7x14xf32, #tpu.memory_space<vmem>>, %arg9: memref<7x14xf32, #tpu.memory_space<vmem>>, %arg10: memref<416x224xf32, #tpu.memory_space<vmem>>, %arg11: memref<7x224x10xf32, #tpu.memory_space<vmem>>, %arg12: memref<1x10xf32, #tpu.memory_space<vmem>>, %arg13: memref<2x10xf32, #tpu.memory_space<vmem>>, %arg14: memref<2x32x32xf32, #tpu.memory_space<vmem>>, %arg15: memref<2x18x288xf32, #tpu.memory_space<vmem>>) attributes {dimension_semantics = [], scalar_prefetch = 0 : i64, scratch_operands = 2 : i64, tpu.core_type = #tpu.core_type<tc>} {
    %cst = arith.constant 0.000000e+00 : f32
    %0 = vector.broadcast %cst : f32 to vector<2x32x32xf32>
    %c0 = arith.constant 0 : index
    %c0_0 = arith.constant 0 : index
    %c0_1 = arith.constant 0 : index
    %1 = vector.load %arg14[%c0, %c0_0, %c0_1] : memref<2x32x32xf32, #tpu.memory_space<vmem>>, vector<2x32x32xf32>
    tpu.vector_store %arg14[%c0, %c0_0, %c0_1], %0 {strides = array<i32>} : memref<2x32x32xf32, #tpu.memory_space<vmem>>, vector<2x32x32xf32>,
    %cst_2 = arith.constant 0.000000e+00 : f32
    %2 = vector.broadcast %cst_2 : f32 to vector<2x18x288xf32>
    %c0_3 = arith.constant 0 : index
    %c0_4 = arith.constant 0 : index
    %c0_5 = arith.constant 0 : index
    %3 = vector.load %arg15[%c0_3, %c0_4, %c0_5] : memref<2x18x288xf32, #tpu.memory_space<vmem>>, vector<2x18x288xf32>
    tpu.vector_store %arg15[%c0_3, %c0_4, %c0_5], %2 {strides = array<i32>} : memref<2x18x288xf32, #tpu.memory_space<vmem>>, vector<2x18x288xf32>,
    %c0_6 = arith.constant 0 : index
    %c0_7 = arith.constant 0 : index
    %c0_8 = arith.constant 0 : index
    %c0_9 = arith.constant 0 : index
    %4 = vector.load %arg0[%c0_6, %c0_7, %c0_8, %c0_9] : memref<2x1x28x28xf32, #tpu.memory_space<vmem>>, vector<1x1x28x28xf32>
    %5 = vector.shape_cast %4 : vector<1x1x28x28xf32> to vector<28x28xf32>
    %c0_10 = arith.constant 0 : index
    %c2 = arith.constant 2 : index
    %c2_11 = arith.constant 2 : index
    %6 = vector.load %arg14[%c0_10, %c2, %c2_11] : memref<2x32x32xf32, #tpu.memory_space<vmem>>, vector<1x28x28xf32>
    %7 = vector.shape_cast %6 : vector<1x28x28xf32> to vector<28x28xf32>
    %8 = vector.shape_cast %5 : vector<28x28xf32> to vector<1x28x28xf32>
    tpu.vector_store %arg14[%c0_10, %c2, %c2_11], %8 {strides = array<i32>} : memref<2x32x32xf32, #tpu.memory_space<vmem>>, vector<1x28x28xf32>,
    %cst_12 = arith.constant 0.000000e+00 : f32
    %9 = vector.broadcast %cst_12 : f32 to vector<28x448xf32>
    %c0_13 = arith.constant 0 : index
    %c0_14 = arith.constant 0 : index
    %c0_15 = arith.constant 0 : index
    %10 = vector.load %arg14[%c0_13, %c0_14, %c0_15] : memref<2x32x32xf32, #tpu.memory_space<vmem>>, vector<1x28x32xf32>
    %11 = vector.shape_cast %10 : vector<1x28x32xf32> to vector<28x32xf32>
    %c0_16 = arith.constant 0 : index
    %c0_17 = arith.constant 0 : index
    %c0_18 = arith.constant 0 : index
    %12 = vector.load %arg1[%c0_16, %c0_17, %c0_18] : memref<5x32x448xf32, #tpu.memory_space<vmem>>, vector<1x32x448xf32>
    %13 = vector.shape_cast %12 : vector<1x32x448xf32> to vector<32x448xf32>
    %cst_19 = arith.constant dense<0.000000e+00> : vector<28x448xf32>
    %14 = tpu.matmul %11, %13, %cst_19 {dimension_numbers = #tpu.dot_dimension_numbers<[1], [0], [0], [1], [0, 0, 1, 1], [], []>} : vector<28x32xf32>, vector<32x448xf32>, vector<28x448xf32> -> vector<28x448xf32>
    %15 = arith.addf %9, %14 : vector<28x448xf32>
    %c0_20 = arith.constant 0 : index
    %c1 = arith.constant 1 : index
    %c0_21 = arith.constant 0 : index
    %16 = vector.load %arg14[%c0_20, %c1, %c0_21] : memref<2x32x32xf32, #tpu.memory_space<vmem>>, vector<1x28x32xf32>
    %17 = vector.shape_cast %16 : vector<1x28x32xf32> to vector<28x32xf32>
    %c1_22 = arith.constant 1 : index
    %c0_23 = arith.constant 0 : index
    %c0_24 = arith.constant 0 : index
    %18 = vector.load %arg1[%c1_22, %c0_23, %c0_24] : memref<5x32x448xf32, #tpu.memory_space<vmem>>, vector<1x32x448xf32>
    %19 = vector.shape_cast %18 : vector<1x32x448xf32> to vector<32x448xf32>
    %cst_25 = arith.constant dense<0.000000e+00> : vector<28x448xf32>
    %20 = tpu.matmul %17, %19, %cst_25 {dimension_numbers = #tpu.dot_dimension_numbers<[1], [0], [0], [1], [0, 0, 1, 1], [], []>} : vector<28x32xf32>, vector<32x448xf32>, vector<28x448xf32> -> vector<28x448xf32>
    %21 = arith.addf %15, %20 : vector<28x448xf32>
    %c0_26 = arith.constant 0 : index
    %c2_27 = arith.constant 2 : index
    %c0_28 = arith.constant 0 : index
    %22 = vector.load %arg14[%c0_26, %c2_27, %c0_28] : memref<2x32x32xf32, #tpu.memory_space<vmem>>, vector<1x28x32xf32>
    %23 = vector.shape_cast %22 : vector<1x28x32xf32> to vector<28x32xf32>
    %c2_29 = arith.constant 2 : index
    %c0_30 = arith.constant 0 : index
    %c0_31 = arith.constant 0 : index
    %24 = vector.load %arg1[%c2_29, %c0_30, %c0_31] : memref<5x32x448xf32, #tpu.memory_space<vmem>>, vector<1x32x448xf32>
    %25 = vector.shape_cast %24 : vector<1x32x448xf32> to vector<32x448xf32>
    %cst_32 = arith.constant dense<0.000000e+00> : vector<28x448xf32>
    %26 = tpu.matmul %23, %25, %cst_32 {dimension_numbers = #tpu.dot_dimension_numbers<[1], [0], [0], [1], [0, 0, 1, 1], [], []>} : vector<28x32xf32>, vector<32x448xf32>, vector<28x448xf32> -> vector<28x448xf32>
    %27 = arith.addf %21, %26 : vector<28x448xf32>
    %c0_33 = arith.constant 0 : index
    %c3 = arith.constant 3 : index
    %c0_34 = arith.constant 0 : index
    %28 = vector.load %arg14[%c0_33, %c3, %c0_34] : memref<2x32x32xf32, #tpu.memory_space<vmem>>, vector<1x28x32xf32>
    %29 = vector.shape_cast %28 : vector<1x28x32xf32> to vector<28x32xf32>
    %c3_35 = arith.constant 3 : index
    %c0_36 = arith.constant 0 : index
    %c0_37 = arith.constant 0 : index
    %30 = vector.load %arg1[%c3_35, %c0_36, %c0_37] : memref<5x32x448xf32, #tpu.memory_space<vmem>>, vector<1x32x448xf32>
    %31 = vector.shape_cast %30 : vector<1x32x448xf32> to vector<32x448xf32>
    %cst_38 = arith.constant dense<0.000000e+00> : vector<28x448xf32>
    %32 = tpu.matmul %29, %31, %cst_38 {dimension_numbers = #tpu.dot_dimension_numbers<[1], [0], [0], [1], [0, 0, 1, 1], [], []>} : vector<28x32xf32>, vector<32x448xf32>, vector<28x448xf32> -> vector<28x448xf32>
    %33 = arith.addf %27, %32 : vector<28x448xf32>
    %c0_39 = arith.constant 0 : index
    %c4 = arith.constant 4 : index
    %c0_40 = arith.constant 0 : index
    %34 = vector.load %arg14[%c0_39, %c4, %c0_40] : memref<2x32x32xf32, #tpu.memory_space<vmem>>, vector<1x28x32xf32>
    %35 = vector.shape_cast %34 : vector<1x28x32xf32> to vector<28x32xf32>
    %c4_41 = arith.constant 4 : index
    %c0_42 = arith.constant 0 : index
    %c0_43 = arith.constant 0 : index
    %36 = vector.load %arg1[%c4_41, %c0_42, %c0_43] : memref<5x32x448xf32, #tpu.memory_space<vmem>>, vector<1x32x448xf32>
    %37 = vector.shape_cast %36 : vector<1x32x448xf32> to vector<32x448xf32>
    %cst_44 = arith.constant dense<0.000000e+00> : vector<28x448xf32>
    %38 = tpu.matmul %35, %37, %cst_44 {dimension_numbers = #tpu.dot_dimension_numbers<[1], [0], [0], [1], [0, 0, 1, 1], [], []>} : vector<28x32xf32>, vector<32x448xf32>, vector<28x448xf32> -> vector<28x448xf32>
    %39 = arith.addf %33, %38 : vector<28x448xf32>
    %c0_45 = arith.constant 0 : index
    %c0_46 = arith.constant 0 : index
    %40 = vector.load %arg2[%c0_45, %c0_46] : memref<1x448xf32, #tpu.memory_space<vmem>>, vector<1x448xf32>
    %41 = vector.broadcast %40 : vector<1x448xf32> to vector<28x448xf32>
    %42 = arith.addf %39, %41 : vector<28x448xf32>
    %cst_47 = arith.constant 0.000000e+00 : f32
    %43 = vector.broadcast %cst_47 : f32 to vector<28x448xf32>
    %44 = arith.maximumf %42, %43 : vector<28x448xf32>
    %c0_48 = arith.constant 0 : index
    %c0_49 = arith.constant 0 : index
    %45 = vector.load %arg5[%c0_48, %c0_49] : memref<14x28xf32, #tpu.memory_space<vmem>>, vector<14x28xf32>
    %cst_50 = arith.constant dense<0.000000e+00> : vector<14x448xf32>
    %46 = tpu.matmul %45, %44, %cst_50 {dimension_numbers = #tpu.dot_dimension_numbers<[1], [0], [0], [1], [0, 0, 1, 1], [], []>} : vector<14x28xf32>, vector<28x448xf32>, vector<14x448xf32> -> vector<14x448xf32>
    %c0_51 = arith.constant 0 : index
    %c0_52 = arith.constant 0 : index
    %47 = vector.load %arg6[%c0_51, %c0_52] : memref<14x28xf32, #tpu.memory_space<vmem>>, vector<14x28xf32>
    %cst_53 = arith.constant dense<0.000000e+00> : vector<14x448xf32>
    %48 = tpu.matmul %47, %44, %cst_53 {dimension_numbers = #tpu.dot_dimension_numbers<[1], [0], [0], [1], [0, 0, 1, 1], [], []>} : vector<14x28xf32>, vector<28x448xf32>, vector<14x448xf32> -> vector<14x448xf32>
    %49 = arith.maximumf %46, %48 : vector<14x448xf32>
    %50 = vector.extract_strided_slice %49 {offsets = [0, 0], sizes = [14, 432], strides = [1, 1]} : vector<14x448xf32> to vector<14x432xf32>
    %51 = vector.extract_strided_slice %49 {offsets = [0, 16], sizes = [14, 432], strides = [1, 1]} : vector<14x448xf32> to vector<14x432xf32>
    %52 = arith.maximumf %50, %51 : vector<14x432xf32>
    %c0_54 = arith.constant 0 : index
    %c0_55 = arith.constant 0 : index
    %53 = vector.load %arg7[%c0_54, %c0_55] : memref<432x224xf32, #tpu.memory_space<vmem>>, vector<432x224xf32>
    %cst_56 = arith.constant dense<0.000000e+00> : vector<14x224xf32>
    %54 = tpu.matmul %52, %53, %cst_56 {dimension_numbers = #tpu.dot_dimension_numbers<[1], [0], [0], [1], [0, 0, 1, 1], [], []>} : vector<14x432xf32>, vector<432x224xf32>, vector<14x224xf32> -> vector<14x224xf32>
    %c0_57 = arith.constant 0 : index
    %c2_58 = arith.constant 2 : index
    %c32 = arith.constant 32 : index
    %55 = vector.load %arg15[%c0_57, %c2_58, %c32] : memref<2x18x288xf32, #tpu.memory_space<vmem>>, vector<1x14x224xf32>
    %56 = vector.shape_cast %55 : vector<1x14x224xf32> to vector<14x224xf32>
    %57 = vector.shape_cast %54 : vector<14x224xf32> to vector<1x14x224xf32>
    tpu.vector_store %arg15[%c0_57, %c2_58, %c32], %57 {strides = array<i32>} : memref<2x18x288xf32, #tpu.memory_space<vmem>>, vector<1x14x224xf32>,
    %cst_59 = arith.constant 0.000000e+00 : f32
    %58 = vector.broadcast %cst_59 : f32 to vector<14x448xf32>
    %c0_60 = arith.constant 0 : index
    %c0_61 = arith.constant 0 : index
    %c0_62 = arith.constant 0 : index
    %59 = vector.load %arg15[%c0_60, %c0_61, %c0_62] : memref<2x18x288xf32, #tpu.memory_space<vmem>>, vector<1x14x288xf32>
    %60 = vector.shape_cast %59 : vector<1x14x288xf32> to vector<14x288xf32>
    %c0_63 = arith.constant 0 : index
    %c0_64 = arith.constant 0 : index
    %c0_65 = arith.constant 0 : index
    %61 = vector.load %arg3[%c0_63, %c0_64, %c0_65] : memref<5x288x448xf32, #tpu.memory_space<vmem>>, vector<1x288x448xf32>
    %62 = vector.shape_cast %61 : vector<1x288x448xf32> to vector<288x448xf32>
    %cst_66 = arith.constant dense<0.000000e+00> : vector<14x448xf32>
    %63 = tpu.matmul %60, %62, %cst_66 {dimension_numbers = #tpu.dot_dimension_numbers<[1], [0], [0], [1], [0, 0, 1, 1], [], []>} : vector<14x288xf32>, vector<288x448xf32>, vector<14x448xf32> -> vector<14x448xf32>
    %64 = arith.addf %58, %63 : vector<14x448xf32>
    %c0_67 = arith.constant 0 : index
    %c1_68 = arith.constant 1 : index
    %c0_69 = arith.constant 0 : index
    %65 = vector.load %arg15[%c0_67, %c1_68, %c0_69] : memref<2x18x288xf32, #tpu.memory_space<vmem>>, vector<1x14x288xf32>
    %66 = vector.shape_cast %65 : vector<1x14x288xf32> to vector<14x288xf32>
    %c1_70 = arith.constant 1 : index
    %c0_71 = arith.constant 0 : index
    %c0_72 = arith.constant 0 : index
    %67 = vector.load %arg3[%c1_70, %c0_71, %c0_72] : memref<5x288x448xf32, #tpu.memory_space<vmem>>, vector<1x288x448xf32>
    %68 = vector.shape_cast %67 : vector<1x288x448xf32> to vector<288x448xf32>
    %cst_73 = arith.constant dense<0.000000e+00> : vector<14x448xf32>
    %69 = tpu.matmul %66, %68, %cst_73 {dimension_numbers = #tpu.dot_dimension_numbers<[1], [0], [0], [1], [0, 0, 1, 1], [], []>} : vector<14x288xf32>, vector<288x448xf32>, vector<14x448xf32> -> vector<14x448xf32>
    %70 = arith.addf %64, %69 : vector<14x448xf32>
    %c0_74 = arith.constant 0 : index
    %c2_75 = arith.constant 2 : index
    %c0_76 = arith.constant 0 : index
    %71 = vector.load %arg15[%c0_74, %c2_75, %c0_76] : memref<2x18x288xf32, #tpu.memory_space<vmem>>, vector<1x14x288xf32>
    %72 = vector.shape_cast %71 : vector<1x14x288xf32> to vector<14x288xf32>
    %c2_77 = arith.constant 2 : index
    %c0_78 = arith.constant 0 : index
    %c0_79 = arith.constant 0 : index
    %73 = vector.load %arg3[%c2_77, %c0_78, %c0_79] : memref<5x288x448xf32, #tpu.memory_space<vmem>>, vector<1x288x448xf32>
    %74 = vector.shape_cast %73 : vector<1x288x448xf32> to vector<288x448xf32>
    %cst_80 = arith.constant dense<0.000000e+00> : vector<14x448xf32>
    %75 = tpu.matmul %72, %74, %cst_80 {dimension_numbers = #tpu.dot_dimension_numbers<[1], [0], [0], [1], [0, 0, 1, 1], [], []>} : vector<14x288xf32>, vector<288x448xf32>, vector<14x448xf32> -> vector<14x448xf32>
    %76 = arith.addf %70, %75 : vector<14x448xf32>
    %c0_81 = arith.constant 0 : index
    %c3_82 = arith.constant 3 : index
    %c0_83 = arith.constant 0 : index
    %77 = vector.load %arg15[%c0_81, %c3_82, %c0_83] : memref<2x18x288xf32, #tpu.memory_space<vmem>>, vector<1x14x288xf32>
    %78 = vector.shape_cast %77 : vector<1x14x288xf32> to vector<14x288xf32>
    %c3_84 = arith.constant 3 : index
    %c0_85 = arith.constant 0 : index
    %c0_86 = arith.constant 0 : index
    %79 = vector.load %arg3[%c3_84, %c0_85, %c0_86] : memref<5x288x448xf32, #tpu.memory_space<vmem>>, vector<1x288x448xf32>
    %80 = vector.shape_cast %79 : vector<1x288x448xf32> to vector<288x448xf32>
    %cst_87 = arith.constant dense<0.000000e+00> : vector<14x448xf32>
    %81 = tpu.matmul %78, %80, %cst_87 {dimension_numbers = #tpu.dot_dimension_numbers<[1], [0], [0], [1], [0, 0, 1, 1], [], []>} : vector<14x288xf32>, vector<288x448xf32>, vector<14x448xf32> -> vector<14x448xf32>
    %82 = arith.addf %76, %81 : vector<14x448xf32>
    %c0_88 = arith.constant 0 : index
    %c4_89 = arith.constant 4 : index
    %c0_90 = arith.constant 0 : index
    %83 = vector.load %arg15[%c0_88, %c4_89, %c0_90] : memref<2x18x288xf32, #tpu.memory_space<vmem>>, vector<1x14x288xf32>
    %84 = vector.shape_cast %83 : vector<1x14x288xf32> to vector<14x288xf32>
    %c4_91 = arith.constant 4 : index
    %c0_92 = arith.constant 0 : index
    %c0_93 = arith.constant 0 : index
    %85 = vector.load %arg3[%c4_91, %c0_92, %c0_93] : memref<5x288x448xf32, #tpu.memory_space<vmem>>, vector<1x288x448xf32>
    %86 = vector.shape_cast %85 : vector<1x288x448xf32> to vector<288x448xf32>
    %cst_94 = arith.constant dense<0.000000e+00> : vector<14x448xf32>
    %87 = tpu.matmul %84, %86, %cst_94 {dimension_numbers = #tpu.dot_dimension_numbers<[1], [0], [0], [1], [0, 0, 1, 1], [], []>} : vector<14x288xf32>, vector<288x448xf32>, vector<14x448xf32> -> vector<14x448xf32>
    %88 = arith.addf %82, %87 : vector<14x448xf32>
    %c0_95 = arith.constant 0 : index
    %c0_96 = arith.constant 0 : index
    %89 = vector.load %arg4[%c0_95, %c0_96] : memref<1x448xf32, #tpu.memory_space<vmem>>, vector<1x448xf32>
    %90 = vector.broadcast %89 : vector<1x448xf32> to vector<14x448xf32>
    %91 = arith.addf %88, %90 : vector<14x448xf32>
    %cst_97 = arith.constant 0.000000e+00 : f32
    %92 = vector.broadcast %cst_97 : f32 to vector<14x448xf32>
    %93 = arith.maximumf %91, %92 : vector<14x448xf32>
    %c0_98 = arith.constant 0 : index
    %c0_99 = arith.constant 0 : index
    %94 = vector.load %arg8[%c0_98, %c0_99] : memref<7x14xf32, #tpu.memory_space<vmem>>, vector<7x14xf32>
    %cst_100 = arith.constant dense<0.000000e+00> : vector<7x448xf32>
    %95 = tpu.matmul %94, %93, %cst_100 {dimension_numbers = #tpu.dot_dimension_numbers<[1], [0], [0], [1], [0, 0, 1, 1], [], []>} : vector<7x14xf32>, vector<14x448xf32>, vector<7x448xf32> -> vector<7x448xf32>
    %c0_101 = arith.constant 0 : index
    %c0_102 = arith.constant 0 : index
    %96 = vector.load %arg9[%c0_101, %c0_102] : memref<7x14xf32, #tpu.memory_space<vmem>>, vector<7x14xf32>
    %cst_103 = arith.constant dense<0.000000e+00> : vector<7x448xf32>
    %97 = tpu.matmul %96, %93, %cst_103 {dimension_numbers = #tpu.dot_dimension_numbers<[1], [0], [0], [1], [0, 0, 1, 1], [], []>} : vector<7x14xf32>, vector<14x448xf32>, vector<7x448xf32> -> vector<7x448xf32>
    %98 = arith.maximumf %95, %97 : vector<7x448xf32>
    %99 = vector.extract_strided_slice %98 {offsets = [0, 0], sizes = [7, 416], strides = [1, 1]} : vector<7x448xf32> to vector<7x416xf32>
    %100 = vector.extract_strided_slice %98 {offsets = [0, 32], sizes = [7, 416], strides = [1, 1]} : vector<7x448xf32> to vector<7x416xf32>
    %101 = arith.maximumf %99, %100 : vector<7x416xf32>
    %c0_104 = arith.constant 0 : index
    %c0_105 = arith.constant 0 : index
    %102 = vector.load %arg10[%c0_104, %c0_105] : memref<416x224xf32, #tpu.memory_space<vmem>>, vector<416x224xf32>
    %cst_106 = arith.constant dense<0.000000e+00> : vector<7x224xf32>
    %103 = tpu.matmul %101, %102, %cst_106 {dimension_numbers = #tpu.dot_dimension_numbers<[1], [0], [0], [1], [0, 0, 1, 1], [], []>} : vector<7x416xf32>, vector<416x224xf32>, vector<7x224xf32> -> vector<7x224xf32>
    %c0_107 = arith.constant 0 : index
    %c0_108 = arith.constant 0 : index
    %104 = vector.load %arg12[%c0_107, %c0_108] : memref<1x10xf32, #tpu.memory_space<vmem>>, vector<1x10xf32>
    %105 = vector.extract_strided_slice %103 {offsets = [0, 0], sizes = [1, 224], strides = [1, 1]} : vector<7x224xf32> to vector<1x224xf32>
    %c0_109 = arith.constant 0 : index
    %c0_110 = arith.constant 0 : index
    %c0_111 = arith.constant 0 : index
    %106 = vector.load %arg11[%c0_109, %c0_110, %c0_111] : memref<7x224x10xf32, #tpu.memory_space<vmem>>, vector<1x224x10xf32>
    %107 = vector.shape_cast %106 : vector<1x224x10xf32> to vector<224x10xf32>
    %cst_112 = arith.constant dense<0.000000e+00> : vector<1x10xf32>
    %108 = tpu.matmul %105, %107, %cst_112 {dimension_numbers = #tpu.dot_dimension_numbers<[1], [0], [0], [1], [0, 0, 1, 1], [], []>} : vector<1x224xf32>, vector<224x10xf32>, vector<1x10xf32> -> vector<1x10xf32>
    %109 = arith.addf %104, %108 : vector<1x10xf32>
    %110 = vector.extract_strided_slice %103 {offsets = [1, 0], sizes = [1, 224], strides = [1, 1]} : vector<7x224xf32> to vector<1x224xf32>
    %c1_113 = arith.constant 1 : index
    %c0_114 = arith.constant 0 : index
    %c0_115 = arith.constant 0 : index
    %111 = vector.load %arg11[%c1_113, %c0_114, %c0_115] : memref<7x224x10xf32, #tpu.memory_space<vmem>>, vector<1x224x10xf32>
    %112 = vector.shape_cast %111 : vector<1x224x10xf32> to vector<224x10xf32>
    %cst_116 = arith.constant dense<0.000000e+00> : vector<1x10xf32>
    %113 = tpu.matmul %110, %112, %cst_116 {dimension_numbers = #tpu.dot_dimension_numbers<[1], [0], [0], [1], [0, 0, 1, 1], [], []>} : vector<1x224xf32>, vector<224x10xf32>, vector<1x10xf32> -> vector<1x10xf32>
    %114 = arith.addf %109, %113 : vector<1x10xf32>
    %115 = vector.extract_strided_slice %103 {offsets = [2, 0], sizes = [1, 224], strides = [1, 1]} : vector<7x224xf32> to vector<1x224xf32>
    %c2_117 = arith.constant 2 : index
    %c0_118 = arith.constant 0 : index
    %c0_119 = arith.constant 0 : index
    %116 = vector.load %arg11[%c2_117, %c0_118, %c0_119] : memref<7x224x10xf32, #tpu.memory_space<vmem>>, vector<1x224x10xf32>
    %117 = vector.shape_cast %116 : vector<1x224x10xf32> to vector<224x10xf32>
    %cst_120 = arith.constant dense<0.000000e+00> : vector<1x10xf32>
    %118 = tpu.matmul %115, %117, %cst_120 {dimension_numbers = #tpu.dot_dimension_numbers<[1], [0], [0], [1], [0, 0, 1, 1], [], []>} : vector<1x224xf32>, vector<224x10xf32>, vector<1x10xf32> -> vector<1x10xf32>
    %119 = arith.addf %114, %118 : vector<1x10xf32>
    %120 = vector.extract_strided_slice %103 {offsets = [3, 0], sizes = [1, 224], strides = [1, 1]} : vector<7x224xf32> to vector<1x224xf32>
    %c3_121 = arith.constant 3 : index
    %c0_122 = arith.constant 0 : index
    %c0_123 = arith.constant 0 : index
    %121 = vector.load %arg11[%c3_121, %c0_122, %c0_123] : memref<7x224x10xf32, #tpu.memory_space<vmem>>, vector<1x224x10xf32>
    %122 = vector.shape_cast %121 : vector<1x224x10xf32> to vector<224x10xf32>
    %cst_124 = arith.constant dense<0.000000e+00> : vector<1x10xf32>
    %123 = tpu.matmul %120, %122, %cst_124 {dimension_numbers = #tpu.dot_dimension_numbers<[1], [0], [0], [1], [0, 0, 1, 1], [], []>} : vector<1x224xf32>, vector<224x10xf32>, vector<1x10xf32> -> vector<1x10xf32>
    %124 = arith.addf %119, %123 : vector<1x10xf32>
    %125 = vector.extract_strided_slice %103 {offsets = [4, 0], sizes = [1, 224], strides = [1, 1]} : vector<7x224xf32> to vector<1x224xf32>
    %c4_125 = arith.constant 4 : index
    %c0_126 = arith.constant 0 : index
    %c0_127 = arith.constant 0 : index
    %126 = vector.load %arg11[%c4_125, %c0_126, %c0_127] : memref<7x224x10xf32, #tpu.memory_space<vmem>>, vector<1x224x10xf32>
    %127 = vector.shape_cast %126 : vector<1x224x10xf32> to vector<224x10xf32>
    %cst_128 = arith.constant dense<0.000000e+00> : vector<1x10xf32>
    %128 = tpu.matmul %125, %127, %cst_128 {dimension_numbers = #tpu.dot_dimension_numbers<[1], [0], [0], [1], [0, 0, 1, 1], [], []>} : vector<1x224xf32>, vector<224x10xf32>, vector<1x10xf32> -> vector<1x10xf32>
    %129 = arith.addf %124, %128 : vector<1x10xf32>
    %130 = vector.extract_strided_slice %103 {offsets = [5, 0], sizes = [1, 224], strides = [1, 1]} : vector<7x224xf32> to vector<1x224xf32>
    %c5 = arith.constant 5 : index
    %c0_129 = arith.constant 0 : index
    %c0_130 = arith.constant 0 : index
    %131 = vector.load %arg11[%c5, %c0_129, %c0_130] : memref<7x224x10xf32, #tpu.memory_space<vmem>>, vector<1x224x10xf32>
    %132 = vector.shape_cast %131 : vector<1x224x10xf32> to vector<224x10xf32>
    %cst_131 = arith.constant dense<0.000000e+00> : vector<1x10xf32>
    %133 = tpu.matmul %130, %132, %cst_131 {dimension_numbers = #tpu.dot_dimension_numbers<[1], [0], [0], [1], [0, 0, 1, 1], [], []>} : vector<1x224xf32>, vector<224x10xf32>, vector<1x10xf32> -> vector<1x10xf32>
    %134 = arith.addf %129, %133 : vector<1x10xf32>
    %135 = vector.extract_strided_slice %103 {offsets = [6, 0], sizes = [1, 224], strides = [1, 1]} : vector<7x224xf32> to vector<1x224xf32>
    %c6 = arith.constant 6 : index
    %c0_132 = arith.constant 0 : index
    %c0_133 = arith.constant 0 : index
    %136 = vector.load %arg11[%c6, %c0_132, %c0_133] : memref<7x224x10xf32, #tpu.memory_space<vmem>>, vector<1x224x10xf32>
    %137 = vector.shape_cast %136 : vector<1x224x10xf32> to vector<224x10xf32>
    %cst_134 = arith.constant dense<0.000000e+00> : vector<1x10xf32>
    %138 = tpu.matmul %135, %137, %cst_134 {dimension_numbers = #tpu.dot_dimension_numbers<[1], [0], [0], [1], [0, 0, 1, 1], [], []>} : vector<1x224xf32>, vector<224x10xf32>, vector<1x10xf32> -> vector<1x10xf32>
    %139 = arith.addf %134, %138 : vector<1x10xf32>
    %c0_135 = arith.constant 0 : index
    %c0_136 = arith.constant 0 : index
    %140 = vector.load %arg13[%c0_135, %c0_136] : memref<2x10xf32, #tpu.memory_space<vmem>>, vector<1x10xf32>
    tpu.vector_store %arg13[%c0_135, %c0_136], %139 {strides = array<i32>} : memref<2x10xf32, #tpu.memory_space<vmem>>, vector<1x10xf32>,
    %c1_137 = arith.constant 1 : index
    %c0_138 = arith.constant 0 : index
    %c0_139 = arith.constant 0 : index
    %c0_140 = arith.constant 0 : index
    %141 = vector.load %arg0[%c1_137, %c0_138, %c0_139, %c0_140] : memref<2x1x28x28xf32, #tpu.memory_space<vmem>>, vector<1x1x28x28xf32>
    %142 = vector.shape_cast %141 : vector<1x1x28x28xf32> to vector<28x28xf32>
    %c1_141 = arith.constant 1 : index
    %c2_142 = arith.constant 2 : index
    %c2_143 = arith.constant 2 : index
    %143 = vector.load %arg14[%c1_141, %c2_142, %c2_143] : memref<2x32x32xf32, #tpu.memory_space<vmem>>, vector<1x28x28xf32>
    %144 = vector.shape_cast %143 : vector<1x28x28xf32> to vector<28x28xf32>
    %145 = vector.shape_cast %142 : vector<28x28xf32> to vector<1x28x28xf32>
    tpu.vector_store %arg14[%c1_141, %c2_142, %c2_143], %145 {strides = array<i32>} : memref<2x32x32xf32, #tpu.memory_space<vmem>>, vector<1x28x28xf32>,
    %cst_144 = arith.constant 0.000000e+00 : f32
    %146 = vector.broadcast %cst_144 : f32 to vector<28x448xf32>
    %c1_145 = arith.constant 1 : index
    %c0_146 = arith.constant 0 : index
    %c0_147 = arith.constant 0 : index
    %147 = vector.load %arg14[%c1_145, %c0_146, %c0_147] : memref<2x32x32xf32, #tpu.memory_space<vmem>>, vector<1x28x32xf32>
    %148 = vector.shape_cast %147 : vector<1x28x32xf32> to vector<28x32xf32>
    %c0_148 = arith.constant 0 : index
    %c0_149 = arith.constant 0 : index
    %c0_150 = arith.constant 0 : index
    %149 = vector.load %arg1[%c0_148, %c0_149, %c0_150] : memref<5x32x448xf32, #tpu.memory_space<vmem>>, vector<1x32x448xf32>
    %150 = vector.shape_cast %149 : vector<1x32x448xf32> to vector<32x448xf32>
    %cst_151 = arith.constant dense<0.000000e+00> : vector<28x448xf32>
    %151 = tpu.matmul %148, %150, %cst_151 {dimension_numbers = #tpu.dot_dimension_numbers<[1], [0], [0], [1], [0, 0, 1, 1], [], []>} : vector<28x32xf32>, vector<32x448xf32>, vector<28x448xf32> -> vector<28x448xf32>
    %152 = arith.addf %146, %151 : vector<28x448xf32>
    %c1_152 = arith.constant 1 : index
    %c1_153 = arith.constant 1 : index
    %c0_154 = arith.constant 0 : index
    %153 = vector.load %arg14[%c1_152, %c1_153, %c0_154] : memref<2x32x32xf32, #tpu.memory_space<vmem>>, vector<1x28x32xf32>
    %154 = vector.shape_cast %153 : vector<1x28x32xf32> to vector<28x32xf32>
    %c1_155 = arith.constant 1 : index
    %c0_156 = arith.constant 0 : index
    %c0_157 = arith.constant 0 : index
    %155 = vector.load %arg1[%c1_155, %c0_156, %c0_157] : memref<5x32x448xf32, #tpu.memory_space<vmem>>, vector<1x32x448xf32>
    %156 = vector.shape_cast %155 : vector<1x32x448xf32> to vector<32x448xf32>
    %cst_158 = arith.constant dense<0.000000e+00> : vector<28x448xf32>
    %157 = tpu.matmul %154, %156, %cst_158 {dimension_numbers = #tpu.dot_dimension_numbers<[1], [0], [0], [1], [0, 0, 1, 1], [], []>} : vector<28x32xf32>, vector<32x448xf32>, vector<28x448xf32> -> vector<28x448xf32>
    %158 = arith.addf %152, %157 : vector<28x448xf32>
    %c1_159 = arith.constant 1 : index
    %c2_160 = arith.constant 2 : index
    %c0_161 = arith.constant 0 : index
    %159 = vector.load %arg14[%c1_159, %c2_160, %c0_161] : memref<2x32x32xf32, #tpu.memory_space<vmem>>, vector<1x28x32xf32>
    %160 = vector.shape_cast %159 : vector<1x28x32xf32> to vector<28x32xf32>
    %c2_162 = arith.constant 2 : index
    %c0_163 = arith.constant 0 : index
    %c0_164 = arith.constant 0 : index
    %161 = vector.load %arg1[%c2_162, %c0_163, %c0_164] : memref<5x32x448xf32, #tpu.memory_space<vmem>>, vector<1x32x448xf32>
    %162 = vector.shape_cast %161 : vector<1x32x448xf32> to vector<32x448xf32>
    %cst_165 = arith.constant dense<0.000000e+00> : vector<28x448xf32>
    %163 = tpu.matmul %160, %162, %cst_165 {dimension_numbers = #tpu.dot_dimension_numbers<[1], [0], [0], [1], [0, 0, 1, 1], [], []>} : vector<28x32xf32>, vector<32x448xf32>, vector<28x448xf32> -> vector<28x448xf32>
    %164 = arith.addf %158, %163 : vector<28x448xf32>
    %c1_166 = arith.constant 1 : index
    %c3_167 = arith.constant 3 : index
    %c0_168 = arith.constant 0 : index
    %165 = vector.load %arg14[%c1_166, %c3_167, %c0_168] : memref<2x32x32xf32, #tpu.memory_space<vmem>>, vector<1x28x32xf32>
    %166 = vector.shape_cast %165 : vector<1x28x32xf32> to vector<28x32xf32>
    %c3_169 = arith.constant 3 : index
    %c0_170 = arith.constant 0 : index
    %c0_171 = arith.constant 0 : index
    %167 = vector.load %arg1[%c3_169, %c0_170, %c0_171] : memref<5x32x448xf32, #tpu.memory_space<vmem>>, vector<1x32x448xf32>
    %168 = vector.shape_cast %167 : vector<1x32x448xf32> to vector<32x448xf32>
    %cst_172 = arith.constant dense<0.000000e+00> : vector<28x448xf32>
    %169 = tpu.matmul %166, %168, %cst_172 {dimension_numbers = #tpu.dot_dimension_numbers<[1], [0], [0], [1], [0, 0, 1, 1], [], []>} : vector<28x32xf32>, vector<32x448xf32>, vector<28x448xf32> -> vector<28x448xf32>
    %170 = arith.addf %164, %169 : vector<28x448xf32>
    %c1_173 = arith.constant 1 : index
    %c4_174 = arith.constant 4 : index
    %c0_175 = arith.constant 0 : index
    %171 = vector.load %arg14[%c1_173, %c4_174, %c0_175] : memref<2x32x32xf32, #tpu.memory_space<vmem>>, vector<1x28x32xf32>
    %172 = vector.shape_cast %171 : vector<1x28x32xf32> to vector<28x32xf32>
    %c4_176 = arith.constant 4 : index
    %c0_177 = arith.constant 0 : index
    %c0_178 = arith.constant 0 : index
    %173 = vector.load %arg1[%c4_176, %c0_177, %c0_178] : memref<5x32x448xf32, #tpu.memory_space<vmem>>, vector<1x32x448xf32>
    %174 = vector.shape_cast %173 : vector<1x32x448xf32> to vector<32x448xf32>
    %cst_179 = arith.constant dense<0.000000e+00> : vector<28x448xf32>
    %175 = tpu.matmul %172, %174, %cst_179 {dimension_numbers = #tpu.dot_dimension_numbers<[1], [0], [0], [1], [0, 0, 1, 1], [], []>} : vector<28x32xf32>, vector<32x448xf32>, vector<28x448xf32> -> vector<28x448xf32>
    %176 = arith.addf %170, %175 : vector<28x448xf32>
    %c0_180 = arith.constant 0 : index
    %c0_181 = arith.constant 0 : index
    %177 = vector.load %arg2[%c0_180, %c0_181] : memref<1x448xf32, #tpu.memory_space<vmem>>, vector<1x448xf32>
    %178 = vector.broadcast %177 : vector<1x448xf32> to vector<28x448xf32>
    %179 = arith.addf %176, %178 : vector<28x448xf32>
    %cst_182 = arith.constant 0.000000e+00 : f32
    %180 = vector.broadcast %cst_182 : f32 to vector<28x448xf32>
    %181 = arith.maximumf %179, %180 : vector<28x448xf32>
    %c0_183 = arith.constant 0 : index
    %c0_184 = arith.constant 0 : index
    %182 = vector.load %arg5[%c0_183, %c0_184] : memref<14x28xf32, #tpu.memory_space<vmem>>, vector<14x28xf32>
    %cst_185 = arith.constant dense<0.000000e+00> : vector<14x448xf32>
    %183 = tpu.matmul %182, %181, %cst_185 {dimension_numbers = #tpu.dot_dimension_numbers<[1], [0], [0], [1], [0, 0, 1, 1], [], []>} : vector<14x28xf32>, vector<28x448xf32>, vector<14x448xf32> -> vector<14x448xf32>
    %c0_186 = arith.constant 0 : index
    %c0_187 = arith.constant 0 : index
    %184 = vector.load %arg6[%c0_186, %c0_187] : memref<14x28xf32, #tpu.memory_space<vmem>>, vector<14x28xf32>
    %cst_188 = arith.constant dense<0.000000e+00> : vector<14x448xf32>
    %185 = tpu.matmul %184, %181, %cst_188 {dimension_numbers = #tpu.dot_dimension_numbers<[1], [0], [0], [1], [0, 0, 1, 1], [], []>} : vector<14x28xf32>, vector<28x448xf32>, vector<14x448xf32> -> vector<14x448xf32>
    %186 = arith.maximumf %183, %185 : vector<14x448xf32>
    %187 = vector.extract_strided_slice %186 {offsets = [0, 0], sizes = [14, 432], strides = [1, 1]} : vector<14x448xf32> to vector<14x432xf32>
    %188 = vector.extract_strided_slice %186 {offsets = [0, 16], sizes = [14, 432], strides = [1, 1]} : vector<14x448xf32> to vector<14x432xf32>
    %189 = arith.maximumf %187, %188 : vector<14x432xf32>
    %c0_189 = arith.constant 0 : index
    %c0_190 = arith.constant 0 : index
    %190 = vector.load %arg7[%c0_189, %c0_190] : memref<432x224xf32, #tpu.memory_space<vmem>>, vector<432x224xf32>
    %cst_191 = arith.constant dense<0.000000e+00> : vector<14x224xf32>
    %191 = tpu.matmul %189, %190, %cst_191 {dimension_numbers = #tpu.dot_dimension_numbers<[1], [0], [0], [1], [0, 0, 1, 1], [], []>} : vector<14x432xf32>, vector<432x224xf32>, vector<14x224xf32> -> vector<14x224xf32>
    %c1_192 = arith.constant 1 : index
    %c2_193 = arith.constant 2 : index
    %c32_194 = arith.constant 32 : index
    %192 = vector.load %arg15[%c1_192, %c2_193, %c32_194] : memref<2x18x288xf32, #tpu.memory_space<vmem>>, vector<1x14x224xf32>
    %193 = vector.shape_cast %192 : vector<1x14x224xf32> to vector<14x224xf32>
    %194 = vector.shape_cast %191 : vector<14x224xf32> to vector<1x14x224xf32>
    tpu.vector_store %arg15[%c1_192, %c2_193, %c32_194], %194 {strides = array<i32>} : memref<2x18x288xf32, #tpu.memory_space<vmem>>, vector<1x14x224xf32>,
    %cst_195 = arith.constant 0.000000e+00 : f32
    %195 = vector.broadcast %cst_195 : f32 to vector<14x448xf32>
    %c1_196 = arith.constant 1 : index
    %c0_197 = arith.constant 0 : index
    %c0_198 = arith.constant 0 : index
    %196 = vector.load %arg15[%c1_196, %c0_197, %c0_198] : memref<2x18x288xf32, #tpu.memory_space<vmem>>, vector<1x14x288xf32>
    %197 = vector.shape_cast %196 : vector<1x14x288xf32> to vector<14x288xf32>
    %c0_199 = arith.constant 0 : index
    %c0_200 = arith.constant 0 : index
    %c0_201 = arith.constant 0 : index
    %198 = vector.load %arg3[%c0_199, %c0_200, %c0_201] : memref<5x288x448xf32, #tpu.memory_space<vmem>>, vector<1x288x448xf32>
    %199 = vector.shape_cast %198 : vector<1x288x448xf32> to vector<288x448xf32>
    %cst_202 = arith.constant dense<0.000000e+00> : vector<14x448xf32>
    %200 = tpu.matmul %197, %199, %cst_202 {dimension_numbers = #tpu.dot_dimension_numbers<[1], [0], [0], [1], [0, 0, 1, 1], [], []>} : vector<14x288xf32>, vector<288x448xf32>, vector<14x448xf32> -> vector<14x448xf32>
    %201 = arith.addf %195, %200 : vector<14x448xf32>
    %c1_203 = arith.constant 1 : index
    %c1_204 = arith.constant 1 : index
    %c0_205 = arith.constant 0 : index
    %202 = vector.load %arg15[%c1_203, %c1_204, %c0_205] : memref<2x18x288xf32, #tpu.memory_space<vmem>>, vector<1x14x288xf32>
    %203 = vector.shape_cast %202 : vector<1x14x288xf32> to vector<14x288xf32>
    %c1_206 = arith.constant 1 : index
    %c0_207 = arith.constant 0 : index
    %c0_208 = arith.constant 0 : index
    %204 = vector.load %arg3[%c1_206, %c0_207, %c0_208] : memref<5x288x448xf32, #tpu.memory_space<vmem>>, vector<1x288x448xf32>
    %205 = vector.shape_cast %204 : vector<1x288x448xf32> to vector<288x448xf32>
    %cst_209 = arith.constant dense<0.000000e+00> : vector<14x448xf32>
    %206 = tpu.matmul %203, %205, %cst_209 {dimension_numbers = #tpu.dot_dimension_numbers<[1], [0], [0], [1], [0, 0, 1, 1], [], []>} : vector<14x288xf32>, vector<288x448xf32>, vector<14x448xf32> -> vector<14x448xf32>
    %207 = arith.addf %201, %206 : vector<14x448xf32>
    %c1_210 = arith.constant 1 : index
    %c2_211 = arith.constant 2 : index
    %c0_212 = arith.constant 0 : index
    %208 = vector.load %arg15[%c1_210, %c2_211, %c0_212] : memref<2x18x288xf32, #tpu.memory_space<vmem>>, vector<1x14x288xf32>
    %209 = vector.shape_cast %208 : vector<1x14x288xf32> to vector<14x288xf32>
    %c2_213 = arith.constant 2 : index
    %c0_214 = arith.constant 0 : index
    %c0_215 = arith.constant 0 : index
    %210 = vector.load %arg3[%c2_213, %c0_214, %c0_215] : memref<5x288x448xf32, #tpu.memory_space<vmem>>, vector<1x288x448xf32>
    %211 = vector.shape_cast %210 : vector<1x288x448xf32> to vector<288x448xf32>
    %cst_216 = arith.constant dense<0.000000e+00> : vector<14x448xf32>
    %212 = tpu.matmul %209, %211, %cst_216 {dimension_numbers = #tpu.dot_dimension_numbers<[1], [0], [0], [1], [0, 0, 1, 1], [], []>} : vector<14x288xf32>, vector<288x448xf32>, vector<14x448xf32> -> vector<14x448xf32>
    %213 = arith.addf %207, %212 : vector<14x448xf32>
    %c1_217 = arith.constant 1 : index
    %c3_218 = arith.constant 3 : index
    %c0_219 = arith.constant 0 : index
    %214 = vector.load %arg15[%c1_217, %c3_218, %c0_219] : memref<2x18x288xf32, #tpu.memory_space<vmem>>, vector<1x14x288xf32>
    %215 = vector.shape_cast %214 : vector<1x14x288xf32> to vector<14x288xf32>
    %c3_220 = arith.constant 3 : index
    %c0_221 = arith.constant 0 : index
    %c0_222 = arith.constant 0 : index
    %216 = vector.load %arg3[%c3_220, %c0_221, %c0_222] : memref<5x288x448xf32, #tpu.memory_space<vmem>>, vector<1x288x448xf32>
    %217 = vector.shape_cast %216 : vector<1x288x448xf32> to vector<288x448xf32>
    %cst_223 = arith.constant dense<0.000000e+00> : vector<14x448xf32>
    %218 = tpu.matmul %215, %217, %cst_223 {dimension_numbers = #tpu.dot_dimension_numbers<[1], [0], [0], [1], [0, 0, 1, 1], [], []>} : vector<14x288xf32>, vector<288x448xf32>, vector<14x448xf32> -> vector<14x448xf32>
    %219 = arith.addf %213, %218 : vector<14x448xf32>
    %c1_224 = arith.constant 1 : index
    %c4_225 = arith.constant 4 : index
    %c0_226 = arith.constant 0 : index
    %220 = vector.load %arg15[%c1_224, %c4_225, %c0_226] : memref<2x18x288xf32, #tpu.memory_space<vmem>>, vector<1x14x288xf32>
    %221 = vector.shape_cast %220 : vector<1x14x288xf32> to vector<14x288xf32>
    %c4_227 = arith.constant 4 : index
    %c0_228 = arith.constant 0 : index
    %c0_229 = arith.constant 0 : index
    %222 = vector.load %arg3[%c4_227, %c0_228, %c0_229] : memref<5x288x448xf32, #tpu.memory_space<vmem>>, vector<1x288x448xf32>
    %223 = vector.shape_cast %222 : vector<1x288x448xf32> to vector<288x448xf32>
    %cst_230 = arith.constant dense<0.000000e+00> : vector<14x448xf32>
    %224 = tpu.matmul %221, %223, %cst_230 {dimension_numbers = #tpu.dot_dimension_numbers<[1], [0], [0], [1], [0, 0, 1, 1], [], []>} : vector<14x288xf32>, vector<288x448xf32>, vector<14x448xf32> -> vector<14x448xf32>
    %225 = arith.addf %219, %224 : vector<14x448xf32>
    %c0_231 = arith.constant 0 : index
    %c0_232 = arith.constant 0 : index
    %226 = vector.load %arg4[%c0_231, %c0_232] : memref<1x448xf32, #tpu.memory_space<vmem>>, vector<1x448xf32>
    %227 = vector.broadcast %226 : vector<1x448xf32> to vector<14x448xf32>
    %228 = arith.addf %225, %227 : vector<14x448xf32>
    %cst_233 = arith.constant 0.000000e+00 : f32
    %229 = vector.broadcast %cst_233 : f32 to vector<14x448xf32>
    %230 = arith.maximumf %228, %229 : vector<14x448xf32>
    %c0_234 = arith.constant 0 : index
    %c0_235 = arith.constant 0 : index
    %231 = vector.load %arg8[%c0_234, %c0_235] : memref<7x14xf32, #tpu.memory_space<vmem>>, vector<7x14xf32>
    %cst_236 = arith.constant dense<0.000000e+00> : vector<7x448xf32>
    %232 = tpu.matmul %231, %230, %cst_236 {dimension_numbers = #tpu.dot_dimension_numbers<[1], [0], [0], [1], [0, 0, 1, 1], [], []>} : vector<7x14xf32>, vector<14x448xf32>, vector<7x448xf32> -> vector<7x448xf32>
    %c0_237 = arith.constant 0 : index
    %c0_238 = arith.constant 0 : index
    %233 = vector.load %arg9[%c0_237, %c0_238] : memref<7x14xf32, #tpu.memory_space<vmem>>, vector<7x14xf32>
    %cst_239 = arith.constant dense<0.000000e+00> : vector<7x448xf32>
    %234 = tpu.matmul %233, %230, %cst_239 {dimension_numbers = #tpu.dot_dimension_numbers<[1], [0], [0], [1], [0, 0, 1, 1], [], []>} : vector<7x14xf32>, vector<14x448xf32>, vector<7x448xf32> -> vector<7x448xf32>
    %235 = arith.maximumf %232, %234 : vector<7x448xf32>
    %236 = vector.extract_strided_slice %235 {offsets = [0, 0], sizes = [7, 416], strides = [1, 1]} : vector<7x448xf32> to vector<7x416xf32>
    %237 = vector.extract_strided_slice %235 {offsets = [0, 32], sizes = [7, 416], strides = [1, 1]} : vector<7x448xf32> to vector<7x416xf32>
    %238 = arith.maximumf %236, %237 : vector<7x416xf32>
    %c0_240 = arith.constant 0 : index
    %c0_241 = arith.constant 0 : index
    %239 = vector.load %arg10[%c0_240, %c0_241] : memref<416x224xf32, #tpu.memory_space<vmem>>, vector<416x224xf32>
    %cst_242 = arith.constant dense<0.000000e+00> : vector<7x224xf32>
    %240 = tpu.matmul %238, %239, %cst_242 {dimension_numbers = #tpu.dot_dimension_numbers<[1], [0], [0], [1], [0, 0, 1, 1], [], []>} : vector<7x416xf32>, vector<416x224xf32>, vector<7x224xf32> -> vector<7x224xf32>
    %c0_243 = arith.constant 0 : index
    %c0_244 = arith.constant 0 : index
    %241 = vector.load %arg12[%c0_243, %c0_244] : memref<1x10xf32, #tpu.memory_space<vmem>>, vector<1x10xf32>
    %242 = vector.extract_strided_slice %240 {offsets = [0, 0], sizes = [1, 224], strides = [1, 1]} : vector<7x224xf32> to vector<1x224xf32>
    %c0_245 = arith.constant 0 : index
    %c0_246 = arith.constant 0 : index
    %c0_247 = arith.constant 0 : index
    %243 = vector.load %arg11[%c0_245, %c0_246, %c0_247] : memref<7x224x10xf32, #tpu.memory_space<vmem>>, vector<1x224x10xf32>
    %244 = vector.shape_cast %243 : vector<1x224x10xf32> to vector<224x10xf32>
    %cst_248 = arith.constant dense<0.000000e+00> : vector<1x10xf32>
    %245 = tpu.matmul %242, %244, %cst_248 {dimension_numbers = #tpu.dot_dimension_numbers<[1], [0], [0], [1], [0, 0, 1, 1], [], []>} : vector<1x224xf32>, vector<224x10xf32>, vector<1x10xf32> -> vector<1x10xf32>
    %246 = arith.addf %241, %245 : vector<1x10xf32>
    %247 = vector.extract_strided_slice %240 {offsets = [1, 0], sizes = [1, 224], strides = [1, 1]} : vector<7x224xf32> to vector<1x224xf32>
    %c1_249 = arith.constant 1 : index
    %c0_250 = arith.constant 0 : index
    %c0_251 = arith.constant 0 : index
    %248 = vector.load %arg11[%c1_249, %c0_250, %c0_251] : memref<7x224x10xf32, #tpu.memory_space<vmem>>, vector<1x224x10xf32>
    %249 = vector.shape_cast %248 : vector<1x224x10xf32> to vector<224x10xf32>
    %cst_252 = arith.constant dense<0.000000e+00> : vector<1x10xf32>
    %250 = tpu.matmul %247, %249, %cst_252 {dimension_numbers = #tpu.dot_dimension_numbers<[1], [0], [0], [1], [0, 0, 1, 1], [], []>} : vector<1x224xf32>, vector<224x10xf32>, vector<1x10xf32> -> vector<1x10xf32>
    %251 = arith.addf %246, %250 : vector<1x10xf32>
    %252 = vector.extract_strided_slice %240 {offsets = [2, 0], sizes = [1, 224], strides = [1, 1]} : vector<7x224xf32> to vector<1x224xf32>
    %c2_253 = arith.constant 2 : index
    %c0_254 = arith.constant 0 : index
    %c0_255 = arith.constant 0 : index
    %253 = vector.load %arg11[%c2_253, %c0_254, %c0_255] : memref<7x224x10xf32, #tpu.memory_space<vmem>>, vector<1x224x10xf32>
    %254 = vector.shape_cast %253 : vector<1x224x10xf32> to vector<224x10xf32>
    %cst_256 = arith.constant dense<0.000000e+00> : vector<1x10xf32>
    %255 = tpu.matmul %252, %254, %cst_256 {dimension_numbers = #tpu.dot_dimension_numbers<[1], [0], [0], [1], [0, 0, 1, 1], [], []>} : vector<1x224xf32>, vector<224x10xf32>, vector<1x10xf32> -> vector<1x10xf32>
    %256 = arith.addf %251, %255 : vector<1x10xf32>
    %257 = vector.extract_strided_slice %240 {offsets = [3, 0], sizes = [1, 224], strides = [1, 1]} : vector<7x224xf32> to vector<1x224xf32>
    %c3_257 = arith.constant 3 : index
    %c0_258 = arith.constant 0 : index
    %c0_259 = arith.constant 0 : index
    %258 = vector.load %arg11[%c3_257, %c0_258, %c0_259] : memref<7x224x10xf32, #tpu.memory_space<vmem>>, vector<1x224x10xf32>
    %259 = vector.shape_cast %258 : vector<1x224x10xf32> to vector<224x10xf32>
    %cst_260 = arith.constant dense<0.000000e+00> : vector<1x10xf32>
    %260 = tpu.matmul %257, %259, %cst_260 {dimension_numbers = #tpu.dot_dimension_numbers<[1], [0], [0], [1], [0, 0, 1, 1], [], []>} : vector<1x224xf32>, vector<224x10xf32>, vector<1x10xf32> -> vector<1x10xf32>
    %261 = arith.addf %256, %260 : vector<1x10xf32>
    %262 = vector.extract_strided_slice %240 {offsets = [4, 0], sizes = [1, 224], strides = [1, 1]} : vector<7x224xf32> to vector<1x224xf32>
    %c4_261 = arith.constant 4 : index
    %c0_262 = arith.constant 0 : index
    %c0_263 = arith.constant 0 : index
    %263 = vector.load %arg11[%c4_261, %c0_262, %c0_263] : memref<7x224x10xf32, #tpu.memory_space<vmem>>, vector<1x224x10xf32>
    %264 = vector.shape_cast %263 : vector<1x224x10xf32> to vector<224x10xf32>
    %cst_264 = arith.constant dense<0.000000e+00> : vector<1x10xf32>
    %265 = tpu.matmul %262, %264, %cst_264 {dimension_numbers = #tpu.dot_dimension_numbers<[1], [0], [0], [1], [0, 0, 1, 1], [], []>} : vector<1x224xf32>, vector<224x10xf32>, vector<1x10xf32> -> vector<1x10xf32>
    %266 = arith.addf %261, %265 : vector<1x10xf32>
    %267 = vector.extract_strided_slice %240 {offsets = [5, 0], sizes = [1, 224], strides = [1, 1]} : vector<7x224xf32> to vector<1x224xf32>
    %c5_265 = arith.constant 5 : index
    %c0_266 = arith.constant 0 : index
    %c0_267 = arith.constant 0 : index
    %268 = vector.load %arg11[%c5_265, %c0_266, %c0_267] : memref<7x224x10xf32, #tpu.memory_space<vmem>>, vector<1x224x10xf32>
    %269 = vector.shape_cast %268 : vector<1x224x10xf32> to vector<224x10xf32>
    %cst_268 = arith.constant dense<0.000000e+00> : vector<1x10xf32>
    %270 = tpu.matmul %267, %269, %cst_268 {dimension_numbers = #tpu.dot_dimension_numbers<[1], [0], [0], [1], [0, 0, 1, 1], [], []>} : vector<1x224xf32>, vector<224x10xf32>, vector<1x10xf32> -> vector<1x10xf32>
    %271 = arith.addf %266, %270 : vector<1x10xf32>
    %272 = vector.extract_strided_slice %240 {offsets = [6, 0], sizes = [1, 224], strides = [1, 1]} : vector<7x224xf32> to vector<1x224xf32>
    %c6_269 = arith.constant 6 : index
    %c0_270 = arith.constant 0 : index
    %c0_271 = arith.constant 0 : index
    %273 = vector.load %arg11[%c6_269, %c0_270, %c0_271] : memref<7x224x10xf32, #tpu.memory_space<vmem>>, vector<1x224x10xf32>
    %274 = vector.shape_cast %273 : vector<1x224x10xf32> to vector<224x10xf32>
    %cst_272 = arith.constant dense<0.000000e+00> : vector<1x10xf32>
    %275 = tpu.matmul %272, %274, %cst_272 {dimension_numbers = #tpu.dot_dimension_numbers<[1], [0], [0], [1], [0, 0, 1, 1], [], []>} : vector<1x224xf32>, vector<224x10xf32>, vector<1x10xf32> -> vector<1x10xf32>
    %276 = arith.addf %271, %275 : vector<1x10xf32>
    %c1_273 = arith.constant 1 : index
    %c0_274 = arith.constant 0 : index
    %277 = vector.load %arg13[%c1_273, %c0_274] : memref<2x10xf32, #tpu.memory_space<vmem>>, vector<1x10xf32>
    tpu.vector_store %arg13[%c1_273, %c0_274], %276 {strides = array<i32>} : memref<2x10xf32, #tpu.memory_space<vmem>>, vector<1x10xf32>,
    return
  }
}

</mosaic_0001>

<bundles_post_ra>
// kernel: cnn_forward.1
= control target key start
LH: loop header
LB: loop body
LE: loop exit
PB: predicated region body
PF: predicated region fallthrough
CT: control target
= control target key end

     0   :  { %18 = vsyncpa [#allocation5], 0  ;;  %s18090_s0 = inlined_call_operand.vmem [shape: f32[2,1,28,28], index: 0, kind: input, shape index: {}]   ;;  %s18091_s1 = inlined_call_operand.hbm [shape: f32[5,32,448], index: 1, kind: input, shape index: {}]   ;;  %s18092_s2 = inlined_call_operand.hbm [shape: f32[1,448], index: 2, kind: input, shape index: {}]   ;;  %s18093_s3 = inlined_call_operand.hbm [shape: f32[5,288,448], index: 3, kind: input, shape index: {}]   ;;  %s18094_s4 = inlined_call_operand.hbm [shape: f32[1,448], index: 4, kind: input, shape index: {}]   ;;  %s18095_s5 = inlined_call_operand.hbm [shape: f32[14,28], index: 5, kind: input, shape index: {}]   ;;  %s18096_s6 = inlined_call_operand.hbm [shape: f32[14,28], index: 6, kind: input, shape index: {}]   ;;  %s18097_s7 = inlined_call_operand.hbm [shape: f32[432,224], index: 7, kind: input, shape index: {}]   ;;  %s18098_s8 = inlined_call_operand.hbm [shape: f32[7,14], index: 8, kind: input, shape index: {}]   ;;  %s18099_s9 = inlined_call_operand.hbm [shape: f32[7,14], index: 9, kind: input, shape index: {}]   ;;  %s18100_s10 = inlined_call_operand.hbm [shape: f32[416,224], index: 10, kind: input, shape index: {}]   ;;  %s18101_s11 = inlined_call_operand.vmem [shape: f32[7,224,10], index: 11, kind: input, shape index: {}]   ;;  %s18102_s12 = inlined_call_operand.hbm [shape: f32[1,10], index: 12, kind: input, shape index: {}]   ;;  %s18103_s13 = inlined_call_operand.hbm [shape: f32[2,10], index: 13, kind: output, shape index: {}]  }
   0x1   :  { %19 = vsyncpa [#allocation8], 0 }
   0x2   :  { %20 = vsyncpa [#allocation11], 0 }
   0x3   :  { %21 = vsyncpa [#allocation14], 0 }
   0x4   :  { %22 = vsyncpa [#allocation17], 0 }
   0x5   :  { %23 = vsyncpa [#allocation20], 0 }
   0x6   :  { %24 = vsyncpa [#allocation6], 0  ;;  %s15477_s25 = smov [#allocation7]   ;;  %s15478_s27 = smov [#allocation10]  }
   0x7   :  { %s45_s26 = sshll.u32 %s15477_s25, 4  ;;  %s67_s28 = sshll.u32 %s15478_s27, 4  ;;  %s46_s26 = int_to_ptr.vmem [resolvable:$true] %s45_s26  ;;  %s68_s28 = int_to_ptr.vmem [resolvable:$true] %s67_s28 }
   0x8   :  { %s15199_s14 = scalar_lea.hbm %s18092_s2, 64 }
   0x9   :  { %p15200_p0 = scmp.ne.s32.totalorder %s18092_s2, %s15199_s14  ;;  %p15203_p1 = scmp.lt.u32.totalorder %s15199_s14, %s18092_s2 }
   0xb   :  { %p15205_p2 = pnand %p15203_p1, %p15200_p0 }
   0xd   :  { %15208 = shalt.err (!%p15205_p2)
}
   0xe   :  { %s15209_s19 = scalar_lea.vmem %s46_s26, 64  ;;  %p15214_p4 = scmp.lt.s32.totalorder %s46_s26, %s46_s26 }
   0xf   :  { %p15210_p3 = scmp.ne.s32.totalorder %s46_s26, %s15209_s19  ;;  %p15215_p5 = scmp.lt.s32.totalorder %s15209_s19, %s15209_s19 }
  0x11   :  { %p15216_p6 = por %p15215_p5, %p15214_p4 }
  0x13   :  { %p15217_p7 = pnand %p15216_p6, %p15210_p3 }
  0x15   :  { %15220 = shalt.err (!%p15217_p7)
}
  0x16   :  { %48 = dma.hbm_to_vmem [thread:$0]  %s18092_s2, 64, %s46_s26, [#allocation8]  }
  0x17   :  { %s15221_s24 = scalar_lea.hbm %s18094_s4, 64 }
  0x18   :  { %p15222_p8 = scmp.ne.s32.totalorder %s18094_s4, %s15221_s24  ;;  %p15225_p9 = scmp.lt.u32.totalorder %s15221_s24, %s18094_s4 }
  0x1a   :  { %p15227_p10 = pnand %p15225_p9, %p15222_p8 }
  0x1c   :  { %15230 = shalt.err (!%p15227_p10)
}
  0x1d   :  { %s15231_s14 = scalar_lea.vmem %s68_s28, 64  ;;  %p15236_p12 = scmp.lt.s32.totalorder %s68_s28, %s68_s28 }
  0x1e   :  { %p15232_p11 = scmp.ne.s32.totalorder %s68_s28, %s15231_s14  ;;  %p15237_p13 = scmp.lt.s32.totalorder %s15231_s14, %s15231_s14 }
  0x20   :  { %p15238_p0 = por %p15237_p13, %p15236_p12 }
  0x22   :  { %p15239_p1 = pnand %p15238_p0, %p15232_p11 }
  0x24   :  { %15242 = shalt.err (!%p15239_p1)
}
  0x25   :  { %70 = dma.hbm_to_vmem [thread:$0]  %s18094_s4, 64, %s68_s28, [#allocation11]  }
  0x26   :  { %s15479_s15 = smov [#allocation13]   ;;  %s15480_s17 = smov [#allocation16]  }
  0x27   :  { %s88_s16 = sshll.u32 %s15479_s15, 4  ;;  %s113_s18 = sshll.u32 %s15480_s17, 4  ;;  %s89_s16 = int_to_ptr.vmem [resolvable:$true] %s88_s16  ;;  %s114_s18 = int_to_ptr.vmem [resolvable:$true] %s113_s18 }
  0x28   :  { %s15243_s21 = scalar_lea.hbm %s18096_s6, 256 }
  0x29   :  { %p15244_p2 = scmp.ne.s32.totalorder %s18096_s6, %s15243_s21  ;;  %p15247_p3 = scmp.lt.u32.totalorder %s15243_s21, %s18096_s6 }
  0x2b   :  { %p15249_p4 = pnand %p15247_p3, %p15244_p2 }
  0x2d   :  { %15252 = shalt.err (!%p15249_p4)
}
  0x2e   :  { %s15253_s4 = scalar_lea.vmem %s89_s16, 256  ;;  %p15258_p6 = scmp.lt.s32.totalorder %s89_s16, %s89_s16 }
  0x2f   :  { %p15254_p5 = scmp.ne.s32.totalorder %s89_s16, %s15253_s4  ;;  %p15259_p7 = scmp.lt.s32.totalorder %s15253_s4, %s15253_s4 }
  0x31   :  { %p15260_p8 = por %p15259_p7, %p15258_p6 }
  0x33   :  { %p15261_p9 = pnand %p15260_p8, %p15254_p5 }
  0x35   :  { %15264 = shalt.err (!%p15261_p9)
}
  0x36   :  { %s15481_s28 = smov 128   ;;  %s15482_s27 = smov 8  }
  0x37   :  { %94 = dma.hbm_to_vmem [thread:$0]  %s18096_s6, 256, %s89_s16, [#allocation14], %s15481_s28, %s15481_s28, %s15482_s27  }
  0x38   :  { %s15265_s26 = scalar_lea.hbm %s18098_s8, 128 }
  0x39   :  { %p15266_p10 = scmp.ne.s32.totalorder %s18098_s8, %s15265_s26  ;;  %p15269_p11 = scmp.lt.u32.totalorder %s15265_s26, %s18098_s8 }
  0x3b   :  { %p15271_p12 = pnand %p15269_p11, %p15266_p10 }
  0x3d   :  { %15274 = shalt.err (!%p15271_p12)
}
  0x3e   :  { %s15275_s21 = scalar_lea.vmem %s114_s18, 128  ;;  %p15280_p0 = scmp.lt.s32.totalorder %s114_s18, %s114_s18 }
  0x3f   :  { %p15276_p13 = scmp.ne.s32.totalorder %s114_s18, %s15275_s21  ;;  %p15281_p1 = scmp.lt.s32.totalorder %s15275_s21, %s15275_s21 }
  0x41   :  { %p15282_p2 = por %p15281_p1, %p15280_p0 }
  0x43   :  { %p15283_p3 = pnand %p15282_p2, %p15276_p13 }
  0x45   :  { %15286 = shalt.err (!%p15283_p3)
}
  0x46   :  { %116 = dma.hbm_to_vmem [thread:$0]  %s18098_s8, 128, %s114_s18, [#allocation17]  }
  0x47   :  { %s15483_s22 = smov [#allocation19]   ;;  %s15484_s24 = smov [#allocation4]  }
  0x48   :  { %s132_s23 = sshll.u32 %s15483_s22, 4  ;;  %s32_s25 = sshll.u32 %s15484_s24, 4  ;;  %s133_s23 = int_to_ptr.vmem [resolvable:$true] %s132_s23  ;;  %s15622_s25 = int_to_ptr.vmem [resolvable:$true] %s32_s25 }
  0x49   :  { %s15287_s30 = scalar_lea.hbm %s18100_s10, 13312 }
  0x4a   :  { %p15288_p4 = scmp.ne.s32.totalorder %s18100_s10, %s15287_s30  ;;  %p15291_p5 = scmp.lt.u32.totalorder %s15287_s30, %s18100_s10 }
  0x4c   :  { %p15293_p6 = pnand %p15291_p5, %p15288_p4 }
  0x4e   :  { %15296 = shalt.err (!%p15293_p6)
}
  0x4f   :  { %s15297_s8 = scalar_lea.vmem %s133_s23, 13312  ;;  %p15302_p8 = scmp.lt.s32.totalorder %s133_s23, %s133_s23 }
  0x50   :  { %p15298_p7 = scmp.ne.s32.totalorder %s133_s23, %s15297_s8  ;;  %p15303_p9 = scmp.lt.s32.totalorder %s15297_s8, %s15297_s8 }
  0x52   :  { %p15304_p10 = por %p15303_p9, %p15302_p8 }
  0x54   :  { %p15305_p11 = pnand %p15304_p10, %p15298_p7 }
  0x56   :  { %15308 = shalt.err (!%p15305_p11)
}
  0x57   :  { %s15485_s18 = smov 256   ;;  %s15486_s17 = smov 16  }
  0x58   :  { %138 = dma.hbm_to_vmem [thread:$0]  %s18100_s10, 13312, %s133_s23, [#allocation20], %s15485_s18, %s15485_s18, %s15486_s17  }
  0x59   :  { %s15309_s16 = scalar_lea.hbm %s18091_s1, 10240 }
  0x5a   :  { %p15310_p12 = scmp.ne.s32.totalorder %s18091_s1, %s15309_s16  ;;  %p15313_p13 = scmp.lt.u32.totalorder %s15309_s16, %s18091_s1 }
  0x5c   :  { %p15315_p0 = pnand %p15313_p13, %p15310_p12 }
  0x5e   :  { %15318 = shalt.err (!%p15315_p0)
}
  0x5f   :  { %s15319_s30 = scalar_lea.vmem %s15622_s25, 10240  ;;  %p15324_p2 = scmp.lt.s32.totalorder %s15622_s25, %s15622_s25 }
  0x60   :  { %p15320_p1 = scmp.ne.s32.totalorder %s15622_s25, %s15319_s30  ;;  %p15325_p3 = scmp.lt.s32.totalorder %s15319_s30, %s15319_s30 }
  0x62   :  { %p15326_p4 = por %p15325_p3, %p15324_p2 }
  0x64   :  { %p15327_p5 = pnand %p15326_p4, %p15320_p1 }
  0x66   :  { %15330 = shalt.err (!%p15327_p5)
}
  0x67   :  { %s15487_s10 = smov 512   ;;  %s15488_s23 = smov 32  }
  0x68   :  { %38 = dma.hbm_to_vmem [thread:$0]  %s18091_s1, 10240, %s15622_s25, [#allocation5], %s15487_s10, %s15487_s10, %s15488_s23  }
  0x69   :  { %s15489_s26 = smov [#allocation9]   ;;  %s15490_s8 = smov [#allocation12]  }
  0x6a   :  { %s54_s15 = sshll.u32 %s15489_s26, 4  ;;  %s76_s19 = sshll.u32 %s15490_s8, 4  ;;  %s55_s15 = int_to_ptr.vmem [resolvable:$true] %s54_s15  ;;  %s15657_s19 = int_to_ptr.vmem [resolvable:$true] %s76_s19 }
  0x6b   :  { %s15331_s6 = scalar_lea.hbm %s18093_s3, 92160 }
  0x6c   :  { %p15332_p6 = scmp.ne.s32.totalorder %s18093_s3, %s15331_s6  ;;  %p15335_p7 = scmp.lt.u32.totalorder %s15331_s6, %s18093_s3 }
  0x6e   :  { %p15337_p8 = pnand %p15335_p7, %p15332_p6 }
  0x70   :  { %15340 = shalt.err (!%p15337_p8)
}
  0x71   :  { %s15341_s1 = scalar_lea.vmem %s55_s15, 92160  ;;  %p15346_p10 = scmp.lt.s32.totalorder %s55_s15, %s55_s15 }
  0x72   :  { %p15342_p9 = scmp.ne.s32.totalorder %s55_s15, %s15341_s1  ;;  %p15347_p11 = scmp.lt.s32.totalorder %s15341_s1, %s15341_s1 }
  0x74   :  { %p15348_p12 = por %p15347_p11, %p15346_p10 }
  0x76   :  { %p15349_p13 = pnand %p15348_p12, %p15342_p9 }
  0x78   :  { %15352 = shalt.err (!%p15349_p13)
}
  0x79   :  { %60 = dma.hbm_to_vmem [thread:$0]  %s18093_s3, 92160, %s55_s15, [#allocation8], %s15487_s10, %s15487_s10, %s15488_s23  }
  0x7a   :  { %s15353_s2 = scalar_lea.hbm %s18095_s5, 256 }
  0x7b   :  { %p15354_p0 = scmp.ne.s32.totalorder %s18095_s5, %s15353_s2  ;;  %p15357_p1 = scmp.lt.u32.totalorder %s15353_s2, %s18095_s5 }
  0x7d   :  { %p15359_p2 = pnand %p15357_p1, %p15354_p0 }
  0x7f   :  { %15362 = shalt.err (!%p15359_p2)
}
  0x80   :  { %s15363_s6 = scalar_lea.vmem %s15657_s19, 256  ;;  %p15368_p4 = scmp.lt.s32.totalorder %s15657_s19, %s15657_s19 }
  0x81   :  { %p15364_p3 = scmp.ne.s32.totalorder %s15657_s19, %s15363_s6  ;;  %p15369_p5 = scmp.lt.s32.totalorder %s15363_s6, %s15363_s6 }
  0x83   :  { %p15370_p6 = por %p15369_p5, %p15368_p4 }
  0x85   :  { %p15371_p7 = pnand %p15370_p6, %p15364_p3 }
  0x87   :  { %15374 = shalt.err (!%p15371_p7)
}
  0x88   :  { %82 = dma.hbm_to_vmem [thread:$0]  %s18095_s5, 256, %s15657_s19, [#allocation11], %s15481_s28, %s15481_s28, %s15482_s27  }
  0x89   :  { %s15491_s15 = smov [#allocation15]   ;;  %s15492_s22 = smov [#allocation18]  }
  0x8a   :  { %s100_s16 = sshll.u32 %s15491_s15, 4  ;;  %s123_s24 = sshll.u32 %s15492_s22, 4  ;;  %s101_s16 = int_to_ptr.vmem [resolvable:$true] %s100_s16  ;;  %s124_s24 = int_to_ptr.vmem [resolvable:$true] %s123_s24 }
  0x8b   :  { %s15375_s25 = scalar_lea.hbm %s18097_s7, 13824 }
  0x8c   :  { %p15376_p8 = scmp.ne.s32.totalorder %s18097_s7, %s15375_s25  ;;  %p15379_p9 = scmp.lt.u32.totalorder %s15375_s25, %s18097_s7 }
  0x8e   :  { %p15381_p10 = pnand %p15379_p9, %p15376_p8 }
  0x90   :  { %15384 = shalt.err (!%p15381_p10)
}
  0x91   :  { %s15385_s5 = scalar_lea.vmem %s101_s16, 13824  ;;  %p15390_p12 = scmp.lt.s32.totalorder %s101_s16, %s101_s16 }
  0x92   :  { %p15386_p11 = scmp.ne.s32.totalorder %s101_s16, %s15385_s5  ;;  %p15391_p13 = scmp.lt.s32.totalorder %s15385_s5, %s15385_s5 }
  0x94   :  { %p15392_p0 = por %p15391_p13, %p15390_p12 }
  0x96   :  { %p15393_p1 = pnand %p15392_p0, %p15386_p11 }
  0x98   :  { %15396 = shalt.err (!%p15393_p1)
}
  0x99   :  { %106 = dma.hbm_to_vmem [thread:$0]  %s18097_s7, 13824, %s101_s16, [#allocation14], %s15485_s18, %s15485_s18, %s15486_s17  }
  0x9a   :  { %s15397_s8 = scalar_lea.hbm %s18099_s9, 128 }
  0x9b   :  { %p15398_p2 = scmp.ne.s32.totalorder %s18099_s9, %s15397_s8  ;;  %p15401_p3 = scmp.lt.u32.totalorder %s15397_s8, %s18099_s9 }
  0x9d   :  { %p15403_p4 = pnand %p15401_p3, %p15398_p2 }
  0x9f   :  { %15406 = shalt.err (!%p15403_p4)
}
  0xa0   :  { %s15407_s10 = scalar_lea.vmem %s124_s24, 128  ;;  %p15412_p6 = scmp.lt.s32.totalorder %s124_s24, %s124_s24 }
  0xa1   :  { %p15408_p5 = scmp.ne.s32.totalorder %s124_s24, %s15407_s10  ;;  %p15413_p7 = scmp.lt.s32.totalorder %s15407_s10, %s15407_s10 }
  0xa3   :  { %p15414_p8 = por %p15413_p7, %p15412_p6 }
  0xa5   :  { %p15415_p9 = pnand %p15414_p8, %p15408_p5 }
  0xa7   :  { %15418 = shalt.err (!%p15415_p9)
}
  0xa8   :  { %126 = dma.hbm_to_vmem [thread:$0]  %s18099_s9, 128, %s124_s24, [#allocation17]  }
  0xa9   :  { %s15493_s17 = smov [#allocation21]   ;;  %s15419_s4 = scalar_lea.hbm %s18102_s12, 16 }
  0xaa   :  { %s147_s15 = sshll.u32 %s15493_s17, 4  ;;  %p15420_p10 = scmp.ne.s32.totalorder %s18102_s12, %s15419_s4  ;;  %s148_s15 = int_to_ptr.vmem [resolvable:$true] %s147_s15 }
  0xab   :  { %p15423_p11 = scmp.lt.u32.totalorder %s15419_s4, %s18102_s12 }
  0xad   :  { %p15425_p12 = pnand %p15423_p11, %p15420_p10 }
  0xaf   :  { %15428 = shalt.err (!%p15425_p12)
}
  0xb0   :  { %s15429_s14 = scalar_lea.vmem %s148_s15, 16  ;;  %s15433_s9 = scalar_lea.vmem %s148_s15, 32 }
  0xb1   :  { %p15430_p13 = scmp.ne.s32.totalorder %s148_s15, %s15429_s14  ;;  %p15434_p0 = scmp.lt.s32.totalorder %s148_s15, %s148_s15 }
  0xb2   :  { %p15435_p1 = scmp.lt.s32.totalorder %s15433_s9, %s15429_s14 }
  0xb4   :  { %p15436_p2 = por %p15435_p1, %p15434_p0 }
  0xb6   :  { %p15437_p3 = pnand %p15436_p2, %p15430_p13 }
  0xb8   :  { %15440 = shalt.err (!%p15437_p3)
}
  0xb9   :  { %150 = dma.hbm_to_vmem [thread:$0]  %s18102_s12, 16, %s148_s15, [#allocation20]  }
  0xba   :  { %15463 = dma.done.wait [#allocation5], 10240  }
  0xbb   :  { %15464 = vsyncadd [#allocation5], 4294957056 }
  0xbc   :  { %15465 = dma.done.wait [#allocation8], 92224  }
  0xbd   :  { %15466 = vsyncadd [#allocation8], 4294875072 }
  0xbe   :  { %15467 = dma.done.wait [#allocation11], 320  }
  0xbf   :  { %15468 = vsyncadd [#allocation11], 4294966976 }
  0xc0   :  { %15469 = dma.done.wait [#allocation14], 14080  }
  0xc1   :  { %15470 = vsyncadd [#allocation14], 4294953216 }
  0xc2   :  { %15471 = dma.done.wait [#allocation17], 256  }
  0xc3   :  { %15472 = vsyncadd [#allocation17], 4294967040 }
  0xc4   :  { %15473 = dma.done.wait [#allocation20], 13328  }
  0xc5   :  { %15474 = vsyncadd [#allocation20], 4294953968  ;;  %vm184_vm0 = vcmask 261120   ;;  %v15494_v0 = vmov 0.0   ;;  %v212_v1 = vld [vmem:[%s18090_s0] sm:$0xff]  ;;  %v214_v2 = vld [vmem:[%s18090_s0 + $0x10] sm:$0xff] }
  0xc6   :  { %185 = vst.msk [vmem:[#allocation2] sm:$0xff] %vm184_vm0, %v15494_v0  ;;  %186 = vst.msk [vmem:[#allocation2 + $0x8] sm:$0xff] %vm184_vm0, %v15494_v0  ;;  %355 = vmatprep.mubr.f32.mxu0 %v15494_v0  ;;  %444 = vmatprep.mubr.f32.mxu1 %v15494_v0  ;;  %v213_v3 = vld [vmem:[%s18090_s0 + $0x8] sm:$0xff]  ;;  %s15495_s8 = smov 2   ;;  %v215_v4 = vld [vmem:[%s18090_s0 + $0x18] sm:$0xf] }
  0xc7   :  { %187 = vst.msk [vmem:[#allocation2 + $0x10] sm:$0xff] %vm184_vm0, %v15494_v0  ;;  %188 = vst.msk [vmem:[#allocation2 + $0x18] sm:$0xff] %vm184_vm0, %v15494_v0  ;;  %220 = vrot.lane.b32.xlu0 %v212_v1, %s15495_s8  ;;  %224 = vrot.lane.b32.xlu1 %v214_v2, %s15495_s8  ;;  %v264_v5 = vld [vmem:[#allocation4 + $0x88] sm:$0xff]  ;;  %v266_v8 = vld [vmem:[#allocation4 + $0x98] sm:$0xff]  ;;  %vm232_vm1 = vcmask 244752   ;;  %vm236_vm2 = vcmask 240656  }
  0xc8   :  { %189 = vst.msk [vmem:[#allocation2 + $0x20] sm:$0xff] %vm184_vm0, %v15494_v0  ;;  %190 = vst.msk [vmem:[#allocation2 + $0x28] sm:$0xff] %vm184_vm0, %v15494_v0  ;;  %v268_v6 = vld [vmem:[#allocation4 + $0xa8] sm:$0xff]  ;;  %v270_v9 = vld [vmem:[#allocation4 + $0xb8] sm:$0xff]  ;;  %vm18104_vm3 = vcmask 1043456   ;;  %vm15496_vm4 = vmmov 1  }
  0xc9   :  { %191 = vst.msk [vmem:[#allocation2 + $0x30] sm:$0xff] %vm184_vm0, %v15494_v0  ;;  %192 = vst.msk [vmem:[#allocation2 + $0x38] sm:$0xff] %vm184_vm0, %v15494_v0  ;;  %v12078_v7 = vpack.c.bf16 %v268_v6, %v264_v5  ;;  %v263_v10 = vld [vmem:[#allocation4 + $0x80] sm:$0xff]  ;;  %v12086_v11 = vpack.c.bf16 %v270_v9, %v266_v8  ;;  %v265_v13 = vld [vmem:[#allocation4 + $0x90] sm:$0xff]  ;;  %vm1396_vm6 = vcmask 228352   ;;  %s15497_s6 = smov 112  }
  0xca   :  { %193 = vst [vmem:[#allocation3] sm:$0xff] %v15494_v0  ;;  %194 = vst [vmem:[#allocation3 + $0x8] sm:$0xff] %v15494_v0  ;;  %v267_v12 = vld [vmem:[#allocation4 + $0xa0] sm:$0xff]  ;;  %v269_v14 = vld [vmem:[#allocation4 + $0xb0] sm:$0xff]  ;;  %vm1764_vm7 = vcmask 916480   ;;  %vm1895_vm8 = vcmask 392192  }
  0xcb   :  { %195 = vst.msk [vmem:[#allocation3 + $0x10] sm:$0xff] %vm184_vm0, %v15494_v0  ;;  %196 = vst [vmem:[#allocation3 + $0x18] sm:$0xff] %v15494_v0  ;;  %12079 = vmatprep.subr.bf16.mxu0 %v12078_v7  ;;  %v12080_v15 = vpack.c.bf16 %v267_v12, %v263_v10  ;;  %v12088_v16 = vpack.c.bf16 %v269_v14, %v265_v13  ;;  %v272_v17 = vld [vmem:[#allocation4 + $0xc8] sm:$0xff]  ;;  %v274_v19 = vld [vmem:[#allocation4 + $0xd8] sm:$0xff]  ;;  %222 = vrot.lane.b32.xlu0 %v213_v3, %s15495_s8  ;;  %vm2060_vm9 = vcmask 1041408   ;;  %vm2081_vm10 = vcmask 1047810  }
  0xcc   :  { %198 = vst.msk [vmem:[#allocation3 + $0x28] sm:$0xff] %vm184_vm0, %v15494_v0  ;;  %199 = vst [vmem:[#allocation3 + $0x30] sm:$0x3] %v15494_v0  ;;  %v276_v18 = vld [vmem:[#allocation4 + $0xe8] sm:$0xff]  ;;  %226 = vrot.lane.b32.xlu1 %v215_v4, %s15495_s8  ;;  %v278_v21 = vld [vmem:[#allocation4 + $0xf8] sm:$0xff]  ;;  %12087 = vmatprep.subr.bf16.mxu1 %v12086_v11  ;;  %vm2084_vm11 = vcmask 1047808  }
  0xcd   :  { %200 = vst [vmem:[#allocation3 + $0x38] sm:$0x3] %v15494_v0  ;;  %203 = vst [vmem:[#allocation3 + $0x48] sm:$0xff] %v15494_v0  ;;  %v12082_v20 = vpack.c.bf16 %v276_v18, %v272_v17  ;;  %v271_v22 = vld [vmem:[#allocation4 + $0xc0] sm:$0xff]  ;;  %12081 = vmatpush1.bf16.msra.mxu0 %v12080_v15  ;;  %v12090_v24 = vpack.c.bf16 %v278_v21, %v274_v19  ;;  %v273_v26 = vld [vmem:[#allocation4 + $0xd0] sm:$0xff]  ;;  %12089 = vmatpush1.bf16.msra.mxu1 %v12088_v16  ;;  %vm2394_vm12 = vcmask 1046528  }
  0xce   :  { %204 = vst [vmem:[#allocation3 + $0x50] sm:$0xff] %v15494_v0  ;;  %205 = vst.msk [vmem:[#allocation3 + $0x58] sm:$0xff] %vm184_vm0, %v15494_v0  ;;  %v275_v23 = vld [vmem:[#allocation4 + $0xe0] sm:$0xff]  ;;  %v277_v27 = vld [vmem:[#allocation4 + $0xf0] sm:$0xff]  ;;  %vm3191_vm13 = vcmask 1045504   ;;  %vm201_vm14 = vcmask 254976  }
  0xcf   :  { %206 = vst [vmem:[#allocation3 + $0x60] sm:$0xff] %v15494_v0  ;;  %208 = vst.msk [vmem:[#allocation3 + $0x70] sm:$0xff] %vm184_vm0, %v15494_v0  ;;  %v12084_v25 = vpack.c.bf16 %v275_v23, %v271_v22  ;;  %v243_v28 = vld [vmem:[#allocation4 + $0x8] sm:$0xff]  ;;  %12083 = vmatprep.subr.bf16.mxu0 %v12082_v20  ;;  %v12092_v29 = vpack.c.bf16 %v277_v27, %v273_v26  ;;  %12091 = vmatprep.subr.bf16.mxu1 %v12090_v24  ;;  %v245_v32 = vld [vmem:[#allocation4 + $0x18] sm:$0xff]  ;;  %vm3688_vm15 = vcmask 1044480   ;;  %s15498_s3 = smov 96  }
  0xd0   :  { %209 = vst [vmem:[#allocation3 + $0x78] sm:$0x3] %v15494_v0  ;;  %210 = vst [vmem:[#allocation3 + $0x80] sm:$0x3] %v15494_v0  ;;  %v247_v30 = vld [vmem:[#allocation4 + $0x28] sm:$0xff]  ;;  %v249_v33 = vld [vmem:[#allocation4 + $0x38] sm:$0xff] }
  0xd1   :  { %v12094_v31 = vpack.c.bf16 %v247_v30, %v243_v28  ;;  %v12102_v34 = vpack.c.bf16 %v249_v33, %v245_v32  ;;  %12085 = vmatpush1.bf16.msra.mxu0 %v12084_v25  ;;  %12093 = vmatpush1.bf16.msra.mxu1 %v12092_v29  ;;  %v242_v37 = vld [vmem:[#allocation4] sm:$0xff]  ;;  %v244_v41 = vld [vmem:[#allocation4 + $0x10] sm:$0xff]  ;;  %v251_v43 = vld [vmem:[#allocation4 + $0x48] sm:$0xff]  ;;  %s15500_s29 = smov [#allocation22]  }
  0xd2   :  { %v246_v38 = vld [vmem:[#allocation4 + $0x20] sm:$0xff]  ;;  %v248_v42 = vld [vmem:[#allocation4 + $0x30] sm:$0xff]  ;;  %v255_v44 = vld [vmem:[#allocation4 + $0x68] sm:$0xff]  ;;  %s11528_s30 = sshll.u32 %s15500_s29, 4  ;;  %s11529_s30 = int_to_ptr.vmem [resolvable:$true] %s11528_s30 }
  0xd3   :  { %12095 = vmatprep.subr.bf16.mxu0 %v12094_v31  ;;  %12103 = vmatprep.subr.bf16.mxu1 %v12102_v34  ;;  %v253_v45 = vld [vmem:[#allocation4 + $0x58] sm:$0xff]  ;;  %v12096_v47 = vpack.c.bf16 %v246_v38, %v242_v37  ;;  %v12104_v48 = vpack.c.bf16 %v248_v42, %v244_v41  ;;  %v250_v49 = vld [vmem:[#allocation4 + $0x40] sm:$0xff]  ;;  %v252_v51 = vld [vmem:[#allocation4 + $0x50] sm:$0xff]  ;;  %v12098_v53 = vpack.c.bf16 %v255_v44, %v251_v43  ;;  %p15446_p5 = scmp.lt.s32.totalorder %s11529_s30, %s11529_s30 }
  0xd4   :  { %v257_v46 = vld [vmem:[#allocation4 + $0x78] sm:$0xff]  ;;  %v254_v50 = vld [vmem:[#allocation4 + $0x60] sm:$0xff]  ;;  %v256_v55 = vld [vmem:[#allocation4 + $0x70] sm:$0xff] }
  0xd5   :  { %v12106_v54 = vpack.c.bf16 %v257_v46, %v253_v45  ;;  %v665_v56 = vld [vmem:[#allocation4 + $0x108] sm:$0xff]  ;;  %v667_v58 = vld [vmem:[#allocation4 + $0x118] sm:$0xff]  ;;  %v12100_v60 = vpack.c.bf16 %v254_v50, %v250_v49  ;;  %v12108_v61 = vpack.c.bf16 %v256_v55, %v252_v51  ;;  %v664_v3 = vld [vmem:[#allocation4 + $0x100] sm:$0xff] }
  0xd6   :  { %v669_v57 = vld [vmem:[#allocation4 + $0x128] sm:$0xff]  ;;  %v671_v59 = vld [vmem:[#allocation4 + $0x138] sm:$0xff]  ;;  %v668_v4 = vld [vmem:[#allocation4 + $0x120] sm:$0xff] }
  0xd7   :  { %v12110_v63 = vpack.c.bf16 %v669_v57, %v665_v56  ;;  %v12118_v1 = vpack.c.bf16 %v671_v59, %v667_v58  ;;  %v666_v5 = vld [vmem:[#allocation4 + $0x110] sm:$0xff]  ;;  %v673_v8 = vld [vmem:[#allocation4 + $0x148] sm:$0xff]  ;;  %v675_v10 = vld [vmem:[#allocation4 + $0x158] sm:$0xff]  ;;  %v12112_v12 = vpack.c.bf16 %v668_v4, %v664_v3 }
  0xd8   :  { %v670_v7 = vld [vmem:[#allocation4 + $0x130] sm:$0xff]  ;;  %v677_v9 = vld [vmem:[#allocation4 + $0x168] sm:$0xff]  ;;  %v679_v11 = vld [vmem:[#allocation4 + $0x178] sm:$0xff] }
  0xd9   :  { %v12120_v13 = vpack.c.bf16 %v670_v7, %v666_v5  ;;  %v672_v14 = vld [vmem:[#allocation4 + $0x140] sm:$0xff]  ;;  %v674_v16 = vld [vmem:[#allocation4 + $0x150] sm:$0xff]  ;;  %v12114_v18 = vpack.c.bf16 %v677_v9, %v673_v8  ;;  %v12122_v19 = vpack.c.bf16 %v679_v11, %v675_v10  ;;  %v892_v21 = vld [vmem:[#allocation4 + $0x188] sm:$0xff] }
  0xda   :  { %v676_v15 = vld [vmem:[#allocation4 + $0x160] sm:$0xff]  ;;  %v678_v20 = vld [vmem:[#allocation4 + $0x170] sm:$0xff]  ;;  %v896_v22 = vld [vmem:[#allocation4 + $0x1a8] sm:$0xff] }
  0xdb   :  { %v894_v23 = vld [vmem:[#allocation4 + $0x198] sm:$0xff]  ;;  %v12116_v25 = vpack.c.bf16 %v676_v15, %v672_v14  ;;  %v12124_v26 = vpack.c.bf16 %v678_v20, %v674_v16  ;;  %v12126_v28 = vpack.c.bf16 %v896_v22, %v892_v21  ;;  %v891_v31 = vld [vmem:[#allocation4 + $0x180] sm:$0xff]  ;;  %v893_v33 = vld [vmem:[#allocation4 + $0x190] sm:$0xff] }
  0xdc   :  { %v898_v24 = vld [vmem:[#allocation4 + $0x1b8] sm:$0xff]  ;;  %v895_v32 = vld [vmem:[#allocation4 + $0x1a0] sm:$0xff]  ;;  %v904_v37 = vld [vmem:[#allocation4 + $0x1e8] sm:$0xff] }
  0xdd   :  { %v12134_v29 = vpack.c.bf16 %v898_v24, %v894_v23  ;;  %v902_v38 = vld [vmem:[#allocation4 + $0x1d8] sm:$0xff]  ;;  %v899_v42 = vld [vmem:[#allocation4 + $0x1c0] sm:$0xff]  ;;  %v901_v44 = vld [vmem:[#allocation4 + $0x1d0] sm:$0xff]  ;;  %v1342_v23 = vlaneseq }
  0xde   :  { %v903_v43 = vld [vmem:[#allocation4 + $0x1e0] sm:$0xff]  ;;  %v1119_v49 = vld [vmem:[#allocation4 + $0x208] sm:$0xff]  ;;  %v1121_v51 = vld [vmem:[#allocation4 + $0x218] sm:$0xff] }
  0xdf   :  { %v1123_v50 = vld [vmem:[#allocation4 + $0x228] sm:$0xff]  ;;  %v1118_v59 = vld [vmem:[#allocation4 + $0x200] sm:$0xff]  ;;  %v1129_v3 = vld [vmem:[#allocation4 + $0x258] sm:$0xff]  ;;  %v1343_v24 = vshrl.u32 %v1342_v23, 7 }
  0xe0   :  { %v12142_v56 = vpack.c.bf16 %v1123_v50, %v1119_v49  ;;  %v1133_v4 = vld [vmem:[#allocation4 + $0x278] sm:$0xff]  ;;  %v1126_v7 = vld [vmem:[#allocation4 + $0x240] sm:$0xff]  ;;  %vm15881_vm5 = vmpackc.low %vm18104_vm3, %vm15496_vm4 }
  0xe1   :  { %v1130_v8 = vld [vmem:[#allocation4 + $0x260] sm:$0xff]  ;;  %v12154_v11 = vpack.c.bf16 %v1133_v4, %v1129_v3 }
  0xe2   :  { %v12148_v14 = vpack.c.bf16 %v1130_v8, %v1126_v7 }
 0x139   :  { %v221_v35 = vpop.permute.xlu0 %220  ;;  %v225_v36 = vpop.permute.xlu1 %224 }
 0x13a   :  { %233 = vst.msk [vmem:[#allocation2 + $0x2] sm:$0xff] %vm232_vm1, %v221_v35  ;;  %235 = vst.msk [vmem:[#allocation2 + $0x12] sm:$0xff] %vm232_vm1, %v225_v36  ;;  %v897_v35 = vld [vmem:[#allocation4 + $0x1b0] sm:$0xff]  ;;  %v900_v36 = vld [vmem:[#allocation4 + $0x1c8] sm:$0xff] }
 0x13b   :  { %v12136_v41 = vpack.c.bf16 %v897_v35, %v893_v33  ;;  %v12130_v46 = vpack.c.bf16 %v904_v37, %v900_v36 }
 0x13d   :  { %v223_v39 = vpop.permute.xlu0 %222 }
 0x13e   :  { %v227_v40 = vpop.permute.xlu1 %226  ;;  %234 = vst.msk [vmem:[#allocation2 + $0xa] sm:$0xff] %vm232_vm1, %v223_v39  ;;  %v906_v39 = vld [vmem:[#allocation4 + $0x1f8] sm:$0xff] }
 0x13f   :  { %237 = vst.msk [vmem:[#allocation2 + $0x1a] sm:$0xf] %vm236_vm2, %v227_v40  ;;  %v12128_v40 = vpack.c.bf16 %v895_v32, %v891_v31 }
 0x141   :  { %v258_v52 = vld [vmem:[#allocation2 + $0x1] sm:$0xff]  ;;  %v661_v58 = vld [vmem:[#allocation2 + $0x12] sm:$0xff] }
 0x142   :  { %11542 = vmatmul.mubr.msk.f32.vlgmr.msra.gmra.mrb[0].mxu0 %vm184_vm0, %v258_v52  ;;  %11546 = vmatmul.mubr.msk.f32.vlgmr.msra.gmra.mrb[0].mxu1 %vm184_vm0, %v258_v52  ;;  %v238_v17 = vld [vmem:[#allocation2] sm:$0xff]  ;;  %v1125_v52 = vld [vmem:[#allocation4 + $0x238] sm:$0xff] }
 0x143   :  { %361 = vmatprep.mubr.f32.mxu0 %v15494_v0  ;;  %450 = vmatprep.mubr.f32.mxu1 %v15494_v0  ;;  %v659_v45 = vld [vmem:[#allocation2 + $0x2] sm:$0xff]  ;;  %v12150_v57 = vpack.c.bf16 %v1125_v52, %v1121_v51 }
 0x144   :  { %12097 = vmatpush1.bf16.msra.mxu0 %v12096_v47  ;;  %12105 = vmatpush1.bf16.msra.mxu1 %v12104_v48  ;;  %v12138_v47 = vpack.c.bf16 %v906_v39, %v902_v38  ;;  %v905_v48 = vld [vmem:[#allocation4 + $0x1f0] sm:$0xff] }
 0x145   :  { %v259_v62 = vld [vmem:[#allocation2 + $0x9] sm:$0xff]  ;;  %12099 = vmatprep.subr.bf16.mxu0 %v12098_v53  ;;  %12107 = vmatprep.subr.bf16.mxu1 %v12106_v54  ;;  %v260_v2 = vld [vmem:[#allocation2 + $0x11] sm:$0xff]  ;;  %v12132_v53 = vpack.c.bf16 %v903_v43, %v899_v42  ;;  %v12140_v54 = vpack.c.bf16 %v905_v48, %v901_v44 }
 0x146   :  { %11543 = vmatmul.mubr.msk.f32.gmra.mrb[2].mxu0 %vm184_vm0, %v259_v62  ;;  %11547 = vmatmul.mubr.msk.f32.gmra.mrb[2].mxu1 %vm184_vm0, %v259_v62  ;;  %v261_v6 = vld [vmem:[#allocation2 + $0x19] sm:$0xf]  ;;  %v239_v27 = vld [vmem:[#allocation2 + $0x8] sm:$0xff]  ;;  %v240_v30 = vld [vmem:[#allocation2 + $0x10] sm:$0xff] }
 0x147   :  { %367 = vmatprep.mubr.f32.mxu0 %v15494_v0  ;;  %456 = vmatprep.mubr.f32.mxu1 %v15494_v0  ;;  %v241_v34 = vld [vmem:[#allocation2 + $0x18] sm:$0xf]  ;;  %v660_v55 = vld [vmem:[#allocation2 + $0xa] sm:$0xff]  ;;  %v1116_v22 = vld [vmem:[#allocation2 + $0x1c] sm:$0xf] }
 0x148   :  { %12101 = vmatpush1.bf16.msra.mxu0 %v12100_v60  ;;  %12109 = vmatpush1.bf16.msra.mxu1 %v12108_v61  ;;  %v1122_v60 = vld [vmem:[#allocation4 + $0x220] sm:$0xff]  ;;  %v1120_v61 = vld [vmem:[#allocation4 + $0x210] sm:$0xff]  ;;  %v662_v62 = vld [vmem:[#allocation2 + $0x1a] sm:$0xf] }
 0x149   :  { %12111 = vmatprep.subr.bf16.mxu0 %v12110_v63  ;;  %12119 = vmatprep.subr.bf16.mxu1 %v12118_v1  ;;  %v1124_v63 = vld [vmem:[#allocation4 + $0x230] sm:$0xff]  ;;  %v1127_v1 = vld [vmem:[#allocation4 + $0x248] sm:$0xff]  ;;  %v12144_v5 = vpack.c.bf16 %v1122_v60, %v1118_v59  ;;  %v887_v16 = vld [vmem:[#allocation2 + $0xb] sm:$0xff] }
 0x14a   :  { %11544 = vmatmul.mubr.msk.f32.gmra.mrb[4].mxu0 %vm184_vm0, %v260_v2  ;;  %11548 = vmatmul.mubr.msk.f32.gmra.mrb[4].mxu1 %vm184_vm0, %v260_v2  ;;  %v1131_v2 = vld [vmem:[#allocation4 + $0x268] sm:$0xff]  ;;  %v886_v9 = vld [vmem:[#allocation2 + $0x3] sm:$0xff]  ;;  %v1114_v20 = vld [vmem:[#allocation2 + $0xc] sm:$0xff] }
 0x14b   :  { %373 = vmatprep.mubr.f32.mxu0 %v15494_v0  ;;  %462 = vmatprep.mubr.f32.mxu1 %v15494_v0  ;;  %v12146_v10 = vpack.c.bf16 %v1131_v2, %v1127_v1  ;;  %v1115_v21 = vld [vmem:[#allocation2 + $0x14] sm:$0xff] }
 0x14e   :  { %11545 = vmatmul.mubr.msk.f32.gmra.mrb[6].mxu0 %vm184_vm0, %v261_v6  ;;  %11549 = vmatmul.mubr.msk.f32.gmra.mrb[6].mxu1 %vm184_vm0, %v261_v6  ;;  %v12152_v6 = vpack.c.bf16 %v1124_v63, %v1120_v61 }
 0x14f   :  { %545 = vmatprep.mubr.f32.mxu0 %v15494_v0  ;;  %634 = vmatprep.mubr.f32.mxu1 %v15494_v0 }
 0x152   :  { %11550 = vmatmul.mubr.msk.f32.vlgmr.msra.gmra.mrb[0].mxu0 %vm184_vm0, %v238_v17  ;;  %11554 = vmatmul.mubr.msk.f32.vlgmr.msra.gmra.mrb[0].mxu1 %vm184_vm0, %v238_v17  ;;  %v888_v17 = vld [vmem:[#allocation2 + $0x13] sm:$0xff] }
 0x153   :  { %551 = vmatprep.mubr.f32.mxu0 %v15494_v0  ;;  %640 = vmatprep.mubr.f32.mxu1 %v15494_v0 }
 0x154   :  { %12113 = vmatpush1.bf16.msra.mxu0 %v12112_v12  ;;  %12121 = vmatpush1.bf16.msra.mxu1 %v12120_v13  ;;  %v1128_v12 = vld [vmem:[#allocation4 + $0x250] sm:$0xff] }
 0x155   :  { %12115 = vmatprep.subr.bf16.mxu0 %v12114_v18  ;;  %12123 = vmatprep.subr.bf16.mxu1 %v12122_v19  ;;  %v1132_v13 = vld [vmem:[#allocation4 + $0x270] sm:$0xff]  ;;  %v889_v18 = vld [vmem:[#allocation2 + $0x1b] sm:$0xf] }
 0x156   :  { %11551 = vmatmul.mubr.msk.f32.gmra.mrb[2].mxu0 %vm184_vm0, %v239_v27  ;;  %11555 = vmatmul.mubr.msk.f32.gmra.mrb[2].mxu1 %vm184_vm0, %v239_v27  ;;  %v12156_v15 = vpack.c.bf16 %v1132_v13, %v1128_v12  ;;  %v1113_v19 = vld [vmem:[#allocation2 + $0x4] sm:$0xff]  ;;  %v1340_v27 = vld [vmem:[#allocation7] sm:$0xf] }
 0x157   :  { %557 = vmatprep.mubr.f32.mxu0 %v15494_v0  ;;  %646 = vmatprep.mubr.f32.mxu1 %v15494_v0 }
 0x158   :  { %12117 = vmatpush1.bf16.msra.mxu0 %v12116_v25  ;;  %12125 = vmatpush1.bf16.msra.mxu1 %v12124_v26  ;;  %v15867_v25 = vsub.s32 0, %v1343_v24  ;;  %v15869_v26 = vsub.s32 2, %v1343_v24 }
 0x159   :  { %12127 = vmatprep.subr.bf16.mxu0 %v12126_v28  ;;  %12135 = vmatprep.subr.bf16.mxu1 %v12134_v29  ;;  %v15871_v28 = vsub.s32 1, %v1343_v24  ;;  %v15873_v29 = vsub.s32 3, %v1343_v24 }
 0x15a   :  { %11552 = vmatmul.mubr.msk.f32.gmra.mrb[4].mxu0 %vm184_vm0, %v240_v30  ;;  %11556 = vmatmul.mubr.msk.f32.gmra.mrb[4].mxu1 %vm184_vm0, %v240_v30  ;;  %v1345_v30 = vrot.slane %v1340_v27, %v15867_v25  ;;  %v1353_v31 = vrot.slane %v1340_v27, %v15869_v26 }
 0x15b   :  { %563 = vmatprep.mubr.f32.mxu0 %v15494_v0  ;;  %652 = vmatprep.mubr.f32.mxu1 %v15494_v0  ;;  %v1357_v35 = vrot.slane %v1340_v27, %v15873_v29 }
 0x15e   :  { %11553 = vmatmul.mubr.msk.f32.gmra.mrb[6].mxu0 %vm184_vm0, %v241_v34  ;;  %11557 = vmatmul.mubr.msk.f32.gmra.mrb[6].mxu1 %vm184_vm0, %v241_v34  ;;  %v1349_v34 = vrot.slane %v1340_v27, %v15871_v28  ;;  %v7454_v27 = vld [vmem:[#allocation15 + $0x30] sm:$0xff] }
 0x15f   :  { %756 = vmatprep.mubr.f32.mxu0 %v15494_v0  ;;  %845 = vmatprep.mubr.f32.mxu1 %v15494_v0 }
 0x162   :  { %11558 = vmatmul.mubr.msk.f32.vlgmr.msra.gmra.mrb[0].mxu0 %vm184_vm0, %v659_v45  ;;  %11562 = vmatmul.mubr.msk.f32.vlgmr.msra.gmra.mrb[0].mxu1 %vm184_vm0, %v659_v45 }
 0x163   :  { %762 = vmatprep.mubr.f32.mxu0 %v15494_v0  ;;  %851 = vmatprep.mubr.f32.mxu1 %v15494_v0 }
 0x164   :  { %12129 = vmatpush1.bf16.msra.mxu0 %v12128_v40  ;;  %12137 = vmatpush1.bf16.msra.mxu1 %v12136_v41 }
 0x165   :  { %12131 = vmatprep.subr.bf16.mxu0 %v12130_v46  ;;  %12139 = vmatprep.subr.bf16.mxu1 %v12138_v47 }
 0x166   :  { %11559 = vmatmul.mubr.msk.f32.gmra.mrb[2].mxu0 %vm184_vm0, %v660_v55  ;;  %11563 = vmatmul.mubr.msk.f32.gmra.mrb[2].mxu1 %vm184_vm0, %v660_v55 }
 0x167   :  { %768 = vmatprep.mubr.f32.mxu0 %v15494_v0  ;;  %857 = vmatprep.mubr.f32.mxu1 %v15494_v0 }
 0x168   :  { %12133 = vmatpush1.bf16.msra.mxu0 %v12132_v53  ;;  %12141 = vmatpush1.bf16.msra.mxu1 %v12140_v54 }
 0x169   :  { %12143 = vmatprep.subr.bf16.mxu0 %v12142_v56  ;;  %12151 = vmatprep.subr.bf16.mxu1 %v12150_v57 }
 0x16a   :  { %11560 = vmatmul.mubr.msk.f32.gmra.mrb[4].mxu0 %vm184_vm0, %v661_v58  ;;  %11564 = vmatmul.mubr.msk.f32.gmra.mrb[4].mxu1 %vm184_vm0, %v661_v58 }
 0x16b   :  { %774 = vmatprep.mubr.f32.mxu0 %v15494_v0  ;;  %863 = vmatprep.mubr.f32.mxu1 %v15494_v0 }
 0x16e   :  { %11561 = vmatmul.mubr.msk.f32.gmra.mrb[6].mxu0 %vm184_vm0, %v662_v62  ;;  %11565 = vmatmul.mubr.msk.f32.gmra.mrb[6].mxu1 %vm184_vm0, %v662_v62 }
 0x16f   :  { %983 = vmatprep.mubr.f32.mxu0 %v15494_v0  ;;  %1072 = vmatprep.mubr.f32.mxu1 %v15494_v0 }
 0x172   :  { %11566 = vmatmul.mubr.msk.f32.vlgmr.msra.gmra.mrb[0].mxu0 %vm184_vm0, %v886_v9  ;;  %11570 = vmatmul.mubr.msk.f32.vlgmr.msra.gmra.mrb[0].mxu1 %vm184_vm0, %v886_v9 }
 0x173   :  { %989 = vmatprep.mubr.f32.mxu0 %v15494_v0  ;;  %1078 = vmatprep.mubr.f32.mxu1 %v15494_v0 }
 0x174   :  { %12145 = vmatpush1.bf16.msra.mxu0 %v12144_v5  ;;  %12153 = vmatpush1.bf16.msra.mxu1 %v12152_v6 }
 0x175   :  { %12147 = vmatprep.subr.bf16.mxu0 %v12146_v10  ;;  %12155 = vmatprep.subr.bf16.mxu1 %v12154_v11 }
 0x176   :  { %11567 = vmatmul.mubr.msk.f32.gmra.mrb[2].mxu0 %vm184_vm0, %v887_v16  ;;  %11571 = vmatmul.mubr.msk.f32.gmra.mrb[2].mxu1 %vm184_vm0, %v887_v16 }
 0x177   :  { %995 = vmatprep.mubr.f32.mxu0 %v15494_v0  ;;  %1084 = vmatprep.mubr.f32.mxu1 %v15494_v0 }
 0x178   :  { %12149 = vmatpush1.bf16.msra.mxu0 %v12148_v14  ;;  %12157 = vmatpush1.bf16.msra.mxu1 %v12156_v15 }
 0x17a   :  { %11568 = vmatmul.mubr.msk.f32.gmra.mrb[4].mxu0 %vm184_vm0, %v888_v17  ;;  %11572 = vmatmul.mubr.msk.f32.gmra.mrb[4].mxu1 %vm184_vm0, %v888_v17 }
 0x17b   :  { %1001 = vmatprep.mubr.f32.mxu0 %v15494_v0  ;;  %1090 = vmatprep.mubr.f32.mxu1 %v15494_v0 }
 0x17e   :  { %11569 = vmatmul.mubr.msk.f32.gmra.mrb[6].mxu0 %vm184_vm0, %v889_v18  ;;  %11573 = vmatmul.mubr.msk.f32.gmra.mrb[6].mxu1 %vm184_vm0, %v889_v18 }
 0x17f   :  { %1210 = vmatprep.mubr.f32.mxu0 %v15494_v0  ;;  %1299 = vmatprep.mubr.f32.mxu1 %v15494_v0 }
 0x182   :  { %11574 = vmatmul.mubr.msk.f32.vlgmr.msra.gmra.mrb[0].mxu0 %vm184_vm0, %v1113_v19  ;;  %11578 = vmatmul.mubr.msk.f32.vlgmr.msra.gmra.mrb[0].mxu1 %vm184_vm0, %v1113_v19 }
 0x183   :  { %1216 = vmatprep.mubr.f32.mxu0 %v15494_v0  ;;  %1305 = vmatprep.mubr.f32.mxu1 %v15494_v0 }
 0x186   :  { %11575 = vmatmul.mubr.msk.f32.gmra.mrb[2].mxu0 %vm184_vm0, %v1114_v20  ;;  %11579 = vmatmul.mubr.msk.f32.gmra.mrb[2].mxu1 %vm184_vm0, %v1114_v20 }
 0x187   :  { %1222 = vmatprep.mubr.f32.mxu0 %v15494_v0  ;;  %1311 = vmatprep.mubr.f32.mxu1 %v15494_v0 }
 0x18a   :  { %11576 = vmatmul.mubr.msk.f32.gmra.mrb[4].mxu0 %vm184_vm0, %v1115_v21  ;;  %11580 = vmatmul.mubr.msk.f32.gmra.mrb[4].mxu1 %vm184_vm0, %v1115_v21 }
 0x18b   :  { %1228 = vmatprep.mubr.f32.mxu0 %v15494_v0  ;;  %1317 = vmatprep.mubr.f32.mxu1 %v15494_v0 }
 0x18e   :  { %11577 = vmatmul.mubr.msk.f32.gmra.mrb[6].mxu0 %vm184_vm0, %v1116_v22  ;;  %11581 = vmatmul.mubr.msk.f32.gmra.mrb[6].mxu1 %vm184_vm0, %v1116_v22 }
 0x18f   :  { %1480 = vmatprep.mubr.f32.mxu0 %v15494_v0  ;;  %1557 = vmatprep.mubr.f32.mxu1 %v15494_v0 }
 0x255   :  { %v1212_v32 = vpop.f32.mrb[0].mxu0  ;;  %v1301_v33 = vpop.f32.mrb[0].mxu1 }
 0x256   :  { %v1214_v36 = vpop.f32.mrb[1].mxu0  ;;  %v1303_v37 = vpop.f32.mrb[1].mxu1  ;;  %v1362_v38 = vadd.f32 %v1345_v30, %v1212_v32  ;;  %v1364_v39 = vadd.f32 %v1353_v31, %v1301_v33  ;;  %v1394_v32 = vld [vmem:[#allocation12] sm:$0xff]  ;;  %v1395_v33 = vld [vmem:[#allocation12 + $0x8] sm:$0x3f] }
 0x257   :  { %v1363_v40 = vadd.f32 %v1349_v34, %v1214_v36  ;;  %v1365_v41 = vadd.f32 %v1357_v35, %v1303_v37  ;;  %v1788_v36 = vld [vmem:[#allocation15 + $0x8] sm:$0xff]  ;;  %v1790_v37 = vld [vmem:[#allocation15 + $0x18] sm:$0xff] }
 0x258   :  { %v1378_v50 = vmax.f32 %v1362_v38, 0.0  ;;  %v1380_v51 = vmax.f32 %v1364_v39, 0.0  ;;  %v1787_v38 = vld [vmem:[#allocation15] sm:$0xff]  ;;  %v12198_v39 = vpack.c.bf16 %v1790_v37, %v1788_v36  ;;  %v1870_v36 = vld [vmem:[#allocation15 + $0x298] sm:$0xff]  ;;  %v1812_v37 = vld [vmem:[#allocation15 + $0xc8] sm:$0xff] }
 0x259   :  { %v1218_v42 = vpop.f32.mrb[2].mxu0  ;;  %v1307_v43 = vpop.f32.mrb[2].mxu1  ;;  %v1379_v54 = vmax.f32 %v1363_v40, 0.0  ;;  %v1381_v55 = vmax.f32 %v1365_v41, 0.0  ;;  %v1789_v40 = vld [vmem:[#allocation15 + $0x10] sm:$0xff]  ;;  %v1792_v41 = vld [vmem:[#allocation15 + $0x28] sm:$0xff] }
 0x25a   :  { %v1366_v44 = vadd.f32 %v1345_v30, %v1218_v42  ;;  %v1368_v45 = vadd.f32 %v1353_v31, %v1307_v43  ;;  %v1220_v46 = vpop.f32.mrb[3].mxu0  ;;  %v1309_v47 = vpop.f32.mrb[3].mxu1  ;;  %v1794_v42 = vld [vmem:[#allocation15 + $0x38] sm:$0xff]  ;;  %v12200_v43 = vpack.c.bf16 %v1789_v40, %v1787_v38 }
 0x25b   :  { %v1367_v48 = vadd.f32 %v1349_v34, %v1220_v46  ;;  %v1369_v49 = vadd.f32 %v1357_v35, %v1309_v47  ;;  %v1793_v46 = vld [vmem:[#allocation15 + $0x30] sm:$0xff]  ;;  %v1796_v47 = vld [vmem:[#allocation15 + $0x48] sm:$0xff]  ;;  %v1814_v38 = vld [vmem:[#allocation15 + $0xd8] sm:$0xff] }
 0x25c   :  { %v1382_v52 = vmax.f32 %v1366_v44, 0.0  ;;  %v1384_v53 = vmax.f32 %v1368_v45, 0.0  ;;  %v12202_v44 = vpack.c.bf16 %v1794_v42, %v1792_v41  ;;  %v1791_v45 = vld [vmem:[#allocation15 + $0x20] sm:$0xff] }
 0x25d   :  { %v1383_v56 = vmax.f32 %v1367_v48, 0.0  ;;  %v1385_v57 = vmax.f32 %v1369_v49, 0.0  ;;  %v1224_v58 = vpop.f32.mrb[4].mxu0  ;;  %v1313_v59 = vpop.f32.mrb[4].mxu1  ;;  %v1798_v48 = vld [vmem:[#allocation15 + $0x58] sm:$0xff]  ;;  %v1811_v41 = vld [vmem:[#allocation15 + $0xc0] sm:$0xff] }
 0x25e   :  { %v12160_v60 = vpack.c.bf16 %v1382_v52, %v1378_v50  ;;  %v12170_v61 = vpack.c.bf16 %v1384_v53, %v1380_v51  ;;  %v1226_v62 = vpop.f32.mrb[5].mxu0  ;;  %v1315_v63 = vpop.f32.mrb[5].mxu1  ;;  %v1370_v3 = vadd.f32 %v1345_v30, %v1224_v58  ;;  %v1372_v4 = vadd.f32 %v1353_v31, %v1313_v59  ;;  %v1795_v50 = vld [vmem:[#allocation15 + $0x40] sm:$0xff]  ;;  %v1797_v51 = vld [vmem:[#allocation15 + $0x50] sm:$0xff]  ;;  %v1800_v52 = vld [vmem:[#allocation15 + $0x68] sm:$0xff] }
 0x25f   :  { %v12158_v1 = vpack.c.bf16 %v1383_v56, %v1379_v54  ;;  %v12168_v2 = vpack.c.bf16 %v1385_v57, %v1381_v55  ;;  %v1371_v5 = vadd.f32 %v1349_v34, %v1226_v62  ;;  %v1373_v6 = vadd.f32 %v1357_v35, %v1315_v63  ;;  %v1802_v53 = vld [vmem:[#allocation15 + $0x78] sm:$0xff]  ;;  %v1852_v54 = vld [vmem:[#allocation15 + $0x208] sm:$0xff]  ;;  %v1851_v56 = vld [vmem:[#allocation15 + $0x200] sm:$0xff] }
 0x260   :  { %v1386_v15 = vmax.f32 %v1370_v3, 0.0  ;;  %v1388_v16 = vmax.f32 %v1372_v4, 0.0  ;;  %v12206_v49 = vpack.c.bf16 %v1798_v48, %v1796_v47  ;;  %v1854_v55 = vld [vmem:[#allocation15 + $0x218] sm:$0xff]  ;;  %v1853_v57 = vld [vmem:[#allocation15 + $0x210] sm:$0xff]  ;;  %v12208_v58 = vpack.c.bf16 %v1797_v51, %v1795_v50  ;;  %v1799_v59 = vld [vmem:[#allocation15 + $0x60] sm:$0xff] }
 0x261   :  { %v1230_v7 = vpop.f32.mrb[6].mxu0  ;;  %v1319_v8 = vpop.f32.mrb[6].mxu1  ;;  %12159 = vmatprep.subr.bf16.mxu0 %v12158_v1  ;;  %12169 = vmatprep.subr.bf16.mxu1 %v12168_v2  ;;  %v1387_v19 = vmax.f32 %v1371_v5, 0.0  ;;  %v1389_v20 = vmax.f32 %v1373_v6, 0.0  ;;  %v12264_v62 = vpack.c.bf16 %v1853_v57, %v1851_v56  ;;  %v12210_v63 = vpack.c.bf16 %v1802_v53, %v1800_v52  ;;  %v1858_v3 = vld [vmem:[#allocation15 + $0x238] sm:$0xff]  ;;  %v1855_v6 = vld [vmem:[#allocation15 + $0x220] sm:$0xff] }
 0x262   :  { %v1374_v9 = vadd.f32 %v1345_v30, %v1230_v7  ;;  %v1376_v10 = vadd.f32 %v1353_v31, %v1319_v8  ;;  %v1232_v11 = vpop.f32.mrb[7].mxu0  ;;  %v1321_v12 = vpop.f32.mrb[7].mxu1  ;;  %12161 = vmatpush1.bf16.msra.mxu0 %v12160_v60  ;;  %12171 = vmatpush1.bf16.msra.mxu1 %v12170_v61  ;;  %v1806_v4 = vld [vmem:[#allocation15 + $0x98] sm:$0xff]  ;;  %v1857_v7 = vld [vmem:[#allocation15 + $0x230] sm:$0xff]  ;;  %v1872_v47 = vld [vmem:[#allocation15 + $0x2a8] sm:$0xff] }
 0x263   :  { %v1375_v13 = vadd.f32 %v1349_v34, %v1232_v11  ;;  %v1377_v14 = vadd.f32 %v1357_v35, %v1321_v12  ;;  %v1570_v34 = vld [vmem:[#allocation13] sm:$0xff]  ;;  %v1571_v35 = vld [vmem:[#allocation13 + $0x8] sm:$0x3f]  ;;  %v12268_v8 = vpack.c.bf16 %v1857_v7, %v1855_v6  ;;  %v1859_v12 = vld [vmem:[#allocation15 + $0x240] sm:$0xff] }
 0x264   :  { %v1390_v17 = vmax.f32 %v1374_v9, 0.0  ;;  %v1392_v18 = vmax.f32 %v1376_v10, 0.0  ;;  %v1860_v10 = vld [vmem:[#allocation15 + $0x248] sm:$0xff]  ;;  %v1862_v11 = vld [vmem:[#allocation15 + $0x258] sm:$0xff]  ;;  %v1815_v52 = vld [vmem:[#allocation15 + $0xe0] sm:$0xff] }
 0x265   :  { %v1391_v21 = vmax.f32 %v1375_v13, 0.0  ;;  %v1393_v22 = vmax.f32 %v1377_v14, 0.0  ;;  %v1803_v14 = vld [vmem:[#allocation15 + $0x80] sm:$0xff]  ;;  %v1874_v48 = vld [vmem:[#allocation15 + $0x2b8] sm:$0xff]  ;;  %v1817_v57 = vld [vmem:[#allocation15 + $0xf0] sm:$0xff] }
 0x266   :  { %v12165_v23 = vpack.c.bf16 %v1390_v17, %v1386_v15  ;;  %v12175_v24 = vpack.c.bf16 %v1392_v18, %v1388_v16  ;;  %v1805_v15 = vld [vmem:[#allocation15 + $0x90] sm:$0xff]  ;;  %v12270_v16 = vpack.c.bf16 %v1862_v11, %v1860_v10  ;;  %v1808_v18 = vld [vmem:[#allocation15 + $0xa8] sm:$0xff]  ;;  %v12282_v53 = vpack.c.bf16 %v1874_v48, %v1872_v47  ;;  %v1826_v10 = vld [vmem:[#allocation15 + $0x138] sm:$0xff] }
 0x267   :  { %v12162_v30 = vpack.c.bf16 %v1391_v21, %v1387_v19  ;;  %v12172_v31 = vpack.c.bf16 %v1393_v22, %v1389_v20  ;;  %v1861_v17 = vld [vmem:[#allocation15 + $0x250] sm:$0xff]  ;;  %v1810_v19 = vld [vmem:[#allocation15 + $0xb8] sm:$0xff]  ;;  %v1864_v20 = vld [vmem:[#allocation15 + $0x268] sm:$0xff] }
 0x268   :  { %v12272_v21 = vpack.c.bf16 %v1861_v17, %v1859_v12  ;;  %v1866_v22 = vld [vmem:[#allocation15 + $0x278] sm:$0xff]  ;;  %v1821_v6 = vld [vmem:[#allocation15 + $0x110] sm:$0xff]  ;;  %v1880_v7 = vld [vmem:[#allocation15 + $0x2e8] sm:$0xff] }
 0x269   :  { %12164 = vmatprep.subr.msk.bf16.mxu0 %vm15881_vm5, %v12162_v30  ;;  %12174 = vmatprep.subr.msk.bf16.mxu1 %vm15881_vm5, %v12172_v31  ;;  %v1838_v47 = vld [vmem:[#allocation15 + $0x198] sm:$0xff] }
 0x26a   :  { %12167 = vmatpush1.bf16.msk.msra.mxu0 %vm15881_vm5, %v12165_v23  ;;  %12177 = vmatpush1.bf16.msk.msra.mxu1 %vm15881_vm5, %v12175_v24 }
 0x26b   :  { %12179 = vmatprep.subr.bf16.mxu0 %v12158_v1  ;;  %12189 = vmatprep.subr.bf16.mxu1 %v12168_v2  ;;  %v1804_v1 = vld [vmem:[#allocation15 + $0x88] sm:$0xff] }
 0x26c   :  { %v1856_v2 = vld [vmem:[#allocation15 + $0x228] sm:$0xff]  ;;  %v12214_v13 = vpack.c.bf16 %v1806_v4, %v1804_v1  ;;  %v1819_v1 = vld [vmem:[#allocation15 + $0x100] sm:$0xff]  ;;  %v1877_v4 = vld [vmem:[#allocation15 + $0x2d0] sm:$0xff] }
 0x26d   :  { %11584 = vmatmul.mubr.msk.f32.vlgmr.msra.gmra.mrb[8].mxu0 %vm1396_vm6, %v1394_v32  ;;  %11588 = vmatmul.mubr.msk.f32.vlgmr.msra.gmra.mrb[8].mxu1 %vm1396_vm6, %v1394_v32  ;;  %v12266_v5 = vpack.c.bf16 %v1858_v3, %v1856_v2  ;;  %v1865_v32 = vld [vmem:[#allocation15 + $0x270] sm:$0xff]  ;;  %v1875_v3 = vld [vmem:[#allocation15 + $0x2c0] sm:$0xff]  ;;  %v12232_v12 = vpack.c.bf16 %v1821_v6, %v1819_v1  ;;  %v1844_v1 = vld [vmem:[#allocation15 + $0x1c8] sm:$0xff] }
 0x26e   :  { %12181 = vmatpush1.bf16.msra.mxu0 %v12160_v60  ;;  %12191 = vmatpush1.bf16.msra.mxu1 %v12170_v61  ;;  %v1801_v60 = vld [vmem:[#allocation15 + $0x70] sm:$0xff]  ;;  %v12262_v61 = vpack.c.bf16 %v1854_v55, %v1852_v54  ;;  %v1871_v54 = vld [vmem:[#allocation15 + $0x2a0] sm:$0xff]  ;;  %v12288_v11 = vpack.c.bf16 %v1877_v4, %v1875_v3  ;;  %v1846_v3 = vld [vmem:[#allocation15 + $0x1d8] sm:$0xff] }
 0x26f   :  { %12184 = vmatprep.subr.msk.bf16.mxu0 %vm15881_vm5, %v12162_v30  ;;  %12194 = vmatprep.subr.msk.bf16.mxu1 %vm15881_vm5, %v12172_v31  ;;  %v12212_v9 = vpack.c.bf16 %v1801_v60, %v1799_v59  ;;  %v12274_v30 = vpack.c.bf16 %v1866_v22, %v1864_v20  ;;  %v1863_v31 = vld [vmem:[#allocation15 + $0x260] sm:$0xff]  ;;  %v1873_v55 = vld [vmem:[#allocation15 + $0x2b0] sm:$0xff]  ;;  %v1878_v59 = vld [vmem:[#allocation15 + $0x2d8] sm:$0xff]  ;;  %v12254_v6 = vpack.c.bf16 %v1846_v3, %v1844_v1 }
 0x270   :  { %1486 = vmatprep.mubr.f32.mxu0 %v15494_v0  ;;  %1563 = vmatprep.mubr.f32.mxu1 %v15494_v0  ;;  %v1820_v60 = vld [vmem:[#allocation15 + $0x108] sm:$0xff]  ;;  %v1886_v20 = vld [vmem:[#allocation15 + $0x318] sm:$0xff]  ;;  %v1843_v4 = vld [vmem:[#allocation15 + $0x1c0] sm:$0xff] }
 0x271   :  { %11585 = vmatmul.mubr.msk.f32.gmra.mrb[10].mxu0 %vm1396_vm6, %v1395_v33  ;;  %11589 = vmatmul.mubr.msk.f32.gmra.mrb[10].mxu1 %vm1396_vm6, %v1395_v33  ;;  %v12218_v33 = vpack.c.bf16 %v1810_v19, %v1808_v18  ;;  %v1825_v18 = vld [vmem:[#allocation15 + $0x130] sm:$0xff]  ;;  %v1884_v19 = vld [vmem:[#allocation15 + $0x308] sm:$0xff]  ;;  %v1830_v22 = vld [vmem:[#allocation15 + $0x158] sm:$0xff] }
 0x272   :  { %12187 = vmatpush1.bf16.msk.msra.mxu0 %vm15881_vm5, %v12165_v23  ;;  %12197 = vmatpush1.bf16.msk.msra.mxu1 %vm15881_vm5, %v12175_v24  ;;  %v12216_v23 = vpack.c.bf16 %v1805_v15, %v1803_v14  ;;  %v1807_v24 = vld [vmem:[#allocation15 + $0xa0] sm:$0xff] }
 0x273   :  { %1642 = vmatprep.mubr.f32.mxu0 %v15494_v0  ;;  %1719 = vmatprep.mubr.f32.mxu1 %v15494_v0  ;;  %v1879_v15 = vld [vmem:[#allocation15 + $0x2e0] sm:$0xff] }
 0x274   :  { %12199 = vmatprep.subr.bf16.mxu1 %v12198_v39  ;;  %12263 = vmatprep.subr.bf16.mxu0 %v12262_v61  ;;  %v12276_v39 = vpack.c.bf16 %v1865_v32, %v1863_v31  ;;  %v1822_v61 = vld [vmem:[#allocation15 + $0x118] sm:$0xff]  ;;  %v12294_v31 = vpack.c.bf16 %v1886_v20, %v1884_v19  ;;  %v1883_v32 = vld [vmem:[#allocation15 + $0x300] sm:$0xff] }
 0x275   :  { %11592 = vmatmul.mubr.msk.f32.vlgmr.msra.gmra.mrb[12].mxu0 %vm1396_vm6, %v1570_v34  ;;  %11596 = vmatmul.mubr.msk.f32.vlgmr.msra.gmra.mrb[12].mxu1 %vm1396_vm6, %v1570_v34  ;;  %v1809_v34 = vld [vmem:[#allocation15 + $0xb0] sm:$0xff]  ;;  %v1850_v19 = vld [vmem:[#allocation15 + $0x1f8] sm:$0xff] }
 0x276   :  { %1648 = vmatprep.mubr.f32.mxu0 %v15494_v0  ;;  %1725 = vmatprep.mubr.f32.mxu1 %v15494_v0  ;;  %v12204_v0 = vpack.c.bf16 %v1793_v46, %v1791_v45  ;;  %v12220_v40 = vpack.c.bf16 %v1809_v34, %v1807_v24  ;;  %v12222_v45 = vpack.c.bf16 %v1814_v38, %v1812_v37  ;;  %v1813_v46 = vld [vmem:[#allocation15 + $0xd0] sm:$0xff]  ;;  %v1890_v37 = vld [vmem:[#allocation15 + $0x338] sm:$0xff]  ;;  %v1832_v38 = vld [vmem:[#allocation15 + $0x168] sm:$0xff] }
 0x277   :  { %12201 = vmatpush1.bf16.msra.mxu1 %v12200_v43  ;;  %12265 = vmatpush1.bf16.msra.mxu0 %v12264_v62  ;;  %v1867_v43 = vld [vmem:[#allocation15 + $0x280] sm:$0xff]  ;;  %v12224_v51 = vpack.c.bf16 %v1813_v46, %v1811_v41  ;;  %v12284_v62 = vpack.c.bf16 %v1873_v55, %v1871_v54  ;;  %v1836_v46 = vld [vmem:[#allocation15 + $0x188] sm:$0xff] }
 0x278   :  { %12203 = vmatprep.subr.bf16.mxu1 %v12202_v44  ;;  %12267 = vmatprep.subr.bf16.mxu0 %v12266_v5  ;;  %v1869_v44 = vld [vmem:[#allocation15 + $0x290] sm:$0xff]  ;;  %v12230_v5 = vpack.c.bf16 %v1822_v61, %v1820_v60  ;;  %v1839_v55 = vld [vmem:[#allocation15 + $0x1a0] sm:$0xff] }
 0x279   :  { %11593 = vmatmul.mubr.msk.f32.gmra.mrb[14].mxu0 %vm1396_vm6, %v1571_v35  ;;  %11597 = vmatmul.mubr.msk.f32.gmra.mrb[14].mxu1 %vm1396_vm6, %v1571_v35  ;;  %v1868_v35 = vld [vmem:[#allocation15 + $0x288] sm:$0xff]  ;;  %v12280_v50 = vpack.c.bf16 %v1869_v44, %v1867_v43  ;;  %v1831_v44 = vld [vmem:[#allocation15 + $0x160] sm:$0xff] }
 0x27a   :  { %v12278_v42 = vpack.c.bf16 %v1870_v36, %v1868_v35  ;;  %v1829_v35 = vld [vmem:[#allocation15 + $0x150] sm:$0xff]  ;;  %v1888_v36 = vld [vmem:[#allocation15 + $0x328] sm:$0xff] }
 0x27b   :  { %12205 = vmatpush1.bf16.msra.mxu1 %v12204_v0  ;;  %12269 = vmatpush1.bf16.msra.mxu0 %v12268_v8  ;;  %v1816_v0 = vld [vmem:[#allocation15 + $0xe8] sm:$0xff]  ;;  %v1882_v8 = vld [vmem:[#allocation15 + $0x2f8] sm:$0xff] }
 0x27c   :  { %12207 = vmatprep.subr.bf16.mxu1 %v12206_v49  ;;  %12271 = vmatprep.subr.bf16.mxu0 %v12270_v16  ;;  %v1818_v49 = vld [vmem:[#allocation15 + $0xf8] sm:$0xff]  ;;  %v12290_v14 = vpack.c.bf16 %v1882_v8, %v1880_v7  ;;  %v1881_v16 = vld [vmem:[#allocation15 + $0x2f0] sm:$0xff]  ;;  %v1892_v8 = vld [vmem:[#allocation15 + $0x348] sm:$0xff] }
 0x27d   :  { %v12226_v56 = vpack.c.bf16 %v1818_v49, %v1816_v0  ;;  %v12246_v0 = vpack.c.bf16 %v1838_v47, %v1836_v46  ;;  %v1835_v49 = vld [vmem:[#allocation15 + $0x180] sm:$0xff] }
 0x27f   :  { %12209 = vmatpush1.bf16.msra.mxu1 %v12208_v58  ;;  %12273 = vmatpush1.bf16.msra.mxu0 %v12272_v21  ;;  %v1876_v58 = vld [vmem:[#allocation15 + $0x2c8] sm:$0xff] }
 0x280   :  { %12211 = vmatprep.subr.bf16.mxu1 %v12210_v63  ;;  %12275 = vmatprep.subr.bf16.mxu0 %v12274_v30  ;;  %v12228_v63 = vpack.c.bf16 %v1817_v57, %v1815_v52  ;;  %v12286_v2 = vpack.c.bf16 %v1878_v59, %v1876_v58  ;;  %v1828_v21 = vld [vmem:[#allocation15 + $0x148] sm:$0xff]  ;;  %v1827_v30 = vld [vmem:[#allocation15 + $0x140] sm:$0xff]  ;;  %v1842_v52 = vld [vmem:[#allocation15 + $0x1b8] sm:$0xff] }
 0x281   :  { %v12238_v34 = vpack.c.bf16 %v1830_v22, %v1828_v21  ;;  %v12240_v41 = vpack.c.bf16 %v1829_v35, %v1827_v30 }
 0x283   :  { %12213 = vmatpush1.bf16.msra.mxu1 %v12212_v9  ;;  %12277 = vmatpush1.bf16.msra.mxu0 %v12276_v39  ;;  %v1824_v9 = vld [vmem:[#allocation15 + $0x128] sm:$0xff]  ;;  %v1834_v39 = vld [vmem:[#allocation15 + $0x178] sm:$0xff] }
 0x284   :  { %12215 = vmatprep.subr.bf16.mxu1 %v12214_v13  ;;  %12279 = vmatprep.subr.bf16.mxu0 %v12278_v42  ;;  %v1823_v13 = vld [vmem:[#allocation15 + $0x120] sm:$0xff]  ;;  %v12234_v17 = vpack.c.bf16 %v1826_v10, %v1824_v9  ;;  %v12298_v42 = vpack.c.bf16 %v1890_v37, %v1888_v36  ;;  %v12242_v43 = vpack.c.bf16 %v1834_v39, %v1832_v38  ;;  %v1894_v9 = vld [vmem:[#allocation15 + $0x358] sm:$0xff] }
 0x285   :  { %v12236_v24 = vpack.c.bf16 %v1825_v18, %v1823_v13  ;;  %v1848_v18 = vld [vmem:[#allocation15 + $0x1e8] sm:$0xff] }
 0x286   :  { %v12258_v22 = vpack.c.bf16 %v1850_v19, %v1848_v18  ;;  %v2252_v19 = vld [vmem:[#allocation9 + $0x4c0] sm:$0xff] }
 0x287   :  { %12217 = vmatpush1.bf16.msra.mxu1 %v12216_v23  ;;  %12281 = vmatpush1.bf16.msra.mxu0 %v12280_v50  ;;  %v12292_v23 = vpack.c.bf16 %v1881_v16, %v1879_v15  ;;  %v1837_v50 = vld [vmem:[#allocation15 + $0x190] sm:$0xff]  ;;  %v1891_v15 = vld [vmem:[#allocation15 + $0x340] sm:$0xff] }
 0x288   :  { %12219 = vmatprep.subr.bf16.mxu1 %v12218_v33  ;;  %12283 = vmatprep.subr.bf16.mxu0 %v12282_v53  ;;  %v1885_v33 = vld [vmem:[#allocation15 + $0x310] sm:$0xff]  ;;  %v12248_v53 = vpack.c.bf16 %v1837_v50, %v1835_v49 }
 0x289   :  { %v1893_v16 = vld [vmem:[#allocation15 + $0x350] sm:$0xff] }
 0x28b   :  { %12221 = vmatpush1.bf16.msra.mxu1 %v12220_v40  ;;  %12285 = vmatpush1.bf16.msra.mxu0 %v12284_v62  ;;  %v12296_v40 = vpack.c.bf16 %v1885_v33, %v1883_v32  ;;  %v1887_v62 = vld [vmem:[#allocation15 + $0x320] sm:$0xff] }
 0x28c   :  { %12223 = vmatprep.subr.bf16.mxu1 %v12222_v45  ;;  %12287 = vmatprep.subr.bf16.mxu0 %v12286_v2  ;;  %v1833_v45 = vld [vmem:[#allocation15 + $0x170] sm:$0xff] }
 0x28d   :  { %v12244_v48 = vpack.c.bf16 %v1833_v45, %v1831_v44 }
 0x28f   :  { %12225 = vmatpush1.bf16.msra.mxu1 %v12224_v51  ;;  %12289 = vmatpush1.bf16.msra.mxu0 %v12288_v11  ;;  %v1840_v51 = vld [vmem:[#allocation15 + $0x1a8] sm:$0xff] }
 0x290   :  { %12227 = vmatprep.subr.bf16.mxu1 %v12226_v56  ;;  %12291 = vmatprep.subr.bf16.mxu0 %v12290_v14  ;;  %v12250_v54 = vpack.c.bf16 %v1842_v52, %v1840_v51  ;;  %v1841_v56 = vld [vmem:[#allocation15 + $0x1b0] sm:$0xff] }
 0x291   :  { %v12252_v57 = vpack.c.bf16 %v1841_v56, %v1839_v55 }
 0x293   :  { %12229 = vmatpush1.bf16.msra.mxu1 %v12228_v63  ;;  %12293 = vmatpush1.bf16.msra.mxu0 %v12292_v23  ;;  %v1889_v63 = vld [vmem:[#allocation15 + $0x330] sm:$0xff]  ;;  %v1847_v23 = vld [vmem:[#allocation15 + $0x1e0] sm:$0xff] }
 0x294   :  { %12231 = vmatprep.subr.bf16.mxu1 %v12230_v5  ;;  %12295 = vmatprep.subr.bf16.mxu0 %v12294_v31  ;;  %v12300_v2 = vpack.c.bf16 %v1889_v63, %v1887_v62  ;;  %v1845_v5 = vld [vmem:[#allocation15 + $0x1d0] sm:$0xff] }
 0x295   :  { %v12256_v7 = vpack.c.bf16 %v1845_v5, %v1843_v4 }
 0x297   :  { %12233 = vmatpush1.bf16.msra.mxu1 %v12232_v12  ;;  %12297 = vmatpush1.bf16.msra.mxu0 %v12296_v40  ;;  %v12302_v12 = vpack.c.bf16 %v1894_v9, %v1892_v8  ;;  %v15928_v9 = vld [vmem:[#allocation3] sm:$0xff] }
 0x298   :  { %12235 = vmatprep.subr.bf16.mxu1 %v12234_v17  ;;  %12299 = vmatprep.subr.bf16.mxu0 %v12298_v42  ;;  %v12304_v17 = vpack.c.bf16 %v1893_v16, %v1891_v15  ;;  %v2253_v15 = vld [vmem:[#allocation9 + $0x4c8] sm:$0xff] }
 0x299   :  { %v2257_v16 = vld [vmem:[#allocation9 + $0x4e8] sm:$0xff] }
 0x29a   :  { %v12310_v18 = vpack.c.bf16 %v2257_v16, %v2253_v15  ;;  %v2324_v15 = vld [vmem:[#allocation9 + $0x700] sm:$0xff] }
 0x29b   :  { %12237 = vmatpush1.bf16.msra.mxu1 %v12236_v24  ;;  %12301 = vmatpush1.bf16.msra.mxu0 %v12300_v2  ;;  %v1849_v24 = vld [vmem:[#allocation15 + $0x1f0] sm:$0xff]  ;;  %v2328_v16 = vld [vmem:[#allocation9 + $0x720] sm:$0xff] }
 0x29c   :  { %12239 = vmatprep.subr.bf16.mxu1 %v12238_v34  ;;  %12303 = vmatprep.subr.bf16.mxu0 %v12302_v12  ;;  %v12260_v34 = vpack.c.bf16 %v1849_v24, %v1847_v23  ;;  %v2244_v12 = vld [vmem:[#allocation9 + $0x480] sm:$0xff] }
 0x29f   :  { %12241 = vmatpush1.bf16.msra.mxu1 %v12240_v41  ;;  %12305 = vmatpush1.bf16.msra.mxu0 %v12304_v17 }
 0x2a0   :  { %12243 = vmatprep.subr.bf16.mxu1 %v12242_v43 }
 0x2a3   :  { %12245 = vmatpush1.bf16.msra.mxu1 %v12244_v48 }
 0x2a4   :  { %12247 = vmatprep.subr.bf16.mxu1 %v12246_v0 }
 0x2a7   :  { %12249 = vmatpush1.bf16.msra.mxu1 %v12248_v53 }
 0x2a8   :  { %12251 = vmatprep.subr.bf16.mxu1 %v12250_v54 }
 0x2ab   :  { %12253 = vmatpush1.bf16.msra.mxu1 %v12252_v57 }
 0x2ac   :  { %12255 = vmatprep.subr.bf16.mxu1 %v12254_v6 }
 0x2af   :  { %12257 = vmatpush1.bf16.msra.mxu1 %v12256_v7 }
 0x2b0   :  { %12259 = vmatprep.subr.bf16.mxu1 %v12258_v22  ;;  %v2265_v22 = vld [vmem:[#allocation9 + $0x528] sm:$0xff] }
 0x2b3   :  { %12261 = vmatpush1.bf16.msra.mxu1 %v12260_v34 }
 0x340   :  { %v1482_v58 = vpop.f32.mrb[8].mxu0  ;;  %v1559_v59 = vpop.f32.mrb[8].mxu1 }
 0x341   :  { %v1484_v60 = vpop.f32.mrb[9].mxu0  ;;  %v1561_v61 = vpop.f32.mrb[9].mxu1 }
 0x344   :  { %v1488_v10 = vpop.f32.mrb[10].mxu0  ;;  %v1565_v11 = vpop.f32.mrb[10].mxu1 }
 0x345   :  { %v1490_v13 = vpop.f32.mrb[11].mxu0  ;;  %v1567_v14 = vpop.f32.mrb[11].mxu1 }
 0x348   :  { %v1644_v20 = vpop.f32.mrb[12].mxu0  ;;  %v1721_v21 = vpop.f32.mrb[12].mxu1 }
 0x349   :  { %v1732_v30 = vmax.f32 %v1482_v58, %v1644_v20  ;;  %v1734_v31 = vmax.f32 %v1559_v59, %v1721_v21  ;;  %v1646_v32 = vpop.f32.mrb[13].mxu0  ;;  %v1723_v33 = vpop.f32.mrb[13].mxu1  ;;  %v2256_v20 = vld [vmem:[#allocation9 + $0x4e0] sm:$0xff]  ;;  %v2261_v21 = vld [vmem:[#allocation9 + $0x508] sm:$0xff] }
 0x34a   :  { %v1733_v35 = vmax.f32 %v1484_v60, %v1646_v32  ;;  %v1735_v36 = vmax.f32 %v1561_v61, %v1723_v33  ;;  %v12312_v23 = vpack.c.bf16 %v2256_v20, %v2252_v19  ;;  %v12314_v24 = vpack.c.bf16 %v2265_v22, %v2261_v21  ;;  %v2269_v32 = vld [vmem:[#allocation9 + $0x548] sm:$0xff]  ;;  %v2332_v21 = vld [vmem:[#allocation9 + $0x740] sm:$0xff] }
 0x34b   :  { %v2273_v33 = vld [vmem:[#allocation9 + $0x568] sm:$0xff]  ;;  %v12348_v19 = vpack.c.bf16 %v2328_v16, %v2324_v15  ;;  %v2336_v22 = vld [vmem:[#allocation9 + $0x760] sm:$0xff] }
 0x34c   :  { %v15152_v37 = vpack.i.bf16 %v1734_v31, %v1733_v35  ;;  %v1650_v38 = vpop.f32.mrb[14].mxu0  ;;  %v1727_v39 = vpop.f32.mrb[14].mxu1 }
 0x34d   :  { %v1736_v40 = vmax.f32 %v1488_v10, %v1650_v38  ;;  %v1738_v41 = vmax.f32 %v1565_v11, %v1727_v39  ;;  %v1652_v42 = vpop.f32.mrb[15].mxu0  ;;  %v1729_v43 = vpop.f32.mrb[15].mxu1  ;;  %v2245_v10 = vld [vmem:[#allocation9 + $0x488] sm:$0xff] }
 0x34e   :  { %v1737_v44 = vmax.f32 %v1490_v13, %v1652_v42  ;;  %v1739_v45 = vmax.f32 %v1567_v14, %v1729_v43  ;;  %15153 = vrot.lane.b32.xlu0 %v15152_v37, %s15497_s6  ;;  %v2249_v11 = vld [vmem:[#allocation9 + $0x4a8] sm:$0xff]  ;;  %v2248_v14 = vld [vmem:[#allocation9 + $0x4a0] sm:$0xff] }
 0x34f   :  { %v15162_v47 = vpack.i.bf16 %v1736_v40, %v1738_v41  ;;  %v12306_v13 = vpack.c.bf16 %v2249_v11, %v2245_v10  ;;  %v12308_v17 = vpack.c.bf16 %v2248_v14, %v2244_v12  ;;  %v2272_v37 = vld [vmem:[#allocation9 + $0x560] sm:$0xff]  ;;  %v2277_v38 = vld [vmem:[#allocation9 + $0x588] sm:$0xff] }
 0x350   :  { %v15157_v46 = vpack.i.bf16 %v1737_v44, %v1732_v30  ;;  %v2281_v39 = vld [vmem:[#allocation9 + $0x5a8] sm:$0xff]  ;;  %v2276_v42 = vld [vmem:[#allocation9 + $0x580] sm:$0xff] }
 0x351   :  { %12307 = vmatprep.subr.bf16.mxu1 %v12306_v13  ;;  %v2280_v43 = vld [vmem:[#allocation9 + $0x5a0] sm:$0xff]  ;;  %v2325_v11 = vld [vmem:[#allocation9 + $0x708] sm:$0xff] }
 0x352   :  { %1754 = vrot.lane.b32.xlu0 %v1735_v36, %s15497_s6  ;;  %15158 = vrot.lane.b32.xlu1 %v15157_v46, %s15497_s6  ;;  %v12324_v46 = vpack.c.bf16 %v2280_v43, %v2276_v42  ;;  %v2320_v10 = vld [vmem:[#allocation9 + $0x6e0] sm:$0xff]  ;;  %v2329_v12 = vld [vmem:[#allocation9 + $0x728] sm:$0xff] }
 0x353   :  { %v12346_v14 = vpack.c.bf16 %v2329_v12, %v2325_v11 }
 0x356   :  { %1762 = vrot.lane.b32.xlu0 %v1739_v45, %s15497_s6  ;;  %15163 = vrot.lane.b32.xlu1 %v15162_v47, %s15497_s6 }
 0x3c0   :  { %v15154_v48 = vpop.permute.xlu0 %15153 }
 0x3c1   :  { %v15156_v0 = vunpack.i.h.bf16 %v15154_v48  ;;  %v15155_v49 = vunpack.i.l.bf16 %v15154_v48  ;;  %v2284_v48 = vld [vmem:[#allocation9 + $0x5c0] sm:$0xff] }
 0x3c3   :  { %v1766_v50 = vsel %vm1764_vm7, %v15155_v49, %v15156_v0 }
 0x3c4   :  { %v1755_v51 = vpop.permute.xlu0 %1754  ;;  %v15159_v52 = vpop.permute.xlu1 %15158  ;;  %v1780_v53 = vmax.f32 %v1733_v35, %v1766_v50  ;;  %v12318_v35 = vpack.c.bf16 %v2273_v33, %v2269_v32  ;;  %v2297_v50 = vld [vmem:[#allocation9 + $0x628] sm:$0xff]  ;;  %v2344_v33 = vld [vmem:[#allocation9 + $0x7a0] sm:$0xff] }
 0x3c5   :  { %v1767_v54 = vsel %vm1764_vm7, %v15156_v0, %v1755_v51  ;;  %v1782_v55 = vmax.f32 %v1735_v36, %v1755_v51  ;;  %v15160_v56 = vunpack.i.l.bf16 %v15159_v52  ;;  %v15161_v62 = vunpack.i.h.bf16 %v15159_v52  ;;  %v2268_v36 = vld [vmem:[#allocation9 + $0x540] sm:$0xff] }
 0x3c6   :  { %v1781_v57 = vmax.f32 %v1734_v31, %v1767_v54  ;;  %1966 = vmatprep.mubr.f32.mxu1 %v1780_v53  ;;  %v2264_v31 = vld [vmem:[#allocation9 + $0x520] sm:$0xff] }
 0x3c7   :  { %v1765_v58 = vsel %vm1764_vm7, %v15160_v56, %v15155_v49  ;;  %11598 = vmatprep.mubr.msk.f32.mxu0 %vm1895_vm8, %v1782_v55  ;;  %v2288_v0 = vld [vmem:[#allocation9 + $0x5e0] sm:$0xff]  ;;  %v2293_v49 = vld [vmem:[#allocation9 + $0x608] sm:$0xff] }
 0x3c8   :  { %v1779_v59 = vmax.f32 %v1732_v30, %v1765_v58  ;;  %v1763_v60 = vpop.permute.xlu0 %1762  ;;  %2044 = vmatmul.mubr.f32.vlgmr.msra.gmra.mrb[16].mxu0 %v1781_v57  ;;  %v15164_v61 = vpop.permute.xlu1 %15163  ;;  %v2260_v30 = vld [vmem:[#allocation9 + $0x500] sm:$0xff]  ;;  %v12328_v51 = vpack.c.bf16 %v2288_v0, %v2284_v48  ;;  %v12330_v52 = vpack.c.bf16 %v2297_v50, %v2293_v49  ;;  %v2301_v55 = vld [vmem:[#allocation9 + $0x648] sm:$0xff] }
 0x3c9   :  { %v1786_v63 = vmax.f32 %v1739_v45, %v1763_v60  ;;  %v15166_v1 = vunpack.i.h.bf16 %v15164_v61  ;;  %v15165_v2 = vunpack.i.l.bf16 %v15164_v61  ;;  %v12316_v34 = vpack.c.bf16 %v2264_v31, %v2260_v30  ;;  %v2289_v45 = vld [vmem:[#allocation9 + $0x5e8] sm:$0xff]  ;;  %v2292_v53 = vld [vmem:[#allocation9 + $0x600] sm:$0xff] }
 0x3ca   :  { %1967 = vmatmul.mubr.f32.vlgmr.msra.gmra.mrb[16].mxu1 %v1779_v59  ;;  %v2296_v54 = vld [vmem:[#allocation9 + $0x620] sm:$0xff]  ;;  %v2305_v56 = vld [vmem:[#allocation9 + $0x668] sm:$0xff] }
 0x3cb   :  { %11599 = vmatprep.mubr.msk.f32.mxu0 %vm1895_vm8, %v1786_v63  ;;  %v1769_v3 = vsel %vm1764_vm7, %v15161_v62, %v15165_v2  ;;  %v1770_v4 = vsel %vm1764_vm7, %v15165_v2, %v1763_v60  ;;  %v1768_v5 = vsel %vm1764_vm7, %v15166_v1, %v15161_v62  ;;  %12309 = vmatpush1.bf16.msra.mxu1 %v12308_v17  ;;  %v2300_v59 = vld [vmem:[#allocation9 + $0x640] sm:$0xff]  ;;  %v2309_v61 = vld [vmem:[#allocation9 + $0x688] sm:$0xff] }
 0x3cc   :  { %v1784_v6 = vmax.f32 %v1737_v44, %v1769_v3  ;;  %v1785_v7 = vmax.f32 %v1738_v41, %v1770_v4  ;;  %v1783_v8 = vmax.f32 %v1736_v40, %v1768_v5  ;;  %12311 = vmatprep.subr.bf16.mxu1 %v12310_v18  ;;  %v12320_v40 = vpack.c.bf16 %v2272_v37, %v2268_v36  ;;  %v2285_v44 = vld [vmem:[#allocation9 + $0x5c8] sm:$0xff]  ;;  %v2304_v60 = vld [vmem:[#allocation9 + $0x660] sm:$0xff] }
 0x3cd   :  { %v12322_v41 = vpack.c.bf16 %v2281_v39, %v2277_v38  ;;  %v12326_v47 = vpack.c.bf16 %v2289_v45, %v2285_v44  ;;  %v12332_v57 = vpack.c.bf16 %v2296_v54, %v2292_v53  ;;  %v12334_v58 = vpack.c.bf16 %v2305_v56, %v2301_v55  ;;  %v2313_v62 = vld [vmem:[#allocation9 + $0x6a8] sm:$0xff]  ;;  %v2308_v2 = vld [vmem:[#allocation9 + $0x680] sm:$0xff] }
 0x3ce   :  { %1972 = vmatprep.mubr.f32.mxu1 %v1784_v6  ;;  %2050 = vmatmul.mubr.f32.gmra.mrb[18].mxu0 %v1785_v7  ;;  %v12336_v63 = vpack.c.bf16 %v2304_v60, %v2300_v59  ;;  %v12338_v1 = vpack.c.bf16 %v2313_v62, %v2309_v61  ;;  %v2312_v3 = vld [vmem:[#allocation9 + $0x6a0] sm:$0xff]  ;;  %v2317_v4 = vld [vmem:[#allocation9 + $0x6c8] sm:$0xff] }
 0x3cf   :  { %1973 = vmatmul.mubr.f32.gmra.mrb[18].mxu1 %v1783_v8  ;;  %4643 = vmatprep.mubr.f32.mxu0 %v15928_v9  ;;  %v2321_v5 = vld [vmem:[#allocation9 + $0x6e8] sm:$0xff]  ;;  %v12340_v6 = vpack.c.bf16 %v2312_v3, %v2308_v2  ;;  %v2316_v8 = vld [vmem:[#allocation9 + $0x6c0] sm:$0xff] }
 0x3d0   :  { %12313 = vmatpush1.bf16.msra.mxu1 %v12312_v23  ;;  %v12342_v7 = vpack.c.bf16 %v2321_v5, %v2317_v4  ;;  %v12344_v13 = vpack.c.bf16 %v2320_v10, %v2316_v8  ;;  %v2333_v17 = vld [vmem:[#allocation9 + $0x748] sm:$0xff]  ;;  %v12352_v23 = vpack.c.bf16 %v2336_v22, %v2332_v21  ;;  %v2340_v31 = vld [vmem:[#allocation9 + $0x780] sm:$0xff] }
 0x3d1   :  { %12315 = vmatprep.subr.bf16.mxu1 %v12314_v24  ;;  %v2337_v18 = vld [vmem:[#allocation9 + $0x768] sm:$0xff]  ;;  %v2352_v44 = vld [vmem:[#allocation9 + $0x7e0] sm:$0xff] }
 0x3d2   :  { %v12350_v20 = vpack.c.bf16 %v2337_v18, %v2333_v17  ;;  %v2341_v24 = vld [vmem:[#allocation9 + $0x788] sm:$0xff]  ;;  %v2356_v49 = vld [vmem:[#allocation9 + $0x800] sm:$0xff] }
 0x3d3   :  { %v2345_v30 = vld [vmem:[#allocation9 + $0x7a8] sm:$0xff]  ;;  %v2360_v50 = vld [vmem:[#allocation9 + $0x820] sm:$0xff] }
 0x3d4   :  { %12317 = vmatpush1.bf16.msra.mxu1 %v12316_v34  ;;  %v12354_v32 = vpack.c.bf16 %v2345_v30, %v2341_v24  ;;  %v12356_v34 = vpack.c.bf16 %v2344_v33, %v2340_v31  ;;  %v2349_v38 = vld [vmem:[#allocation9 + $0x7c8] sm:$0xff]  ;;  %v12364_v56 = vpack.c.bf16 %v2360_v50, %v2356_v49  ;;  %v2364_v60 = vld [vmem:[#allocation9 + $0x840] sm:$0xff]  ;;  %v2255_v49 = vld [vmem:[#allocation9 + $0x4d8] sm:$0xff] }
 0x3d5   :  { %12319 = vmatprep.subr.bf16.mxu1 %v12318_v35  ;;  %v2353_v39 = vld [vmem:[#allocation9 + $0x7e8] sm:$0xff]  ;;  %v2368_v61 = vld [vmem:[#allocation9 + $0x860] sm:$0xff]  ;;  %v2259_v50 = vld [vmem:[#allocation9 + $0x4f8] sm:$0xff] }
 0x3d6   :  { %v12358_v43 = vpack.c.bf16 %v2353_v39, %v2349_v38  ;;  %v2357_v45 = vld [vmem:[#allocation9 + $0x808] sm:$0xff]  ;;  %v12368_v3 = vpack.c.bf16 %v2368_v61, %v2364_v60  ;;  %v2376_v21 = vld [vmem:[#allocation9 + $0x8a0] sm:$0xff]  ;;  %v2262_v60 = vld [vmem:[#allocation9 + $0x510] sm:$0xff] }
 0x3d7   :  { %v2369_v53 = vld [vmem:[#allocation9 + $0x868] sm:$0xff]  ;;  %v2384_v38 = vld [vmem:[#allocation9 + $0x8e0] sm:$0xff]  ;;  %v2266_v61 = vld [vmem:[#allocation9 + $0x530] sm:$0xff] }
 0x3d8   :  { %12321 = vmatpush1.bf16.msra.mxu1 %v12320_v40  ;;  %v2348_v40 = vld [vmem:[#allocation9 + $0x7c0] sm:$0xff]  ;;  %v2377_v8 = vld [vmem:[#allocation9 + $0x8a8] sm:$0xff] }
 0x3d9   :  { %12323 = vmatprep.subr.bf16.mxu1 %v12322_v41  ;;  %v12360_v48 = vpack.c.bf16 %v2352_v44, %v2348_v40  ;;  %v2381_v24 = vld [vmem:[#allocation9 + $0x8c8] sm:$0xff]  ;;  %v2239_v39 = vld [vmem:[#allocation3 + $0x10] sm:$0xfe]  ;;  %v2242_v40 = vld [vmem:[#allocation3 + $0x28] sm:$0x7f] }
 0x3da   :  { %v2385_v30 = vld [vmem:[#allocation9 + $0x8e8] sm:$0xff] }
 0x3dc   :  { %12325 = vmatpush1.bf16.msra.mxu1 %v12324_v46  ;;  %v2361_v46 = vld [vmem:[#allocation9 + $0x828] sm:$0xff] }
 0x3dd   :  { %12327 = vmatprep.subr.bf16.mxu1 %v12326_v47  ;;  %v12362_v0 = vpack.c.bf16 %v2361_v46, %v2357_v45  ;;  %v2401_v45 = vrot.slane %v2239_v39, 1  ;;  %v15953_v46 = vrot.slane %v2242_v40, 1 }
 0x3e0   :  { %12329 = vmatpush1.bf16.msra.mxu1 %v12328_v51  ;;  %v2365_v51 = vld [vmem:[#allocation9 + $0x848] sm:$0xff] }
 0x3e1   :  { %12331 = vmatprep.subr.bf16.mxu1 %v12330_v52  ;;  %v12366_v59 = vpack.c.bf16 %v2369_v53, %v2365_v51  ;;  %v15959_v51 = vsel %vm2394_vm12, %v2401_v45, %v15953_v46  ;;  %v12382_v53 = vpack.c.bf16 %v2259_v50, %v2255_v49  ;;  %v2323_v45 = vld [vmem:[#allocation9 + $0x6f8] sm:$0xff]  ;;  %v2322_v49 = vld [vmem:[#allocation9 + $0x6f0] sm:$0xff] }
 0x3e2   :  { %v2327_v50 = vld [vmem:[#allocation9 + $0x718] sm:$0xff] }
 0x3e4   :  { %12333 = vmatpush1.bf16.msra.mxu1 %v12332_v57 }
 0x3e5   :  { %12335 = vmatprep.subr.bf16.mxu1 %v12334_v58 }
 0x3e8   :  { %12337 = vmatpush1.bf16.msra.mxu1 %v12336_v63 }
 0x3e9   :  { %12339 = vmatprep.subr.bf16.mxu1 %v12338_v1 }
 0x3ec   :  { %12341 = vmatpush1.bf16.msra.mxu1 %v12340_v6 }
 0x3ed   :  { %12343 = vmatprep.subr.bf16.mxu1 %v12342_v7  ;;  %v2373_v7 = vld [vmem:[#allocation9 + $0x888] sm:$0xff] }
 0x3ee   :  { %v12370_v10 = vpack.c.bf16 %v2377_v8, %v2373_v7 }
 0x3f0   :  { %12345 = vmatpush1.bf16.msra.mxu1 %v12344_v13 }
 0x3f1   :  { %12347 = vmatprep.subr.bf16.mxu1 %v12346_v14 }
 0x3f4   :  { %12349 = vmatpush1.bf16.msra.mxu1 %v12348_v19 }
 0x3f5   :  { %12351 = vmatprep.subr.bf16.mxu1 %v12350_v20  ;;  %v2372_v20 = vld [vmem:[#allocation9 + $0x880] sm:$0xff] }
 0x3f8   :  { %12353 = vmatpush1.bf16.msra.mxu1 %v12352_v23 }
 0x3f9   :  { %12355 = vmatprep.subr.bf16.mxu1 %v12354_v32 }
 0x3fc   :  { %12357 = vmatpush1.bf16.msra.mxu1 %v12356_v34  ;;  %v12372_v34 = vpack.c.bf16 %v2376_v21, %v2372_v20 }
 0x3fd   :  { %12359 = vmatprep.subr.bf16.mxu1 %v12358_v43  ;;  %v2251_v43 = vld [vmem:[#allocation9 + $0x4b8] sm:$0xff] }
 0x400   :  { %12361 = vmatpush1.bf16.msra.mxu1 %v12360_v48  ;;  %v2246_v48 = vld [vmem:[#allocation9 + $0x490] sm:$0xff] }
 0x401   :  { %12363 = vmatprep.subr.bf16.mxu1 %v12362_v0  ;;  %v2250_v0 = vld [vmem:[#allocation9 + $0x4b0] sm:$0xff] }
 0x404   :  { %12365 = vmatpush1.bf16.msra.mxu1 %v12364_v56  ;;  %v2263_v56 = vld [vmem:[#allocation9 + $0x518] sm:$0xff] }
 0x405   :  { %12367 = vmatprep.subr.bf16.mxu1 %v12366_v59 }
 0x408   :  { %12369 = vmatpush1.bf16.msra.mxu1 %v12368_v3  ;;  %v2270_v3 = vld [vmem:[#allocation9 + $0x550] sm:$0xff] }
 0x409   :  { %12371 = vmatprep.subr.bf16.mxu1 %v12370_v10  ;;  %v2278_v10 = vld [vmem:[#allocation9 + $0x590] sm:$0xff] }
 0x49b   :  { %v2045_v35 = vpop.f32.mrb[16].mxu0 }
 0x49c   :  { %v2047_v36 = vpop.f32.mrb[17].mxu0 }
 0x49d   :  { %v1968_v37 = vpop.f32.mrb[16].mxu1 }
 0x49e   :  { %v2046_v41 = vadd.f32 %v2045_v35, %v1968_v37  ;;  %v1970_v42 = vpop.f32.mrb[17].mxu1  ;;  %v2380_v35 = vld [vmem:[#allocation9 + $0x8c0] sm:$0xff]  ;;  %v12374_v37 = vpack.c.bf16 %v2385_v30, %v2381_v24  ;;  %v2298_v24 = vld [vmem:[#allocation9 + $0x630] sm:$0xff]  ;;  %v2303_v30 = vld [vmem:[#allocation9 + $0x658] sm:$0xff] }
 0x49f   :  { %v2048_v47 = vadd.f32 %v2047_v36, %v1970_v42  ;;  %v2247_v42 = vld [vmem:[#allocation9 + $0x498] sm:$0xff]  ;;  %v12376_v44 = vpack.c.bf16 %v2384_v38, %v2380_v35  ;;  %v2302_v35 = vld [vmem:[#allocation9 + $0x650] sm:$0xff] }
 0x4a0   :  { %v2061_v52 = vrot.slane %v2046_v41, 6  ;;  %v2315_v38 = vld [vmem:[#allocation9 + $0x6b8] sm:$0xff] }
 0x4a1   :  { %v2062_v54 = vrot.slane %v2048_v47, 6  ;;  %v2051_v55 = vpop.f32.mrb[18].mxu0  ;;  %v12378_v47 = vpack.c.bf16 %v2251_v43, %v2247_v42  ;;  %v2310_v42 = vld [vmem:[#allocation9 + $0x690] sm:$0xff] }
 0x4a2   :  { %v2053_v57 = vpop.f32.mrb[19].mxu0  ;;  %2067 = vrot.lane.b32.xlu1 %v2061_v52, %s15488_s23  ;;  %v1974_v58 = vpop.f32.mrb[18].mxu1  ;;  %v2314_v43 = vld [vmem:[#allocation9 + $0x6b0] sm:$0xff] }
 0x4a3   :  { %v2052_v62 = vadd.f32 %v2051_v55, %v1974_v58  ;;  %2069 = vrot.lane.b32.xlu0 %v2062_v54, %s15488_s23  ;;  %v1976_v63 = vpop.f32.mrb[19].mxu1  ;;  %v2258_v55 = vld [vmem:[#allocation9 + $0x4f0] sm:$0xff] }
 0x4a4   :  { %v2054_v1 = vadd.f32 %v2053_v57, %v1976_v63  ;;  %v2267_v57 = vld [vmem:[#allocation9 + $0x538] sm:$0xff] }
 0x4a5   :  { %v2063_v2 = vrot.slane %v2052_v62, 6  ;;  %v12386_v59 = vpack.c.bf16 %v2267_v57, %v2263_v56  ;;  %v2271_v62 = vld [vmem:[#allocation9 + $0x558] sm:$0xff]  ;;  %v2330_v56 = vld [vmem:[#allocation9 + $0x730] sm:$0xff] }
 0x4a6   :  { %v2065_v4 = vrot.slane %v2054_v1, 6  ;;  %v2275_v63 = vld [vmem:[#allocation9 + $0x578] sm:$0xff]  ;;  %v12388_v1 = vpack.c.bf16 %v2266_v61, %v2262_v60  ;;  %v2334_v61 = vld [vmem:[#allocation9 + $0x750] sm:$0xff] }
 0x4a7   :  { %v2064_v5 = vsel %vm2060_vm9, %v2061_v52, %v2063_v2  ;;  %v12380_v52 = vpack.c.bf16 %v2250_v0, %v2246_v48  ;;  %v12390_v2 = vpack.c.bf16 %v2275_v63, %v2271_v62  ;;  %v2318_v0 = vld [vmem:[#allocation9 + $0x6d0] sm:$0xff]  ;;  %v2335_v57 = vld [vmem:[#allocation9 + $0x758] sm:$0xff] }
 0x4a8   :  { %2071 = vrot.lane.b32.xlu1 %v2064_v5, %s15488_s23  ;;  %v2066_v6 = vsel %vm2060_vm9, %v2062_v54, %v2065_v4  ;;  %v2254_v54 = vld [vmem:[#allocation9 + $0x4d0] sm:$0xff]  ;;  %v2279_v5 = vld [vmem:[#allocation9 + $0x598] sm:$0xff] }
 0x4a9   :  { %2073 = vrot.lane.b32.xlu0 %v2066_v6, %s15488_s23  ;;  %v12384_v58 = vpack.c.bf16 %v2258_v55, %v2254_v54  ;;  %v2274_v4 = vld [vmem:[#allocation9 + $0x570] sm:$0xff]  ;;  %v2283_v6 = vld [vmem:[#allocation9 + $0x5b8] sm:$0xff] }
 0x4aa   :  { %v12392_v7 = vpack.c.bf16 %v2274_v4, %v2270_v3  ;;  %v12394_v8 = vpack.c.bf16 %v2283_v6, %v2279_v5  ;;  %v2326_v55 = vld [vmem:[#allocation9 + $0x710] sm:$0xff]  ;;  %v2343_v63 = vld [vmem:[#allocation9 + $0x798] sm:$0xff] }
 0x4ab   :  { %v2338_v62 = vld [vmem:[#allocation9 + $0x770] sm:$0xff]  ;;  %v2351_v6 = vld [vmem:[#allocation9 + $0x7d8] sm:$0xff] }
 0x4ac   :  { %v2342_v4 = vld [vmem:[#allocation9 + $0x790] sm:$0xff] }
 0x4ad   :  { %v2346_v5 = vld [vmem:[#allocation9 + $0x7b0] sm:$0xff] }
 0x514   :  { %v2068_v11 = vpop.permute.xlu1 %2067 }
 0x515   :  { %2082 = vst.msk [vmem:[#allocation3] sm:$0xfc] %vm2081_vm10, %v2068_v11  ;;  %v2070_v12 = vpop.permute.xlu0 %2069 }
 0x516   :  { %v2075_v13 = vsel %vm184_vm0, %v2068_v11, %v2070_v12  ;;  %v2282_v11 = vld [vmem:[#allocation9 + $0x5b0] sm:$0xff]  ;;  %v2287_v12 = vld [vmem:[#allocation9 + $0x5d8] sm:$0xff] }
 0x517   :  { %2083 = vst [vmem:[#allocation3 + $0x8] sm:$0xfc] %v2075_v13  ;;  %v2291_v13 = vld [vmem:[#allocation9 + $0x5f8] sm:$0xff] }
 0x51a   :  { %v2072_v14 = vpop.permute.xlu1 %2071 }
 0x51b   :  { %2085 = vst.msk [vmem:[#allocation3 + $0x18] sm:$0xff] %vm2084_vm11, %v2072_v14  ;;  %v2074_v15 = vpop.permute.xlu0 %2073 }
 0x51c   :  { %v2076_v16 = vsel %vm184_vm0, %v2072_v14, %v2074_v15  ;;  %v2237_v19 = vld [vmem:[#allocation3] sm:$0xfe]  ;;  %v12396_v14 = vpack.c.bf16 %v2282_v11, %v2278_v10  ;;  %v12398_v15 = vpack.c.bf16 %v2291_v13, %v2287_v12  ;;  %v2359_v13 = vld [vmem:[#allocation9 + $0x818] sm:$0xff] }
 0x51d   :  { %2086 = vst [vmem:[#allocation3 + $0x20] sm:$0xff] %v2076_v16  ;;  %v2395_v33 = vrot.slane %v2237_v19, 1  ;;  %v2286_v16 = vld [vmem:[#allocation9 + $0x5d0] sm:$0xff]  ;;  %v2299_v19 = vld [vmem:[#allocation9 + $0x638] sm:$0xff] }
 0x51e   :  { %v2238_v17 = vld [vmem:[#allocation3 + $0x8] sm:$0xfe] }
 0x51f   :  { %v2398_v31 = vrot.slane %v2238_v17, 1  ;;  %v2290_v17 = vld [vmem:[#allocation9 + $0x5f0] sm:$0xff] }
 0x520   :  { %v12400_v20 = vpack.c.bf16 %v2290_v17, %v2286_v16  ;;  %v2350_v11 = vld [vmem:[#allocation9 + $0x7d0] sm:$0xff] }
 0x521   :  { %v2354_v12 = vld [vmem:[#allocation9 + $0x7f0] sm:$0xff] }
 0x522   :  { %v2240_v18 = vld [vmem:[#allocation3 + $0x18] sm:$0x7f]  ;;  %v2358_v17 = vld [vmem:[#allocation9 + $0x810] sm:$0xff] }
 0x523   :  { %v15941_v23 = vrot.slane %v2240_v18, 1  ;;  %v2295_v18 = vld [vmem:[#allocation9 + $0x618] sm:$0xff] }
 0x524   :  { %v2241_v22 = vld [vmem:[#allocation3 + $0x20] sm:$0x7f]  ;;  %v12402_v21 = vpack.c.bf16 %v2299_v19, %v2295_v18  ;;  %v2367_v19 = vld [vmem:[#allocation9 + $0x858] sm:$0xff] }
 0x525   :  { %v15943_v32 = vrot.slane %v2241_v22, 1  ;;  %v15949_v41 = vsel %vm2394_vm12, %v2395_v33, %v15941_v23  ;;  %v2294_v22 = vld [vmem:[#allocation9 + $0x610] sm:$0xff] }
 0x526   :  { %v12404_v33 = vpack.c.bf16 %v2298_v24, %v2294_v22  ;;  %v2362_v18 = vld [vmem:[#allocation9 + $0x830] sm:$0xff] }
 0x527   :  { %v2400_v36 = vsel %vm2394_vm12, %v2398_v31, %v15943_v32  ;;  %v2307_v31 = vld [vmem:[#allocation9 + $0x678] sm:$0xff]  ;;  %v2366_v24 = vld [vmem:[#allocation9 + $0x850] sm:$0xff] }
 0x528   :  { %2476 = vmatprep.mubr.f32.mxu1 %v2400_v36 }
 0x529   :  { %2477 = vmatmul.mubr.f32.vlgmr.msra.gmra.mrb[20].mxu1 %v15949_v41 }
 0x52a   :  { %12373 = vmatpush1.bf16.msra.mxu1 %v12372_v34  ;;  %2482 = vmatprep.mubr.f32.mxu1 %v15943_v32  ;;  %v12406_v34 = vpack.c.bf16 %v2307_v31, %v2303_v30  ;;  %v2370_v30 = vld [vmem:[#allocation9 + $0x870] sm:$0xff]  ;;  %v2375_v31 = vld [vmem:[#allocation9 + $0x898] sm:$0xff] }
 0x52b   :  { %12375 = vmatprep.subr.bf16.mxu1 %v12374_v37  ;;  %v2311_v37 = vld [vmem:[#allocation9 + $0x698] sm:$0xff] }
 0x52c   :  { %v12410_v40 = vpack.c.bf16 %v2315_v38, %v2311_v37  ;;  %v2378_v37 = vld [vmem:[#allocation9 + $0x8b0] sm:$0xff]  ;;  %v2383_v38 = vld [vmem:[#allocation9 + $0x8d8] sm:$0xff] }
 0x52d   :  { %2483 = vmatmul.mubr.f32.gmra.mrb[22].mxu1 %v15941_v23 }
 0x52e   :  { %12377 = vmatpush1.bf16.msra.mxu1 %v12376_v44  ;;  %2553 = vmatprep.mubr.f32.mxu1 %v15928_v9  ;;  %v2319_v44 = vld [vmem:[#allocation9 + $0x6d8] sm:$0xff] }
 0x52f   :  { %12379 = vmatprep.subr.bf16.mxu1 %v12378_v47  ;;  %v12412_v47 = vpack.c.bf16 %v2314_v43, %v2310_v42  ;;  %v12414_v48 = vpack.c.bf16 %v2323_v45, %v2319_v44  ;;  %v2382_v43 = vld [vmem:[#allocation9 + $0x8d0] sm:$0xff]  ;;  %v2094_v45 = vld [vmem:[#allocation9 + $0x8] sm:$0xff] }
 0x530   :  { %v2386_v44 = vld [vmem:[#allocation9 + $0x8f0] sm:$0xff] }
 0x531   :  { %11600 = vmatmul.mubr.msk.f32.vlgmr.msra.gmra.mrb[20].mxu1 %vm184_vm0, %v15959_v51 }
 0x532   :  { %12381 = vmatpush1.bf16.msra.mxu1 %v12380_v52  ;;  %2559 = vmatprep.mubr.f32.mxu1 %v15928_v9  ;;  %v2331_v52 = vld [vmem:[#allocation9 + $0x738] sm:$0xff] }
 0x533   :  { %12383 = vmatprep.subr.bf16.mxu1 %v12382_v53  ;;  %v12416_v53 = vpack.c.bf16 %v2322_v49, %v2318_v0  ;;  %v12418_v54 = vpack.c.bf16 %v2331_v52, %v2327_v50  ;;  %v2093_v49 = vld [vmem:[#allocation9] sm:$0xff]  ;;  %v2102_v52 = vld [vmem:[#allocation9 + $0x48] sm:$0xff] }
 0x534   :  { %v2097_v50 = vld [vmem:[#allocation9 + $0x20] sm:$0xff] }
 0x535   :  { %11601 = vmatmul.mubr.msk.f32.gmra.mrb[22].mxu1 %vm184_vm0, %v15953_v46 }
 0x536   :  { %12385 = vmatpush1.bf16.msra.mxu1 %v12384_v58  ;;  %2630 = vmatprep.mubr.f32.mxu1 %v2400_v36  ;;  %v2306_v36 = vld [vmem:[#allocation9 + $0x670] sm:$0xff]  ;;  %v2339_v58 = vld [vmem:[#allocation9 + $0x778] sm:$0xff] }
 0x537   :  { %12387 = vmatprep.subr.bf16.mxu1 %v12386_v59  ;;  %v12408_v39 = vpack.c.bf16 %v2306_v36, %v2302_v35  ;;  %v12420_v59 = vpack.c.bf16 %v2330_v56, %v2326_v55  ;;  %v12422_v60 = vpack.c.bf16 %v2339_v58, %v2335_v57  ;;  %v2374_v36 = vld [vmem:[#allocation9 + $0x890] sm:$0xff]  ;;  %v2101_v56 = vld [vmem:[#allocation9 + $0x40] sm:$0xff]  ;;  %v2110_v57 = vld [vmem:[#allocation9 + $0x88] sm:$0xff] }
 0x53a   :  { %12389 = vmatpush1.bf16.msra.mxu1 %v12388_v1  ;;  %v2347_v1 = vld [vmem:[#allocation9 + $0x7b8] sm:$0xff] }
 0x53b   :  { %12391 = vmatprep.subr.bf16.mxu1 %v12390_v2  ;;  %v12424_v2 = vpack.c.bf16 %v2338_v62, %v2334_v61  ;;  %v12426_v3 = vpack.c.bf16 %v2347_v1, %v2343_v63  ;;  %v2118_v61 = vld [vmem:[#allocation9 + $0xc8] sm:$0xff]  ;;  %v15975_v63 = vld [vmem:[#allocation3 + $0x8] sm:$0xff] }
 0x53c   :  { %v2122_v62 = vld [vmem:[#allocation9 + $0xe8] sm:$0xff] }
 0x53e   :  { %12393 = vmatpush1.bf16.msra.mxu1 %v12392_v7  ;;  %v2355_v7 = vld [vmem:[#allocation9 + $0x7f8] sm:$0xff] }
 0x53f   :  { %12395 = vmatprep.subr.bf16.mxu1 %v12394_v8  ;;  %v12428_v8 = vpack.c.bf16 %v2346_v5, %v2342_v4  ;;  %v12430_v10 = vpack.c.bf16 %v2355_v7, %v2351_v6  ;;  %v2130_v4 = vld [vmem:[#allocation9 + $0x128] sm:$0xff]  ;;  %v2125_v7 = vld [vmem:[#allocation9 + $0x100] sm:$0xff] }
 0x542   :  { %12397 = vmatpush1.bf16.msra.mxu1 %v12396_v14  ;;  %v2363_v14 = vld [vmem:[#allocation9 + $0x838] sm:$0xff] }
 0x543   :  { %12399 = vmatprep.subr.bf16.mxu1 %v12398_v15  ;;  %v12432_v15 = vpack.c.bf16 %v2354_v12, %v2350_v11  ;;  %v12434_v16 = vpack.c.bf16 %v2363_v14, %v2359_v13  ;;  %v2133_v13 = vld [vmem:[#allocation9 + $0x140] sm:$0xff] }
 0x544   :  { %v2137_v14 = vld [vmem:[#allocation9 + $0x160] sm:$0xff] }
 0x546   :  { %12401 = vmatpush1.bf16.msra.mxu1 %v12400_v20  ;;  %v2371_v20 = vld [vmem:[#allocation9 + $0x878] sm:$0xff] }
 0x547   :  { %12403 = vmatprep.subr.bf16.mxu1 %v12402_v21  ;;  %v12436_v21 = vpack.c.bf16 %v2362_v18, %v2358_v17  ;;  %v12438_v22 = vpack.c.bf16 %v2371_v20, %v2367_v19  ;;  %v12472_v17 = vpack.c.bf16 %v2137_v14, %v2133_v13  ;;  %v2141_v19 = vld [vmem:[#allocation9 + $0x180] sm:$0xff] }
 0x548   :  { %v2145_v20 = vld [vmem:[#allocation9 + $0x1a0] sm:$0xff] }
 0x54a   :  { %12405 = vmatpush1.bf16.msra.mxu1 %v12404_v33  ;;  %v2379_v33 = vld [vmem:[#allocation9 + $0x8b8] sm:$0xff] }
 0x54b   :  { %12407 = vmatprep.subr.bf16.mxu1 %v12406_v34  ;;  %v12440_v34 = vpack.c.bf16 %v2370_v30, %v2366_v24  ;;  %v12442_v35 = vpack.c.bf16 %v2379_v33, %v2375_v31  ;;  %v12476_v24 = vpack.c.bf16 %v2145_v20, %v2141_v19  ;;  %v2149_v31 = vld [vmem:[#allocation9 + $0x1c0] sm:$0xff] }
 0x54c   :  { %v2153_v33 = vld [vmem:[#allocation9 + $0x1e0] sm:$0xff] }
 0x54e   :  { %12409 = vmatpush1.bf16.msra.mxu1 %v12408_v39  ;;  %v2387_v39 = vld [vmem:[#allocation9 + $0x8f8] sm:$0xff] }
 0x54f   :  { %12411 = vmatprep.subr.bf16.mxu1 %v12410_v40  ;;  %v12444_v40 = vpack.c.bf16 %v2378_v37, %v2374_v36  ;;  %v12446_v42 = vpack.c.bf16 %v2387_v39, %v2383_v38  ;;  %v12480_v36 = vpack.c.bf16 %v2153_v33, %v2149_v31  ;;  %v2157_v38 = vld [vmem:[#allocation9 + $0x200] sm:$0xff] }
 0x550   :  { %v2161_v39 = vld [vmem:[#allocation9 + $0x220] sm:$0xff] }
 0x552   :  { %12413 = vmatpush1.bf16.msra.mxu1 %v12412_v47  ;;  %v2098_v47 = vld [vmem:[#allocation9 + $0x28] sm:$0xff] }
 0x553   :  { %12415 = vmatprep.subr.bf16.mxu1 %v12414_v48  ;;  %v12448_v48 = vpack.c.bf16 %v2386_v44, %v2382_v43  ;;  %v12450_v0 = vpack.c.bf16 %v2098_v47, %v2094_v45  ;;  %v12484_v43 = vpack.c.bf16 %v2161_v39, %v2157_v38  ;;  %v2165_v45 = vld [vmem:[#allocation9 + $0x240] sm:$0xff]  ;;  %v2100_v38 = vld [vmem:[#allocation9 + $0x38] sm:$0xff]  ;;  %v15981_v39 = vld [vmem:[#allocation3 + $0x20] sm:$0x3f] }
 0x554   :  { %v2169_v47 = vld [vmem:[#allocation9 + $0x260] sm:$0xff] }
 0x556   :  { %12417 = vmatpush1.bf16.msra.mxu1 %v12416_v53  ;;  %v2106_v53 = vld [vmem:[#allocation9 + $0x68] sm:$0xff] }
 0x557   :  { %12419 = vmatprep.subr.bf16.mxu1 %v12418_v54  ;;  %v12452_v54 = vpack.c.bf16 %v2097_v50, %v2093_v49  ;;  %v12454_v55 = vpack.c.bf16 %v2106_v53, %v2102_v52  ;;  %v12488_v49 = vpack.c.bf16 %v2169_v47, %v2165_v45  ;;  %v2173_v52 = vld [vmem:[#allocation9 + $0x280] sm:$0xff]  ;;  %v2104_v47 = vld [vmem:[#allocation9 + $0x58] sm:$0xff] }
 0x558   :  { %v2177_v53 = vld [vmem:[#allocation9 + $0x2a0] sm:$0xff] }
 0x559   :  { %v15984_v45 = vld [vmem:[#allocation3 + $0x18] sm:$0x3f] }
 0x55a   :  { %12421 = vmatpush1.bf16.msra.mxu1 %v12420_v59 }
 0x55b   :  { %12423 = vmatprep.subr.bf16.mxu1 %v12422_v60  ;;  %v2113_v60 = vld [vmem:[#allocation9 + $0xa0] sm:$0xff] }
 0x55e   :  { %12425 = vmatpush1.bf16.msra.mxu1 %v12424_v2  ;;  %v2117_v2 = vld [vmem:[#allocation9 + $0xc0] sm:$0xff] }
 0x55f   :  { %12427 = vmatprep.subr.bf16.mxu1 %v12426_v3  ;;  %v2126_v3 = vld [vmem:[#allocation9 + $0x108] sm:$0xff] }
 0x560   :  { %v12466_v6 = vpack.c.bf16 %v2130_v4, %v2126_v3  ;;  %v2197_v3 = vld [vmem:[#allocation9 + $0x340] sm:$0xff] }
 0x561   :  { %v2201_v4 = vld [vmem:[#allocation9 + $0x360] sm:$0xff] }
 0x562   :  { %12429 = vmatpush1.bf16.msra.mxu1 %v12428_v8  ;;  %v2129_v8 = vld [vmem:[#allocation9 + $0x120] sm:$0xff] }
 0x563   :  { %12431 = vmatprep.subr.bf16.mxu1 %v12430_v10  ;;  %v2134_v10 = vld [vmem:[#allocation9 + $0x148] sm:$0xff]  ;;  %v12468_v11 = vpack.c.bf16 %v2129_v8, %v2125_v7  ;;  %v12504_v7 = vpack.c.bf16 %v2201_v4, %v2197_v3 }
 0x566   :  { %12433 = vmatpush1.bf16.msra.mxu1 %v12432_v15  ;;  %v2142_v15 = vld [vmem:[#allocation9 + $0x188] sm:$0xff] }
 0x567   :  { %12435 = vmatprep.subr.bf16.mxu1 %v12434_v16  ;;  %v2146_v16 = vld [vmem:[#allocation9 + $0x1a8] sm:$0xff] }
 0x568   :  { %v12474_v18 = vpack.c.bf16 %v2146_v16, %v2142_v15  ;;  %v2213_v15 = vld [vmem:[#allocation9 + $0x3c0] sm:$0xff] }
 0x569   :  { %v2217_v16 = vld [vmem:[#allocation9 + $0x3e0] sm:$0xff] }
 0x56a   :  { %12437 = vmatpush1.bf16.msra.mxu1 %v12436_v21  ;;  %v2150_v21 = vld [vmem:[#allocation9 + $0x1c8] sm:$0xff]  ;;  %v12512_v19 = vpack.c.bf16 %v2217_v16, %v2213_v15  ;;  %v2143_v16 = vld [vmem:[#allocation9 + $0x190] sm:$0xff] }
 0x56b   :  { %12439 = vmatprep.subr.bf16.mxu1 %v12438_v22  ;;  %v2154_v22 = vld [vmem:[#allocation9 + $0x1e8] sm:$0xff] }
 0x56c   :  { %v12478_v30 = vpack.c.bf16 %v2154_v22, %v2150_v21  ;;  %v2221_v21 = vld [vmem:[#allocation9 + $0x400] sm:$0xff] }
 0x56d   :  { %v2225_v22 = vld [vmem:[#allocation9 + $0x420] sm:$0xff] }
 0x56e   :  { %12441 = vmatpush1.bf16.msra.mxu1 %v12440_v34  ;;  %v2158_v34 = vld [vmem:[#allocation9 + $0x208] sm:$0xff]  ;;  %v12516_v31 = vpack.c.bf16 %v2225_v22, %v2221_v21  ;;  %v2151_v22 = vld [vmem:[#allocation9 + $0x1d0] sm:$0xff] }
 0x56f   :  { %12443 = vmatprep.subr.bf16.mxu1 %v12442_v35  ;;  %v2162_v35 = vld [vmem:[#allocation9 + $0x228] sm:$0xff] }
 0x570   :  { %v12482_v37 = vpack.c.bf16 %v2162_v35, %v2158_v34  ;;  %v2229_v34 = vld [vmem:[#allocation9 + $0x440] sm:$0xff] }
 0x571   :  { %2631 = vmatmul.mubr.f32.vlgmr.msra.gmra.mrb[24].mxu1 %v15949_v41  ;;  %v2105_v41 = vld [vmem:[#allocation9 + $0x60] sm:$0xff] }
 0x572   :  { %2636 = vmatprep.mubr.f32.mxu1 %v15943_v32  ;;  %12445 = vmatpush1.bf16.msra.mxu1 %v12444_v40  ;;  %v2114_v32 = vld [vmem:[#allocation9 + $0xa8] sm:$0xff]  ;;  %v12456_v58 = vpack.c.bf16 %v2105_v41, %v2101_v56  ;;  %v12492_v56 = vpack.c.bf16 %v2177_v53, %v2173_v52  ;;  %v2233_v35 = vld [vmem:[#allocation9 + $0x460] sm:$0xff]  ;;  %v2103_v53 = vld [vmem:[#allocation9 + $0x50] sm:$0xff] }
 0x573   :  { %12447 = vmatprep.subr.bf16.mxu1 %v12446_v42  ;;  %v12458_v59 = vpack.c.bf16 %v2114_v32, %v2110_v57  ;;  %v2166_v40 = vld [vmem:[#allocation9 + $0x248] sm:$0xff]  ;;  %v2181_v57 = vld [vmem:[#allocation9 + $0x2c0] sm:$0xff] }
 0x574   :  { %v2170_v42 = vld [vmem:[#allocation9 + $0x268] sm:$0xff]  ;;  %v2185_v32 = vld [vmem:[#allocation9 + $0x2e0] sm:$0xff] }
 0x575   :  { %2637 = vmatmul.mubr.f32.gmra.mrb[26].mxu1 %v15941_v23  ;;  %v2109_v23 = vld [vmem:[#allocation9 + $0x80] sm:$0xff]  ;;  %v12486_v44 = vpack.c.bf16 %v2170_v42, %v2166_v40  ;;  %v12520_v40 = vpack.c.bf16 %v2233_v35, %v2229_v34  ;;  %v2159_v35 = vld [vmem:[#allocation9 + $0x210] sm:$0xff] }
 0x576   :  { %12449 = vmatpush1.bf16.msra.mxu1 %v12448_v48  ;;  %2707 = vmatprep.mubr.f32.mxu1 %v15928_v9  ;;  %v12460_v1 = vpack.c.bf16 %v2113_v60, %v2109_v23  ;;  %v2174_v48 = vld [vmem:[#allocation9 + $0x288] sm:$0xff]  ;;  %v12496_v23 = vpack.c.bf16 %v2185_v32, %v2181_v57 }
 0x577   :  { %12451 = vmatprep.subr.bf16.mxu1 %v12450_v0  ;;  %v2178_v0 = vld [vmem:[#allocation9 + $0x2a8] sm:$0xff] }
 0x578   :  { %v12490_v50 = vpack.c.bf16 %v2178_v0, %v2174_v48  ;;  %v2108_v48 = vld [vmem:[#allocation9 + $0x78] sm:$0xff] }
 0x579   :  { %11602 = vmatmul.mubr.msk.f32.vlgmr.msra.gmra.mrb[24].mxu1 %vm184_vm0, %v15959_v51  ;;  %v12462_v51 = vpack.c.bf16 %v2122_v62, %v2118_v61  ;;  %v2189_v61 = vld [vmem:[#allocation9 + $0x300] sm:$0xff]  ;;  %v15987_v0 = vld [vmem:[#allocation3 + $0x48] sm:$0xff]  ;;  %v12526_v52 = vpack.c.bf16 %v2108_v48, %v2104_v47 }
 0x57a   :  { %12453 = vmatpush1.bf16.msra.mxu1 %v12452_v54  ;;  %2713 = vmatprep.mubr.f32.mxu1 %v15928_v9  ;;  %v2121_v9 = vld [vmem:[#allocation9 + $0xe0] sm:$0xff]  ;;  %v2182_v54 = vld [vmem:[#allocation9 + $0x2c8] sm:$0xff]  ;;  %v2171_v47 = vld [vmem:[#allocation9 + $0x270] sm:$0xff]  ;;  %202 = vst.msk [vmem:[#allocation3 + $0x40] sm:$0x3] %vm201_vm14, %v15987_v0 }
 0x57b   :  { %12455 = vmatprep.subr.bf16.mxu1 %v12454_v55  ;;  %v12464_v5 = vpack.c.bf16 %v2121_v9, %v2117_v2  ;;  %v2186_v55 = vld [vmem:[#allocation9 + $0x2e8] sm:$0xff]  ;;  %v2193_v62 = vld [vmem:[#allocation9 + $0x320] sm:$0xff]  ;;  %v2176_v48 = vld [vmem:[#allocation9 + $0x298] sm:$0xff]  ;;  %211 = vst.msk [vmem:[#allocation3 + $0x88] sm:$0x3] %vm201_vm14, %v15987_v0 }
 0x57c   :  { %v12494_v41 = vpack.c.bf16 %v2186_v55, %v2182_v54  ;;  %v12500_v2 = vpack.c.bf16 %v2193_v62, %v2189_v61  ;;  %v2107_v54 = vld [vmem:[#allocation9 + $0x70] sm:$0xff]  ;;  %v2112_v55 = vld [vmem:[#allocation9 + $0x98] sm:$0xff]  ;;  %vm16155_vm14 = vmpackc.low %vm3191_vm13, %vm15496_vm4  ;;  %vm4883_vm4 = vcmask 785408  }
 0x57d   :  { %11603 = vmatmul.mubr.msk.f32.gmra.mrb[26].mxu1 %vm184_vm0, %v15953_v46  ;;  %v2138_v46 = vld [vmem:[#allocation9 + $0x168] sm:$0xff]  ;;  %v12528_v57 = vpack.c.bf16 %v2107_v54, %v2103_v53  ;;  %v2175_v54 = vld [vmem:[#allocation9 + $0x290] sm:$0xff] }
 0x57e   :  { %12457 = vmatpush1.bf16.msra.mxu1 %v12456_v58  ;;  %2790 = vmatprep.mubr.f32.mxu1 %v15975_v63  ;;  %v12470_v12 = vpack.c.bf16 %v2138_v46, %v2134_v10  ;;  %v2190_v58 = vld [vmem:[#allocation9 + $0x308] sm:$0xff]  ;;  %v2205_v10 = vld [vmem:[#allocation9 + $0x380] sm:$0xff] }
 0x57f   :  { %12459 = vmatprep.subr.bf16.mxu1 %v12458_v59  ;;  %v2194_v59 = vld [vmem:[#allocation9 + $0x328] sm:$0xff]  ;;  %v2209_v46 = vld [vmem:[#allocation9 + $0x3a0] sm:$0xff] }
 0x580   :  { %v12498_v60 = vpack.c.bf16 %v2194_v59, %v2190_v58  ;;  %v12508_v13 = vpack.c.bf16 %v2209_v46, %v2205_v10  ;;  %v2111_v58 = vld [vmem:[#allocation9 + $0x90] sm:$0xff] }
 0x581   :  { %v2115_v59 = vld [vmem:[#allocation9 + $0xb0] sm:$0xff] }
 0x582   :  { %12461 = vmatpush1.bf16.msra.mxu1 %v12460_v1  ;;  %v2198_v1 = vld [vmem:[#allocation9 + $0x348] sm:$0xff]  ;;  %v12532_v61 = vpack.c.bf16 %v2115_v59, %v2111_v58  ;;  %v2183_v59 = vld [vmem:[#allocation9 + $0x2d0] sm:$0xff] }
 0x583   :  { %12463 = vmatprep.subr.bf16.mxu1 %v12462_v51  ;;  %v2202_v51 = vld [vmem:[#allocation9 + $0x368] sm:$0xff] }
 0x584   :  { %v12502_v9 = vpack.c.bf16 %v2202_v51, %v2198_v1  ;;  %v2119_v1 = vld [vmem:[#allocation9 + $0xd0] sm:$0xff] }
 0x585   :  { %v2123_v51 = vld [vmem:[#allocation9 + $0xf0] sm:$0xff] }
 0x586   :  { %12465 = vmatpush1.bf16.msra.mxu1 %v12464_v5  ;;  %v2206_v5 = vld [vmem:[#allocation9 + $0x388] sm:$0xff]  ;;  %v12536_v3 = vpack.c.bf16 %v2123_v51, %v2119_v1  ;;  %v2191_v51 = vld [vmem:[#allocation9 + $0x310] sm:$0xff] }
 0x587   :  { %12467 = vmatprep.subr.bf16.mxu1 %v12466_v6  ;;  %v2210_v6 = vld [vmem:[#allocation9 + $0x3a8] sm:$0xff] }
 0x588   :  { %v12506_v8 = vpack.c.bf16 %v2210_v6, %v2206_v5  ;;  %v2127_v5 = vld [vmem:[#allocation9 + $0x110] sm:$0xff] }
 0x589   :  { %v2131_v6 = vld [vmem:[#allocation9 + $0x130] sm:$0xff] }
 0x58a   :  { %12469 = vmatpush1.bf16.msra.mxu1 %v12468_v11  ;;  %v2214_v11 = vld [vmem:[#allocation9 + $0x3c8] sm:$0xff]  ;;  %v12540_v10 = vpack.c.bf16 %v2131_v6, %v2127_v5  ;;  %v2199_v6 = vld [vmem:[#allocation9 + $0x350] sm:$0xff] }
 0x58b   :  { %12471 = vmatprep.subr.bf16.mxu1 %v12470_v12  ;;  %v2218_v12 = vld [vmem:[#allocation9 + $0x3e8] sm:$0xff] }
 0x58c   :  { %v12510_v14 = vpack.c.bf16 %v2218_v12, %v2214_v11  ;;  %v2139_v11 = vld [vmem:[#allocation9 + $0x170] sm:$0xff]  ;;  %v2144_v12 = vld [vmem:[#allocation9 + $0x198] sm:$0xff] }
 0x58e   :  { %12473 = vmatpush1.bf16.msra.mxu1 %v12472_v17  ;;  %v2222_v17 = vld [vmem:[#allocation9 + $0x408] sm:$0xff] }
 0x58f   :  { %12475 = vmatprep.subr.bf16.mxu1 %v12474_v18  ;;  %v2226_v18 = vld [vmem:[#allocation9 + $0x428] sm:$0xff] }
 0x590   :  { %v12514_v20 = vpack.c.bf16 %v2226_v18, %v2222_v17  ;;  %v2147_v17 = vld [vmem:[#allocation9 + $0x1b0] sm:$0xff]  ;;  %v2152_v18 = vld [vmem:[#allocation9 + $0x1d8] sm:$0xff] }
 0x592   :  { %12477 = vmatpush1.bf16.msra.mxu1 %v12476_v24  ;;  %v2230_v24 = vld [vmem:[#allocation9 + $0x448] sm:$0xff] }
 0x593   :  { %12479 = vmatprep.subr.bf16.mxu1 %v12478_v30  ;;  %v2234_v30 = vld [vmem:[#allocation9 + $0x468] sm:$0xff] }
 0x594   :  { %v12518_v33 = vpack.c.bf16 %v2234_v30, %v2230_v24  ;;  %v2155_v24 = vld [vmem:[#allocation9 + $0x1f0] sm:$0xff]  ;;  %v2160_v30 = vld [vmem:[#allocation9 + $0x218] sm:$0xff] }
 0x596   :  { %12481 = vmatpush1.bf16.msra.mxu1 %v12480_v36  ;;  %v15978_v36 = vld [vmem:[#allocation3] sm:$0xff] }
 0x597   :  { %12483 = vmatprep.subr.bf16.mxu1 %v12482_v37  ;;  %v2096_v37 = vld [vmem:[#allocation9 + $0x18] sm:$0xff] }
 0x598   :  { %v12522_v42 = vpack.c.bf16 %v2100_v38, %v2096_v37  ;;  %v2163_v37 = vld [vmem:[#allocation9 + $0x230] sm:$0xff]  ;;  %v2168_v38 = vld [vmem:[#allocation9 + $0x258] sm:$0xff] }
 0x59a   :  { %12485 = vmatpush1.bf16.msra.mxu1 %v12484_v43  ;;  %v2095_v43 = vld [vmem:[#allocation9 + $0x10] sm:$0xff] }
 0x59b   :  { %12487 = vmatprep.subr.bf16.mxu1 %v12486_v44  ;;  %v2099_v44 = vld [vmem:[#allocation9 + $0x30] sm:$0xff] }
 0x59e   :  { %12489 = vmatpush1.bf16.msra.mxu1 %v12488_v49  ;;  %v15990_v49 = vld [vmem:[#allocation3 + $0x10] sm:$0xff] }
 0x59f   :  { %12491 = vmatprep.subr.bf16.mxu1 %v12490_v50  ;;  %v12524_v50 = vpack.c.bf16 %v2099_v44, %v2095_v43  ;;  %v2167_v44 = vld [vmem:[#allocation9 + $0x250] sm:$0xff] }
 0x5a2   :  { %12493 = vmatpush1.bf16.msra.mxu1 %v12492_v56  ;;  %v2116_v56 = vld [vmem:[#allocation9 + $0xb8] sm:$0xff] }
 0x5a3   :  { %12495 = vmatprep.subr.bf16.mxu1 %v12494_v41  ;;  %v15995_v41 = vld [vmem:[#allocation3 + $0x28] sm:$0x3f]  ;;  %v12530_v32 = vpack.c.bf16 %v2116_v56, %v2112_v55 }
 0x5a4   :  { %v2179_v55 = vld [vmem:[#allocation9 + $0x2b0] sm:$0xff]  ;;  %v2184_v56 = vld [vmem:[#allocation9 + $0x2d8] sm:$0xff] }
 0x5a6   :  { %12497 = vmatpush1.bf16.msra.mxu1 %v12496_v23  ;;  %v2120_v23 = vld [vmem:[#allocation9 + $0xd8] sm:$0xff] }
 0x5a7   :  { %12499 = vmatprep.subr.bf16.mxu1 %v12498_v60  ;;  %v2124_v60 = vld [vmem:[#allocation9 + $0xf8] sm:$0xff] }
 0x5a8   :  { %v12534_v62 = vpack.c.bf16 %v2124_v60, %v2120_v23  ;;  %v2187_v23 = vld [vmem:[#allocation9 + $0x2f0] sm:$0xff]  ;;  %v2192_v60 = vld [vmem:[#allocation9 + $0x318] sm:$0xff] }
 0x5aa   :  { %12501 = vmatpush1.bf16.msra.mxu1 %v12500_v2  ;;  %v2128_v2 = vld [vmem:[#allocation9 + $0x118] sm:$0xff] }
 0x5ab   :  { %12503 = vmatprep.subr.bf16.mxu1 %v12502_v9  ;;  %v2132_v9 = vld [vmem:[#allocation9 + $0x138] sm:$0xff] }
 0x5ac   :  { %v12538_v4 = vpack.c.bf16 %v2132_v9, %v2128_v2  ;;  %v2195_v2 = vld [vmem:[#allocation9 + $0x330] sm:$0xff]  ;;  %v2200_v9 = vld [vmem:[#allocation9 + $0x358] sm:$0xff] }
 0x5ae   :  { %12505 = vmatpush1.bf16.msra.mxu1 %v12504_v7  ;;  %v2136_v7 = vld [vmem:[#allocation9 + $0x158] sm:$0xff] }
 0x5af   :  { %12507 = vmatprep.subr.bf16.mxu1 %v12506_v8  ;;  %v2140_v8 = vld [vmem:[#allocation9 + $0x178] sm:$0xff] }
 0x5b0   :  { %v12542_v46 = vpack.c.bf16 %v2140_v8, %v2136_v7  ;;  %v2203_v7 = vld [vmem:[#allocation9 + $0x370] sm:$0xff]  ;;  %v2208_v8 = vld [vmem:[#allocation9 + $0x398] sm:$0xff] }
 0x5b2   :  { %12509 = vmatpush1.bf16.msra.mxu1 %v12508_v13  ;;  %v2148_v13 = vld [vmem:[#allocation9 + $0x1b8] sm:$0xff] }
 0x5b3   :  { %12511 = vmatprep.subr.bf16.mxu1 %v12510_v14  ;;  %v12546_v15 = vpack.c.bf16 %v2148_v13, %v2144_v12  ;;  %v2211_v12 = vld [vmem:[#allocation9 + $0x3b0] sm:$0xff]  ;;  %v2216_v13 = vld [vmem:[#allocation9 + $0x3d8] sm:$0xff] }
 0x5b6   :  { %12513 = vmatpush1.bf16.msra.mxu1 %v12512_v19  ;;  %v2156_v19 = vld [vmem:[#allocation9 + $0x1f8] sm:$0xff] }
 0x5b7   :  { %12515 = vmatprep.subr.bf16.mxu1 %v12514_v20  ;;  %v12548_v20 = vpack.c.bf16 %v2147_v17, %v2143_v16  ;;  %v12550_v21 = vpack.c.bf16 %v2156_v19, %v2152_v18  ;;  %v2215_v17 = vld [vmem:[#allocation9 + $0x3d0] sm:$0xff]  ;;  %v2224_v19 = vld [vmem:[#allocation9 + $0x418] sm:$0xff] }
 0x5b8   :  { %v2219_v18 = vld [vmem:[#allocation9 + $0x3f0] sm:$0xff] }
 0x5b9   :  { %2791 = vmatmul.mubr.f32.vlgmr.msra.gmra.mrb[20].mxu1 %v15978_v36 }
 0x5ba   :  { %2796 = vmatprep.mubr.f32.mxu1 %v15981_v39  ;;  %12517 = vmatpush1.bf16.msra.mxu1 %v12516_v31  ;;  %v2164_v31 = vld [vmem:[#allocation9 + $0x238] sm:$0xff] }
 0x5bb   :  { %12519 = vmatprep.subr.bf16.mxu1 %v12518_v33  ;;  %v12552_v33 = vpack.c.bf16 %v2155_v24, %v2151_v22  ;;  %v12554_v34 = vpack.c.bf16 %v2164_v31, %v2160_v30  ;;  %v2223_v24 = vld [vmem:[#allocation9 + $0x410] sm:$0xff]  ;;  %v2232_v31 = vld [vmem:[#allocation9 + $0x458] sm:$0xff] }
 0x5bc   :  { %v2227_v30 = vld [vmem:[#allocation9 + $0x430] sm:$0xff] }
 0x5bd   :  { %2797 = vmatmul.mubr.f32.gmra.mrb[22].mxu1 %v15984_v45 }
 0x5be   :  { %12521 = vmatpush1.bf16.msra.mxu1 %v12520_v40  ;;  %2867 = vmatprep.mubr.f32.mxu1 %v15987_v0  ;;  %v2172_v40 = vld [vmem:[#allocation9 + $0x278] sm:$0xff] }
 0x5bf   :  { %12523 = vmatprep.subr.bf16.mxu1 %v12522_v42  ;;  %v12556_v42 = vpack.c.bf16 %v2163_v37, %v2159_v35  ;;  %v12558_v43 = vpack.c.bf16 %v2172_v40, %v2168_v38  ;;  %v2231_v37 = vld [vmem:[#allocation9 + $0x450] sm:$0xff]  ;;  %v3042_v40 = vld [vmem:[#allocation9 + $0x908] sm:$0xff] }
 0x5c0   :  { %v2235_v38 = vld [vmem:[#allocation9 + $0x470] sm:$0xff] }
 0x5c1   :  { %11604 = vmatmul.mubr.msk.f32.vlgmr.msra.gmra.mrb[20].mxu1 %vm184_vm0, %v15990_v49 }
 0x5c2   :  { %12525 = vmatpush1.bf16.msra.mxu1 %v12524_v50  ;;  %2873 = vmatprep.mubr.f32.mxu1 %v15987_v0  ;;  %v2180_v50 = vld [vmem:[#allocation9 + $0x2b8] sm:$0xff] }
 0x5c3   :  { %12527 = vmatprep.subr.bf16.mxu1 %v12526_v52  ;;  %v12560_v52 = vpack.c.bf16 %v2171_v47, %v2167_v44  ;;  %v12562_v53 = vpack.c.bf16 %v2180_v50, %v2176_v48  ;;  %v3041_v47 = vld [vmem:[#allocation9 + $0x900] sm:$0xff]  ;;  %v3050_v50 = vld [vmem:[#allocation9 + $0x948] sm:$0xff] }
 0x5c4   :  { %v3045_v48 = vld [vmem:[#allocation9 + $0x920] sm:$0xff] }
 0x5c5   :  { %11605 = vmatmul.mubr.msk.f32.gmra.mrb[22].mxu1 %vm184_vm0, %v15995_v41 }
 0x5c6   :  { %12529 = vmatpush1.bf16.msra.mxu1 %v12528_v57  ;;  %2944 = vmatprep.mubr.f32.mxu1 %v15975_v63  ;;  %v2135_v63 = vld [vmem:[#allocation9 + $0x150] sm:$0xff]  ;;  %v2188_v57 = vld [vmem:[#allocation9 + $0x2f8] sm:$0xff] }
 0x5c7   :  { %12531 = vmatprep.subr.bf16.mxu1 %v12530_v32  ;;  %v12544_v14 = vpack.c.bf16 %v2139_v11, %v2135_v63  ;;  %v12564_v32 = vpack.c.bf16 %v2179_v55, %v2175_v54  ;;  %v12566_v58 = vpack.c.bf16 %v2188_v57, %v2184_v56  ;;  %v2207_v11 = vld [vmem:[#allocation9 + $0x390] sm:$0xff]  ;;  %v3049_v55 = vld [vmem:[#allocation9 + $0x940] sm:$0xff]  ;;  %v3058_v57 = vld [vmem:[#allocation9 + $0x988] sm:$0xff] }
 0x5c8   :  { %v16004_v54 = vld [vmem:[#allocation3 + $0x20] sm:$0xff]  ;;  %v3035_v56 = vld [vmem:[#allocation3 + $0x8] sm:$0xfc] }
 0x5ca   :  { %12533 = vmatpush1.bf16.msra.mxu1 %v12532_v61  ;;  %v2196_v61 = vld [vmem:[#allocation9 + $0x338] sm:$0xff] }
 0x5cb   :  { %12535 = vmatprep.subr.bf16.mxu1 %v12534_v62  ;;  %v12568_v62 = vpack.c.bf16 %v2187_v23, %v2183_v59  ;;  %v12570_v1 = vpack.c.bf16 %v2196_v61, %v2192_v60  ;;  %v3195_v59 = vrot.slane %v3035_v56, 2  ;;  %v3057_v60 = vld [vmem:[#allocation9 + $0x980] sm:$0xff] }
 0x5cc   :  { %v3061_v61 = vld [vmem:[#allocation9 + $0x9a0] sm:$0xff] }
 0x5cd   :  { %v3125_v56 = vld [vmem:[#allocation9 + $0xba0] sm:$0xff] }
 0x5ce   :  { %12537 = vmatpush1.bf16.msra.mxu1 %v12536_v3  ;;  %v2204_v3 = vld [vmem:[#allocation9 + $0x378] sm:$0xff] }
 0x5cf   :  { %12539 = vmatprep.subr.bf16.mxu1 %v12538_v4  ;;  %v12572_v4 = vpack.c.bf16 %v2195_v2, %v2191_v51  ;;  %v12574_v5 = vpack.c.bf16 %v2204_v3, %v2200_v9  ;;  %v12604_v51 = vpack.c.bf16 %v3061_v61, %v3057_v60  ;;  %v3065_v9 = vld [vmem:[#allocation9 + $0x9c0] sm:$0xff]  ;;  %v3138_v61 = vld [vmem:[#allocation9 + $0xc08] sm:$0xff] }
 0x5d0   :  { %v3069_v3 = vld [vmem:[#allocation9 + $0x9e0] sm:$0xff] }
 0x5d1   :  { %v3133_v60 = vld [vmem:[#allocation9 + $0xbe0] sm:$0xff] }
 0x5d2   :  { %12541 = vmatpush1.bf16.msra.mxu1 %v12540_v10  ;;  %v2212_v10 = vld [vmem:[#allocation9 + $0x3b8] sm:$0xff] }
 0x5d3   :  { %12543 = vmatprep.subr.bf16.mxu1 %v12542_v46  ;;  %v12576_v46 = vpack.c.bf16 %v2203_v7, %v2199_v6  ;;  %v12578_v63 = vpack.c.bf16 %v2212_v10, %v2208_v8  ;;  %v12608_v6 = vpack.c.bf16 %v3069_v3, %v3065_v9  ;;  %v3073_v8 = vld [vmem:[#allocation9 + $0xa00] sm:$0xff]  ;;  %v3082_v10 = vld [vmem:[#allocation9 + $0xa48] sm:$0xff] }
 0x5d4   :  { %v3141_v9 = vld [vmem:[#allocation9 + $0xc20] sm:$0xff]  ;;  %v3146_v3 = vld [vmem:[#allocation9 + $0xc48] sm:$0xff] }
 0x5d6   :  { %12545 = vmatpush1.bf16.msra.mxu1 %v12544_v14  ;;  %v2220_v14 = vld [vmem:[#allocation9 + $0x3f8] sm:$0xff] }
 0x5d7   :  { %12547 = vmatprep.subr.bf16.mxu1 %v12546_v15  ;;  %v12580_v15 = vpack.c.bf16 %v2211_v12, %v2207_v11  ;;  %v12582_v16 = vpack.c.bf16 %v2220_v14, %v2216_v13  ;;  %v3081_v12 = vld [vmem:[#allocation9 + $0xa40] sm:$0xff]  ;;  %v3090_v14 = vld [vmem:[#allocation9 + $0xa88] sm:$0xff] }
 0x5d8   :  { %v3085_v13 = vld [vmem:[#allocation9 + $0xa60] sm:$0xff] }
 0x5da   :  { %12549 = vmatpush1.bf16.msra.mxu1 %v12548_v20  ;;  %v2228_v20 = vld [vmem:[#allocation9 + $0x438] sm:$0xff] }
 0x5db   :  { %12551 = vmatprep.subr.bf16.mxu1 %v12550_v21  ;;  %v12584_v21 = vpack.c.bf16 %v2219_v18, %v2215_v17  ;;  %v12586_v22 = vpack.c.bf16 %v2228_v20, %v2224_v19  ;;  %v3089_v18 = vld [vmem:[#allocation9 + $0xa80] sm:$0xff]  ;;  %v3098_v20 = vld [vmem:[#allocation9 + $0xac8] sm:$0xff] }
 0x5dc   :  { %v3093_v19 = vld [vmem:[#allocation9 + $0xaa0] sm:$0xff] }
 0x5de   :  { %12553 = vmatpush1.bf16.msra.mxu1 %v12552_v33  ;;  %v2236_v33 = vld [vmem:[#allocation9 + $0x478] sm:$0xff] }
 0x5df   :  { %12555 = vmatprep.subr.bf16.mxu1 %v12554_v34  ;;  %v12588_v34 = vpack.c.bf16 %v2227_v30, %v2223_v24  ;;  %v12590_v35 = vpack.c.bf16 %v2236_v33, %v2232_v31  ;;  %v3097_v30 = vld [vmem:[#allocation9 + $0xac0] sm:$0xff]  ;;  %v3106_v33 = vld [vmem:[#allocation9 + $0xb08] sm:$0xff] }
 0x5e0   :  { %v3101_v31 = vld [vmem:[#allocation9 + $0xae0] sm:$0xff] }
 0x5e2   :  { %12557 = vmatpush1.bf16.msra.mxu1 %v12556_v42  ;;  %v3046_v42 = vld [vmem:[#allocation9 + $0x928] sm:$0xff] }
 0x5e3   :  { %12559 = vmatprep.subr.bf16.mxu1 %v12558_v43  ;;  %v12592_v43 = vpack.c.bf16 %v2235_v38, %v2231_v37  ;;  %v12594_v44 = vpack.c.bf16 %v3046_v42, %v3042_v40  ;;  %v3105_v38 = vld [vmem:[#allocation9 + $0xb00] sm:$0xff]  ;;  %v3114_v42 = vld [vmem:[#allocation9 + $0xb48] sm:$0xff] }
 0x5e4   :  { %v3109_v40 = vld [vmem:[#allocation9 + $0xb20] sm:$0xff] }
 0x5e6   :  { %12561 = vmatpush1.bf16.msra.mxu1 %v12560_v52  ;;  %v3054_v52 = vld [vmem:[#allocation9 + $0x968] sm:$0xff] }
 0x5e7   :  { %12563 = vmatprep.subr.bf16.mxu1 %v12562_v53  ;;  %v12596_v53 = vpack.c.bf16 %v3045_v48, %v3041_v47  ;;  %v3113_v48 = vld [vmem:[#allocation9 + $0xb40] sm:$0xff] }
 0x5ea   :  { %12565 = vmatpush1.bf16.msra.mxu1 %v12564_v32  ;;  %v3062_v32 = vld [vmem:[#allocation9 + $0x9a8] sm:$0xff] }
 0x5eb   :  { %12567 = vmatprep.subr.bf16.mxu1 %v12566_v58  ;;  %v16009_v58 = vrot.slane %v16004_v54, 2  ;;  %v12602_v23 = vpack.c.bf16 %v3062_v32, %v3058_v57  ;;  %v3130_v57 = vld [vmem:[#allocation9 + $0xbc8] sm:$0xff] }
 0x5ec   :  { %v3134_v32 = vld [vmem:[#allocation9 + $0xbe8] sm:$0xff] }
 0x5ee   :  { %12569 = vmatpush1.bf16.msra.mxu1 %v12568_v62  ;;  %v3066_v62 = vld [vmem:[#allocation9 + $0x9c8] sm:$0xff] }
 0x5ef   :  { %12571 = vmatprep.subr.bf16.mxu1 %v12570_v1  ;;  %v3070_v1 = vld [vmem:[#allocation9 + $0x9e8] sm:$0xff] }
 0x5f0   :  { %v12606_v2 = vpack.c.bf16 %v3070_v1, %v3066_v62  ;;  %v3142_v62 = vld [vmem:[#allocation9 + $0xc28] sm:$0xff] }
 0x5f2   :  { %12573 = vmatpush1.bf16.msra.mxu1 %v12572_v4  ;;  %v3074_v4 = vld [vmem:[#allocation9 + $0xa08] sm:$0xff] }
 0x5f3   :  { %12575 = vmatprep.subr.bf16.mxu1 %v12574_v5  ;;  %v3078_v5 = vld [vmem:[#allocation9 + $0xa28] sm:$0xff] }
 0x5f4   :  { %v12610_v7 = vpack.c.bf16 %v3078_v5, %v3074_v4  ;;  %v3150_v4 = vld [vmem:[#allocation9 + $0xc68] sm:$0xff] }
 0x5f6   :  { %12577 = vmatpush1.bf16.msra.mxu1 %v12576_v46  ;;  %v3086_v46 = vld [vmem:[#allocation9 + $0xa68] sm:$0xff] }
 0x5f7   :  { %12579 = vmatprep.subr.bf16.mxu1 %v12578_v63  ;;  %v12614_v11 = vpack.c.bf16 %v3086_v46, %v3082_v10  ;;  %v3158_v10 = vld [vmem:[#allocation9 + $0xca8] sm:$0xff] }
 0x5fa   :  { %12581 = vmatpush1.bf16.msra.mxu1 %v12580_v15  ;;  %v3094_v15 = vld [vmem:[#allocation9 + $0xaa8] sm:$0xff] }
 0x5fb   :  { %12583 = vmatprep.subr.bf16.mxu1 %v12582_v16  ;;  %v12616_v16 = vpack.c.bf16 %v3085_v13, %v3081_v12  ;;  %v12618_v17 = vpack.c.bf16 %v3094_v15, %v3090_v14  ;;  %v3157_v12 = vld [vmem:[#allocation9 + $0xca0] sm:$0xff]  ;;  %v3162_v13 = vld [vmem:[#allocation9 + $0xcc8] sm:$0xff] }
 0x5fc   :  { %v3166_v14 = vld [vmem:[#allocation9 + $0xce8] sm:$0xff] }
 0x5fe   :  { %12585 = vmatpush1.bf16.msra.mxu1 %v12584_v21  ;;  %v3102_v21 = vld [vmem:[#allocation9 + $0xae8] sm:$0xff] }
 0x5ff   :  { %12587 = vmatprep.subr.bf16.mxu1 %v12586_v22  ;;  %v12620_v22 = vpack.c.bf16 %v3093_v19, %v3089_v18  ;;  %v12622_v24 = vpack.c.bf16 %v3102_v21, %v3098_v20  ;;  %v3165_v18 = vld [vmem:[#allocation9 + $0xce0] sm:$0xff]  ;;  %v3170_v19 = vld [vmem:[#allocation9 + $0xd08] sm:$0xff] }
 0x600   :  { %v3174_v20 = vld [vmem:[#allocation9 + $0xd28] sm:$0xff] }
 0x601   :  { %2945 = vmatmul.mubr.f32.vlgmr.msra.gmra.mrb[24].mxu1 %v15978_v36  ;;  %v12598_v36 = vpack.c.bf16 %v3054_v52, %v3050_v50  ;;  %v3117_v50 = vld [vmem:[#allocation9 + $0xb60] sm:$0xff]  ;;  %v3122_v52 = vld [vmem:[#allocation9 + $0xb88] sm:$0xff] }
 0x602   :  { %2950 = vmatprep.mubr.f32.mxu1 %v15981_v39  ;;  %12589 = vmatpush1.bf16.msra.mxu1 %v12588_v34  ;;  %v3053_v39 = vld [vmem:[#allocation9 + $0x960] sm:$0xff]  ;;  %v3110_v34 = vld [vmem:[#allocation9 + $0xb28] sm:$0xff] }
 0x603   :  { %12591 = vmatprep.subr.bf16.mxu1 %v12590_v35  ;;  %v12624_v35 = vpack.c.bf16 %v3101_v31, %v3097_v30  ;;  %v12626_v37 = vpack.c.bf16 %v3110_v34, %v3106_v33  ;;  %v16019_v21 = vld [vmem:[#allocation3 + $0x18] sm:$0xff]  ;;  %v12658_v30 = vpack.c.bf16 %v3174_v20, %v3170_v19  ;;  %v3083_v19 = vld [vmem:[#allocation9 + $0xa50] sm:$0xff] }
 0x604   :  { %v3169_v31 = vld [vmem:[#allocation9 + $0xd00] sm:$0xff]  ;;  %v16022_v34 = vrot.slane %v16019_v21, 2  ;;  %v3087_v20 = vld [vmem:[#allocation9 + $0xa70] sm:$0xff] }
 0x605   :  { %2951 = vmatmul.mubr.f32.gmra.mrb[26].mxu1 %v15984_v45  ;;  %v12600_v45 = vpack.c.bf16 %v3053_v39, %v3049_v55  ;;  %v3121_v39 = vld [vmem:[#allocation9 + $0xb80] sm:$0xff] }
 0x606   :  { %12593 = vmatpush1.bf16.msra.mxu1 %v12592_v43  ;;  %3021 = vmatprep.mubr.f32.mxu1 %v15987_v0  ;;  %v3118_v43 = vld [vmem:[#allocation9 + $0xb68] sm:$0xff]  ;;  %v3173_v33 = vld [vmem:[#allocation9 + $0xd20] sm:$0xff] }
 0x607   :  { %12595 = vmatprep.subr.bf16.mxu1 %v12594_v44  ;;  %v12628_v44 = vpack.c.bf16 %v3109_v40, %v3105_v38  ;;  %v12630_v47 = vpack.c.bf16 %v3118_v43, %v3114_v42  ;;  %v12660_v40 = vpack.c.bf16 %v3173_v33, %v3169_v31  ;;  %v3177_v42 = vld [vmem:[#allocation9 + $0xd40] sm:$0xff]  ;;  %v3091_v33 = vld [vmem:[#allocation9 + $0xa90] sm:$0xff] }
 0x609   :  { %11606 = vmatmul.mubr.msk.f32.vlgmr.msra.gmra.mrb[24].mxu1 %vm184_vm0, %v15990_v49  ;;  %v16016_v49 = vsel %vm3191_vm13, %v3195_v59, %v16009_v58  ;;  %v12638_v59 = vpack.c.bf16 %v3134_v32, %v3130_v57  ;;  %v3043_v57 = vld [vmem:[#allocation9 + $0x910] sm:$0xff] }
 0x60a   :  { %12597 = vmatpush1.bf16.msra.mxu1 %v12596_v53  ;;  %3027 = vmatprep.mubr.f32.mxu1 %v15987_v0  ;;  %v3126_v53 = vld [vmem:[#allocation9 + $0xba8] sm:$0xff]  ;;  %v3047_v32 = vld [vmem:[#allocation9 + $0x930] sm:$0xff] }
 0x60b   :  { %12599 = vmatprep.subr.bf16.mxu1 %v12598_v36  ;;  %v12632_v36 = vpack.c.bf16 %v3117_v50, %v3113_v48  ;;  %v12634_v55 = vpack.c.bf16 %v3126_v53, %v3122_v52  ;;  %v16024_v48 = vld [vmem:[#allocation3 + $0x28] sm:$0xff] }
 0x60c   :  { %v3044_v52 = vld [vmem:[#allocation9 + $0x918] sm:$0xff] }
 0x60d   :  { %11607 = vmatmul.mubr.msk.f32.gmra.mrb[26].mxu1 %vm184_vm0, %v15995_v41  ;;  %v3077_v41 = vld [vmem:[#allocation9 + $0xa20] sm:$0xff]  ;;  %v3048_v53 = vld [vmem:[#allocation9 + $0x938] sm:$0xff] }
 0x60e   :  { %12601 = vmatpush1.bf16.msra.mxu1 %v12600_v45  ;;  %3273 = vmatprep.mubr.f32.mxu1 %v16016_v49  ;;  %v12612_v63 = vpack.c.bf16 %v3077_v41, %v3073_v8  ;;  %v12636_v45 = vpack.c.bf16 %v3125_v56, %v3121_v39  ;;  %v3149_v8 = vld [vmem:[#allocation9 + $0xc60] sm:$0xff]  ;;  %v3154_v41 = vld [vmem:[#allocation9 + $0xc88] sm:$0xff]  ;;  %v16033_v39 = vrot.slane %v16024_v48, 2  ;;  %v12666_v56 = vpack.c.bf16 %v3048_v53, %v3044_v52  ;;  %v3112_v52 = vld [vmem:[#allocation9 + $0xb38] sm:$0xff] }
 0x60f   :  { %12603 = vmatprep.subr.bf16.mxu1 %v12602_v23  ;;  %v3129_v23 = vld [vmem:[#allocation9 + $0xbc0] sm:$0xff] }
 0x610   :  { %v12640_v1 = vpack.c.bf16 %v3133_v60, %v3129_v23  ;;  %v12668_v60 = vpack.c.bf16 %v3047_v32, %v3043_v57  ;;  %v3116_v57 = vld [vmem:[#allocation9 + $0xb58] sm:$0xff] }
 0x611   :  { %v3120_v32 = vld [vmem:[#allocation9 + $0xb78] sm:$0xff] }
 0x612   :  { %12605 = vmatpush1.bf16.msra.mxu1 %v12604_v51  ;;  %v12642_v51 = vpack.c.bf16 %v3142_v62, %v3138_v61  ;;  %v3051_v62 = vld [vmem:[#allocation9 + $0x950] sm:$0xff] }
 0x613   :  { %12607 = vmatprep.subr.bf16.mxu1 %v12606_v2  ;;  %v3137_v2 = vld [vmem:[#allocation9 + $0xc00] sm:$0xff] }
 0x614   :  { %v12644_v5 = vpack.c.bf16 %v3141_v9, %v3137_v2  ;;  %v3064_v2 = vld [vmem:[#allocation9 + $0x9b8] sm:$0xff] }
 0x616   :  { %12609 = vmatpush1.bf16.msra.mxu1 %v12608_v6  ;;  %v12646_v6 = vpack.c.bf16 %v3150_v4, %v3146_v3  ;;  %v3059_v4 = vld [vmem:[#allocation9 + $0x990] sm:$0xff] }
 0x617   :  { %12611 = vmatprep.subr.bf16.mxu1 %v12610_v7  ;;  %v3145_v7 = vld [vmem:[#allocation9 + $0xc40] sm:$0xff] }
 0x618   :  { %v12648_v46 = vpack.c.bf16 %v3149_v8, %v3145_v7  ;;  %v3072_v7 = vld [vmem:[#allocation9 + $0x9f8] sm:$0xff] }
 0x61a   :  { %12613 = vmatpush1.bf16.msra.mxu1 %v12612_v63  ;;  %v12650_v63 = vpack.c.bf16 %v3158_v10, %v3154_v41  ;;  %v3067_v10 = vld [vmem:[#allocation9 + $0x9d0] sm:$0xff] }
 0x61b   :  { %12615 = vmatprep.subr.bf16.mxu1 %v12614_v11  ;;  %v3153_v11 = vld [vmem:[#allocation9 + $0xc80] sm:$0xff] }
 0x61c   :  { %v12652_v15 = vpack.c.bf16 %v3157_v12, %v3153_v11  ;;  %v3080_v11 = vld [vmem:[#allocation9 + $0xa38] sm:$0xff] }
 0x61e   :  { %12617 = vmatpush1.bf16.msra.mxu1 %v12616_v16  ;;  %v12654_v16 = vpack.c.bf16 %v3166_v14, %v3162_v13  ;;  %v3075_v14 = vld [vmem:[#allocation9 + $0xa10] sm:$0xff] }
 0x61f   :  { %12619 = vmatprep.subr.bf16.mxu1 %v12618_v17  ;;  %v3161_v17 = vld [vmem:[#allocation9 + $0xcc0] sm:$0xff] }
 0x622   :  { %12621 = vmatpush1.bf16.msra.mxu1 %v12620_v22  ;;  %v12656_v22 = vpack.c.bf16 %v3165_v18, %v3161_v17  ;;  %v3088_v17 = vld [vmem:[#allocation9 + $0xa78] sm:$0xff] }
 0x623   :  { %12623 = vmatprep.subr.bf16.mxu1 %v12622_v24  ;;  %v3034_v24 = vld [vmem:[#allocation3] sm:$0xfc] }
 0x624   :  { %v3192_v38 = vrot.slane %v3034_v24, 2  ;;  %v3096_v24 = vld [vmem:[#allocation9 + $0xab8] sm:$0xff] }
 0x626   :  { %12625 = vmatpush1.bf16.msra.mxu1 %v12624_v35  ;;  %v3178_v35 = vld [vmem:[#allocation9 + $0xd48] sm:$0xff]  ;;  %v16028_v50 = vsel %vm3191_vm13, %v3192_v38, %v16022_v34  ;;  %v3104_v38 = vld [vmem:[#allocation9 + $0xaf8] sm:$0xff] }
 0x627   :  { %12627 = vmatprep.subr.bf16.mxu1 %v12626_v37  ;;  %v3182_v37 = vld [vmem:[#allocation9 + $0xd68] sm:$0xff] }
 0x628   :  { %v12662_v43 = vpack.c.bf16 %v3182_v37, %v3178_v35  ;;  %v3095_v35 = vld [vmem:[#allocation9 + $0xab0] sm:$0xff]  ;;  %v3100_v37 = vld [vmem:[#allocation9 + $0xad8] sm:$0xff] }
 0x62a   :  { %12629 = vmatpush1.bf16.msra.mxu1 %v12628_v44  ;;  %v3181_v44 = vld [vmem:[#allocation9 + $0xd60] sm:$0xff] }
 0x62b   :  { %12631 = vmatprep.subr.bf16.mxu1 %v12630_v47  ;;  %v3036_v47 = vld [vmem:[#allocation3 + $0x10] sm:$0xfc] }
 0x62e   :  { %12633 = vmatpush1.bf16.msra.mxu1 %v12632_v36  ;;  %v12664_v36 = vpack.c.bf16 %v3181_v44, %v3177_v42  ;;  %v12694_v42 = vpack.c.bf16 %v3104_v38, %v3100_v37  ;;  %v3103_v44 = vld [vmem:[#allocation9 + $0xaf0] sm:$0xff] }
 0x62f   :  { %12635 = vmatprep.subr.bf16.mxu1 %v12634_v55  ;;  %v3198_v55 = vrot.slane %v3036_v47, 2  ;;  %v3108_v47 = vld [vmem:[#allocation9 + $0xb18] sm:$0xff] }
 0x631   :  { %v16039_v23 = vsel %vm3191_vm13, %v3198_v55, %v16033_v39  ;;  %v3107_v55 = vld [vmem:[#allocation9 + $0xb10] sm:$0xff] }
 0x632   :  { %12637 = vmatpush1.bf16.msra.mxu1 %v12636_v45  ;;  %v3052_v45 = vld [vmem:[#allocation9 + $0x958] sm:$0xff] }
 0x633   :  { %12639 = vmatprep.subr.bf16.mxu1 %v12638_v59  ;;  %v3056_v59 = vld [vmem:[#allocation9 + $0x978] sm:$0xff] }
 0x634   :  { %v12670_v61 = vpack.c.bf16 %v3056_v59, %v3052_v45  ;;  %v12702_v59 = vpack.c.bf16 %v3120_v32, %v3116_v57 }
 0x636   :  { %12641 = vmatpush1.bf16.msra.mxu1 %v12640_v1  ;;  %v3055_v1 = vld [vmem:[#allocation9 + $0x970] sm:$0xff] }
 0x637   :  { %12643 = vmatprep.subr.bf16.mxu1 %v12642_v51  ;;  %v3060_v51 = vld [vmem:[#allocation9 + $0x998] sm:$0xff]  ;;  %v12672_v9 = vpack.c.bf16 %v3055_v1, %v3051_v62 }
 0x638   :  { %v12674_v3 = vpack.c.bf16 %v3064_v2, %v3060_v51  ;;  %v3124_v62 = vld [vmem:[#allocation9 + $0xb98] sm:$0xff] }
 0x639   :  { %v3128_v1 = vld [vmem:[#allocation9 + $0xbb8] sm:$0xff] }
 0x63a   :  { %12645 = vmatpush1.bf16.msra.mxu1 %v12644_v5  ;;  %v3063_v5 = vld [vmem:[#allocation9 + $0x9b0] sm:$0xff]  ;;  %v12706_v2 = vpack.c.bf16 %v3128_v1, %v3124_v62 }
 0x63b   :  { %12647 = vmatprep.subr.bf16.mxu1 %v12646_v6  ;;  %v3068_v6 = vld [vmem:[#allocation9 + $0x9d8] sm:$0xff]  ;;  %v12676_v8 = vpack.c.bf16 %v3063_v5, %v3059_v4 }
 0x63c   :  { %v12678_v41 = vpack.c.bf16 %v3072_v7, %v3068_v6  ;;  %v3132_v4 = vld [vmem:[#allocation9 + $0xbd8] sm:$0xff] }
 0x63d   :  { %v3136_v5 = vld [vmem:[#allocation9 + $0xbf8] sm:$0xff] }
 0x63e   :  { %12649 = vmatpush1.bf16.msra.mxu1 %v12648_v46  ;;  %v3071_v46 = vld [vmem:[#allocation9 + $0x9f0] sm:$0xff]  ;;  %v12710_v7 = vpack.c.bf16 %v3136_v5, %v3132_v4 }
 0x63f   :  { %12651 = vmatprep.subr.bf16.mxu1 %v12650_v63  ;;  %v3076_v63 = vld [vmem:[#allocation9 + $0xa18] sm:$0xff]  ;;  %v12680_v12 = vpack.c.bf16 %v3071_v46, %v3067_v10 }
 0x640   :  { %v12682_v13 = vpack.c.bf16 %v3080_v11, %v3076_v63  ;;  %v3140_v10 = vld [vmem:[#allocation9 + $0xc18] sm:$0xff] }
 0x641   :  { %v3144_v46 = vld [vmem:[#allocation9 + $0xc38] sm:$0xff] }
 0x642   :  { %12653 = vmatpush1.bf16.msra.mxu1 %v12652_v15  ;;  %v3079_v15 = vld [vmem:[#allocation9 + $0xa30] sm:$0xff]  ;;  %v12714_v11 = vpack.c.bf16 %v3144_v46, %v3140_v10 }
 0x643   :  { %12655 = vmatprep.subr.bf16.mxu1 %v12654_v16  ;;  %v3084_v16 = vld [vmem:[#allocation9 + $0xa58] sm:$0xff] }
 0x644   :  { %v12686_v18 = vpack.c.bf16 %v3088_v17, %v3084_v16 }
 0x646   :  { %12657 = vmatpush1.bf16.msra.mxu1 %v12656_v22  ;;  %v3092_v22 = vld [vmem:[#allocation9 + $0xa98] sm:$0xff] }
 0x647   :  { %12659 = vmatprep.subr.bf16.mxu1 %v12658_v30  ;;  %v12688_v30 = vpack.c.bf16 %v3087_v20, %v3083_v19  ;;  %v12690_v31 = vpack.c.bf16 %v3096_v24, %v3092_v22  ;;  %v3156_v19 = vld [vmem:[#allocation9 + $0xc98] sm:$0xff] }
 0x648   :  { %v3160_v20 = vld [vmem:[#allocation9 + $0xcb8] sm:$0xff] }
 0x649   :  { %3274 = vmatmul.mubr.f32.vlgmr.msra.gmra.mrb[20].mxu1 %v16028_v50  ;;  %v12722_v24 = vpack.c.bf16 %v3160_v20, %v3156_v19  ;;  %v3571_v20 = vld [vmem:[#allocation9 + $0xea0] sm:$0xff] }
 0x64a   :  { %3279 = vmatprep.mubr.f32.mxu1 %v16009_v58  ;;  %12661 = vmatpush1.bf16.msra.mxu1 %v12660_v40  ;;  %v12692_v40 = vpack.c.bf16 %v3095_v35, %v3091_v33  ;;  %v3164_v33 = vld [vmem:[#allocation9 + $0xcd8] sm:$0xff] }
 0x64b   :  { %12663 = vmatprep.subr.bf16.mxu1 %v12662_v43  ;;  %v3099_v43 = vld [vmem:[#allocation9 + $0xad0] sm:$0xff]  ;;  %v3168_v35 = vld [vmem:[#allocation9 + $0xcf8] sm:$0xff] }
 0x64c   :  { %v12696_v53 = vpack.c.bf16 %v3103_v44, %v3099_v43  ;;  %v12726_v38 = vpack.c.bf16 %v3168_v35, %v3164_v33  ;;  %v3172_v43 = vld [vmem:[#allocation9 + $0xd18] sm:$0xff]  ;;  %v3575_v33 = vld [vmem:[#allocation9 + $0xec0] sm:$0xff] }
 0x64d   :  { %3280 = vmatmul.mubr.f32.gmra.mrb[22].mxu1 %v16022_v34  ;;  %v3176_v44 = vld [vmem:[#allocation9 + $0xd38] sm:$0xff]  ;;  %v3579_v35 = vld [vmem:[#allocation9 + $0xee0] sm:$0xff] }
 0x64e   :  { %12665 = vmatpush1.bf16.msra.mxu1 %v12664_v36  ;;  %3350 = vmatprep.mubr.f32.mxu1 %v15987_v0  ;;  %v12698_v36 = vpack.c.bf16 %v3112_v52, %v3108_v47  ;;  %v12730_v52 = vpack.c.bf16 %v3176_v44, %v3172_v43  ;;  %v3583_v43 = vld [vmem:[#allocation9 + $0xf00] sm:$0xff] }
 0x64f   :  { %12667 = vmatprep.subr.bf16.mxu1 %v12666_v56  ;;  %v3111_v56 = vld [vmem:[#allocation9 + $0xb30] sm:$0xff]  ;;  %v3587_v44 = vld [vmem:[#allocation9 + $0xf20] sm:$0xff] }
 0x650   :  { %v12700_v45 = vpack.c.bf16 %v3111_v56, %v3107_v55  ;;  %v3180_v55 = vld [vmem:[#allocation9 + $0xd58] sm:$0xff] }
 0x651   :  { %11608 = vmatmul.mubr.msk.f32.vlgmr.msra.gmra.mrb[20].mxu1 %vm184_vm0, %v16039_v23  ;;  %v3184_v56 = vld [vmem:[#allocation9 + $0xd78] sm:$0xff] }
 0x652   :  { %12669 = vmatpush1.bf16.msra.mxu1 %v12668_v60  ;;  %3356 = vmatprep.mubr.f32.mxu1 %v15987_v0  ;;  %v3115_v60 = vld [vmem:[#allocation9 + $0xb50] sm:$0xff]  ;;  %v12734_v32 = vpack.c.bf16 %v3184_v56, %v3180_v55  ;;  %v3591_v55 = vld [vmem:[#allocation9 + $0xf40] sm:$0xff] }
 0x653   :  { %12671 = vmatprep.subr.bf16.mxu1 %v12670_v61  ;;  %v3119_v61 = vld [vmem:[#allocation9 + $0xb70] sm:$0xff]  ;;  %v3595_v56 = vld [vmem:[#allocation9 + $0xf60] sm:$0xff] }
 0x654   :  { %v12704_v51 = vpack.c.bf16 %v3119_v61, %v3115_v60  ;;  %v3536_v60 = vld [vmem:[#allocation9 + $0xd88] sm:$0xff] }
 0x655   :  { %11609 = vmatmul.mubr.msk.f32.gmra.mrb[22].mxu1 %vm184_vm0, %v16033_v39  ;;  %v3540_v61 = vld [vmem:[#allocation9 + $0xda8] sm:$0xff] }
 0x656   :  { %12673 = vmatpush1.bf16.msra.mxu1 %v12672_v9  ;;  %3427 = vmatprep.mubr.f32.mxu1 %v16016_v49  ;;  %v12684_v49 = vpack.c.bf16 %v3079_v15, %v3075_v14  ;;  %v3123_v9 = vld [vmem:[#allocation9 + $0xb90] sm:$0xff]  ;;  %v3148_v14 = vld [vmem:[#allocation9 + $0xc58] sm:$0xff]  ;;  %v12738_v1 = vpack.c.bf16 %v3540_v61, %v3536_v60  ;;  %v3599_v60 = vld [vmem:[#allocation9 + $0xf80] sm:$0xff] }
 0x657   :  { %12675 = vmatprep.subr.bf16.mxu1 %v12674_v3  ;;  %v3127_v3 = vld [vmem:[#allocation9 + $0xbb0] sm:$0xff]  ;;  %v3152_v15 = vld [vmem:[#allocation9 + $0xc78] sm:$0xff]  ;;  %v3603_v61 = vld [vmem:[#allocation9 + $0xfa0] sm:$0xff] }
 0x658   :  { %v12708_v6 = vpack.c.bf16 %v3127_v3, %v3123_v9  ;;  %v12718_v17 = vpack.c.bf16 %v3152_v15, %v3148_v14  ;;  %v3544_v9 = vld [vmem:[#allocation9 + $0xdc8] sm:$0xff]  ;;  %v3559_v15 = vld [vmem:[#allocation9 + $0xe40] sm:$0xff] }
 0x659   :  { %v3548_v3 = vld [vmem:[#allocation9 + $0xde8] sm:$0xff] }
 0x65a   :  { %12677 = vmatpush1.bf16.msra.mxu1 %v12676_v8  ;;  %v3131_v8 = vld [vmem:[#allocation9 + $0xbd0] sm:$0xff]  ;;  %v12742_v5 = vpack.c.bf16 %v3548_v3, %v3544_v9  ;;  %v3607_v9 = vld [vmem:[#allocation9 + $0xfc0] sm:$0xff] }
 0x65b   :  { %12679 = vmatprep.subr.bf16.mxu1 %v12678_v41  ;;  %v3135_v41 = vld [vmem:[#allocation9 + $0xbf0] sm:$0xff]  ;;  %v3611_v3 = vld [vmem:[#allocation9 + $0xfe0] sm:$0xff] }
 0x65c   :  { %v12712_v63 = vpack.c.bf16 %v3135_v41, %v3131_v8  ;;  %v3556_v8 = vld [vmem:[#allocation9 + $0xe28] sm:$0xff]  ;;  %v3693_v41 = vrot.slane %v16004_v54, 3  ;;  %v3550_v54 = vld [vmem:[#allocation9 + $0xdf8] sm:$0xff] }
 0x65e   :  { %12681 = vmatpush1.bf16.msra.mxu1 %v12680_v12  ;;  %v3139_v12 = vld [vmem:[#allocation9 + $0xc10] sm:$0xff] }
 0x65f   :  { %12683 = vmatprep.subr.bf16.mxu1 %v12682_v13  ;;  %v3143_v13 = vld [vmem:[#allocation9 + $0xc30] sm:$0xff] }
 0x660   :  { %v12716_v16 = vpack.c.bf16 %v3143_v13, %v3139_v12  ;;  %v3560_v12 = vld [vmem:[#allocation9 + $0xe48] sm:$0xff] }
 0x661   :  { %v3564_v13 = vld [vmem:[#allocation9 + $0xe68] sm:$0xff] }
 0x662   :  { %12685 = vmatpush1.bf16.msra.mxu1 %v12684_v49  ;;  %v3147_v49 = vld [vmem:[#allocation9 + $0xc50] sm:$0xff]  ;;  %v12750_v14 = vpack.c.bf16 %v3564_v13, %v3560_v12  ;;  %v3632_v12 = vld [vmem:[#allocation9 + $0x1088] sm:$0xff] }
 0x663   :  { %12687 = vmatprep.subr.bf16.mxu1 %v12686_v18  ;;  %v3151_v18 = vld [vmem:[#allocation9 + $0xc70] sm:$0xff]  ;;  %v3636_v13 = vld [vmem:[#allocation9 + $0x10a8] sm:$0xff] }
 0x664   :  { %v12720_v22 = vpack.c.bf16 %v3151_v18, %v3147_v49  ;;  %v3572_v49 = vld [vmem:[#allocation9 + $0xea8] sm:$0xff] }
 0x666   :  { %12689 = vmatpush1.bf16.msra.mxu1 %v12688_v30  ;;  %v3155_v30 = vld [vmem:[#allocation9 + $0xc90] sm:$0xff] }
 0x667   :  { %12691 = vmatprep.subr.bf16.mxu1 %v12690_v31  ;;  %v3159_v31 = vld [vmem:[#allocation9 + $0xcb0] sm:$0xff] }
 0x668   :  { %v12724_v37 = vpack.c.bf16 %v3159_v31, %v3155_v30 }
 0x66a   :  { %12693 = vmatpush1.bf16.msra.mxu1 %v12692_v40  ;;  %v3163_v40 = vld [vmem:[#allocation9 + $0xcd0] sm:$0xff] }
 0x66b   :  { %12695 = vmatprep.subr.bf16.mxu1 %v12694_v42  ;;  %v3167_v42 = vld [vmem:[#allocation9 + $0xcf0] sm:$0xff] }
 0x66c   :  { %v12728_v47 = vpack.c.bf16 %v3167_v42, %v3163_v40  ;;  %v12760_v40 = vpack.c.bf16 %v3579_v35, %v3575_v33  ;;  %v3647_v33 = vld [vmem:[#allocation9 + $0x1100] sm:$0xff] }
 0x66d   :  { %v3651_v35 = vld [vmem:[#allocation9 + $0x1120] sm:$0xff] }
 0x66e   :  { %12697 = vmatpush1.bf16.msra.mxu1 %v12696_v53  ;;  %v3171_v53 = vld [vmem:[#allocation9 + $0xd10] sm:$0xff] }
 0x66f   :  { %12699 = vmatprep.subr.bf16.mxu1 %v12698_v36  ;;  %v3175_v36 = vld [vmem:[#allocation9 + $0xd30] sm:$0xff] }
 0x670   :  { %v12732_v57 = vpack.c.bf16 %v3175_v36, %v3171_v53  ;;  %v12764_v53 = vpack.c.bf16 %v3587_v44, %v3583_v43  ;;  %v3655_v43 = vld [vmem:[#allocation9 + $0x1140] sm:$0xff] }
 0x671   :  { %v3659_v44 = vld [vmem:[#allocation9 + $0x1160] sm:$0xff] }
 0x672   :  { %12701 = vmatpush1.bf16.msra.mxu1 %v12700_v45  ;;  %v3179_v45 = vld [vmem:[#allocation9 + $0xd50] sm:$0xff] }
 0x673   :  { %12703 = vmatprep.subr.bf16.mxu1 %v12702_v59  ;;  %v3183_v59 = vld [vmem:[#allocation9 + $0xd70] sm:$0xff] }
 0x674   :  { %v12736_v62 = vpack.c.bf16 %v3183_v59, %v3179_v45  ;;  %v12768_v45 = vpack.c.bf16 %v3595_v56, %v3591_v55  ;;  %v3525_v55 = vld [vmem:[#allocation3] sm:$0xf8] }
 0x676   :  { %12705 = vmatpush1.bf16.msra.mxu1 %v12704_v51  ;;  %v3535_v51 = vld [vmem:[#allocation9 + $0xd80] sm:$0xff] }
 0x677   :  { %12707 = vmatprep.subr.bf16.mxu1 %v12706_v2  ;;  %v3539_v2 = vld [vmem:[#allocation9 + $0xda0] sm:$0xff] }
 0x678   :  { %v12740_v4 = vpack.c.bf16 %v3539_v2, %v3535_v51  ;;  %v12772_v51 = vpack.c.bf16 %v3603_v61, %v3599_v60  ;;  %v3676_v60 = vld [vmem:[#allocation9 + $0x11e8] sm:$0xff] }
 0x67a   :  { %12709 = vmatpush1.bf16.msra.mxu1 %v12708_v6  ;;  %v3543_v6 = vld [vmem:[#allocation9 + $0xdc0] sm:$0xff] }
 0x67b   :  { %12711 = vmatprep.subr.bf16.mxu1 %v12710_v7  ;;  %v3526_v7 = vld [vmem:[#allocation3 + $0x8] sm:$0xf8] }
 0x67c   :  { %v3692_v10 = vrot.slane %v3526_v7, 3  ;;  %v3615_v7 = vld [vmem:[#allocation9 + $0x1000] sm:$0xff] }
 0x67e   :  { %12713 = vmatpush1.bf16.msra.mxu1 %v12712_v63  ;;  %v3551_v63 = vld [vmem:[#allocation9 + $0xe00] sm:$0xff] }
 0x67f   :  { %12715 = vmatprep.subr.bf16.mxu1 %v12714_v11  ;;  %v3555_v11 = vld [vmem:[#allocation9 + $0xe20] sm:$0xff] }
 0x682   :  { %12717 = vmatpush1.bf16.msra.mxu1 %v12716_v16  ;;  %v3563_v16 = vld [vmem:[#allocation9 + $0xe60] sm:$0xff] }
 0x683   :  { %12719 = vmatprep.subr.bf16.mxu1 %v12718_v17  ;;  %v3568_v17 = vld [vmem:[#allocation9 + $0xe88] sm:$0xff]  ;;  %v12752_v18 = vpack.c.bf16 %v3563_v16, %v3559_v15  ;;  %v3631_v15 = vld [vmem:[#allocation9 + $0x1080] sm:$0xff] }
 0x684   :  { %v12754_v19 = vpack.c.bf16 %v3572_v49, %v3568_v17  ;;  %v3635_v16 = vld [vmem:[#allocation9 + $0x10a0] sm:$0xff]  ;;  %v3640_v17 = vld [vmem:[#allocation9 + $0x10c8] sm:$0xff] }
 0x685   :  { %v3644_v49 = vld [vmem:[#allocation9 + $0x10e8] sm:$0xff] }
 0x686   :  { %12721 = vmatpush1.bf16.msra.mxu1 %v12720_v22  ;;  %v3576_v22 = vld [vmem:[#allocation9 + $0xec8] sm:$0xff] }
 0x687   :  { %12723 = vmatprep.subr.bf16.mxu1 %v12722_v24  ;;  %v3580_v24 = vld [vmem:[#allocation9 + $0xee8] sm:$0xff] }
 0x688   :  { %v12758_v31 = vpack.c.bf16 %v3580_v24, %v3576_v22  ;;  %v3648_v22 = vld [vmem:[#allocation9 + $0x1108] sm:$0xff] }
 0x689   :  { %v3652_v24 = vld [vmem:[#allocation9 + $0x1128] sm:$0xff] }
 0x68a   :  { %12725 = vmatpush1.bf16.msra.mxu1 %v12724_v37  ;;  %v3584_v37 = vld [vmem:[#allocation9 + $0xf08] sm:$0xff] }
 0x68b   :  { %12727 = vmatprep.subr.bf16.mxu1 %v12726_v38  ;;  %v3588_v38 = vld [vmem:[#allocation9 + $0xf28] sm:$0xff] }
 0x68c   :  { %v12762_v42 = vpack.c.bf16 %v3588_v38, %v3584_v37  ;;  %v3656_v37 = vld [vmem:[#allocation9 + $0x1148] sm:$0xff] }
 0x68d   :  { %v3660_v38 = vld [vmem:[#allocation9 + $0x1168] sm:$0xff] }
 0x68e   :  { %12729 = vmatpush1.bf16.msra.mxu1 %v12728_v47  ;;  %v3592_v47 = vld [vmem:[#allocation9 + $0xf48] sm:$0xff] }
 0x68f   :  { %12731 = vmatprep.subr.bf16.mxu1 %v12730_v52  ;;  %v3596_v52 = vld [vmem:[#allocation9 + $0xf68] sm:$0xff] }
 0x690   :  { %v12766_v36 = vpack.c.bf16 %v3596_v52, %v3592_v47  ;;  %v3664_v47 = vld [vmem:[#allocation9 + $0x1188] sm:$0xff] }
 0x691   :  { %3428 = vmatmul.mubr.f32.vlgmr.msra.gmra.mrb[24].mxu1 %v16028_v50  ;;  %v3547_v50 = vld [vmem:[#allocation9 + $0xde0] sm:$0xff]  ;;  %v3668_v52 = vld [vmem:[#allocation9 + $0x11a8] sm:$0xff] }
 0x692   :  { %3433 = vmatprep.mubr.f32.mxu1 %v16009_v58  ;;  %12733 = vmatpush1.bf16.msra.mxu1 %v12732_v57  ;;  %v3552_v58 = vld [vmem:[#allocation9 + $0xe08] sm:$0xff]  ;;  %v12802_v56 = vpack.c.bf16 %v3668_v52, %v3664_v47  ;;  %v3569_v47 = vld [vmem:[#allocation9 + $0xe90] sm:$0xff] }
 0x693   :  { %12735 = vmatprep.subr.bf16.mxu1 %v12734_v32  ;;  %v12746_v46 = vpack.c.bf16 %v3556_v8, %v3552_v58  ;;  %v3600_v57 = vld [vmem:[#allocation9 + $0xf88] sm:$0xff]  ;;  %v3619_v58 = vld [vmem:[#allocation9 + $0x1020] sm:$0xff]  ;;  %v3573_v52 = vld [vmem:[#allocation9 + $0xeb0] sm:$0xff] }
 0x694   :  { %v3604_v32 = vld [vmem:[#allocation9 + $0xfa8] sm:$0xff] }
 0x695   :  { %3434 = vmatmul.mubr.f32.gmra.mrb[26].mxu1 %v16022_v34  ;;  %v12744_v34 = vpack.c.bf16 %v3547_v50, %v3543_v6  ;;  %v12770_v59 = vpack.c.bf16 %v3604_v32, %v3600_v57  ;;  %v12776_v6 = vpack.c.bf16 %v3611_v3, %v3607_v9  ;;  %v3624_v8 = vld [vmem:[#allocation9 + $0x1048] sm:$0xff]  ;;  %v3663_v57 = vld [vmem:[#allocation9 + $0x1180] sm:$0xff] }
 0x696   :  { %12737 = vmatpush1.bf16.msra.mxu1 %v12736_v62  ;;  %3504 = vmatprep.mubr.f32.mxu1 %v15987_v0  ;;  %v3608_v62 = vld [vmem:[#allocation9 + $0xfc8] sm:$0xff]  ;;  %v3667_v32 = vld [vmem:[#allocation9 + $0x11a0] sm:$0xff] }
 0x697   :  { %12739 = vmatprep.subr.bf16.mxu1 %v12738_v1  ;;  %v3612_v1 = vld [vmem:[#allocation9 + $0xfe8] sm:$0xff]  ;;  %v3671_v9 = vld [vmem:[#allocation9 + $0x11c0] sm:$0xff] }
 0x698   :  { %v12774_v2 = vpack.c.bf16 %v3612_v1, %v3608_v62  ;;  %v3531_v62 = vld [vmem:[#allocation3 + $0x30] sm:$0x1]  ;;  %v3689_v1 = vrot.slane %v3525_v55, 3  ;;  %v3675_v3 = vld [vmem:[#allocation9 + $0x11e0] sm:$0xff]  ;;  %v12828_v55 = vpack.c.bf16 %v3573_v52, %v3569_v47  ;;  %v3641_v52 = vld [vmem:[#allocation9 + $0x10d0] sm:$0xff] }
 0x699   :  { %11610 = vmatmul.mubr.msk.f32.vlgmr.msra.gmra.mrb[24].mxu1 %vm184_vm0, %v16039_v23  ;;  %v16062_v23 = vsel %vm3688_vm15, %v3692_v10, %v3693_v41  ;;  %v12780_v10 = vpack.c.bf16 %v3619_v58, %v3615_v7  ;;  %v3542_v7 = vld [vmem:[#allocation9 + $0xdb8] sm:$0xff]  ;;  %v12808_v58 = vpack.c.bf16 %v3675_v3, %v3671_v9  ;;  %v3593_v3 = vld [vmem:[#allocation9 + $0xf50] sm:$0xff] }
 0x69a   :  { %12741 = vmatpush1.bf16.msra.mxu1 %v12740_v4  ;;  %3510 = vmatprep.mubr.f32.mxu1 %v15987_v0  ;;  %v12748_v0 = vpack.c.bf16 %v3555_v11, %v3551_v63  ;;  %v3616_v4 = vld [vmem:[#allocation9 + $0x1008] sm:$0xff]  ;;  %v3623_v63 = vld [vmem:[#allocation9 + $0x1040] sm:$0xff] }
 0x69b   :  { %12743 = vmatprep.subr.bf16.mxu1 %v12742_v5  ;;  %v3620_v5 = vld [vmem:[#allocation9 + $0x1028] sm:$0xff]  ;;  %v3627_v11 = vld [vmem:[#allocation9 + $0x1060] sm:$0xff] }
 0x69c   :  { %v12778_v50 = vpack.c.bf16 %v3620_v5, %v3616_v4  ;;  %v3527_v4 = vld [vmem:[#allocation3 + $0x10] sm:$0xf8] }
 0x69d   :  { %11611 = vmatmul.mubr.msk.f32.gmra.mrb[26].mxu1 %vm184_vm0, %v16033_v39  ;;  %v3567_v39 = vld [vmem:[#allocation9 + $0xe80] sm:$0xff] }
 0x69e   :  { %12745 = vmatpush1.bf16.msra.mxu1 %v12744_v34  ;;  %3776 = vmatprep.mubr.f32.mxu1 %v16062_v23  ;;  %v12756_v30 = vpack.c.bf16 %v3571_v20, %v3567_v39  ;;  %v3628_v34 = vld [vmem:[#allocation9 + $0x1068] sm:$0xff]  ;;  %v3639_v39 = vld [vmem:[#allocation9 + $0x10c0] sm:$0xff] }
 0x69f   :  { %12747 = vmatprep.subr.bf16.mxu1 %v12746_v46  ;;  %v12782_v46 = vpack.c.bf16 %v3628_v34, %v3624_v8  ;;  %v3643_v20 = vld [vmem:[#allocation9 + $0x10e0] sm:$0xff]  ;;  %v3695_v8 = vrot.slane %v3527_v4, 3  ;;  %v3696_v34 = vrot.slane %v16024_v48, 3  ;;  %v3597_v4 = vld [vmem:[#allocation9 + $0xf70] sm:$0xff] }
 0x6a2   :  { %12749 = vmatpush1.bf16.msra.mxu1 %v12748_v0  ;;  %v12784_v0 = vpack.c.bf16 %v3627_v11, %v3623_v63  ;;  %v3541_v63 = vld [vmem:[#allocation9 + $0xdb0] sm:$0xff]  ;;  %v3533_v11 = vld [vmem:[#allocation3 + $0x40] sm:$0x1] }
 0x6a3   :  { %12751 = vmatprep.subr.bf16.mxu1 %v12750_v14  ;;  %v12786_v14 = vpack.c.bf16 %v3636_v13, %v3632_v12  ;;  %v3546_v13 = vld [vmem:[#allocation9 + $0xdd8] sm:$0xff] }
 0x6a6   :  { %12753 = vmatpush1.bf16.msra.mxu1 %v12752_v18  ;;  %v12788_v18 = vpack.c.bf16 %v3635_v16, %v3631_v15  ;;  %v12814_v15 = vpack.c.bf16 %v3550_v54, %v3546_v13  ;;  %v3545_v16 = vld [vmem:[#allocation9 + $0xdd0] sm:$0xff] }
 0x6a7   :  { %12755 = vmatprep.subr.bf16.mxu1 %v12754_v19  ;;  %v12790_v19 = vpack.c.bf16 %v3644_v49, %v3640_v17  ;;  %v3549_v17 = vld [vmem:[#allocation9 + $0xdf0] sm:$0xff]  ;;  %v3554_v49 = vld [vmem:[#allocation9 + $0xe18] sm:$0xff] }
 0x6a8   :  { %v3609_v13 = vld [vmem:[#allocation9 + $0xfd0] sm:$0xff] }
 0x6a9   :  { %v3613_v54 = vld [vmem:[#allocation9 + $0xff0] sm:$0xff] }
 0x6aa   :  { %12757 = vmatpush1.bf16.msra.mxu1 %v12756_v30  ;;  %v12792_v30 = vpack.c.bf16 %v3643_v20, %v3639_v39  ;;  %v12816_v39 = vpack.c.bf16 %v3549_v17, %v3545_v16  ;;  %v3617_v17 = vld [vmem:[#allocation9 + $0x1010] sm:$0xff] }
 0x6ab   :  { %12759 = vmatprep.subr.bf16.mxu1 %v12758_v31  ;;  %v12794_v31 = vpack.c.bf16 %v3652_v24, %v3648_v22  ;;  %v3553_v22 = vld [vmem:[#allocation9 + $0xe10] sm:$0xff] }
 0x6ac   :  { %v3557_v24 = vld [vmem:[#allocation9 + $0xe30] sm:$0xff] }
 0x6ae   :  { %12761 = vmatpush1.bf16.msra.mxu1 %v12760_v40  ;;  %v12796_v40 = vpack.c.bf16 %v3651_v35, %v3647_v33  ;;  %v12820_v33 = vpack.c.bf16 %v3557_v24, %v3553_v22  ;;  %v3625_v24 = vld [vmem:[#allocation9 + $0x1050] sm:$0xff] }
 0x6af   :  { %12763 = vmatprep.subr.bf16.mxu1 %v12762_v42  ;;  %v12798_v42 = vpack.c.bf16 %v3660_v38, %v3656_v37  ;;  %v3561_v37 = vld [vmem:[#allocation9 + $0xe50] sm:$0xff] }
 0x6b0   :  { %v3565_v38 = vld [vmem:[#allocation9 + $0xe70] sm:$0xff] }
 0x6b2   :  { %12765 = vmatpush1.bf16.msra.mxu1 %v12764_v53  ;;  %v12800_v53 = vpack.c.bf16 %v3659_v44, %v3655_v43  ;;  %v12824_v43 = vpack.c.bf16 %v3565_v38, %v3561_v37  ;;  %v3633_v38 = vld [vmem:[#allocation9 + $0x1090] sm:$0xff] }
 0x6b3   :  { %12767 = vmatprep.subr.bf16.mxu1 %v12766_v36  ;;  %v3532_v36 = vld [vmem:[#allocation3 + $0x38] sm:$0x1] }
 0x6b4   :  { %v3700_v61 = vrot.slane %v3532_v36, 3  ;;  %v3582_v36 = vld [vmem:[#allocation9 + $0xef8] sm:$0xff] }
 0x6b6   :  { %12769 = vmatpush1.bf16.msra.mxu1 %v12768_v45  ;;  %v3690_v45 = vrot.slane %v16019_v21, 3  ;;  %v16073_v21 = vsel %vm3688_vm15, %v3693_v41, %v3700_v61  ;;  %v16081_v41 = vld [vmem:[#allocation3 + $0x48] sm:$0xff] }
 0x6b7   :  { %12771 = vmatprep.subr.bf16.mxu1 %v12770_v59  ;;  %v3672_v59 = vld [vmem:[#allocation9 + $0x11c8] sm:$0xff]  ;;  %v3585_v61 = vld [vmem:[#allocation9 + $0xf10] sm:$0xff] }
 0x6b8   :  { %v16067_v5 = vsel %vm3688_vm15, %v3689_v1, %v3690_v45  ;;  %v3594_v1 = vld [vmem:[#allocation9 + $0xf58] sm:$0xff] }
 0x6ba   :  { %12773 = vmatpush1.bf16.msra.mxu1 %v12772_v51  ;;  %v12804_v51 = vpack.c.bf16 %v3667_v32, %v3663_v57  ;;  %v3581_v57 = vld [vmem:[#allocation9 + $0xef0] sm:$0xff]  ;;  %v3586_v32 = vld [vmem:[#allocation9 + $0xf18] sm:$0xff] }
 0x6bb   :  { %12775 = vmatprep.subr.bf16.mxu1 %v12774_v2  ;;  %v12806_v2 = vpack.c.bf16 %v3676_v60, %v3672_v59 }
 0x6be   :  { %12777 = vmatpush1.bf16.msra.mxu1 %v12776_v6  ;;  %v3698_v6 = vrot.slane %v3531_v62, 3  ;;  %v3589_v62 = vld [vmem:[#allocation9 + $0xf30] sm:$0xff] }
 0x6bf   :  { %12779 = vmatprep.subr.bf16.mxu1 %v12778_v50  ;;  %v3538_v50 = vld [vmem:[#allocation9 + $0xd98] sm:$0xff] }
 0x6c0   :  { %v16078_v12 = vsel %vm3688_vm15, %v3690_v45, %v3698_v6  ;;  %v3590_v45 = vld [vmem:[#allocation9 + $0xf38] sm:$0xff] }
 0x6c1   :  { %v12834_v60 = vpack.c.bf16 %v3590_v45, %v3586_v32  ;;  %v3602_v6 = vld [vmem:[#allocation9 + $0xf98] sm:$0xff]  ;;  %v3653_v32 = vld [vmem:[#allocation9 + $0x1130] sm:$0xff] }
 0x6c2   :  { %12781 = vmatpush1.bf16.msra.mxu1 %v12780_v10  ;;  %v12810_v10 = vpack.c.bf16 %v3542_v7, %v3538_v50  ;;  %v3606_v50 = vld [vmem:[#allocation9 + $0xfb8] sm:$0xff]  ;;  %v12840_v7 = vpack.c.bf16 %v3597_v4, %v3593_v3  ;;  %v3665_v4 = vld [vmem:[#allocation9 + $0x1190] sm:$0xff] }
 0x6c3   :  { %12783 = vmatprep.subr.bf16.mxu1 %v12782_v46  ;;  %v3537_v46 = vld [vmem:[#allocation9 + $0xd90] sm:$0xff]  ;;  %v3658_v45 = vld [vmem:[#allocation9 + $0x1158] sm:$0xff] }
 0x6c4   :  { %v12812_v48 = vpack.c.bf16 %v3541_v63, %v3537_v46  ;;  %v3614_v46 = vld [vmem:[#allocation9 + $0xff8] sm:$0xff] }
 0x6c6   :  { %12785 = vmatpush1.bf16.msra.mxu1 %v12784_v0  ;;  %v16085_v0 = vsel %vm3688_vm15, %v3695_v8, %v3696_v34  ;;  %v3601_v8 = vld [vmem:[#allocation9 + $0xf90] sm:$0xff] }
 0x6c7   :  { %12787 = vmatprep.subr.bf16.mxu1 %v12786_v14  ;;  %v3702_v14 = vrot.slane %v3533_v11, 3 }
 0x6ca   :  { %12789 = vmatpush1.bf16.msra.mxu1 %v12788_v18  ;;  %v3558_v18 = vld [vmem:[#allocation9 + $0xe38] sm:$0xff] }
 0x6cb   :  { %12791 = vmatprep.subr.bf16.mxu1 %v12790_v19  ;;  %v16091_v19 = vsel %vm3688_vm15, %v3696_v34, %v3702_v14  ;;  %v12818_v20 = vpack.c.bf16 %v3558_v18, %v3554_v49  ;;  %v3605_v34 = vld [vmem:[#allocation9 + $0xfb0] sm:$0xff]  ;;  %v3622_v14 = vld [vmem:[#allocation9 + $0x1038] sm:$0xff] }
 0x6cc   :  { %v12844_v63 = vpack.c.bf16 %v3605_v34, %v3601_v8  ;;  %v3621_v49 = vld [vmem:[#allocation9 + $0x1030] sm:$0xff]  ;;  %v3626_v18 = vld [vmem:[#allocation9 + $0x1058] sm:$0xff] }
 0x6cd   :  { %v3673_v34 = vld [vmem:[#allocation9 + $0x11d0] sm:$0xff] }
 0x6ce   :  { %12793 = vmatpush1.bf16.msra.mxu1 %v12792_v30  ;;  %v3562_v30 = vld [vmem:[#allocation9 + $0xe58] sm:$0xff] }
 0x6cf   :  { %12795 = vmatprep.subr.bf16.mxu1 %v12794_v31  ;;  %v3566_v31 = vld [vmem:[#allocation9 + $0xe78] sm:$0xff] }
 0x6d0   :  { %v12822_v35 = vpack.c.bf16 %v3566_v31, %v3562_v30  ;;  %v3629_v30 = vld [vmem:[#allocation9 + $0x1070] sm:$0xff]  ;;  %v3634_v31 = vld [vmem:[#allocation9 + $0x1098] sm:$0xff] }
 0x6d2   :  { %12797 = vmatpush1.bf16.msra.mxu1 %v12796_v40  ;;  %v3570_v40 = vld [vmem:[#allocation9 + $0xe98] sm:$0xff] }
 0x6d3   :  { %12799 = vmatprep.subr.bf16.mxu1 %v12798_v42  ;;  %v3574_v42 = vld [vmem:[#allocation9 + $0xeb8] sm:$0xff] }
 0x6d4   :  { %v12826_v44 = vpack.c.bf16 %v3574_v42, %v3570_v40  ;;  %v3637_v40 = vld [vmem:[#allocation9 + $0x10b0] sm:$0xff]  ;;  %v3642_v42 = vld [vmem:[#allocation9 + $0x10d8] sm:$0xff] }
 0x6d6   :  { %12801 = vmatpush1.bf16.msra.mxu1 %v12800_v53  ;;  %v3578_v53 = vld [vmem:[#allocation9 + $0xed8] sm:$0xff] }
 0x6d7   :  { %12803 = vmatprep.subr.bf16.mxu1 %v12802_v56  ;;  %v12830_v56 = vpack.c.bf16 %v3582_v36, %v3578_v53  ;;  %v3645_v53 = vld [vmem:[#allocation9 + $0x10f0] sm:$0xff]  ;;  %v3650_v36 = vld [vmem:[#allocation9 + $0x1118] sm:$0xff] }
 0x6d9   :  { %3777 = vmatmul.mubr.f32.vlgmr.msra.gmra.mrb[20].mxu1 %v16067_v5 }
 0x6da   :  { %3782 = vmatprep.mubr.f32.mxu1 %v16073_v21  ;;  %12805 = vmatpush1.bf16.msra.mxu1 %v12804_v51  ;;  %v3598_v51 = vld [vmem:[#allocation9 + $0xf78] sm:$0xff] }
 0x6db   :  { %12807 = vmatprep.subr.bf16.mxu1 %v12806_v2  ;;  %v12836_v2 = vpack.c.bf16 %v3589_v62, %v3585_v61  ;;  %v12838_v9 = vpack.c.bf16 %v3598_v51, %v3594_v1  ;;  %v3657_v62 = vld [vmem:[#allocation9 + $0x1150] sm:$0xff]  ;;  %v3666_v51 = vld [vmem:[#allocation9 + $0x1198] sm:$0xff] }
 0x6dc   :  { %v3661_v1 = vld [vmem:[#allocation9 + $0x1170] sm:$0xff] }
 0x6dd   :  { %3783 = vmatmul.mubr.f32.gmra.mrb[22].mxu1 %v16078_v12 }
 0x6de   :  { %12809 = vmatpush1.bf16.msra.mxu1 %v12808_v58  ;;  %3853 = vmatprep.mubr.f32.mxu1 %v16081_v41  ;;  %v12842_v58 = vpack.c.bf16 %v3606_v50, %v3602_v6  ;;  %v3669_v6 = vld [vmem:[#allocation9 + $0x11b0] sm:$0xff]  ;;  %v3674_v50 = vld [vmem:[#allocation9 + $0x11d8] sm:$0xff] }
 0x6df   :  { %12811 = vmatprep.subr.bf16.mxu1 %v12810_v10  ;;  %v3610_v10 = vld [vmem:[#allocation9 + $0xfd8] sm:$0xff] }
 0x6e0   :  { %v12846_v11 = vpack.c.bf16 %v3614_v46, %v3610_v10  ;;  %v3677_v10 = vld [vmem:[#allocation9 + $0x11f0] sm:$0xff]  ;;  %v4036_v46 = vld [vmem:[#allocation9 + $0x1208] sm:$0xff] }
 0x6e1   :  { %11612 = vmatmul.mubr.msk.f32.vlgmr.msra.gmra.mrb[20].mxu1 %vm184_vm0, %v16085_v0 }
 0x6e2   :  { %12813 = vmatpush1.bf16.msra.mxu1 %v12812_v48  ;;  %3859 = vmatprep.mubr.f32.mxu1 %v16081_v41  ;;  %v3618_v48 = vld [vmem:[#allocation9 + $0x1018] sm:$0xff] }
 0x6e3   :  { %12815 = vmatprep.subr.bf16.mxu1 %v12814_v15  ;;  %v12848_v15 = vpack.c.bf16 %v3613_v54, %v3609_v13  ;;  %v12850_v16 = vpack.c.bf16 %v3622_v14, %v3618_v48  ;;  %v4035_v54 = vld [vmem:[#allocation9 + $0x1200] sm:$0xff]  ;;  %v4044_v14 = vld [vmem:[#allocation9 + $0x1248] sm:$0xff] }
 0x6e4   :  { %v4039_v48 = vld [vmem:[#allocation9 + $0x1220] sm:$0xff] }
 0x6e5   :  { %11613 = vmatmul.mubr.msk.f32.gmra.mrb[22].mxu1 %vm184_vm0, %v16091_v19 }
 0x6e6   :  { %12817 = vmatpush1.bf16.msra.mxu1 %v12816_v39  ;;  %3930 = vmatprep.mubr.f32.mxu1 %v16062_v23  ;;  %v3577_v23 = vld [vmem:[#allocation9 + $0xed0] sm:$0xff]  ;;  %v3630_v39 = vld [vmem:[#allocation9 + $0x1078] sm:$0xff] }
 0x6e7   :  { %12819 = vmatprep.subr.bf16.mxu1 %v12818_v20  ;;  %v12832_v59 = vpack.c.bf16 %v3581_v57, %v3577_v23  ;;  %v12852_v20 = vpack.c.bf16 %v3621_v49, %v3617_v17  ;;  %v12854_v22 = vpack.c.bf16 %v3630_v39, %v3626_v18  ;;  %v3649_v57 = vld [vmem:[#allocation9 + $0x1110] sm:$0xff]  ;;  %v4043_v49 = vld [vmem:[#allocation9 + $0x1240] sm:$0xff]  ;;  %v4029_v18 = vld [vmem:[#allocation3 + $0x8] sm:$0xf0] }
 0x6e8   :  { %v4056_v39 = vld [vmem:[#allocation9 + $0x12a8] sm:$0xff] }
 0x6ea   :  { %12821 = vmatpush1.bf16.msra.mxu1 %v12820_v33  ;;  %v3638_v33 = vld [vmem:[#allocation9 + $0x10b8] sm:$0xff] }
 0x6eb   :  { %12823 = vmatprep.subr.bf16.mxu1 %v12822_v35  ;;  %v12856_v35 = vpack.c.bf16 %v3629_v30, %v3625_v24  ;;  %v12858_v37 = vpack.c.bf16 %v3638_v33, %v3634_v31  ;;  %v4188_v24 = vrot.slane %v4029_v18, 4  ;;  %v4051_v31 = vld [vmem:[#allocation9 + $0x1280] sm:$0xff] }
 0x6ec   :  { %v4055_v33 = vld [vmem:[#allocation9 + $0x12a0] sm:$0xff] }
 0x6ed   :  { %v4119_v18 = vld [vmem:[#allocation9 + $0x14a0] sm:$0xff] }
 0x6ee   :  { %12825 = vmatpush1.bf16.msra.mxu1 %v12824_v43  ;;  %v3646_v43 = vld [vmem:[#allocation9 + $0x10f8] sm:$0xff] }
 0x6ef   :  { %12827 = vmatprep.subr.bf16.mxu1 %v12826_v44  ;;  %v12860_v44 = vpack.c.bf16 %v3637_v40, %v3633_v38  ;;  %v12862_v47 = vpack.c.bf16 %v3646_v43, %v3642_v42  ;;  %v12892_v38 = vpack.c.bf16 %v4055_v33, %v4051_v31  ;;  %v4059_v42 = vld [vmem:[#allocation9 + $0x12c0] sm:$0xff]  ;;  %v4132_v33 = vld [vmem:[#allocation9 + $0x1508] sm:$0xff] }
 0x6f0   :  { %v4063_v43 = vld [vmem:[#allocation9 + $0x12e0] sm:$0xff] }
 0x6f1   :  { %v4127_v31 = vld [vmem:[#allocation9 + $0x14e0] sm:$0xff] }
 0x6f2   :  { %12829 = vmatpush1.bf16.msra.mxu1 %v12828_v55  ;;  %v3654_v55 = vld [vmem:[#allocation9 + $0x1138] sm:$0xff] }
 0x6f3   :  { %12831 = vmatprep.subr.bf16.mxu1 %v12830_v56  ;;  %v12864_v56 = vpack.c.bf16 %v3645_v53, %v3641_v52  ;;  %v12866_v23 = vpack.c.bf16 %v3654_v55, %v3650_v36  ;;  %v12896_v52 = vpack.c.bf16 %v4063_v43, %v4059_v42  ;;  %v4071_v36 = vld [vmem:[#allocation9 + $0x1320] sm:$0xff]  ;;  %v4076_v55 = vld [vmem:[#allocation9 + $0x1348] sm:$0xff] }
 0x6f4   :  { %v4135_v42 = vld [vmem:[#allocation9 + $0x1520] sm:$0xff]  ;;  %v4140_v43 = vld [vmem:[#allocation9 + $0x1548] sm:$0xff] }
 0x6f6   :  { %12833 = vmatpush1.bf16.msra.mxu1 %v12832_v59  ;;  %v3662_v59 = vld [vmem:[#allocation9 + $0x1178] sm:$0xff] }
 0x6f7   :  { %12835 = vmatprep.subr.bf16.mxu1 %v12834_v60  ;;  %v12868_v60 = vpack.c.bf16 %v3653_v32, %v3649_v57  ;;  %v12870_v61 = vpack.c.bf16 %v3662_v59, %v3658_v45  ;;  %v4075_v32 = vld [vmem:[#allocation9 + $0x1340] sm:$0xff]  ;;  %v4084_v59 = vld [vmem:[#allocation9 + $0x1388] sm:$0xff] }
 0x6f8   :  { %v4079_v45 = vld [vmem:[#allocation9 + $0x1360] sm:$0xff] }
 0x6fa   :  { %12837 = vmatpush1.bf16.msra.mxu1 %v12836_v2  ;;  %v3670_v2 = vld [vmem:[#allocation9 + $0x11b8] sm:$0xff] }
 0x6fb   :  { %12839 = vmatprep.subr.bf16.mxu1 %v12838_v9  ;;  %v12872_v9 = vpack.c.bf16 %v3661_v1, %v3657_v62  ;;  %v12874_v3 = vpack.c.bf16 %v3670_v2, %v3666_v51  ;;  %v4083_v1 = vld [vmem:[#allocation9 + $0x1380] sm:$0xff]  ;;  %v4092_v2 = vld [vmem:[#allocation9 + $0x13c8] sm:$0xff] }
 0x6fc   :  { %v4087_v51 = vld [vmem:[#allocation9 + $0x13a0] sm:$0xff] }
 0x6fe   :  { %12841 = vmatpush1.bf16.msra.mxu1 %v12840_v7  ;;  %v3678_v7 = vld [vmem:[#allocation9 + $0x11f8] sm:$0xff] }
 0x6ff   :  { %12843 = vmatprep.subr.bf16.mxu1 %v12842_v58  ;;  %v12876_v58 = vpack.c.bf16 %v3669_v6, %v3665_v4  ;;  %v12878_v8 = vpack.c.bf16 %v3678_v7, %v3674_v50  ;;  %v4091_v6 = vld [vmem:[#allocation9 + $0x13c0] sm:$0xff]  ;;  %v4100_v7 = vld [vmem:[#allocation9 + $0x1408] sm:$0xff] }
 0x700   :  { %v4095_v50 = vld [vmem:[#allocation9 + $0x13e0] sm:$0xff] }
 0x702   :  { %12845 = vmatpush1.bf16.msra.mxu1 %v12844_v63  ;;  %v4040_v63 = vld [vmem:[#allocation9 + $0x1228] sm:$0xff] }
 0x703   :  { %12847 = vmatprep.subr.bf16.mxu1 %v12846_v11  ;;  %v12880_v11 = vpack.c.bf16 %v3677_v10, %v3673_v34  ;;  %v12882_v13 = vpack.c.bf16 %v4040_v63, %v4036_v46  ;;  %v4099_v10 = vld [vmem:[#allocation9 + $0x1400] sm:$0xff]  ;;  %v4108_v63 = vld [vmem:[#allocation9 + $0x1448] sm:$0xff] }
 0x704   :  { %v4103_v46 = vld [vmem:[#allocation9 + $0x1420] sm:$0xff] }
 0x706   :  { %12849 = vmatpush1.bf16.msra.mxu1 %v12848_v15  ;;  %v4048_v15 = vld [vmem:[#allocation9 + $0x1268] sm:$0xff] }
 0x707   :  { %12851 = vmatprep.subr.bf16.mxu1 %v12850_v16  ;;  %v12884_v16 = vpack.c.bf16 %v4039_v48, %v4035_v54  ;;  %v12886_v17 = vpack.c.bf16 %v4048_v15, %v4044_v14  ;;  %v4107_v48 = vld [vmem:[#allocation9 + $0x1440] sm:$0xff]  ;;  %v4116_v15 = vld [vmem:[#allocation9 + $0x1488] sm:$0xff] }
 0x708   :  { %v4111_v14 = vld [vmem:[#allocation9 + $0x1460] sm:$0xff] }
 0x70a   :  { %12853 = vmatpush1.bf16.msra.mxu1 %v12852_v20  ;;  %v16102_v20 = vld [vmem:[#allocation3 + $0x20] sm:$0xff] }
 0x70b   :  { %12855 = vmatprep.subr.bf16.mxu1 %v12854_v22  ;;  %v4189_v22 = vrot.slane %v16102_v20, 4  ;;  %v4050_v20 = vld [vmem:[#allocation9 + $0x1278] sm:$0xff] }
 0x70e   :  { %12857 = vmatpush1.bf16.msra.mxu1 %v12856_v35  ;;  %v4060_v35 = vld [vmem:[#allocation9 + $0x12c8] sm:$0xff] }
 0x70f   :  { %12859 = vmatprep.subr.bf16.mxu1 %v12858_v37  ;;  %v4064_v37 = vld [vmem:[#allocation9 + $0x12e8] sm:$0xff] }
 0x710   :  { %v12894_v40 = vpack.c.bf16 %v4064_v37, %v4060_v35  ;;  %v4136_v35 = vld [vmem:[#allocation9 + $0x1528] sm:$0xff] }
 0x712   :  { %12861 = vmatpush1.bf16.msra.mxu1 %v12860_v44  ;;  %v4068_v44 = vld [vmem:[#allocation9 + $0x1308] sm:$0xff] }
 0x713   :  { %12863 = vmatprep.subr.bf16.mxu1 %v12862_v47  ;;  %v4072_v47 = vld [vmem:[#allocation9 + $0x1328] sm:$0xff] }
 0x714   :  { %v12898_v53 = vpack.c.bf16 %v4072_v47, %v4068_v44  ;;  %v4144_v44 = vld [vmem:[#allocation9 + $0x1568] sm:$0xff] }
 0x716   :  { %12865 = vmatpush1.bf16.msra.mxu1 %v12864_v56  ;;  %v4080_v56 = vld [vmem:[#allocation9 + $0x1368] sm:$0xff] }
 0x717   :  { %12867 = vmatprep.subr.bf16.mxu1 %v12866_v23  ;;  %v12902_v57 = vpack.c.bf16 %v4080_v56, %v4076_v55  ;;  %v4152_v55 = vld [vmem:[#allocation9 + $0x15a8] sm:$0xff] }
 0x71a   :  { %12869 = vmatpush1.bf16.msra.mxu1 %v12868_v60  ;;  %v4088_v60 = vld [vmem:[#allocation9 + $0x13a8] sm:$0xff] }
 0x71b   :  { %12871 = vmatprep.subr.bf16.mxu1 %v12870_v61  ;;  %v12904_v61 = vpack.c.bf16 %v4079_v45, %v4075_v32  ;;  %v12906_v62 = vpack.c.bf16 %v4088_v60, %v4084_v59  ;;  %v4151_v32 = vld [vmem:[#allocation9 + $0x15a0] sm:$0xff]  ;;  %v4156_v45 = vld [vmem:[#allocation9 + $0x15c8] sm:$0xff] }
 0x71c   :  { %v4160_v59 = vld [vmem:[#allocation9 + $0x15e8] sm:$0xff] }
 0x71e   :  { %12873 = vmatpush1.bf16.msra.mxu1 %v12872_v9  ;;  %v4096_v9 = vld [vmem:[#allocation9 + $0x13e8] sm:$0xff] }
 0x71f   :  { %12875 = vmatprep.subr.bf16.mxu1 %v12874_v3  ;;  %v12908_v3 = vpack.c.bf16 %v4087_v51, %v4083_v1  ;;  %v12910_v4 = vpack.c.bf16 %v4096_v9, %v4092_v2  ;;  %v4159_v1 = vld [vmem:[#allocation9 + $0x15e0] sm:$0xff]  ;;  %v4164_v51 = vld [vmem:[#allocation9 + $0x1608] sm:$0xff] }
 0x720   :  { %v4168_v2 = vld [vmem:[#allocation9 + $0x1628] sm:$0xff] }
 0x721   :  { %3931 = vmatmul.mubr.f32.vlgmr.msra.gmra.mrb[24].mxu1 %v16067_v5  ;;  %v4047_v5 = vld [vmem:[#allocation9 + $0x1260] sm:$0xff] }
 0x722   :  { %3936 = vmatprep.mubr.f32.mxu1 %v16073_v21  ;;  %12877 = vmatpush1.bf16.msra.mxu1 %v12876_v58  ;;  %v4052_v21 = vld [vmem:[#allocation9 + $0x1288] sm:$0xff] }
 0x723   :  { %12879 = vmatprep.subr.bf16.mxu1 %v12878_v8  ;;  %v12890_v30 = vpack.c.bf16 %v4056_v39, %v4052_v21  ;;  %v4104_v58 = vld [vmem:[#allocation9 + $0x1428] sm:$0xff]  ;;  %v12912_v8 = vpack.c.bf16 %v4095_v50, %v4091_v6  ;;  %v12946_v6 = vpack.c.bf16 %v4168_v2, %v4164_v51  ;;  %v4163_v50 = vld [vmem:[#allocation9 + $0x1600] sm:$0xff] }
 0x724   :  { %v12914_v34 = vpack.c.bf16 %v4104_v58, %v4100_v7  ;;  %v4124_v21 = vld [vmem:[#allocation9 + $0x14c8] sm:$0xff]  ;;  %v4167_v7 = vld [vmem:[#allocation9 + $0x1620] sm:$0xff] }
 0x725   :  { %3937 = vmatmul.mubr.f32.gmra.mrb[26].mxu1 %v16078_v12  ;;  %v12888_v12 = vpack.c.bf16 %v4047_v5, %v4043_v49  ;;  %v4115_v5 = vld [vmem:[#allocation9 + $0x1480] sm:$0xff]  ;;  %v4128_v39 = vld [vmem:[#allocation9 + $0x14e8] sm:$0xff] }
 0x726   :  { %12881 = vmatpush1.bf16.msra.mxu1 %v12880_v11  ;;  %4007 = vmatprep.mubr.f32.mxu1 %v16081_v41  ;;  %v4112_v11 = vld [vmem:[#allocation9 + $0x1468] sm:$0xff] }
 0x727   :  { %12883 = vmatprep.subr.bf16.mxu1 %v12882_v13  ;;  %v12916_v13 = vpack.c.bf16 %v4103_v46, %v4099_v10  ;;  %v12918_v54 = vpack.c.bf16 %v4112_v11, %v4108_v63  ;;  %v15191_v58 = vld [vmem:[#allocation3 + $0x18] sm:$0xff]  ;;  %v4031_v63 = vld [vmem:[#allocation3 + $0x30] sm:$0x3] }
 0x728   :  { %v4176_v10 = vld [vmem:[#allocation9 + $0x1668] sm:$0xff] }
 0x729   :  { %11614 = vmatmul.mubr.msk.f32.vlgmr.msra.gmra.mrb[24].mxu1 %vm184_vm0, %v16085_v0  ;;  %v16111_v0 = vsel %vm18104_vm3, %v4188_v24, %v4189_v22  ;;  %v12926_v24 = vpack.c.bf16 %v4128_v39, %v4124_v21 }
 0x72a   :  { %12885 = vmatpush1.bf16.msra.mxu1 %v12884_v16  ;;  %4013 = vmatprep.mubr.f32.mxu1 %v16081_v41  ;;  %v4120_v16 = vld [vmem:[#allocation9 + $0x14a8] sm:$0xff] }
 0x72b   :  { %12887 = vmatprep.subr.bf16.mxu1 %v12886_v17  ;;  %v12920_v17 = vpack.c.bf16 %v4111_v14, %v4107_v48  ;;  %v12922_v49 = vpack.c.bf16 %v4120_v16, %v4116_v15  ;;  %v4171_v48 = vld [vmem:[#allocation9 + $0x1640] sm:$0xff] }
 0x72c   :  { %v4175_v14 = vld [vmem:[#allocation9 + $0x1660] sm:$0xff] }
 0x72d   :  { %11615 = vmatmul.mubr.msk.f32.gmra.mrb[26].mxu1 %vm184_vm0, %v16091_v19  ;;  %v4067_v19 = vld [vmem:[#allocation9 + $0x1300] sm:$0xff]  ;;  %v12952_v21 = vpack.c.bf16 %v4175_v14, %v4171_v48 }
 0x72e   :  { %12889 = vmatpush1.bf16.msra.mxu1 %v12888_v12  ;;  %4272 = vmatprep.mubr.f32.mxu1 %v16111_v0  ;;  %v12900_v23 = vpack.c.bf16 %v4071_v36, %v4067_v19  ;;  %v12924_v12 = vpack.c.bf16 %v4119_v18, %v4115_v5  ;;  %v4143_v19 = vld [vmem:[#allocation9 + $0x1560] sm:$0xff]  ;;  %v4148_v36 = vld [vmem:[#allocation9 + $0x1588] sm:$0xff]  ;;  %v4042_v5 = vld [vmem:[#allocation9 + $0x1238] sm:$0xff] }
 0x72f   :  { %12891 = vmatprep.subr.bf16.mxu1 %v12890_v30  ;;  %v4123_v30 = vld [vmem:[#allocation9 + $0x14c0] sm:$0xff] }
 0x730   :  { %v12928_v37 = vpack.c.bf16 %v4127_v31, %v4123_v30  ;;  %v4030_v15 = vld [vmem:[#allocation3 + $0x10] sm:$0xf0]  ;;  %v4037_v31 = vld [vmem:[#allocation9 + $0x1210] sm:$0xff] }
 0x731   :  { %v4191_v39 = vrot.slane %v4030_v15, 4  ;;  %v4093_v15 = vld [vmem:[#allocation9 + $0x13d0] sm:$0xff] }
 0x732   :  { %12893 = vmatpush1.bf16.msra.mxu1 %v12892_v38  ;;  %v12930_v38 = vpack.c.bf16 %v4136_v35, %v4132_v33  ;;  %v4041_v33 = vld [vmem:[#allocation9 + $0x1230] sm:$0xff]  ;;  %v4033_v35 = vld [vmem:[#allocation3 + $0x40] sm:$0x3] }
 0x733   :  { %12895 = vmatprep.subr.bf16.mxu1 %v12894_v40  ;;  %v4131_v40 = vld [vmem:[#allocation9 + $0x1500] sm:$0xff] }
 0x734   :  { %v12932_v47 = vpack.c.bf16 %v4135_v42, %v4131_v40  ;;  %v12956_v40 = vpack.c.bf16 %v4041_v33, %v4037_v31  ;;  %v4198_v42 = vrot.slane %v4033_v35, 4  ;;  %v4114_v31 = vld [vmem:[#allocation9 + $0x1478] sm:$0xff] }
 0x736   :  { %12897 = vmatpush1.bf16.msra.mxu1 %v12896_v52  ;;  %v12934_v52 = vpack.c.bf16 %v4144_v44, %v4140_v43  ;;  %v4045_v44 = vld [vmem:[#allocation9 + $0x1250] sm:$0xff] }
 0x737   :  { %12899 = vmatprep.subr.bf16.mxu1 %v12898_v53  ;;  %v4139_v53 = vld [vmem:[#allocation9 + $0x1540] sm:$0xff] }
 0x738   :  { %v12936_v56 = vpack.c.bf16 %v4143_v19, %v4139_v53  ;;  %v4058_v53 = vld [vmem:[#allocation9 + $0x12b8] sm:$0xff] }
 0x73a   :  { %12901 = vmatpush1.bf16.msra.mxu1 %v12900_v23  ;;  %v12938_v23 = vpack.c.bf16 %v4152_v55, %v4148_v36 }
 0x73b   :  { %12903 = vmatprep.subr.bf16.mxu1 %v12902_v57  ;;  %v4147_v57 = vld [vmem:[#allocation9 + $0x1580] sm:$0xff] }
 0x73c   :  { %v12940_v60 = vpack.c.bf16 %v4151_v32, %v4147_v57  ;;  %v4062_v57 = vld [vmem:[#allocation9 + $0x12d8] sm:$0xff] }
 0x73d   :  { %v4066_v32 = vld [vmem:[#allocation9 + $0x12f8] sm:$0xff] }
 0x73e   :  { %12905 = vmatpush1.bf16.msra.mxu1 %v12904_v61  ;;  %v12942_v61 = vpack.c.bf16 %v4160_v59, %v4156_v45  ;;  %v12966_v59 = vpack.c.bf16 %v4066_v32, %v4062_v57  ;;  %v4129_v57 = vld [vmem:[#allocation9 + $0x14f0] sm:$0xff]  ;;  %v4134_v32 = vld [vmem:[#allocation9 + $0x1518] sm:$0xff] }
 0x73f   :  { %12907 = vmatprep.subr.bf16.mxu1 %v12906_v62  ;;  %v4155_v62 = vld [vmem:[#allocation9 + $0x15c0] sm:$0xff] }
 0x740   :  { %v12944_v9 = vpack.c.bf16 %v4159_v1, %v4155_v62  ;;  %v4070_v62 = vld [vmem:[#allocation9 + $0x1318] sm:$0xff] }
 0x741   :  { %v4074_v1 = vld [vmem:[#allocation9 + $0x1338] sm:$0xff] }
 0x742   :  { %12909 = vmatpush1.bf16.msra.mxu1 %v12908_v3  ;;  %v4032_v3 = vld [vmem:[#allocation3 + $0x38] sm:$0x3]  ;;  %v12970_v2 = vpack.c.bf16 %v4074_v1, %v4070_v62  ;;  %v4137_v62 = vld [vmem:[#allocation9 + $0x1530] sm:$0xff]  ;;  %v4142_v1 = vld [vmem:[#allocation9 + $0x1558] sm:$0xff] }
 0x743   :  { %12911 = vmatprep.subr.bf16.mxu1 %v12910_v4  ;;  %v4028_v4 = vld [vmem:[#allocation3] sm:$0xf0]  ;;  %v4196_v46 = vrot.slane %v4032_v3, 4 }
 0x744   :  { %v4185_v11 = vrot.slane %v4028_v4, 4  ;;  %v4073_v3 = vld [vmem:[#allocation9 + $0x1330] sm:$0xff]  ;;  %v4078_v4 = vld [vmem:[#allocation9 + $0x1358] sm:$0xff] }
 0x745   :  { %v16121_v18 = vsel %vm18104_vm3, %v4189_v22, %v4196_v46 }
 0x746   :  { %12913 = vmatpush1.bf16.msra.mxu1 %v12912_v8  ;;  %v4186_v8 = vrot.slane %v15191_v58, 4  ;;  %v4081_v58 = vld [vmem:[#allocation9 + $0x1370] sm:$0xff] }
 0x747   :  { %12915 = vmatprep.subr.bf16.mxu1 %v12914_v34  ;;  %v4172_v34 = vld [vmem:[#allocation9 + $0x1648] sm:$0xff] }
 0x748   :  { %v16115_v16 = vsel %vm18104_vm3, %v4185_v11, %v4186_v8  ;;  %v4089_v11 = vld [vmem:[#allocation9 + $0x13b0] sm:$0xff] }
 0x74a   :  { %12917 = vmatpush1.bf16.msra.mxu1 %v12916_v13  ;;  %v12948_v13 = vpack.c.bf16 %v4167_v7, %v4163_v50 }
 0x74b   :  { %12919 = vmatprep.subr.bf16.mxu1 %v12918_v54  ;;  %v12950_v54 = vpack.c.bf16 %v4176_v10, %v4172_v34  ;;  %v4090_v34 = vld [vmem:[#allocation9 + $0x13b8] sm:$0xff] }
 0x74e   :  { %12921 = vmatpush1.bf16.msra.mxu1 %v12920_v17  ;;  %v4194_v17 = vrot.slane %v4031_v63, 4  ;;  %v4085_v63 = vld [vmem:[#allocation9 + $0x1390] sm:$0xff] }
 0x74f   :  { %12923 = vmatprep.subr.bf16.mxu1 %v12922_v49  ;;  %v4038_v49 = vld [vmem:[#allocation9 + $0x1218] sm:$0xff]  ;;  %v12980_v48 = vpack.c.bf16 %v4089_v11, %v4085_v63  ;;  %v4157_v11 = vld [vmem:[#allocation9 + $0x15d0] sm:$0xff] }
 0x750   :  { %v12954_v30 = vpack.c.bf16 %v4042_v5, %v4038_v49  ;;  %v4102_v49 = vld [vmem:[#allocation9 + $0x1418] sm:$0xff] }
 0x751   :  { %v4106_v5 = vld [vmem:[#allocation9 + $0x1438] sm:$0xff] }
 0x752   :  { %12925 = vmatpush1.bf16.msra.mxu1 %v12924_v12  ;;  %v15192_v12 = vld [vmem:[#allocation3 + $0x28] sm:$0xff] }
 0x753   :  { %12927 = vmatprep.subr.bf16.mxu1 %v12926_v24  ;;  %v4192_v24 = vrot.slane %v15192_v12, 4  ;;  %v4101_v12 = vld [vmem:[#allocation9 + $0x1410] sm:$0xff] }
 0x755   :  { %v16130_v22 = vsel %vm18104_vm3, %v4191_v39, %v4192_v24  ;;  %v16136_v19 = vsel %vm18104_vm3, %v4192_v24, %v4198_v42  ;;  %v12986_v39 = vpack.c.bf16 %v4106_v5, %v4102_v49  ;;  %v4105_v24 = vld [vmem:[#allocation9 + $0x1430] sm:$0xff]  ;;  %v4122_v42 = vld [vmem:[#allocation9 + $0x14b8] sm:$0xff] }
 0x756   :  { %12929 = vmatpush1.bf16.msra.mxu1 %v12928_v37  ;;  %v16125_v37 = vsel %vm18104_vm3, %v4186_v8, %v4194_v17  ;;  %v4086_v8 = vld [vmem:[#allocation9 + $0x1398] sm:$0xff]  ;;  %v4097_v17 = vld [vmem:[#allocation9 + $0x13f0] sm:$0xff]  ;;  %v12988_v33 = vpack.c.bf16 %v4105_v24, %v4101_v12  ;;  %vm4563_vm3 = vcmask 113664  }
 0x757   :  { %12931 = vmatprep.subr.bf16.mxu1 %v12930_v38  ;;  %v4046_v38 = vld [vmem:[#allocation9 + $0x1258] sm:$0xff]  ;;  %v12978_v46 = vpack.c.bf16 %v4090_v34, %v4086_v8  ;;  %v4153_v8 = vld [vmem:[#allocation9 + $0x15b0] sm:$0xff] }
 0x758   :  { %v12958_v43 = vpack.c.bf16 %v4050_v20, %v4046_v38  ;;  %v4109_v38 = vld [vmem:[#allocation9 + $0x1450] sm:$0xff]  ;;  %v4158_v34 = vld [vmem:[#allocation9 + $0x15d8] sm:$0xff] }
 0x759   :  { %v4113_v20 = vld [vmem:[#allocation9 + $0x1470] sm:$0xff]  ;;  %v4174_v5 = vld [vmem:[#allocation9 + $0x1658] sm:$0xff] }
 0x75a   :  { %12933 = vmatpush1.bf16.msra.mxu1 %v12932_v47  ;;  %v4049_v47 = vld [vmem:[#allocation9 + $0x1270] sm:$0xff] }
 0x75b   :  { %12935 = vmatprep.subr.bf16.mxu1 %v12934_v52  ;;  %v4054_v52 = vld [vmem:[#allocation9 + $0x1298] sm:$0xff]  ;;  %v12960_v36 = vpack.c.bf16 %v4049_v47, %v4045_v44  ;;  %v4117_v47 = vld [vmem:[#allocation9 + $0x1490] sm:$0xff] }
 0x75c   :  { %v12962_v55 = vpack.c.bf16 %v4058_v53, %v4054_v52  ;;  %v4121_v52 = vld [vmem:[#allocation9 + $0x14b0] sm:$0xff]  ;;  %v4126_v53 = vld [vmem:[#allocation9 + $0x14d8] sm:$0xff] }
 0x75d   :  { %v4169_v49 = vld [vmem:[#allocation9 + $0x1630] sm:$0xff] }
 0x75e   :  { %12937 = vmatpush1.bf16.msra.mxu1 %v12936_v56  ;;  %v4053_v56 = vld [vmem:[#allocation9 + $0x1290] sm:$0xff] }
 0x75f   :  { %12939 = vmatprep.subr.bf16.mxu1 %v12938_v23  ;;  %v4057_v23 = vld [vmem:[#allocation9 + $0x12b0] sm:$0xff] }
 0x760   :  { %v12964_v45 = vpack.c.bf16 %v4057_v23, %v4053_v56  ;;  %v4125_v23 = vld [vmem:[#allocation9 + $0x14d0] sm:$0xff] }
 0x761   :  { %v4173_v24 = vld [vmem:[#allocation9 + $0x1650] sm:$0xff] }
 0x762   :  { %12941 = vmatpush1.bf16.msra.mxu1 %v12940_v60  ;;  %v4061_v60 = vld [vmem:[#allocation9 + $0x12d0] sm:$0xff] }
 0x763   :  { %12943 = vmatprep.subr.bf16.mxu1 %v12942_v61  ;;  %v4065_v61 = vld [vmem:[#allocation9 + $0x12f0] sm:$0xff] }
 0x764   :  { %v12968_v51 = vpack.c.bf16 %v4065_v61, %v4061_v60  ;;  %v4133_v61 = vld [vmem:[#allocation9 + $0x1510] sm:$0xff] }
 0x766   :  { %12945 = vmatpush1.bf16.msra.mxu1 %v12944_v9  ;;  %v4069_v9 = vld [vmem:[#allocation9 + $0x1310] sm:$0xff] }
 0x767   :  { %12947 = vmatprep.subr.bf16.mxu1 %v12946_v6  ;;  %v4082_v6 = vld [vmem:[#allocation9 + $0x1378] sm:$0xff]  ;;  %v12972_v50 = vpack.c.bf16 %v4073_v3, %v4069_v9  ;;  %v4141_v3 = vld [vmem:[#allocation9 + $0x1550] sm:$0xff] }
 0x768   :  { %v12974_v7 = vpack.c.bf16 %v4082_v6, %v4078_v4  ;;  %v4145_v4 = vld [vmem:[#allocation9 + $0x1570] sm:$0xff]  ;;  %v4150_v6 = vld [vmem:[#allocation9 + $0x1598] sm:$0xff] }
 0x769   :  { %4273 = vmatmul.mubr.f32.vlgmr.msra.gmra.mrb[20].mxu1 %v16115_v16 }
 0x76a   :  { %4278 = vmatprep.mubr.f32.mxu1 %v16121_v18  ;;  %12949 = vmatpush1.bf16.msra.mxu1 %v12948_v13  ;;  %v4094_v13 = vld [vmem:[#allocation9 + $0x13d8] sm:$0xff] }
 0x76b   :  { %12951 = vmatprep.subr.bf16.mxu1 %v12950_v54  ;;  %v4098_v54 = vld [vmem:[#allocation9 + $0x13f8] sm:$0xff] }
 0x76c   :  { %v12982_v14 = vpack.c.bf16 %v4098_v54, %v4094_v13  ;;  %v4161_v13 = vld [vmem:[#allocation9 + $0x15f0] sm:$0xff]  ;;  %v4166_v54 = vld [vmem:[#allocation9 + $0x1618] sm:$0xff] }
 0x76d   :  { %4279 = vmatmul.mubr.f32.gmra.mrb[22].mxu1 %v16125_v37 }
 0x76e   :  { %12953 = vmatpush1.bf16.msra.mxu1 %v12952_v21  ;;  %4349 = vmatprep.mubr.f32.mxu1 %v16081_v41  ;;  %v12984_v21 = vpack.c.bf16 %v4097_v17, %v4093_v15  ;;  %v4165_v17 = vld [vmem:[#allocation9 + $0x1610] sm:$0xff] }
 0x76f   :  { %12955 = vmatprep.subr.bf16.mxu1 %v12954_v30  ;;  %v4110_v30 = vld [vmem:[#allocation9 + $0x1458] sm:$0xff] }
 0x770   :  { %v12990_v35 = vpack.c.bf16 %v4114_v31, %v4110_v30  ;;  %v4177_v30 = vld [vmem:[#allocation9 + $0x1670] sm:$0xff] }
 0x771   :  { %11616 = vmatmul.mubr.msk.f32.vlgmr.msra.gmra.mrb[20].mxu1 %vm184_vm0, %v16130_v22  ;;  %v13024_v31 = vpack.c.bf16 %v4177_v30, %v4173_v24 }
 0x772   :  { %12957 = vmatpush1.bf16.msra.mxu1 %v12956_v40  ;;  %4355 = vmatprep.mubr.f32.mxu1 %v16081_v41  ;;  %v4118_v40 = vld [vmem:[#allocation9 + $0x1498] sm:$0xff] }
 0x773   :  { %12959 = vmatprep.subr.bf16.mxu1 %v12958_v43  ;;  %v12992_v43 = vpack.c.bf16 %v4113_v20, %v4109_v38  ;;  %v12994_v44 = vpack.c.bf16 %v4122_v42, %v4118_v40 }
 0x775   :  { %11617 = vmatmul.mubr.msk.f32.gmra.mrb[22].mxu1 %vm184_vm0, %v16136_v19 }
 0x776   :  { %12961 = vmatpush1.bf16.msra.mxu1 %v12960_v36  ;;  %4426 = vmatprep.mubr.f32.mxu1 %v16111_v0  ;;  %v4077_v0 = vld [vmem:[#allocation9 + $0x1350] sm:$0xff]  ;;  %v4130_v36 = vld [vmem:[#allocation9 + $0x14f8] sm:$0xff] }
 0x777   :  { %12963 = vmatprep.subr.bf16.mxu1 %v12962_v55  ;;  %v12976_v10 = vpack.c.bf16 %v4081_v58, %v4077_v0  ;;  %v12996_v55 = vpack.c.bf16 %v4121_v52, %v4117_v47  ;;  %v12998_v56 = vpack.c.bf16 %v4130_v36, %v4126_v53  ;;  %v4149_v58 = vld [vmem:[#allocation9 + $0x1590] sm:$0xff] }
 0x77a   :  { %12965 = vmatpush1.bf16.msra.mxu1 %v12964_v45  ;;  %v4138_v45 = vld [vmem:[#allocation9 + $0x1538] sm:$0xff] }
 0x77b   :  { %12967 = vmatprep.subr.bf16.mxu1 %v12966_v59  ;;  %v13000_v59 = vpack.c.bf16 %v4129_v57, %v4125_v23  ;;  %v13002_v60 = vpack.c.bf16 %v4138_v45, %v4134_v32 }
 0x77e   :  { %12969 = vmatpush1.bf16.msra.mxu1 %v12968_v51  ;;  %v4146_v51 = vld [vmem:[#allocation9 + $0x1578] sm:$0xff] }
 0x77f   :  { %12971 = vmatprep.subr.bf16.mxu1 %v12970_v2  ;;  %v13004_v2 = vpack.c.bf16 %v4137_v62, %v4133_v61  ;;  %v13006_v9 = vpack.c.bf16 %v4146_v51, %v4142_v1 }
 0x782   :  { %12973 = vmatpush1.bf16.msra.mxu1 %v12972_v50  ;;  %v4154_v50 = vld [vmem:[#allocation9 + $0x15b8] sm:$0xff] }
 0x783   :  { %12975 = vmatprep.subr.bf16.mxu1 %v12974_v7  ;;  %v13008_v7 = vpack.c.bf16 %v4145_v4, %v4141_v3  ;;  %v13010_v0 = vpack.c.bf16 %v4154_v50, %v4150_v6 }
 0x786   :  { %12977 = vmatpush1.bf16.msra.mxu1 %v12976_v10  ;;  %v4162_v10 = vld [vmem:[#allocation9 + $0x15f8] sm:$0xff] }
 0x787   :  { %12979 = vmatprep.subr.bf16.mxu1 %v12978_v46  ;;  %v13012_v46 = vpack.c.bf16 %v4153_v8, %v4149_v58  ;;  %v13014_v63 = vpack.c.bf16 %v4162_v10, %v4158_v34  ;;  %v4898_v58 = vld [vmem:[#allocation19 + $0x18] sm:$0xff]  ;;  %v4895_v8 = vld [vmem:[#allocation19] sm:$0xff]  ;;  %v4897_v10 = vld [vmem:[#allocation19 + $0x10] sm:$0xff] }
 0x78a   :  { %12981 = vmatpush1.bf16.msra.mxu1 %v12980_v48  ;;  %v4170_v48 = vld [vmem:[#allocation9 + $0x1638] sm:$0xff] }
 0x78b   :  { %12983 = vmatprep.subr.bf16.mxu1 %v12982_v14  ;;  %v13016_v14 = vpack.c.bf16 %v4161_v13, %v4157_v11  ;;  %v13018_v15 = vpack.c.bf16 %v4170_v48, %v4166_v54  ;;  %v13052_v11 = vpack.c.bf16 %v4897_v10, %v4895_v8  ;;  %v4899_v54 = vld [vmem:[#allocation19 + $0x20] sm:$0xff]  ;;  %v4901_v48 = vld [vmem:[#allocation19 + $0x30] sm:$0xff]  ;;  %v4938_v8 = vld [vmem:[#allocation19 + $0x158] sm:$0xff] }
 0x78e   :  { %12985 = vmatpush1.bf16.msra.mxu1 %v12984_v21  ;;  %v4178_v21 = vld [vmem:[#allocation9 + $0x1678] sm:$0xff] }
 0x78f   :  { %12987 = vmatprep.subr.bf16.mxu1 %v12986_v39  ;;  %v13020_v39 = vpack.c.bf16 %v4169_v49, %v4165_v17  ;;  %v13022_v12 = vpack.c.bf16 %v4178_v21, %v4174_v5  ;;  %v13056_v17 = vpack.c.bf16 %v4901_v48, %v4899_v54  ;;  %v4903_v5 = vld [vmem:[#allocation19 + $0x40] sm:$0xff]  ;;  %v4905_v21 = vld [vmem:[#allocation19 + $0x50] sm:$0xff] }
 0x790   :  { %v13060_v24 = vpack.c.bf16 %v4905_v21, %v4903_v5  ;;  %v4944_v5 = vld [vmem:[#allocation19 + $0x188] sm:$0xff]  ;;  %v4946_v21 = vld [vmem:[#allocation19 + $0x198] sm:$0xff] }
 0x792   :  { %12989 = vmatpush1.bf16.msra.mxu1 %v12988_v33 }
 0x793   :  { %12991 = vmatprep.subr.bf16.mxu1 %v12990_v35 }
 0x796   :  { %12993 = vmatpush1.bf16.msra.mxu1 %v12992_v43 }
 0x797   :  { %12995 = vmatprep.subr.bf16.mxu1 %v12994_v44 }
 0x79a   :  { %12997 = vmatpush1.bf16.msra.mxu1 %v12996_v55 }
 0x79b   :  { %12999 = vmatprep.subr.bf16.mxu1 %v12998_v56  ;;  %v4562_v56 = vld [vmem:[#allocation16] sm:$0x7f] }
 0x79e   :  { %13001 = vmatpush1.bf16.msra.mxu1 %v13000_v59 }
 0x79f   :  { %13003 = vmatprep.subr.bf16.mxu1 %v13002_v60 }
 0x7a2   :  { %13005 = vmatpush1.bf16.msra.mxu1 %v13004_v2 }
 0x7a3   :  { %13007 = vmatprep.subr.bf16.mxu1 %v13006_v9 }
 0x7a6   :  { %13009 = vmatpush1.bf16.msra.mxu1 %v13008_v7  ;;  %v4721_v7 = vld [vmem:[#allocation18] sm:$0x7f] }
 0x7a7   :  { %13011 = vmatprep.subr.bf16.mxu1 %v13010_v0  ;;  %v4896_v0 = vld [vmem:[#allocation19 + $0x8] sm:$0xff] }
 0x7a8   :  { %v13050_v34 = vpack.c.bf16 %v4898_v58, %v4896_v0  ;;  %v4933_v0 = vld [vmem:[#allocation19 + $0x130] sm:$0xff]  ;;  %v4936_v58 = vld [vmem:[#allocation19 + $0x148] sm:$0xff] }
 0x7a9   :  { %v13090_v10 = vpack.c.bf16 %v4938_v8, %v4936_v58  ;;  %v4964_v8 = vld [vmem:[#allocation19 + $0x228] sm:$0xff] }
 0x7aa   :  { %13013 = vmatpush1.bf16.msra.mxu1 %v13012_v46  ;;  %v4900_v46 = vld [vmem:[#allocation19 + $0x28] sm:$0xff] }
 0x7ab   :  { %13015 = vmatprep.subr.bf16.mxu1 %v13014_v63  ;;  %v4902_v63 = vld [vmem:[#allocation19 + $0x38] sm:$0xff] }
 0x7ac   :  { %v13054_v13 = vpack.c.bf16 %v4902_v63, %v4900_v46  ;;  %v4935_v46 = vld [vmem:[#allocation19 + $0x140] sm:$0xff]  ;;  %v4937_v63 = vld [vmem:[#allocation19 + $0x150] sm:$0xff] }
 0x7ae   :  { %13017 = vmatpush1.bf16.msra.mxu1 %v13016_v14  ;;  %v4904_v14 = vld [vmem:[#allocation19 + $0x48] sm:$0xff] }
 0x7af   :  { %13019 = vmatprep.subr.bf16.mxu1 %v13018_v15  ;;  %v4906_v15 = vld [vmem:[#allocation19 + $0x58] sm:$0xff] }
 0x7b0   :  { %v13058_v49 = vpack.c.bf16 %v4906_v15, %v4904_v14  ;;  %v13092_v14 = vpack.c.bf16 %v4937_v63, %v4935_v46 }
 0x7b1   :  { %4427 = vmatmul.mubr.f32.vlgmr.msra.gmra.mrb[24].mxu1 %v16115_v16  ;;  %v4524_v16 = vld [vmem:[#allocation10] sm:$0xf] }
 0x7b2   :  { %4432 = vmatprep.mubr.f32.mxu1 %v16121_v18  ;;  %13021 = vmatpush1.bf16.msra.mxu1 %v13020_v39  ;;  %v4529_v18 = vrot.slane %v4524_v16, %v15867_v25  ;;  %v4533_v35 = vrot.slane %v4524_v16, %v15871_v28  ;;  %v4537_v23 = vrot.slane %v4524_v16, %v15869_v26  ;;  %v4908_v39 = vld [vmem:[#allocation19 + $0x68] sm:$0xff] }
 0x7b3   :  { %13023 = vmatprep.subr.bf16.mxu1 %v13022_v12  ;;  %v4541_v32 = vrot.slane %v4524_v16, %v15873_v29  ;;  %v4910_v12 = vld [vmem:[#allocation19 + $0x78] sm:$0xff]  ;;  %v4909_v16 = vld [vmem:[#allocation19 + $0x70] sm:$0xff] }
 0x7b4   :  { %v13062_v30 = vpack.c.bf16 %v4910_v12, %v4908_v39  ;;  %v13098_v12 = vpack.c.bf16 %v4946_v21, %v4944_v5  ;;  %v4970_v5 = vld [vmem:[#allocation19 + $0x258] sm:$0xff] }
 0x7b5   :  { %4433 = vmatmul.mubr.f32.gmra.mrb[26].mxu1 %v16125_v37 }
 0x7b6   :  { %13025 = vmatpush1.bf16.msra.mxu1 %v13024_v31  ;;  %4503 = vmatprep.mubr.f32.mxu1 %v16081_v41  ;;  %v4907_v31 = vld [vmem:[#allocation19 + $0x60] sm:$0xff] }
 0x7b9   :  { %11618 = vmatmul.mubr.msk.f32.vlgmr.msra.gmra.mrb[24].mxu1 %vm184_vm0, %v16130_v22 }
 0x7ba   :  { %4509 = vmatprep.mubr.f32.mxu1 %v16081_v41 }
 0x7bd   :  { %11619 = vmatmul.mubr.msk.f32.gmra.mrb[26].mxu1 %vm184_vm0, %v16136_v19 }
 0x7be   :  { %7142 = vmatprep.mubr.f32.mxu1 %v16081_v41 }
 0x844   :  { %v4351_v33 = vpop.f32.mrb[20].mxu1 }
 0x845   :  { %v4353_v37 = vpop.f32.mrb[21].mxu1  ;;  %v4546_v38 = vadd.f32 %v4529_v18, %v4351_v33  ;;  %v4914_v33 = vld [vmem:[#allocation19 + $0x98] sm:$0xff] }
 0x846   :  { %v4547_v20 = vadd.f32 %v4533_v35, %v4353_v37 }
 0x847   :  { %v4554_v44 = vmax.f32 %v4546_v38, 0.0  ;;  %v4911_v38 = vld [vmem:[#allocation19 + $0x80] sm:$0xff] }
 0x848   :  { %v4357_v40 = vpop.f32.mrb[22].mxu1  ;;  %v4555_v52 = vmax.f32 %v4547_v20, 0.0  ;;  %v4913_v20 = vld [vmem:[#allocation19 + $0x90] sm:$0xff] }
 0x849   :  { %v4550_v42 = vadd.f32 %v4529_v18, %v4357_v40  ;;  %v4359_v43 = vpop.f32.mrb[23].mxu1  ;;  %v4912_v18 = vld [vmem:[#allocation19 + $0x88] sm:$0xff] }
 0x84a   :  { %v4551_v22 = vadd.f32 %v4533_v35, %v4359_v43  ;;  %v13064_v35 = vpack.c.bf16 %v4909_v16, %v4907_v31  ;;  %v13066_v37 = vpack.c.bf16 %v4914_v33, %v4912_v18  ;;  %v4916_v40 = vld [vmem:[#allocation19 + $0xa8] sm:$0xff]  ;;  %v13068_v43 = vpack.c.bf16 %v4913_v20, %v4911_v38  ;;  %v4950_v16 = vld [vmem:[#allocation19 + $0x1b8] sm:$0xff] }
 0x84b   :  { %v4558_v47 = vmax.f32 %v4550_v42, 0.0  ;;  %v4918_v42 = vld [vmem:[#allocation19 + $0xb8] sm:$0xff]  ;;  %v4948_v31 = vld [vmem:[#allocation19 + $0x1a8] sm:$0xff] }
 0x84c   :  { %v4559_v53 = vmax.f32 %v4551_v22, 0.0  ;;  %v13070_v22 = vpack.c.bf16 %v4918_v42, %v4916_v40  ;;  %v13102_v33 = vpack.c.bf16 %v4950_v16, %v4948_v31  ;;  %v4952_v38 = vld [vmem:[#allocation19 + $0x1c8] sm:$0xff]  ;;  %v4954_v40 = vld [vmem:[#allocation19 + $0x1d8] sm:$0xff]  ;;  %v4951_v42 = vld [vmem:[#allocation19 + $0x1c0] sm:$0xff] }
 0x84d   :  { %v13029_v36 = vpack.c.bf16 %v4558_v47, %v4554_v44  ;;  %v4915_v44 = vld [vmem:[#allocation19 + $0xa0] sm:$0xff]  ;;  %v4917_v47 = vld [vmem:[#allocation19 + $0xb0] sm:$0xff]  ;;  %v4974_v31 = vld [vmem:[#allocation19 + $0x278] sm:$0xff] }
 0x84e   :  { %v13026_v55 = vpack.c.bf16 %v4559_v53, %v4555_v52  ;;  %v4920_v52 = vld [vmem:[#allocation19 + $0xc8] sm:$0xff]  ;;  %v4922_v53 = vld [vmem:[#allocation19 + $0xd8] sm:$0xff] }
 0x850   :  { %13028 = vmatprep.subr.msk.bf16.mxu0 %vm16155_vm14, %v13026_v55 }
 0x851   :  { %13031 = vmatpush1.bf16.msk.msra.mxu0 %vm16155_vm14, %v13029_v36 }
 0x854   :  { %11622 = vmatmul.mubr.msk.f32.vlgmr.msra.gmra.mrb[20].mxu0 %vm4563_vm3, %v4562_v56 }
 0x855   :  { %4714 = vmatprep.mubr.f32.mxu0 %v16081_v41  ;;  %v15193_v41 = vld [vmem:[#allocation3 + $0x48] sm:$0xff] }
 0x88c   :  { %v4505_v57 = vpop.f32.mrb[24].mxu1 }
 0x88d   :  { %v4507_v45 = vpop.f32.mrb[25].mxu1  ;;  %v4548_v59 = vadd.f32 %v4537_v23, %v4505_v57  ;;  %v4924_v57 = vld [vmem:[#allocation19 + $0xe8] sm:$0xff] }
 0x88e   :  { %v4549_v60 = vadd.f32 %v4541_v32, %v4507_v45 }
 0x88f   :  { %v4556_v2 = vmax.f32 %v4548_v59, 0.0 }
 0x890   :  { %v4511_v61 = vpop.f32.mrb[26].mxu1  ;;  %v4557_v3 = vmax.f32 %v4549_v60, 0.0  ;;  %v4923_v60 = vld [vmem:[#allocation19 + $0xe0] sm:$0xff] }
 0x891   :  { %v4552_v62 = vadd.f32 %v4537_v23, %v4511_v61  ;;  %v4513_v1 = vpop.f32.mrb[27].mxu1  ;;  %v4921_v23 = vld [vmem:[#allocation19 + $0xd0] sm:$0xff] }
 0x892   :  { %v4553_v51 = vadd.f32 %v4541_v32, %v4513_v1  ;;  %v4926_v32 = vld [vmem:[#allocation19 + $0xf8] sm:$0xff]  ;;  %v4925_v61 = vld [vmem:[#allocation19 + $0xf0] sm:$0xff] }
 0x893   :  { %v4560_v9 = vmax.f32 %v4552_v62, 0.0  ;;  %v13078_v59 = vpack.c.bf16 %v4926_v32, %v4924_v57  ;;  %v4928_v62 = vld [vmem:[#allocation19 + $0x108] sm:$0xff]  ;;  %v4930_v1 = vld [vmem:[#allocation19 + $0x118] sm:$0xff] }
 0x894   :  { %v4561_v4 = vmax.f32 %v4553_v51, 0.0  ;;  %v13080_v51 = vpack.c.bf16 %v4925_v61, %v4923_v60  ;;  %v4960_v60 = vld [vmem:[#allocation19 + $0x208] sm:$0xff]  ;;  %v4962_v61 = vld [vmem:[#allocation19 + $0x218] sm:$0xff] }
 0x895   :  { %v13035_v6 = vpack.c.bf16 %v4560_v9, %v4556_v2  ;;  %v13082_v2 = vpack.c.bf16 %v4930_v1, %v4928_v62  ;;  %v4927_v9 = vld [vmem:[#allocation19 + $0x100] sm:$0xff]  ;;  %v13114_v1 = vpack.c.bf16 %v4962_v61, %v4960_v60  ;;  %v4990_v60 = vld [vmem:[#allocation19 + $0x2f8] sm:$0xff] }
 0x896   :  { %v13032_v50 = vpack.c.bf16 %v4561_v4, %v4557_v3  ;;  %v4929_v3 = vld [vmem:[#allocation19 + $0x110] sm:$0xff]  ;;  %v4932_v4 = vld [vmem:[#allocation19 + $0x128] sm:$0xff] }
 0x898   :  { %13034 = vmatprep.subr.msk.bf16.mxu0 %vm16155_vm14, %v13032_v50 }
 0x899   :  { %13037 = vmatpush1.bf16.msk.msra.mxu0 %vm16155_vm14, %v13035_v6 }
 0x89a   :  { %13040 = vmatprep.subr.msk.bf16.mxu0 %vm16155_vm14, %v13026_v55  ;;  %v13074_v55 = vpack.c.bf16 %v4922_v53, %v4920_v52  ;;  %v4956_v53 = vld [vmem:[#allocation19 + $0x1e8] sm:$0xff] }
 0x89c   :  { %11625 = vmatmul.mubr.msk.f32.vlgmr.msra.gmra.mrb[22].mxu0 %vm4563_vm3, %v4562_v56  ;;  %v4919_v56 = vld [vmem:[#allocation19 + $0xc0] sm:$0xff] }
 0x89d   :  { %13043 = vmatpush1.bf16.msk.msra.mxu0 %vm16155_vm14, %v13029_v36  ;;  %4789 = vmatprep.mubr.f32.mxu0 %v15193_v41  ;;  %v13072_v36 = vpack.c.bf16 %v4917_v47, %v4915_v44  ;;  %v13076_v45 = vpack.c.bf16 %v4921_v23, %v4919_v56  ;;  %v4955_v56 = vld [vmem:[#allocation19 + $0x1e0] sm:$0xff]  ;;  %v4957_v23 = vld [vmem:[#allocation19 + $0x1f0] sm:$0xff] }
 0x89e   :  { %13046 = vmatprep.subr.msk.bf16.mxu0 %vm16155_vm14, %v13032_v50  ;;  %v13084_v50 = vpack.c.bf16 %v4929_v3, %v4927_v9  ;;  %v13112_v32 = vpack.c.bf16 %v4957_v23, %v4955_v56  ;;  %v4986_v56 = vld [vmem:[#allocation19 + $0x2d8] sm:$0xff] }
 0x8a0   :  { %11628 = vmatmul.mubr.msk.f32.vlgmr.msra.gmra.mrb[24].mxu0 %vm4563_vm3, %v4721_v7 }
 0x8a1   :  { %13049 = vmatpush1.bf16.msk.msra.mxu0 %vm16155_vm14, %v13035_v6  ;;  %4860 = vmatprep.mubr.f32.mxu0 %v15193_v41  ;;  %v4934_v6 = vld [vmem:[#allocation19 + $0x138] sm:$0xff] }
 0x8a2   :  { %13051 = vmatprep.subr.bf16.mxu0 %v13050_v34  ;;  %v13086_v41 = vpack.c.bf16 %v4934_v6, %v4932_v4 }
 0x8a4   :  { %11631 = vmatmul.mubr.msk.f32.vlgmr.msra.gmra.mrb[26].mxu0 %vm4563_vm3, %v4721_v7  ;;  %v4931_v7 = vld [vmem:[#allocation19 + $0x120] sm:$0xff] }
 0x8a5   :  { %13053 = vmatpush1.bf16.msra.mxu0 %v13052_v11  ;;  %v13088_v34 = vpack.c.bf16 %v4933_v0, %v4931_v7  ;;  %v4940_v11 = vld [vmem:[#allocation19 + $0x168] sm:$0xff]  ;;  %v4959_v7 = vld [vmem:[#allocation19 + $0x200] sm:$0xff]  ;;  %v4961_v0 = vld [vmem:[#allocation19 + $0x210] sm:$0xff] }
 0x8a6   :  { %13055 = vmatprep.subr.bf16.mxu0 %v13054_v13  ;;  %v4942_v13 = vld [vmem:[#allocation19 + $0x178] sm:$0xff] }
 0x8a7   :  { %v13094_v15 = vpack.c.bf16 %v4942_v13, %v4940_v11 }
 0x8a9   :  { %13057 = vmatpush1.bf16.msra.mxu0 %v13056_v17  ;;  %v4939_v17 = vld [vmem:[#allocation19 + $0x160] sm:$0xff] }
 0x8aa   :  { %13059 = vmatprep.subr.bf16.mxu0 %v13058_v49  ;;  %v4941_v49 = vld [vmem:[#allocation19 + $0x170] sm:$0xff] }
 0x8ab   :  { %v13096_v39 = vpack.c.bf16 %v4941_v49, %v4939_v17  ;;  %v4965_v17 = vld [vmem:[#allocation19 + $0x230] sm:$0xff]  ;;  %v4968_v49 = vld [vmem:[#allocation19 + $0x248] sm:$0xff] }
 0x8ad   :  { %13061 = vmatpush1.bf16.msra.mxu0 %v13060_v24  ;;  %v4943_v24 = vld [vmem:[#allocation19 + $0x180] sm:$0xff] }
 0x8ae   :  { %13063 = vmatprep.subr.bf16.mxu0 %v13062_v30  ;;  %v4945_v30 = vld [vmem:[#allocation19 + $0x190] sm:$0xff] }
 0x8af   :  { %v13100_v18 = vpack.c.bf16 %v4945_v30, %v4943_v24  ;;  %v4969_v24 = vld [vmem:[#allocation19 + $0x250] sm:$0xff]  ;;  %v4972_v30 = vld [vmem:[#allocation19 + $0x268] sm:$0xff] }
 0x8b1   :  { %13065 = vmatpush1.bf16.msra.mxu0 %v13064_v35  ;;  %v4947_v35 = vld [vmem:[#allocation19 + $0x1a0] sm:$0xff] }
 0x8b2   :  { %13067 = vmatprep.subr.bf16.mxu0 %v13066_v37  ;;  %v4949_v37 = vld [vmem:[#allocation19 + $0x1b0] sm:$0xff] }
 0x8b3   :  { %v13104_v20 = vpack.c.bf16 %v4949_v37, %v4947_v35  ;;  %v4973_v35 = vld [vmem:[#allocation19 + $0x270] sm:$0xff]  ;;  %v4976_v37 = vld [vmem:[#allocation19 + $0x288] sm:$0xff] }
 0x8b5   :  { %13069 = vmatpush1.bf16.msra.mxu0 %v13068_v43  ;;  %v4953_v43 = vld [vmem:[#allocation19 + $0x1d0] sm:$0xff] }
 0x8b6   :  { %13071 = vmatprep.subr.bf16.mxu0 %v13070_v22  ;;  %v13106_v22 = vpack.c.bf16 %v4954_v40, %v4952_v38  ;;  %v13108_v44 = vpack.c.bf16 %v4953_v43, %v4951_v42  ;;  %v4978_v38 = vld [vmem:[#allocation19 + $0x298] sm:$0xff]  ;;  %v4975_v42 = vld [vmem:[#allocation19 + $0x280] sm:$0xff]  ;;  %v4977_v43 = vld [vmem:[#allocation19 + $0x290] sm:$0xff] }
 0x8b7   :  { %v13130_v40 = vpack.c.bf16 %v4978_v38, %v4976_v37  ;;  %v5157_v37 = vld [vmem:[%s18101_s11 + $0x60] sm:$0xff]  ;;  %v5158_v38 = vld [vmem:[%s18101_s11 + $0x68] sm:$0xff] }
 0x8b9   :  { %13073 = vmatpush1.bf16.msra.mxu0 %v13072_v36  ;;  %v4958_v36 = vld [vmem:[#allocation19 + $0x1f8] sm:$0xff] }
 0x8ba   :  { %13075 = vmatprep.subr.bf16.mxu0 %v13074_v55  ;;  %v13110_v55 = vpack.c.bf16 %v4958_v36, %v4956_v53  ;;  %v4979_v53 = vld [vmem:[#allocation19 + $0x2a0] sm:$0xff]  ;;  %v4981_v36 = vld [vmem:[#allocation19 + $0x2b0] sm:$0xff] }
 0x8bb   :  { %v13136_v23 = vpack.c.bf16 %v4981_v36, %v4979_v53  ;;  %v5164_v53 = vld [vmem:[%s18101_s11 + $0x98] sm:$0xff] }
 0x8bd   :  { %13077 = vmatpush1.bf16.msra.mxu0 %v13076_v45 }
 0x8be   :  { %13079 = vmatprep.subr.bf16.mxu0 %v13078_v59 }
 0x8c1   :  { %13081 = vmatpush1.bf16.msra.mxu0 %v13080_v51 }
 0x8c2   :  { %13083 = vmatprep.subr.bf16.mxu0 %v13082_v2 }
 0x8c5   :  { %13085 = vmatpush1.bf16.msra.mxu0 %v13084_v50 }
 0x8c6   :  { %13087 = vmatprep.subr.bf16.mxu0 %v13086_v41 }
 0x8c9   :  { %13089 = vmatpush1.bf16.msra.mxu0 %v13088_v34  ;;  %v4966_v34 = vld [vmem:[#allocation19 + $0x238] sm:$0xff] }
 0x8ca   :  { %13091 = vmatprep.subr.bf16.mxu0 %v13090_v10 }
 0x8cd   :  { %13093 = vmatpush1.bf16.msra.mxu0 %v13092_v14  ;;  %v13118_v14 = vpack.c.bf16 %v4966_v34, %v4964_v8  ;;  %v4998_v8 = vld [vmem:[#allocation19 + $0x338] sm:$0xff] }
 0x8ce   :  { %13095 = vmatprep.subr.bf16.mxu0 %v13094_v15  ;;  %v4963_v15 = vld [vmem:[#allocation19 + $0x220] sm:$0xff] }
 0x8cf   :  { %v13120_v21 = vpack.c.bf16 %v4965_v17, %v4963_v15 }
 0x8d1   :  { %13097 = vmatpush1.bf16.msra.mxu0 %v13096_v39  ;;  %v13122_v39 = vpack.c.bf16 %v4970_v5, %v4968_v49  ;;  %v15499_v49 = vmov 0.0|0.0   ;;  %v5147_v5 = vld [vmem:[%s18101_s11 + $0x10] sm:$0xff] }
 0x8d2   :  { %13099 = vmatprep.subr.bf16.mxu0 %v13098_v12  ;;  %v4967_v12 = vld [vmem:[#allocation19 + $0x240] sm:$0xff] }
 0x8d3   :  { %v13124_v16 = vpack.c.bf16 %v4969_v24, %v4967_v12  ;;  %v5152_v12 = vld [vmem:[%s18101_s11 + $0x38] sm:$0xff] }
 0x8d5   :  { %13101 = vmatpush1.bf16.msra.mxu0 %v13100_v18  ;;  %v13126_v18 = vpack.c.bf16 %v4974_v31, %v4972_v30  ;;  %v5153_v30 = vld [vmem:[%s18101_s11 + $0x40] sm:$0xff]  ;;  %v5154_v31 = vld [vmem:[%s18101_s11 + $0x48] sm:$0xff] }
 0x8d6   :  { %13103 = vmatprep.subr.bf16.mxu0 %v13102_v33  ;;  %v4971_v33 = vld [vmem:[#allocation19 + $0x260] sm:$0xff] }
 0x8d9   :  { %13105 = vmatpush1.bf16.msra.mxu0 %v13104_v20  ;;  %v13128_v20 = vpack.c.bf16 %v4973_v35, %v4971_v33  ;;  %v5156_v33 = vld [vmem:[%s18101_s11 + $0x58] sm:$0xff] }
 0x8da   :  { %13107 = vmatprep.subr.bf16.mxu0 %v13106_v22  ;;  %v4980_v22 = vld [vmem:[#allocation19 + $0x2a8] sm:$0xff] }
 0x8dd   :  { %13109 = vmatpush1.bf16.msra.mxu0 %v13108_v44  ;;  %v4982_v44 = vld [vmem:[#allocation19 + $0x2b8] sm:$0xff] }
 0x8de   :  { %13111 = vmatprep.subr.bf16.mxu0 %v13110_v55  ;;  %v4984_v55 = vld [vmem:[#allocation19 + $0x2c8] sm:$0xff] }
 0x8e1   :  { %13113 = vmatpush1.bf16.msra.mxu0 %v13112_v32  ;;  %v4983_v32 = vld [vmem:[#allocation19 + $0x2c0] sm:$0xff] }
 0x8e2   :  { %13115 = vmatprep.subr.bf16.mxu0 %v13114_v1  ;;  %v4987_v1 = vld [vmem:[#allocation19 + $0x2e0] sm:$0xff] }
 0x927   :  { %v4645_v54 = vpop.f32.mrb[20].mxu0 }
 0x928   :  { %v4647_v48 = vpop.f32.mrb[21].mxu0 }
 0x96f   :  { %v4716_v47 = vpop.f32.mrb[22].mxu0 }
 0x970   :  { %v4718_v52 = vpop.f32.mrb[23].mxu0 }
 0x973   :  { %v4791_v57 = vpop.f32.mrb[24].mxu0 }
 0x974   :  { %v4867_v45 = vmax.f32 %v4645_v54, %v4791_v57  ;;  %v4793_v59 = vpop.f32.mrb[25].mxu0  ;;  %v13116_v54 = vpack.c.bf16 %v4961_v0, %v4959_v7  ;;  %v13138_v57 = vpack.c.bf16 %v4986_v56, %v4984_v55  ;;  %v4991_v7 = vld [vmem:[#allocation19 + $0x300] sm:$0xff]  ;;  %v4993_v0 = vld [vmem:[#allocation19 + $0x310] sm:$0xff]  ;;  %v5165_v55 = vld [vmem:[%s18101_s11 + $0xa0] sm:$0xff] }
 0x975   :  { %v4868_v62 = vmax.f32 %v4647_v48, %v4793_v59  ;;  %v4988_v59 = vld [vmem:[#allocation19 + $0x2e8] sm:$0xff]  ;;  %v13148_v34 = vpack.c.bf16 %v4993_v0, %v4991_v7  ;;  %v5166_v56 = vld [vmem:[%s18101_s11 + $0xa8] sm:$0xff] }
 0x976   :  { %4875 = vrot.lane.b32.xlu0 %v4867_v45, %s15498_s3  ;;  %v11636_v0 = vld [vmem:[%s18101_s11 + $0xf0] sm:$0xff] }
 0x977   :  { %v4862_v51 = vpop.f32.mrb[26].mxu0 }
 0x978   :  { %v16183_v2 = vmax.f32 %v4716_v47, %v4862_v51  ;;  %v4864_v9 = vpop.f32.mrb[27].mxu0  ;;  %v13132_v47 = vpack.c.bf16 %v4977_v43, %v4975_v42  ;;  %v4989_v51 = vld [vmem:[#allocation19 + $0x2f0] sm:$0xff] }
 0x979   :  { %v4870_v3 = vmax.f32 %v4718_v52, %v4864_v9  ;;  %v13134_v52 = vpack.c.bf16 %v4982_v44, %v4980_v22  ;;  %v4992_v9 = vld [vmem:[#allocation19 + $0x308] sm:$0xff]  ;;  %v5160_v42 = vld [vmem:[%s18101_s11 + $0x78] sm:$0xff]  ;;  %v5161_v22 = vld [vmem:[%s18101_s11 + $0x80] sm:$0xff] }
 0x97a   :  { %v15167_v4 = vpack.i.bf16 %v16183_v2, %v4868_v62  ;;  %v5162_v44 = vld [vmem:[%s18101_s11 + $0x88] sm:$0xff] }
 0x97c   :  { %15168 = vrot.lane.b32.xlu1 %v15167_v4, %s15498_s3  ;;  %v13144_v4 = vpack.c.bf16 %v4989_v51, %v4987_v1  ;;  %v5172_v1 = vld [vmem:[%s18101_s11 + $0xd8] sm:$0xff] }
 0x980   :  { %4881 = vrot.lane.b32.xlu1 %v4870_v3, %s15498_s3 }
 0x9e8   :  { %v4876_v58 = vpop.permute.xlu0 %4875 }
 0x9ee   :  { %v16188_v6 = vpop.permute.xlu1 %15168 }
 0x9ef   :  { %v15171_v50 = vunpack.i.h.bf16 %v16188_v6  ;;  %v15170_v41 = vunpack.i.l.bf16 %v16188_v6 }
 0x9f1   :  { %v4884_v10 = vsel %vm4883_vm4, %v4876_v58, %v15170_v41  ;;  %v4885_v46 = vsel %vm4883_vm4, %v15170_v41, %v15171_v50  ;;  %v4996_v58 = vld [vmem:[#allocation19 + $0x328] sm:$0xff] }
 0x9f2   :  { %v4891_v63 = vmax.f32 %v4867_v45, %v4884_v10  ;;  %v16196_v11 = vpop.permute.xlu1 %4881  ;;  %v4892_v13 = vmax.f32 %v4868_v62, %v4885_v46  ;;  %v4985_v45 = vld [vmem:[#allocation19 + $0x2d0] sm:$0xff]  ;;  %v13142_v62 = vpack.c.bf16 %v4990_v60, %v4988_v59  ;;  %v13150_v10 = vpack.c.bf16 %v4998_v8, %v4996_v58  ;;  %v4995_v46 = vld [vmem:[#allocation19 + $0x320] sm:$0xff]  ;;  %v5169_v59 = vld [vmem:[%s18101_s11 + $0xc0] sm:$0xff] }
 0x9f3   :  { %v4894_v48 = vmax.f32 %v4870_v3, %v16196_v11  ;;  %v13140_v61 = vpack.c.bf16 %v4985_v45, %v4983_v32  ;;  %v4994_v3 = vld [vmem:[#allocation19 + $0x318] sm:$0xff]  ;;  %v5168_v32 = vld [vmem:[%s18101_s11 + $0xb8] sm:$0xff]  ;;  %v5170_v60 = vld [vmem:[%s18101_s11 + $0xc8] sm:$0xff] }
 0x9f4   :  { %5066 = vmatprep.mubr.f32.mxu0 %v4892_v13  ;;  %v13146_v41 = vpack.c.bf16 %v4994_v3, %v4992_v9  ;;  %v11634_v9 = vld [vmem:[%s18101_s11 + $0xe0] sm:$0xff]  ;;  %v11635_v3 = vld [vmem:[%s18101_s11 + $0xe8] sm:$0xff]  ;;  %v11637_v58 = vld [vmem:[%s18101_s11 + $0xf8] sm:$0xff] }
 0x9f5   :  { %5067 = vmatmul.mubr.f32.vlgmr.msra.gmra.mrb[28].mxu0 %v4891_v63  ;;  %v4997_v63 = vld [vmem:[#allocation19 + $0x330] sm:$0xff] }
 0x9f6   :  { %13117 = vmatpush1.bf16.msra.mxu0 %v13116_v54  ;;  %11632 = vmatprep.mubr.msk.f32.mxu0 %vm184_vm0, %v4894_v48  ;;  %v13152_v13 = vpack.c.bf16 %v4997_v63, %v4995_v46  ;;  %v5145_v54 = vld [vmem:[%s18101_s11] sm:$0xff]  ;;  %v5146_v48 = vld [vmem:[%s18101_s11 + $0x8] sm:$0xff] }
 0x9f7   :  { %13119 = vmatprep.subr.bf16.mxu0 %v13118_v14  ;;  %v4886_v14 = vsel %vm4883_vm4, %v15171_v50, %v16196_v11  ;;  %v13155_v15 = vpack.c.bf16 %v5146_v48, %v5145_v54  ;;  %v5150_v50 = vld [vmem:[%s18101_s11 + $0x28] sm:$0xff]  ;;  %v11641_v54 = vld [vmem:[%s18101_s11 + $0x118] sm:$0xff] }
 0x9f8   :  { %v4893_v17 = vmax.f32 %v16183_v2, %v4886_v14  ;;  %v5149_v2 = vld [vmem:[%s18101_s11 + $0x20] sm:$0xff]  ;;  %v11639_v46 = vld [vmem:[%s18101_s11 + $0x108] sm:$0xff] }
 0x9f9   :  { %v13161_v11 = vpack.c.bf16 %v5150_v50, %v5149_v2  ;;  %v11642_v14 = vld [vmem:[%s18101_s11 + $0x120] sm:$0xff]  ;;  %v11647_v50 = vld [vmem:[%s18101_s11 + $0x148] sm:$0xff] }
 0x9fa   :  { %13121 = vmatpush1.bf16.msra.mxu0 %v13120_v21  ;;  %v5148_v21 = vld [vmem:[%s18101_s11 + $0x18] sm:$0xff]  ;;  %v11646_v2 = vld [vmem:[%s18101_s11 + $0x140] sm:$0xff] }
 0x9fb   :  { %13123 = vmatprep.subr.bf16.mxu0 %v13122_v39  ;;  %v13158_v6 = vpack.c.bf16 %v5148_v21, %v5147_v5  ;;  %v5151_v39 = vld [vmem:[%s18101_s11 + $0x30] sm:$0xff]  ;;  %v11645_v21 = vld [vmem:[%s18101_s11 + $0x138] sm:$0xff] }
 0x9fc   :  { %v13164_v24 = vpack.c.bf16 %v5152_v12, %v5151_v39  ;;  %v11644_v5 = vld [vmem:[%s18101_s11 + $0x130] sm:$0xff]  ;;  %v11649_v12 = vld [vmem:[%s18101_s11 + $0x158] sm:$0xff] }
 0x9fd   :  { %v11648_v39 = vld [vmem:[%s18101_s11 + $0x150] sm:$0xff] }
 0x9fe   :  { %13125 = vmatpush1.bf16.msra.mxu0 %v13124_v16  ;;  %v13167_v16 = vpack.c.bf16 %v5154_v31, %v5153_v30  ;;  %v11650_v30 = vld [vmem:[%s18101_s11 + $0x160] sm:$0xff]  ;;  %v11651_v31 = vld [vmem:[%s18101_s11 + $0x168] sm:$0xff] }
 0x9ff   :  { %13127 = vmatprep.subr.bf16.mxu0 %v13126_v18  ;;  %v5155_v18 = vld [vmem:[%s18101_s11 + $0x50] sm:$0xff] }
 0xa00   :  { %v13170_v35 = vpack.c.bf16 %v5156_v33, %v5155_v18  ;;  %v11652_v18 = vld [vmem:[%s18101_s11 + $0x170] sm:$0xff]  ;;  %v11653_v33 = vld [vmem:[%s18101_s11 + $0x178] sm:$0xff] }
 0xa02   :  { %13129 = vmatpush1.bf16.msra.mxu0 %v13128_v20  ;;  %v13173_v20 = vpack.c.bf16 %v5158_v38, %v5157_v37  ;;  %v11654_v37 = vld [vmem:[%s18101_s11 + $0x180] sm:$0xff]  ;;  %v11655_v38 = vld [vmem:[%s18101_s11 + $0x188] sm:$0xff] }
 0xa03   :  { %13131 = vmatprep.subr.bf16.mxu0 %v13130_v40  ;;  %v5159_v40 = vld [vmem:[%s18101_s11 + $0x70] sm:$0xff] }
 0xa04   :  { %v13176_v43 = vpack.c.bf16 %v5160_v42, %v5159_v40  ;;  %v11656_v40 = vld [vmem:[%s18101_s11 + $0x190] sm:$0xff]  ;;  %v11657_v42 = vld [vmem:[%s18101_s11 + $0x198] sm:$0xff] }
 0xa06   :  { %13133 = vmatpush1.bf16.msra.mxu0 %v13132_v47  ;;  %v13179_v47 = vpack.c.bf16 %v5162_v44, %v5161_v22  ;;  %v11658_v22 = vld [vmem:[%s18101_s11 + $0x1a0] sm:$0xff]  ;;  %v11659_v44 = vld [vmem:[%s18101_s11 + $0x1a8] sm:$0xff] }
 0xa07   :  { %13135 = vmatprep.subr.bf16.mxu0 %v13134_v52  ;;  %v5163_v52 = vld [vmem:[%s18101_s11 + $0x90] sm:$0xff] }
 0xa08   :  { %v13182_v36 = vpack.c.bf16 %v5164_v53, %v5163_v52  ;;  %v11660_v52 = vld [vmem:[%s18101_s11 + $0x1b0] sm:$0xff]  ;;  %v11661_v53 = vld [vmem:[%s18101_s11 + $0x1b8] sm:$0xff] }
 0xa0a   :  { %13137 = vmatpush1.bf16.msra.mxu0 %v13136_v23  ;;  %v13185_v23 = vpack.c.bf16 %v5166_v56, %v5165_v55  ;;  %v11663_v55 = vld [vmem:[%s18101_s11 + $0x1c0] sm:$0xff]  ;;  %v11664_v56 = vld [vmem:[%s18101_s11 + $0x1c8] sm:$0xff] }
 0xa0b   :  { %13139 = vmatprep.subr.bf16.mxu0 %v13138_v57  ;;  %v5167_v57 = vld [vmem:[%s18101_s11 + $0xb0] sm:$0xff] }
 0xa0c   :  { %v13188_v45 = vpack.c.bf16 %v5168_v32, %v5167_v57  ;;  %v11665_v32 = vld [vmem:[%s18101_s11 + $0x1d0] sm:$0xff] }
 0xa0e   :  { %13141 = vmatpush1.bf16.msra.mxu0 %v13140_v61  ;;  %v13191_v61 = vpack.c.bf16 %v5170_v60, %v5169_v59 }
 0xa0f   :  { %13143 = vmatprep.subr.bf16.mxu0 %v13142_v62  ;;  %v5171_v62 = vld [vmem:[%s18101_s11 + $0xd0] sm:$0xff] }
 0xa10   :  { %v13194_v51 = vpack.c.bf16 %v5172_v1, %v5171_v62  ;;  %v11668_v62 = vld [vmem:[%s18101_s11 + $0x1e8] sm:$0xff] }
 0xa12   :  { %13145 = vmatpush1.bf16.msra.mxu0 %v13144_v4 }
 0xa13   :  { %13147 = vmatprep.subr.bf16.mxu0 %v13146_v41  ;;  %v13197_v41 = vpack.c.bf16 %v11635_v3, %v11634_v9  ;;  %v11670_v9 = vld [vmem:[%s18101_s11 + $0x1f8] sm:$0xff] }
 0xa16   :  { %13149 = vmatpush1.bf16.msra.mxu0 %v13148_v34  ;;  %v13200_v34 = vpack.c.bf16 %v11637_v58, %v11636_v0  ;;  %v11672_v0 = vld [vmem:[%s18101_s11 + $0x208] sm:$0xff] }
 0xa17   :  { %13151 = vmatprep.subr.bf16.mxu0 %v13150_v10  ;;  %v11638_v10 = vld [vmem:[%s18101_s11 + $0x100] sm:$0xff] }
 0xa18   :  { %v13203_v63 = vpack.c.bf16 %v11639_v46, %v11638_v10  ;;  %v11675_v46 = vld [vmem:[%s18101_s11 + $0x220] sm:$0xff] }
 0xa1a   :  { %13153 = vmatpush1.bf16.msra.mxu0 %v13152_v13  ;;  %v11640_v13 = vld [vmem:[%s18101_s11 + $0x110] sm:$0xff] }
 0xa1b   :  { %13154 = vmatprep.subr.bf16.mxu0 %v15499_v49  ;;  %v13206_v48 = vpack.c.bf16 %v11641_v54, %v11640_v13  ;;  %v11677_v54 = vld [vmem:[%s18101_s11 + $0x230] sm:$0xff] }
 0xa1d   :  { %5138 = vmatmul.mubr.f32.vlgmr.msra.gmra.mrb[28].mxu0 %v4893_v17 }
 0xa1e   :  { %13156 = vmatpush1.bf16.msra.mxu0 %v13155_v15  ;;  %v11643_v15 = vld [vmem:[%s18101_s11 + $0x128] sm:$0xff] }
 0xa1f   :  { %13157 = vmatprep.subr.bf16.mxu0 %v15499_v49  ;;  %v13209_v17 = vpack.c.bf16 %v11643_v15, %v11642_v14  ;;  %v11679_v15 = vld [vmem:[%s18101_s11 + $0x240] sm:$0xff] }
 0xa22   :  { %13159 = vmatpush1.bf16.msra.mxu0 %v13158_v6  ;;  %v13212_v6 = vpack.c.bf16 %v11645_v21, %v11644_v5  ;;  %v11681_v21 = vld [vmem:[%s18101_s11 + $0x250] sm:$0xff] }
 0xa23   :  { %13160 = vmatprep.subr.bf16.mxu0 %v15499_v49 }
 0xa26   :  { %13162 = vmatpush1.bf16.msra.mxu0 %v13161_v11  ;;  %v13215_v11 = vpack.c.bf16 %v11647_v50, %v11646_v2  ;;  %v11683_v50 = vld [vmem:[%s18101_s11 + $0x260] sm:$0xff] }
 0xa27   :  { %13163 = vmatprep.subr.bf16.mxu0 %v15499_v49 }
 0xa2a   :  { %13165 = vmatpush1.bf16.msra.mxu0 %v13164_v24  ;;  %v13218_v24 = vpack.c.bf16 %v11649_v12, %v11648_v39  ;;  %v11808_v39 = vld [vmem:[%s18090_s0 + $0x20] sm:$0xff] }
 0xa2b   :  { %13166 = vmatprep.subr.bf16.mxu0 %v15499_v49  ;;  %5889 = vrot.lane.b32.xlu0 %v11808_v39, %s15495_s8  ;;  %v11718_v39 = vld [vmem:[%s18101_s11 + $0x370] sm:$0xff] }
 0xa2e   :  { %13168 = vmatpush1.bf16.msra.mxu0 %v13167_v16  ;;  %v13221_v16 = vpack.c.bf16 %v11651_v31, %v11650_v30  ;;  %v11686_v30 = vld [vmem:[%s18101_s11 + $0x278] sm:$0xff]  ;;  %v11809_v31 = vld [vmem:[%s18090_s0 + $0x28] sm:$0xff] }
 0xa2f   :  { %13169 = vmatprep.subr.bf16.mxu0 %v15499_v49  ;;  %5891 = vrot.lane.b32.xlu1 %v11809_v31, %s15495_s8  ;;  %v11722_v31 = vld [vmem:[%s18101_s11 + $0x388] sm:$0xff] }
 0xa32   :  { %13171 = vmatpush1.bf16.msra.mxu0 %v13170_v35  ;;  %v13224_v35 = vpack.c.bf16 %v11653_v33, %v11652_v18  ;;  %v11687_v18 = vld [vmem:[%s18101_s11 + $0x280] sm:$0xff]  ;;  %v11688_v33 = vld [vmem:[%s18101_s11 + $0x288] sm:$0xff] }
 0xa33   :  { %13172 = vmatprep.subr.bf16.mxu0 %v15499_v49 }
 0xa36   :  { %13174 = vmatpush1.bf16.msra.mxu0 %v13173_v20  ;;  %v13227_v20 = vpack.c.bf16 %v11655_v38, %v11654_v37  ;;  %v13275_v37 = vpack.c.bf16 %v11688_v33, %v11687_v18  ;;  %v11689_v38 = vld [vmem:[%s18101_s11 + $0x290] sm:$0xff] }
 0xa37   :  { %13175 = vmatprep.subr.bf16.mxu0 %v15499_v49  ;;  %v11723_v33 = vld [vmem:[%s18101_s11 + $0x390] sm:$0xff] }
 0xa3a   :  { %13177 = vmatpush1.bf16.msra.mxu0 %v13176_v43  ;;  %v13230_v43 = vpack.c.bf16 %v11657_v42, %v11656_v40  ;;  %v11811_v40 = vld [vmem:[%s18090_s0 + $0x38] sm:$0xf] }
 0xa3b   :  { %13178 = vmatprep.subr.bf16.mxu0 %v15499_v49  ;;  %5895 = vrot.lane.b32.xlu1 %v11811_v40, %s15495_s8  ;;  %v11726_v40 = vld [vmem:[%s18101_s11 + $0x3a8] sm:$0xff] }
 0xa3e   :  { %13180 = vmatpush1.bf16.msra.mxu0 %v13179_v47  ;;  %v13233_v47 = vpack.c.bf16 %v11659_v44, %v11658_v22  ;;  %v11693_v22 = vld [vmem:[%s18101_s11 + $0x2a8] sm:$0xff] }
 0xa3f   :  { %13181 = vmatprep.subr.bf16.mxu0 %v15499_v49 }
 0xa42   :  { %13183 = vmatpush1.bf16.msra.mxu0 %v13182_v36  ;;  %v13236_v36 = vpack.c.bf16 %v11661_v53, %v11660_v52  ;;  %v11694_v52 = vld [vmem:[%s18101_s11 + $0x2b0] sm:$0xff]  ;;  %v11695_v53 = vld [vmem:[%s18101_s11 + $0x2b8] sm:$0xff] }
 0xa43   :  { %13184 = vmatprep.subr.bf16.mxu0 %v15499_v49 }
 0xa46   :  { %13186 = vmatpush1.bf16.msra.mxu0 %v13185_v23  ;;  %v13239_v23 = vpack.c.bf16 %v11664_v56, %v11663_v55  ;;  %v13284_v55 = vpack.c.bf16 %v11695_v53, %v11694_v52  ;;  %v11696_v56 = vld [vmem:[%s18101_s11 + $0x2c0] sm:$0xff]  ;;  %v11730_v52 = vld [vmem:[%s18101_s11 + $0x3c8] sm:$0xff] }
 0xa47   :  { %13187 = vmatprep.subr.bf16.mxu0 %v15499_v49 }
 0xa4a   :  { %13189 = vmatpush1.bf16.msra.mxu0 %v13188_v45  ;;  %v11666_v45 = vld [vmem:[%s18101_s11 + $0x1d8] sm:$0xff] }
 0xa4b   :  { %13190 = vmatprep.subr.bf16.mxu0 %v15499_v49  ;;  %v13242_v60 = vpack.c.bf16 %v11666_v45, %v11665_v32  ;;  %v11698_v32 = vld [vmem:[%s18101_s11 + $0x2d0] sm:$0xff]  ;;  %v11699_v45 = vld [vmem:[%s18101_s11 + $0x2d8] sm:$0xff] }
 0xa4e   :  { %13192 = vmatpush1.bf16.msra.mxu0 %v13191_v61  ;;  %v11667_v61 = vld [vmem:[%s18101_s11 + $0x1e0] sm:$0xff] }
 0xa4f   :  { %13193 = vmatprep.subr.bf16.mxu0 %v15499_v49  ;;  %v13245_v1 = vpack.c.bf16 %v11668_v62, %v11667_v61  ;;  %v11701_v61 = vld [vmem:[%s18101_s11 + $0x2e8] sm:$0xff] }
 0xa52   :  { %13195 = vmatpush1.bf16.msra.mxu0 %v13194_v51  ;;  %v11669_v51 = vld [vmem:[%s18101_s11 + $0x1f0] sm:$0xff] }
 0xa53   :  { %13196 = vmatprep.subr.bf16.mxu0 %v15499_v49  ;;  %v13248_v3 = vpack.c.bf16 %v11670_v9, %v11669_v51  ;;  %v11703_v51 = vld [vmem:[%s18101_s11 + $0x2f8] sm:$0xff] }
 0xaf0   :  { %v16310_v4 = vpop.f32.mrb[28].mxu0 }
 0xaf1   :  { %v16312_v7 = vpop.f32.mrb[29].mxu0  ;;  %v5277_v57 = vrot.slane %v16310_v4, 1  ;;  %v5487_v18 = vrot.slane %v16310_v4, 3 }
 0xaf2   :  { %11633 = vmatprep.mubr.msk.f32.mxu0 %vm4883_vm4, %v16312_v7  ;;  %v5278_v8 = vrot.slane %v16312_v7, 1  ;;  %v5383_v59 = vrot.slane %v16312_v7, 2 }
 0xaf3   :  { %5241 = vmatmul.mubr.f32.vlgmr.msra.gmra.mrb[30].mxu0 %v16310_v4 }
 0xaf4   :  { %13198 = vmatpush1.bf16.msra.mxu0 %v13197_v41  ;;  %11662 = vmatprep.mubr.msk.f32.mxu0 %vm4883_vm4, %v5278_v8  ;;  %v11671_v41 = vld [vmem:[%s18101_s11 + $0x200] sm:$0xff]  ;;  %v11673_v8 = vld [vmem:[%s18101_s11 + $0x210] sm:$0xff] }
 0xaf5   :  { %13199 = vmatprep.subr.bf16.mxu0 %v15499_v49  ;;  %v13251_v58 = vpack.c.bf16 %v11672_v0, %v11671_v41  ;;  %v11705_v41 = vld [vmem:[%s18101_s11 + $0x308] sm:$0xff] }
 0xaf8   :  { %13201 = vmatpush1.bf16.msra.mxu0 %v13200_v34  ;;  %v11674_v34 = vld [vmem:[%s18101_s11 + $0x218] sm:$0xff] }
 0xaf9   :  { %13202 = vmatprep.subr.bf16.mxu0 %v15499_v49  ;;  %v13254_v10 = vpack.c.bf16 %v11674_v34, %v11673_v8  ;;  %v11707_v8 = vld [vmem:[%s18101_s11 + $0x318] sm:$0xff] }
 0xafc   :  { %13204 = vmatpush1.bf16.msra.mxu0 %v13203_v63  ;;  %v11676_v63 = vld [vmem:[%s18101_s11 + $0x228] sm:$0xff] }
 0xafd   :  { %13205 = vmatprep.subr.bf16.mxu0 %v15499_v49  ;;  %v13257_v13 = vpack.c.bf16 %v11676_v63, %v11675_v46  ;;  %v11709_v46 = vld [vmem:[%s18101_s11 + $0x328] sm:$0xff] }
 0xb00   :  { %13207 = vmatpush1.bf16.msra.mxu0 %v13206_v48  ;;  %v11678_v48 = vld [vmem:[%s18101_s11 + $0x238] sm:$0xff] }
 0xb01   :  { %13208 = vmatprep.subr.bf16.mxu0 %v15499_v49  ;;  %v13260_v14 = vpack.c.bf16 %v11678_v48, %v11677_v54  ;;  %v11711_v54 = vld [vmem:[%s18101_s11 + $0x338] sm:$0xff] }
 0xb04   :  { %13210 = vmatpush1.bf16.msra.mxu0 %v13209_v17  ;;  %v11680_v17 = vld [vmem:[%s18101_s11 + $0x248] sm:$0xff] }
 0xb05   :  { %13211 = vmatprep.subr.bf16.mxu0 %v15499_v49  ;;  %v13263_v5 = vpack.c.bf16 %v11680_v17, %v11679_v15  ;;  %v11713_v15 = vld [vmem:[%s18101_s11 + $0x348] sm:$0xff] }
 0xb08   :  { %13213 = vmatpush1.bf16.msra.mxu0 %v13212_v6  ;;  %v11682_v6 = vld [vmem:[%s18101_s11 + $0x258] sm:$0xff] }
 0xb09   :  { %13214 = vmatprep.subr.bf16.mxu0 %v15499_v49  ;;  %v13266_v2 = vpack.c.bf16 %v11682_v6, %v11681_v21  ;;  %v11715_v21 = vld [vmem:[%s18101_s11 + $0x358] sm:$0xff] }
 0xb0c   :  { %13216 = vmatpush1.bf16.msra.mxu0 %v13215_v11  ;;  %v11684_v11 = vld [vmem:[%s18101_s11 + $0x268] sm:$0xff] }
 0xb0d   :  { %13217 = vmatprep.subr.bf16.mxu0 %v15499_v49  ;;  %v13269_v12 = vpack.c.bf16 %v11684_v11, %v11683_v50  ;;  %v11717_v50 = vld [vmem:[%s18101_s11 + $0x368] sm:$0xff] }
 0xb10   :  { %13219 = vmatpush1.bf16.msra.mxu0 %v13218_v24  ;;  %v11685_v24 = vld [vmem:[%s18101_s11 + $0x270] sm:$0xff] }
 0xb11   :  { %13220 = vmatprep.subr.bf16.mxu0 %v15499_v49 }
 0xb14   :  { %13222 = vmatpush1.bf16.msra.mxu0 %v13221_v16  ;;  %v13272_v16 = vpack.c.bf16 %v11686_v30, %v11685_v24  ;;  %v11721_v30 = vld [vmem:[%s18101_s11 + $0x380] sm:$0xff] }
 0xb15   :  { %13223 = vmatprep.subr.bf16.mxu0 %v15499_v49 }
 0xb18   :  { %13225 = vmatpush1.bf16.msra.mxu0 %v13224_v35  ;;  %v11810_v35 = vld [vmem:[%s18090_s0 + $0x30] sm:$0xff]  ;;  %s15441_s0 = scalar_lea.vmem %s11529_s30, 32 }
 0xb19   :  { %13226 = vmatprep.subr.bf16.mxu0 %v15499_v49  ;;  %5893 = vrot.lane.b32.xlu0 %v11810_v35, %s15495_s8  ;;  %v11724_v35 = vld [vmem:[%s18101_s11 + $0x398] sm:$0xff]  ;;  %p15442_p4 = scmp.ne.s32.totalorder %s11529_s30, %s15441_s0  ;;  %p15447_p6 = scmp.lt.s32.totalorder %s15441_s0, %s15441_s0 }
 0xb1b   :  { %p15448_p7 = por %p15447_p6, %p15446_p5 }
 0xb1c   :  { %13228 = vmatpush1.bf16.msra.mxu0 %v13227_v20  ;;  %v11690_v20 = vld [vmem:[%s18101_s11 + $0x298] sm:$0xff] }
 0xb1d   :  { %13229 = vmatprep.subr.bf16.mxu0 %v15499_v49  ;;  %v13278_v42 = vpack.c.bf16 %v11690_v20, %v11689_v38  ;;  %v13326_v38 = vpack.c.bf16 %v11724_v35, %v11723_v33  ;;  %v11725_v20 = vld [vmem:[%s18101_s11 + $0x3a0] sm:$0xff]  ;;  %v11756_v33 = vld [vmem:[%s18101_s11 + $0x490] sm:$0xff]  ;;  %v11757_v35 = vld [vmem:[%s18101_s11 + $0x498] sm:$0xff]  ;;  %p15449_p8 = pnand %p15448_p7, %p15442_p4 }
 0xb20   :  { %13231 = vmatpush1.bf16.msra.mxu0 %v13230_v43  ;;  %v11692_v43 = vld [vmem:[%s18101_s11 + $0x2a0] sm:$0xff] }
 0xb21   :  { %13232 = vmatprep.subr.bf16.mxu0 %v15499_v49  ;;  %v13281_v44 = vpack.c.bf16 %v11693_v22, %v11692_v43  ;;  %v11727_v43 = vld [vmem:[%s18101_s11 + $0x3b0] sm:$0xff]  ;;  %v11728_v22 = vld [vmem:[%s18101_s11 + $0x3b8] sm:$0xff] }
 0xb24   :  { %13234 = vmatpush1.bf16.msra.mxu0 %v13233_v47  ;;  %v5382_v47 = vrot.slane %v16310_v4, 2 }
 0xb25   :  { %13235 = vmatprep.subr.bf16.mxu0 %v15499_v49 }
 0xb28   :  { %13237 = vmatpush1.bf16.msra.mxu0 %v13236_v36  ;;  %v5488_v36 = vrot.slane %v16312_v7, 3 }
 0xb29   :  { %13238 = vmatprep.subr.bf16.mxu0 %v15499_v49 }
 0xb2b   :  { %5347 = vmatmul.mubr.f32.vlgmr.msra.gmra.mrb[30].mxu0 %v5277_v57 }
 0xb2c   :  { %13240 = vmatpush1.bf16.msra.mxu0 %v13239_v23  ;;  %11691 = vmatprep.mubr.msk.f32.mxu0 %vm4883_vm4, %v5383_v59  ;;  %v11697_v23 = vld [vmem:[%s18101_s11 + $0x2c8] sm:$0xff]  ;;  %v13290_v59 = vpack.c.bf16 %v11699_v45, %v11698_v32  ;;  %v11735_v45 = vld [vmem:[%s18101_s11 + $0x3f0] sm:$0xff] }
 0xb2d   :  { %13241 = vmatprep.subr.bf16.mxu0 %v15499_v49  ;;  %v13287_v57 = vpack.c.bf16 %v11697_v23, %v11696_v56  ;;  %v11733_v23 = vld [vmem:[%s18101_s11 + $0x3e0] sm:$0xff] }
 0xb30   :  { %13243 = vmatpush1.bf16.msra.mxu0 %v13242_v60  ;;  %v11700_v60 = vld [vmem:[%s18101_s11 + $0x2e0] sm:$0xff] }
 0xb31   :  { %13244 = vmatprep.subr.bf16.mxu0 %v15499_v49  ;;  %v13293_v62 = vpack.c.bf16 %v11701_v61, %v11700_v60  ;;  %v11737_v61 = vld [vmem:[%s18101_s11 + $0x400] sm:$0xff] }
 0xb34   :  { %13246 = vmatpush1.bf16.msra.mxu0 %v13245_v1  ;;  %v11702_v1 = vld [vmem:[%s18101_s11 + $0x2f0] sm:$0xff] }
 0xb35   :  { %13247 = vmatprep.subr.bf16.mxu0 %v15499_v49  ;;  %v13296_v9 = vpack.c.bf16 %v11703_v51, %v11702_v1  ;;  %v11739_v51 = vld [vmem:[%s18101_s11 + $0x410] sm:$0xff] }
 0xb38   :  { %13249 = vmatpush1.bf16.msra.mxu0 %v13248_v3  ;;  %v11704_v3 = vld [vmem:[%s18101_s11 + $0x300] sm:$0xff] }
 0xb39   :  { %13250 = vmatprep.subr.bf16.mxu0 %v15499_v49  ;;  %v13299_v0 = vpack.c.bf16 %v11705_v41, %v11704_v3  ;;  %v11741_v41 = vld [vmem:[%s18101_s11 + $0x420] sm:$0xff] }
 0xb3c   :  { %13252 = vmatpush1.bf16.msra.mxu0 %v13251_v58  ;;  %v11706_v58 = vld [vmem:[%s18101_s11 + $0x310] sm:$0xff] }
 0xb3d   :  { %13253 = vmatprep.subr.bf16.mxu0 %v15499_v49  ;;  %v13302_v34 = vpack.c.bf16 %v11707_v8, %v11706_v58  ;;  %v5890_v8 = vpop.permute.xlu0 %5889 }
 0xb3e   :  { %5902 = vst.msk [vmem:[#allocation2 + $0x22] sm:$0xff] %vm232_vm1, %v5890_v8  ;;  %v11777_v8 = vld [vmem:[%s18101_s11 + $0x538] sm:$0xff] }
 0xb40   :  { %13255 = vmatpush1.bf16.msra.mxu0 %v13254_v10  ;;  %v11708_v10 = vld [vmem:[%s18101_s11 + $0x320] sm:$0xff] }
 0xb41   :  { %13256 = vmatprep.subr.bf16.mxu0 %v15499_v49  ;;  %v13305_v63 = vpack.c.bf16 %v11709_v46, %v11708_v10  ;;  %v11744_v10 = vld [vmem:[%s18101_s11 + $0x438] sm:$0xff] }
 0xb44   :  { %13258 = vmatpush1.bf16.msra.mxu0 %v13257_v13  ;;  %v11710_v13 = vld [vmem:[%s18101_s11 + $0x330] sm:$0xff] }
 0xb45   :  { %13259 = vmatprep.subr.bf16.mxu0 %v15499_v49  ;;  %v13308_v48 = vpack.c.bf16 %v11711_v54, %v11710_v13  ;;  %v11745_v13 = vld [vmem:[%s18101_s11 + $0x440] sm:$0xff]  ;;  %v11746_v54 = vld [vmem:[%s18101_s11 + $0x448] sm:$0xff] }
 0xb48   :  { %13261 = vmatpush1.bf16.msra.mxu0 %v13260_v14  ;;  %v11712_v14 = vld [vmem:[%s18101_s11 + $0x340] sm:$0xff] }
 0xb49   :  { %13262 = vmatprep.subr.bf16.mxu0 %v15499_v49  ;;  %v13311_v17 = vpack.c.bf16 %v11713_v15, %v11712_v14  ;;  %v11747_v15 = vld [vmem:[%s18101_s11 + $0x450] sm:$0xff] }
 0xb4c   :  { %13264 = vmatpush1.bf16.msra.mxu0 %v13263_v5  ;;  %v11714_v5 = vld [vmem:[%s18101_s11 + $0x350] sm:$0xff] }
 0xb4d   :  { %13265 = vmatprep.subr.bf16.mxu0 %v15499_v49  ;;  %v13314_v6 = vpack.c.bf16 %v11715_v21, %v11714_v5 }
 0xb50   :  { %13267 = vmatpush1.bf16.msra.mxu0 %v13266_v2  ;;  %v11716_v2 = vld [vmem:[%s18101_s11 + $0x360] sm:$0xff] }
 0xb51   :  { %13268 = vmatprep.subr.bf16.mxu0 %v15499_v49  ;;  %v13317_v11 = vpack.c.bf16 %v11717_v50, %v11716_v2  ;;  %v11751_v2 = vld [vmem:[%s18101_s11 + $0x468] sm:$0xff] }
 0xb54   :  { %13270 = vmatpush1.bf16.msra.mxu0 %v13269_v12  ;;  %v11719_v12 = vld [vmem:[%s18101_s11 + $0x378] sm:$0xff] }
 0xb55   :  { %13271 = vmatprep.subr.bf16.mxu0 %v15499_v49  ;;  %v13320_v24 = vpack.c.bf16 %v11719_v12, %v11718_v39  ;;  %v11752_v39 = vld [vmem:[%s18101_s11 + $0x470] sm:$0xff]  ;;  %v11753_v12 = vld [vmem:[%s18101_s11 + $0x478] sm:$0xff] }
 0xb58   :  { %13273 = vmatpush1.bf16.msra.mxu0 %v13272_v16  ;;  %v13323_v16 = vpack.c.bf16 %v11722_v31, %v11721_v30  ;;  %v13368_v30 = vpack.c.bf16 %v11753_v12, %v11752_v39  ;;  %v11754_v31 = vld [vmem:[%s18101_s11 + $0x480] sm:$0xff]  ;;  %v11789_v12 = vld [vmem:[%s18101_s11 + $0x590] sm:$0xff] }
 0xb59   :  { %13274 = vmatprep.subr.bf16.mxu0 %v15499_v49 }
 0xb5c   :  { %13276 = vmatpush1.bf16.msra.mxu0 %v13275_v37  ;;  %v5593_v37 = vrot.slane %v16312_v7, 4 }
 0xb5d   :  { %13277 = vmatprep.subr.bf16.mxu0 %v15499_v49 }
 0xb60   :  { %13279 = vmatpush1.bf16.msra.mxu0 %v13278_v42  ;;  %v13329_v42 = vpack.c.bf16 %v11726_v40, %v11725_v20  ;;  %v11759_v20 = vld [vmem:[%s18101_s11 + $0x4a8] sm:$0xff] }
 0xb61   :  { %13280 = vmatprep.subr.bf16.mxu0 %v15499_v49 }
 0xb63   :  { %5452 = vmatmul.mubr.f32.vlgmr.msra.gmra.mrb[30].mxu0 %v5382_v47  ;;  %v11729_v47 = vld [vmem:[%s18101_s11 + $0x3c0] sm:$0xff] }
 0xb64   :  { %13282 = vmatpush1.bf16.msra.mxu0 %v13281_v44  ;;  %11720 = vmatprep.mubr.msk.f32.mxu0 %vm4883_vm4, %v5488_v36  ;;  %v13332_v44 = vpack.c.bf16 %v11728_v22, %v11727_v43  ;;  %v13335_v53 = vpack.c.bf16 %v11730_v52, %v11729_v47  ;;  %v11731_v36 = vld [vmem:[%s18101_s11 + $0x3d0] sm:$0xff]  ;;  %v11761_v43 = vld [vmem:[%s18101_s11 + $0x4b8] sm:$0xff]  ;;  %v11763_v47 = vld [vmem:[%s18101_s11 + $0x4c8] sm:$0xff] }
 0xb65   :  { %13283 = vmatprep.subr.bf16.mxu0 %v15499_v49 }
 0xb68   :  { %13285 = vmatpush1.bf16.msra.mxu0 %v13284_v55  ;;  %v11732_v55 = vld [vmem:[%s18101_s11 + $0x3d8] sm:$0xff] }
 0xb69   :  { %13286 = vmatprep.subr.bf16.mxu0 %v15499_v49  ;;  %v13338_v56 = vpack.c.bf16 %v11732_v55, %v11731_v36  ;;  %v11765_v36 = vld [vmem:[%s18101_s11 + $0x4d8] sm:$0xff] }
 0xb6c   :  { %13288 = vmatpush1.bf16.msra.mxu0 %v13287_v57  ;;  %v11734_v57 = vld [vmem:[%s18101_s11 + $0x3e8] sm:$0xff] }
 0xb6d   :  { %13289 = vmatprep.subr.bf16.mxu0 %v15499_v49  ;;  %v13341_v32 = vpack.c.bf16 %v11734_v57, %v11733_v23  ;;  %v11767_v23 = vld [vmem:[%s18101_s11 + $0x4e8] sm:$0xff] }
 0xb70   :  { %13291 = vmatpush1.bf16.msra.mxu0 %v13290_v59  ;;  %v11736_v59 = vld [vmem:[%s18101_s11 + $0x3f8] sm:$0xff] }
 0xb71   :  { %13292 = vmatprep.subr.bf16.mxu0 %v15499_v49  ;;  %v13344_v60 = vpack.c.bf16 %v11736_v59, %v11735_v45  ;;  %v11769_v45 = vld [vmem:[%s18101_s11 + $0x4f8] sm:$0xff] }
 0xb74   :  { %13294 = vmatpush1.bf16.msra.mxu0 %v13293_v62  ;;  %v11738_v62 = vld [vmem:[%s18101_s11 + $0x408] sm:$0xff] }
 0xb75   :  { %13295 = vmatprep.subr.bf16.mxu0 %v15499_v49  ;;  %v13347_v1 = vpack.c.bf16 %v11738_v62, %v11737_v61  ;;  %v11771_v61 = vld [vmem:[%s18101_s11 + $0x508] sm:$0xff] }
 0xb78   :  { %13297 = vmatpush1.bf16.msra.mxu0 %v13296_v9  ;;  %v11740_v9 = vld [vmem:[%s18101_s11 + $0x418] sm:$0xff] }
 0xb79   :  { %13298 = vmatprep.subr.bf16.mxu0 %v15499_v49  ;;  %v13350_v3 = vpack.c.bf16 %v11740_v9, %v11739_v51  ;;  %v11773_v51 = vld [vmem:[%s18101_s11 + $0x518] sm:$0xff] }
 0xb7c   :  { %13300 = vmatpush1.bf16.msra.mxu0 %v13299_v0  ;;  %v11742_v0 = vld [vmem:[%s18101_s11 + $0x428] sm:$0xff] }
 0xb7d   :  { %13301 = vmatprep.subr.bf16.mxu0 %v15499_v49  ;;  %v13353_v58 = vpack.c.bf16 %v11742_v0, %v11741_v41  ;;  %v11775_v41 = vld [vmem:[%s18101_s11 + $0x528] sm:$0xff] }
 0xb80   :  { %13303 = vmatpush1.bf16.msra.mxu0 %v13302_v34  ;;  %v11743_v34 = vld [vmem:[%s18101_s11 + $0x430] sm:$0xff] }
 0xb81   :  { %13304 = vmatprep.subr.bf16.mxu0 %v15499_v49  ;;  %v13356_v46 = vpack.c.bf16 %v11744_v10, %v11743_v34  ;;  %v11779_v10 = vld [vmem:[%s18101_s11 + $0x540] sm:$0xff] }
 0xb84   :  { %13306 = vmatpush1.bf16.msra.mxu0 %v13305_v63  ;;  %v5892_v63 = vpop.permute.xlu1 %5891 }
 0xb85   :  { %13307 = vmatprep.subr.bf16.mxu0 %v15499_v49  ;;  %5903 = vst.msk [vmem:[#allocation2 + $0x2a] sm:$0xff] %vm232_vm1, %v5892_v63 }
 0xb88   :  { %13309 = vmatpush1.bf16.msra.mxu0 %v13308_v48  ;;  %v13359_v48 = vpack.c.bf16 %v11746_v54, %v11745_v13  ;;  %v5896_v21 = vpop.permute.xlu1 %5895  ;;  %v5697_v13 = vrot.slane %v16310_v4, 5  ;;  %v11781_v54 = vld [vmem:[%s18101_s11 + $0x550] sm:$0xff] }
 0xb89   :  { %13310 = vmatprep.subr.bf16.mxu0 %v15499_v49  ;;  %5905 = vst.msk [vmem:[#allocation2 + $0x3a] sm:$0xf] %vm236_vm2, %v5896_v21  ;;  %vm18109_vm2 = vcmask 1043456  }
 0xb8b   :  { %v5894_v14 = vpop.permute.xlu0 %5893 }
 0xb8c   :  { %13312 = vmatpush1.bf16.msra.mxu0 %v13311_v17  ;;  %v11748_v17 = vld [vmem:[%s18101_s11 + $0x458] sm:$0xff]  ;;  %5904 = vst.msk [vmem:[#allocation2 + $0x32] sm:$0xff] %vm232_vm1, %v5894_v14  ;;  %v5803_v14 = vrot.slane %v16312_v7, 6  ;;  %vm5878_vm1 = vcmask 73728  }
 0xb8d   :  { %13313 = vmatprep.subr.bf16.mxu0 %v15499_v49  ;;  %v13362_v5 = vpack.c.bf16 %v11748_v17, %v11747_v15  ;;  %v11783_v17 = vld [vmem:[%s18101_s11 + $0x560] sm:$0xff] }
 0xb90   :  { %13315 = vmatpush1.bf16.msra.mxu0 %v13314_v6  ;;  %v11750_v6 = vld [vmem:[%s18101_s11 + $0x460] sm:$0xff] }
 0xb91   :  { %13316 = vmatprep.subr.bf16.mxu0 %v15499_v49  ;;  %v13365_v50 = vpack.c.bf16 %v11751_v2, %v11750_v6  ;;  %v11786_v6 = vld [vmem:[%s18101_s11 + $0x578] sm:$0xff] }
 0xb94   :  { %13318 = vmatpush1.bf16.msra.mxu0 %v13317_v11  ;;  %v5592_v11 = vrot.slane %v16310_v4, 4 }
 0xb95   :  { %13319 = vmatprep.subr.bf16.mxu0 %v15499_v49 }
 0xb98   :  { %13321 = vmatpush1.bf16.msra.mxu0 %v13320_v24  ;;  %v5698_v24 = vrot.slane %v16312_v7, 5  ;;  %v11785_v7 = vld [vmem:[%s18101_s11 + $0x570] sm:$0xff] }
 0xb99   :  { %13322 = vmatprep.subr.bf16.mxu0 %v15499_v49  ;;  %v13416_v2 = vpack.c.bf16 %v11786_v6, %v11785_v7  ;;  %v5940_v7 = vld [vmem:[#allocation4 + $0xd0] sm:$0xff] }
 0xb9a   :  { %v5944_v6 = vld [vmem:[#allocation4 + $0xf0] sm:$0xff] }
 0xb9b   :  { %5557 = vmatmul.mubr.f32.vlgmr.msra.gmra.mrb[30].mxu0 %v5487_v18 }
 0xb9c   :  { %13324 = vmatpush1.bf16.msra.mxu0 %v13323_v16  ;;  %11749 = vmatprep.mubr.msk.f32.mxu0 %vm4883_vm4, %v5593_v37  ;;  %v11755_v16 = vld [vmem:[%s18101_s11 + $0x488] sm:$0xff]  ;;  %v13374_v37 = vpack.c.bf16 %v11757_v35, %v11756_v33  ;;  %v11793_v33 = vld [vmem:[%s18101_s11 + $0x5b0] sm:$0xff]  ;;  %v11794_v35 = vld [vmem:[%s18101_s11 + $0x5b8] sm:$0xff] }
 0xb9d   :  { %13325 = vmatprep.subr.bf16.mxu0 %v15499_v49  ;;  %v13371_v18 = vpack.c.bf16 %v11755_v16, %v11754_v31  ;;  %v11791_v31 = vld [vmem:[%s18101_s11 + $0x5a0] sm:$0xff]  ;;  %v11792_v16 = vld [vmem:[%s18101_s11 + $0x5a8] sm:$0xff] }
 0xba0   :  { %13327 = vmatpush1.bf16.msra.mxu0 %v13326_v38  ;;  %v11758_v38 = vld [vmem:[%s18101_s11 + $0x4a0] sm:$0xff] }
 0xba1   :  { %13328 = vmatprep.subr.bf16.mxu0 %v15499_v49  ;;  %v13377_v40 = vpack.c.bf16 %v11759_v20, %v11758_v38  ;;  %v11795_v38 = vld [vmem:[%s18101_s11 + $0x5c0] sm:$0xff]  ;;  %v11796_v20 = vld [vmem:[%s18101_s11 + $0x5c8] sm:$0xff] }
 0xba4   :  { %13330 = vmatpush1.bf16.msra.mxu0 %v13329_v42  ;;  %v11760_v42 = vld [vmem:[%s18101_s11 + $0x4b0] sm:$0xff] }
 0xba5   :  { %13331 = vmatprep.subr.bf16.mxu0 %v15499_v49  ;;  %v13380_v22 = vpack.c.bf16 %v11761_v43, %v11760_v42  ;;  %v11797_v42 = vld [vmem:[%s18101_s11 + $0x5d0] sm:$0xff]  ;;  %v11798_v43 = vld [vmem:[%s18101_s11 + $0x5d8] sm:$0xff] }
 0xba8   :  { %13333 = vmatpush1.bf16.msra.mxu0 %v13332_v44  ;;  %v11762_v44 = vld [vmem:[%s18101_s11 + $0x4c0] sm:$0xff] }
 0xba9   :  { %13334 = vmatprep.subr.bf16.mxu0 %v15499_v49  ;;  %v13383_v52 = vpack.c.bf16 %v11763_v47, %v11762_v44  ;;  %v11799_v44 = vld [vmem:[%s18101_s11 + $0x5e0] sm:$0xff]  ;;  %v11800_v47 = vld [vmem:[%s18101_s11 + $0x5e8] sm:$0xff] }
 0xbac   :  { %13336 = vmatpush1.bf16.msra.mxu0 %v13335_v53  ;;  %v11764_v53 = vld [vmem:[%s18101_s11 + $0x4d0] sm:$0xff] }
 0xbad   :  { %13337 = vmatprep.subr.bf16.mxu0 %v15499_v49  ;;  %v13386_v55 = vpack.c.bf16 %v11765_v36, %v11764_v53  ;;  %v11801_v53 = vld [vmem:[%s18101_s11 + $0x5f0] sm:$0xff]  ;;  %v11802_v36 = vld [vmem:[%s18101_s11 + $0x5f8] sm:$0xff] }
 0xbb0   :  { %13339 = vmatpush1.bf16.msra.mxu0 %v13338_v56  ;;  %v11766_v56 = vld [vmem:[%s18101_s11 + $0x4e0] sm:$0xff] }
 0xbb1   :  { %13340 = vmatprep.subr.bf16.mxu0 %v15499_v49  ;;  %v13389_v57 = vpack.c.bf16 %v11767_v23, %v11766_v56  ;;  %v11803_v56 = vld [vmem:[%s18101_s11 + $0x600] sm:$0xff]  ;;  %v11804_v23 = vld [vmem:[%s18101_s11 + $0x608] sm:$0xff] }
 0xbb4   :  { %13342 = vmatpush1.bf16.msra.mxu0 %v13341_v32  ;;  %v11768_v32 = vld [vmem:[%s18101_s11 + $0x4f0] sm:$0xff] }
 0xbb5   :  { %13343 = vmatprep.subr.bf16.mxu0 %v15499_v49  ;;  %v13392_v59 = vpack.c.bf16 %v11769_v45, %v11768_v32  ;;  %v11805_v32 = vld [vmem:[%s18101_s11 + $0x610] sm:$0xff]  ;;  %v11806_v45 = vld [vmem:[%s18101_s11 + $0x618] sm:$0xff] }
 0xbb8   :  { %13345 = vmatpush1.bf16.msra.mxu0 %v13344_v60  ;;  %v11770_v60 = vld [vmem:[%s18101_s11 + $0x500] sm:$0xff] }
 0xbb9   :  { %13346 = vmatprep.subr.bf16.mxu0 %v15499_v49  ;;  %v13395_v62 = vpack.c.bf16 %v11771_v61, %v11770_v60  ;;  %v5935_v60 = vld [vmem:[#allocation4 + $0xa8] sm:$0xff]  ;;  %v13446_v61 = vpack.c.bf16 %v11806_v45, %v11805_v32 }
 0xbba   :  { %v6331_v32 = vld [vmem:[#allocation4 + $0x108] sm:$0xff] }
 0xbbb   :  { %v6335_v45 = vld [vmem:[#allocation4 + $0x128] sm:$0xff] }
 0xbbc   :  { %13348 = vmatpush1.bf16.msra.mxu0 %v13347_v1  ;;  %v11772_v1 = vld [vmem:[%s18101_s11 + $0x510] sm:$0xff] }
 0xbbd   :  { %13349 = vmatprep.subr.bf16.mxu0 %v15499_v49  ;;  %v13398_v9 = vpack.c.bf16 %v11773_v51, %v11772_v1  ;;  %v5930_v1 = vld [vmem:[#allocation4 + $0x80] sm:$0xff] }
 0xbbe   :  { %v5934_v51 = vld [vmem:[#allocation4 + $0xa0] sm:$0xff] }
 0xbc0   :  { %13351 = vmatpush1.bf16.msra.mxu0 %v13350_v3  ;;  %v11774_v3 = vld [vmem:[%s18101_s11 + $0x520] sm:$0xff] }
 0xbc1   :  { %13352 = vmatprep.subr.bf16.mxu0 %v15499_v49  ;;  %v13401_v0 = vpack.c.bf16 %v11775_v41, %v11774_v3  ;;  %v5943_v3 = vld [vmem:[#allocation4 + $0xe8] sm:$0xff]  ;;  %v13450_v41 = vpack.c.bf16 %v5934_v51, %v5930_v1  ;;  %v6330_v1 = vld [vmem:[#allocation4 + $0x100] sm:$0xff] }
 0xbc2   :  { %v6334_v51 = vld [vmem:[#allocation4 + $0x120] sm:$0xff] }
 0xbc4   :  { %13354 = vmatpush1.bf16.msra.mxu0 %v13353_v58  ;;  %v11776_v58 = vld [vmem:[%s18101_s11 + $0x530] sm:$0xff] }
 0xbc5   :  { %13355 = vmatprep.subr.bf16.mxu0 %v15499_v49  ;;  %v13404_v34 = vpack.c.bf16 %v11777_v8, %v11776_v58  ;;  %v5938_v8 = vld [vmem:[#allocation4 + $0xc0] sm:$0xff] }
 0xbc8   :  { %13357 = vmatpush1.bf16.msra.mxu0 %v13356_v46  ;;  %v11780_v46 = vld [vmem:[%s18101_s11 + $0x548] sm:$0xff] }
 0xbc9   :  { %13358 = vmatprep.subr.bf16.mxu0 %v15499_v49  ;;  %v13407_v63 = vpack.c.bf16 %v11780_v46, %v11779_v10  ;;  %v5933_v10 = vld [vmem:[#allocation4 + $0x98] sm:$0xff] }
 0xbca   :  { %v5937_v46 = vld [vmem:[#allocation4 + $0xb8] sm:$0xff] }
 0xbcc   :  { %13360 = vmatpush1.bf16.msra.mxu0 %v13359_v48  ;;  %v11782_v48 = vld [vmem:[%s18101_s11 + $0x558] sm:$0xff] }
 0xbcd   :  { %13361 = vmatprep.subr.bf16.mxu0 %v15499_v49  ;;  %v13410_v15 = vpack.c.bf16 %v11782_v48, %v11781_v54  ;;  %v13456_v54 = vpack.c.bf16 %v5937_v46, %v5933_v10  ;;  %v5932_v48 = vld [vmem:[#allocation4 + $0x90] sm:$0xff]  ;;  %v6333_v10 = vld [vmem:[#allocation4 + $0x118] sm:$0xff] }
 0xbce   :  { %v6337_v46 = vld [vmem:[#allocation4 + $0x138] sm:$0xff] }
 0xbd0   :  { %13363 = vmatpush1.bf16.msra.mxu0 %v13362_v5  ;;  %v11784_v5 = vld [vmem:[%s18101_s11 + $0x568] sm:$0xff] }
 0xbd1   :  { %13364 = vmatprep.subr.bf16.mxu0 %v15499_v49  ;;  %v13413_v21 = vpack.c.bf16 %v11784_v5, %v11783_v17  ;;  %v5945_v17 = vld [vmem:[#allocation4 + $0xf8] sm:$0xff] }
 0xbd3   :  { %5662 = vmatmul.mubr.f32.vlgmr.msra.gmra.mrb[30].mxu0 %v5592_v11  ;;  %v11788_v11 = vld [vmem:[%s18101_s11 + $0x588] sm:$0xff] }
 0xbd4   :  { %13366 = vmatpush1.bf16.msra.mxu0 %v13365_v50  ;;  %11778 = vmatprep.mubr.msk.f32.mxu0 %vm4883_vm4, %v5698_v24  ;;  %v11787_v50 = vld [vmem:[%s18101_s11 + $0x580] sm:$0xff]  ;;  %v11790_v24 = vld [vmem:[%s18101_s11 + $0x598] sm:$0xff] }
 0xbd5   :  { %13367 = vmatprep.subr.bf16.mxu0 %v15499_v49  ;;  %v13419_v39 = vpack.c.bf16 %v11788_v11, %v11787_v50  ;;  %v5915_v50 = vld [vmem:[#allocation4 + $0x28] sm:$0xff]  ;;  %v13462_v11 = vpack.c.bf16 %v5944_v6, %v5940_v7  ;;  %v6344_v7 = vld [vmem:[#allocation4 + $0x170] sm:$0xff] }
 0xbd6   :  { %v6326_v6 = vld [vmem:[#allocation2 + $0x22] sm:$0xff] }
 0xbd8   :  { %13369 = vmatpush1.bf16.msra.mxu0 %v13368_v30  ;;  %v13422_v30 = vpack.c.bf16 %v11790_v24, %v11789_v12  ;;  %v5927_v12 = vld [vmem:[#allocation2 + $0x29] sm:$0xff]  ;;  %v5928_v24 = vld [vmem:[#allocation2 + $0x31] sm:$0xff] }
 0xbd9   :  { %13370 = vmatprep.subr.bf16.mxu0 %v15499_v49 }
 0xbdc   :  { %13372 = vmatpush1.bf16.msra.mxu0 %v13371_v18  ;;  %v13425_v18 = vpack.c.bf16 %v11792_v16, %v11791_v31  ;;  %v5914_v31 = vld [vmem:[#allocation4 + $0x20] sm:$0xff]  ;;  %v5929_v16 = vld [vmem:[#allocation2 + $0x39] sm:$0xf] }
 0xbdd   :  { %13373 = vmatprep.subr.bf16.mxu0 %v15499_v49 }
 0xbe0   :  { %13375 = vmatpush1.bf16.msra.mxu0 %v13374_v37  ;;  %v13428_v37 = vpack.c.bf16 %v11794_v35, %v11793_v33  ;;  %v5923_v33 = vld [vmem:[#allocation4 + $0x68] sm:$0xff] }
 0xbe1   :  { %13376 = vmatprep.subr.bf16.mxu0 %v15499_v49 }
 0xbe4   :  { %13378 = vmatpush1.bf16.msra.mxu0 %v13377_v40  ;;  %v13431_v40 = vpack.c.bf16 %v11796_v20, %v11795_v38  ;;  %v5918_v38 = vld [vmem:[#allocation4 + $0x40] sm:$0xff] }
 0xbe5   :  { %13379 = vmatprep.subr.bf16.mxu0 %v15499_v49  ;;  %v5922_v20 = vld [vmem:[#allocation4 + $0x60] sm:$0xff] }
 0xbe8   :  { %13381 = vmatpush1.bf16.msra.mxu0 %v13380_v22  ;;  %v13434_v22 = vpack.c.bf16 %v11798_v43, %v11797_v42  ;;  %v5917_v42 = vld [vmem:[#allocation4 + $0x38] sm:$0xff]  ;;  %v13470_v43 = vpack.c.bf16 %v5922_v20, %v5918_v38  ;;  %v6564_v38 = vld [vmem:[#allocation4 + $0x1c0] sm:$0xff] }
 0xbe9   :  { %13382 = vmatprep.subr.bf16.mxu0 %v15499_v49  ;;  %v6568_v20 = vld [vmem:[#allocation4 + $0x1e0] sm:$0xff] }
 0xbec   :  { %13384 = vmatpush1.bf16.msra.mxu0 %v13383_v52  ;;  %v13437_v52 = vpack.c.bf16 %v11800_v47, %v11799_v44  ;;  %v5912_v44 = vld [vmem:[#allocation4 + $0x10] sm:$0xff] }
 0xbed   :  { %13385 = vmatprep.subr.bf16.mxu0 %v15499_v49  ;;  %v5916_v47 = vld [vmem:[#allocation4 + $0x30] sm:$0xff] }
 0xbf0   :  { %13387 = vmatpush1.bf16.msra.mxu0 %v13386_v55  ;;  %v13440_v55 = vpack.c.bf16 %v11802_v36, %v11801_v53  ;;  %v5925_v53 = vld [vmem:[#allocation4 + $0x78] sm:$0xff]  ;;  %v13474_v36 = vpack.c.bf16 %v5916_v47, %v5912_v44  ;;  %v6558_v44 = vld [vmem:[#allocation4 + $0x190] sm:$0xff] }
 0xbf1   :  { %13388 = vmatprep.subr.bf16.mxu0 %v15499_v49  ;;  %v6562_v47 = vld [vmem:[#allocation4 + $0x1b0] sm:$0xff] }
 0xbf4   :  { %13390 = vmatpush1.bf16.msra.mxu0 %v13389_v57  ;;  %v13443_v57 = vpack.c.bf16 %v11804_v23, %v11803_v56  ;;  %v5920_v56 = vld [vmem:[#allocation4 + $0x50] sm:$0xff] }
 0xbf5   :  { %13391 = vmatprep.subr.bf16.mxu0 %v15499_v49  ;;  %v5924_v23 = vld [vmem:[#allocation4 + $0x70] sm:$0xff] }
 0xbf8   :  { %13393 = vmatpush1.bf16.msra.mxu0 %v13392_v59  ;;  %v5931_v59 = vld [vmem:[#allocation4 + $0x88] sm:$0xff] }
 0xbf9   :  { %13394 = vmatprep.subr.bf16.mxu0 %v15499_v49 }
 0xbfc   :  { %13396 = vmatpush1.bf16.msra.mxu0 %v13395_v62  ;;  %v13448_v62 = vpack.c.bf16 %v5935_v60, %v5931_v59  ;;  %v13478_v59 = vpack.c.bf16 %v5924_v23, %v5920_v56  ;;  %v13480_v60 = vpack.c.bf16 %v6335_v45, %v6331_v32  ;;  %v6566_v56 = vld [vmem:[#allocation4 + $0x1d0] sm:$0xff]  ;;  %v6783_v32 = vld [vmem:[#allocation4 + $0x208] sm:$0xff] }
 0xbfd   :  { %13397 = vmatprep.subr.bf16.mxu0 %v15499_v49  ;;  %v6570_v23 = vld [vmem:[#allocation4 + $0x1f0] sm:$0xff]  ;;  %v6787_v45 = vld [vmem:[#allocation4 + $0x228] sm:$0xff] }
 0xc00   :  { %13399 = vmatpush1.bf16.msra.mxu0 %v13398_v9  ;;  %v5939_v9 = vld [vmem:[#allocation4 + $0xc8] sm:$0xff] }
 0xc01   :  { %13400 = vmatprep.subr.bf16.mxu0 %v15499_v49  ;;  %v13452_v58 = vpack.c.bf16 %v5943_v3, %v5939_v9  ;;  %v5909_v9 = vld [vmem:[#allocation2 + $0x38] sm:$0xf] }
 0xc02   :  { %v6339_v3 = vld [vmem:[#allocation4 + $0x148] sm:$0xff] }
 0xc04   :  { %13402 = vmatpush1.bf16.msra.mxu0 %v13401_v0  ;;  %v5802_v0 = vrot.slane %v16310_v4, 6  ;;  %v5926_v4 = vld [vmem:[#allocation2 + $0x21] sm:$0xff] }
 0xc05   :  { %13403 = vmatprep.subr.bf16.mxu0 %v15499_v49 }
 0xc08   :  { %13405 = vmatpush1.bf16.msra.mxu0 %v13404_v34  ;;  %v5942_v34 = vld [vmem:[#allocation4 + $0xe0] sm:$0xff] }
 0xc09   :  { %13406 = vmatprep.subr.bf16.mxu0 %v15499_v49 }
 0xc0b   :  { %5767 = vmatmul.mubr.f32.vlgmr.msra.gmra.mrb[30].mxu0 %v5697_v13  ;;  %v16936_v13 = vld [vmem:[#allocation3 + $0x48] sm:$0xff] }
 0xc0c   :  { %13408 = vmatpush1.bf16.msra.mxu0 %v13407_v63  ;;  %11807 = vmatprep.mubr.msk.f32.mxu0 %vm4883_vm4, %v5803_v14  ;;  %v13454_v63 = vpack.c.bf16 %v5942_v34, %v5938_v8  ;;  %v5936_v14 = vld [vmem:[#allocation4 + $0xb0] sm:$0xff]  ;;  %v6338_v8 = vld [vmem:[#allocation4 + $0x140] sm:$0xff] }
 0xc0d   :  { %13409 = vmatprep.subr.bf16.mxu0 %v15499_v49  ;;  %v13458_v5 = vpack.c.bf16 %v5936_v14, %v5932_v48  ;;  %v6342_v34 = vld [vmem:[#allocation4 + $0x160] sm:$0xff]  ;;  %v6332_v48 = vld [vmem:[#allocation4 + $0x110] sm:$0xff] }
 0xc0e   :  { %v6336_v14 = vld [vmem:[#allocation4 + $0x130] sm:$0xff] }
 0xc10   :  { %13411 = vmatpush1.bf16.msra.mxu0 %v13410_v15  ;;  %v5941_v15 = vld [vmem:[#allocation4 + $0xd8] sm:$0xff] }
 0xc11   :  { %13412 = vmatprep.subr.bf16.mxu0 %v15499_v49 }
 0xc14   :  { %13414 = vmatpush1.bf16.msra.mxu0 %v13413_v21  ;;  %v13460_v21 = vpack.c.bf16 %v5945_v17, %v5941_v15  ;;  %v6341_v15 = vld [vmem:[#allocation4 + $0x158] sm:$0xff] }
 0xc15   :  { %13415 = vmatprep.subr.bf16.mxu0 %v15499_v49  ;;  %v6345_v17 = vld [vmem:[#allocation4 + $0x178] sm:$0xff] }
 0xc18   :  { %13417 = vmatpush1.bf16.msra.mxu0 %v13416_v2  ;;  %v5911_v2 = vld [vmem:[#allocation4 + $0x8] sm:$0xff] }
 0xc19   :  { %13418 = vmatprep.subr.bf16.mxu0 %v15499_v49 }
 0xc1c   :  { %13420 = vmatpush1.bf16.msra.mxu0 %v13419_v39  ;;  %v13464_v39 = vpack.c.bf16 %v5915_v50, %v5911_v2  ;;  %v6557_v2 = vld [vmem:[#allocation4 + $0x188] sm:$0xff] }
 0xc1d   :  { %13421 = vmatprep.subr.bf16.mxu0 %v15499_v49  ;;  %v6561_v50 = vld [vmem:[#allocation4 + $0x1a8] sm:$0xff] }
 0xc20   :  { %13423 = vmatpush1.bf16.msra.mxu0 %v13422_v30  ;;  %v5910_v30 = vld [vmem:[#allocation4] sm:$0xff] }
 0xc21   :  { %13424 = vmatprep.subr.bf16.mxu0 %v15499_v49  ;;  %v13466_v35 = vpack.c.bf16 %v5914_v31, %v5910_v30  ;;  %v6556_v30 = vld [vmem:[#allocation4 + $0x180] sm:$0xff] }
 0xc22   :  { %v6560_v31 = vld [vmem:[#allocation4 + $0x1a0] sm:$0xff] }
 0xc24   :  { %13426 = vmatpush1.bf16.msra.mxu0 %v13425_v18  ;;  %v5919_v18 = vld [vmem:[#allocation4 + $0x48] sm:$0xff] }
 0xc25   :  { %13427 = vmatprep.subr.bf16.mxu0 %v15499_v49 }
 0xc28   :  { %13429 = vmatpush1.bf16.msra.mxu0 %v13428_v37  ;;  %v13468_v37 = vpack.c.bf16 %v5923_v33, %v5919_v18  ;;  %v6565_v18 = vld [vmem:[#allocation4 + $0x1c8] sm:$0xff] }
 0xc29   :  { %13430 = vmatprep.subr.bf16.mxu0 %v15499_v49  ;;  %v6569_v33 = vld [vmem:[#allocation4 + $0x1e8] sm:$0xff] }
 0xc2c   :  { %13432 = vmatpush1.bf16.msra.mxu0 %v13431_v40  ;;  %v5913_v40 = vld [vmem:[#allocation4 + $0x18] sm:$0xff] }
 0xc2d   :  { %13433 = vmatprep.subr.bf16.mxu0 %v15499_v49 }
 0xc30   :  { %13435 = vmatpush1.bf16.msra.mxu0 %v13434_v22  ;;  %v13472_v22 = vpack.c.bf16 %v5917_v42, %v5913_v40  ;;  %v6559_v40 = vld [vmem:[#allocation4 + $0x198] sm:$0xff] }
 0xc31   :  { %13436 = vmatprep.subr.bf16.mxu0 %v15499_v49  ;;  %v6563_v42 = vld [vmem:[#allocation4 + $0x1b8] sm:$0xff] }
 0xc34   :  { %13438 = vmatpush1.bf16.msra.mxu0 %v13437_v52  ;;  %v5921_v52 = vld [vmem:[#allocation4 + $0x58] sm:$0xff] }
 0xc35   :  { %13439 = vmatprep.subr.bf16.mxu0 %v15499_v49 }
 0xc38   :  { %13441 = vmatpush1.bf16.msra.mxu0 %v13440_v55  ;;  %v13476_v55 = vpack.c.bf16 %v5925_v53, %v5921_v52  ;;  %v6567_v52 = vld [vmem:[#allocation4 + $0x1d8] sm:$0xff] }
 0xc39   :  { %13442 = vmatprep.subr.bf16.mxu0 %v15499_v49  ;;  %v6571_v53 = vld [vmem:[#allocation4 + $0x1f8] sm:$0xff] }
 0xc3c   :  { %13444 = vmatpush1.bf16.msra.mxu0 %v13443_v57  ;;  %v5906_v57 = vld [vmem:[#allocation2 + $0x20] sm:$0xff] }
 0xc3d   :  { %13445 = vmatprep.subr.bf16.mxu0 %v15499_v49 }
 0xc40   :  { %13447 = vmatpush1.bf16.msra.mxu0 %v13446_v61  ;;  %v5907_v61 = vld [vmem:[#allocation2 + $0x28] sm:$0xff] }
 0xc41   :  { %13449 = vmatprep.subr.bf16.mxu0 %v13448_v62  ;;  %v5908_v62 = vld [vmem:[#allocation2 + $0x30] sm:$0xff] }
 0xc43   :  { %5872 = vmatmul.mubr.f32.vlgmr.msra.gmra.mrb[30].mxu0 %v5802_v0  ;;  %v13482_v0 = vpack.c.bf16 %v6334_v51, %v6330_v1  ;;  %v6782_v1 = vld [vmem:[#allocation4 + $0x200] sm:$0xff] }
 0xc44   :  { %13451 = vmatpush1.bf16.msra.mxu0 %v13450_v41  ;;  %6022 = vmatprep.mubr.f32.mxu0 %v16936_v13  ;;  %v6343_v41 = vld [vmem:[#allocation4 + $0x168] sm:$0xff]  ;;  %v6786_v51 = vld [vmem:[#allocation4 + $0x220] sm:$0xff] }
 0xc45   :  { %13453 = vmatprep.subr.bf16.mxu0 %v13452_v58  ;;  %v13484_v58 = vpack.c.bf16 %v6343_v41, %v6339_v3  ;;  %v6791_v3 = vld [vmem:[#allocation4 + $0x248] sm:$0xff] }
 0xc46   :  { %v6795_v41 = vld [vmem:[#allocation4 + $0x268] sm:$0xff] }
 0xc48   :  { %13455 = vmatpush1.bf16.msra.mxu0 %v13454_v63  ;;  %v13486_v63 = vpack.c.bf16 %v6342_v34, %v6338_v8  ;;  %v6790_v8 = vld [vmem:[#allocation4 + $0x240] sm:$0xff] }
 0xc49   :  { %13457 = vmatprep.subr.bf16.mxu0 %v13456_v54  ;;  %v13488_v54 = vpack.c.bf16 %v6337_v46, %v6333_v10  ;;  %v6794_v34 = vld [vmem:[#allocation4 + $0x260] sm:$0xff]  ;;  %v6785_v10 = vld [vmem:[#allocation4 + $0x218] sm:$0xff] }
 0xc4a   :  { %v6789_v46 = vld [vmem:[#allocation4 + $0x238] sm:$0xff] }
 0xc4b   :  { %11812 = vmatmul.mubr.msk.f32.vlgmr.msra.gmra.mrb[32].mxu0 %vm184_vm0, %v5926_v4 }
 0xc4c   :  { %6028 = vmatprep.mubr.f32.mxu0 %v16936_v13  ;;  %13459 = vmatpush1.bf16.msra.mxu0 %v13458_v5  ;;  %v13492_v5 = vpack.c.bf16 %v6345_v17, %v6341_v15  ;;  %v6793_v15 = vld [vmem:[#allocation4 + $0x258] sm:$0xff] }
 0xc4d   :  { %13461 = vmatprep.subr.bf16.mxu0 %v13460_v21  ;;  %v6340_v21 = vld [vmem:[#allocation4 + $0x150] sm:$0xff]  ;;  %v6797_v17 = vld [vmem:[#allocation4 + $0x278] sm:$0xff] }
 0xc4f   :  { %11813 = vmatmul.mubr.msk.f32.gmra.mrb[34].mxu0 %vm184_vm0, %v5927_v12 }
 0xc50   :  { %6034 = vmatprep.mubr.f32.mxu0 %v16936_v13  ;;  %13463 = vmatpush1.bf16.msra.mxu0 %v13462_v11  ;;  %v13494_v11 = vpack.c.bf16 %v6344_v7, %v6340_v21  ;;  %v6792_v21 = vld [vmem:[#allocation4 + $0x250] sm:$0xff] }
 0xc51   :  { %13465 = vmatprep.subr.bf16.mxu0 %v13464_v39  ;;  %v13496_v39 = vpack.c.bf16 %v6561_v50, %v6557_v2  ;;  %v6796_v7 = vld [vmem:[#allocation4 + $0x270] sm:$0xff]  ;;  %v6779_v50 = vld [vmem:[#allocation2 + $0x2c] sm:$0xff] }
 0xc52   :  { %v13526_v2 = vpack.c.bf16 %v6796_v7, %v6792_v21 }
 0xc53   :  { %11814 = vmatmul.mubr.msk.f32.gmra.mrb[36].mxu0 %vm184_vm0, %v5928_v24 }
 0xc54   :  { %6040 = vmatprep.mubr.f32.mxu0 %v16936_v13 }
 0xc57   :  { %11815 = vmatmul.mubr.msk.f32.gmra.mrb[38].mxu0 %vm184_vm0, %v5929_v16 }
 0xc58   :  { %6111 = vmatprep.mubr.f32.mxu0 %v16936_v13 }
 0xc5b   :  { %11816 = vmatmul.mubr.msk.f32.vlgmr.msra.gmra.mrb[40].mxu0 %vm184_vm0, %v5926_v4  ;;  %v13490_v4 = vpack.c.bf16 %v6336_v14, %v6332_v48  ;;  %v6784_v48 = vld [vmem:[#allocation4 + $0x210] sm:$0xff] }
 0xc5c   :  { %6117 = vmatprep.mubr.f32.mxu0 %v16936_v13  ;;  %13467 = vmatpush1.bf16.msra.mxu0 %v13466_v35  ;;  %v13498_v35 = vpack.c.bf16 %v6560_v31, %v6556_v30  ;;  %v6788_v14 = vld [vmem:[#allocation4 + $0x230] sm:$0xff] }
 0xc5d   :  { %13469 = vmatprep.subr.bf16.mxu0 %v13468_v37  ;;  %v13500_v37 = vpack.c.bf16 %v6569_v33, %v6565_v18 }
 0xc5f   :  { %11817 = vmatmul.mubr.msk.f32.gmra.mrb[42].mxu0 %vm184_vm0, %v5927_v12  ;;  %v6327_v12 = vld [vmem:[#allocation2 + $0x2a] sm:$0xff] }
 0xc60   :  { %6123 = vmatprep.mubr.f32.mxu0 %v16936_v13  ;;  %13471 = vmatpush1.bf16.msra.mxu0 %v13470_v43  ;;  %v13502_v43 = vpack.c.bf16 %v6568_v20, %v6564_v38 }
 0xc61   :  { %13473 = vmatprep.subr.bf16.mxu0 %v13472_v22  ;;  %v13504_v22 = vpack.c.bf16 %v6563_v42, %v6559_v40 }
 0xc63   :  { %11818 = vmatmul.mubr.msk.f32.gmra.mrb[44].mxu0 %vm184_vm0, %v5928_v24  ;;  %v6328_v24 = vld [vmem:[#allocation2 + $0x32] sm:$0xff] }
 0xc64   :  { %6129 = vmatprep.mubr.f32.mxu0 %v16936_v13 }
 0xc67   :  { %11819 = vmatmul.mubr.msk.f32.gmra.mrb[46].mxu0 %vm184_vm0, %v5929_v16  ;;  %v6329_v16 = vld [vmem:[#allocation2 + $0x3a] sm:$0xf] }
 0xc68   :  { %6212 = vmatprep.mubr.f32.mxu0 %v16936_v13 }
 0xc6b   :  { %11820 = vmatmul.mubr.msk.f32.vlgmr.msra.gmra.mrb[32].mxu0 %vm184_vm0, %v5906_v57 }
 0xc6c   :  { %6218 = vmatprep.mubr.f32.mxu0 %v16936_v13  ;;  %13475 = vmatpush1.bf16.msra.mxu0 %v13474_v36  ;;  %v13506_v36 = vpack.c.bf16 %v6562_v47, %v6558_v44 }
 0xc6d   :  { %13477 = vmatprep.subr.bf16.mxu0 %v13476_v55  ;;  %v13508_v55 = vpack.c.bf16 %v6571_v53, %v6567_v52 }
 0xc6f   :  { %11821 = vmatmul.mubr.msk.f32.gmra.mrb[34].mxu0 %vm184_vm0, %v5907_v61 }
 0xc70   :  { %6224 = vmatprep.mubr.f32.mxu0 %v16936_v13  ;;  %13479 = vmatpush1.bf16.msra.mxu0 %v13478_v59  ;;  %v13510_v59 = vpack.c.bf16 %v6570_v23, %v6566_v56 }
 0xc71   :  { %13481 = vmatprep.subr.bf16.mxu0 %v13480_v60  ;;  %v13512_v60 = vpack.c.bf16 %v6787_v45, %v6783_v32 }
 0xc73   :  { %11822 = vmatmul.mubr.msk.f32.gmra.mrb[36].mxu0 %vm184_vm0, %v5908_v62 }
 0xc74   :  { %6230 = vmatprep.mubr.f32.mxu0 %v16936_v13 }
 0xc77   :  { %11823 = vmatmul.mubr.msk.f32.gmra.mrb[38].mxu0 %vm184_vm0, %v5909_v9 }
 0xc78   :  { %6301 = vmatprep.mubr.f32.mxu0 %v16936_v13 }
 0xc7b   :  { %11824 = vmatmul.mubr.msk.f32.vlgmr.msra.gmra.mrb[40].mxu0 %vm184_vm0, %v5906_v57  ;;  %v6552_v57 = vld [vmem:[#allocation2 + $0x23] sm:$0xff] }
 0xc7c   :  { %6307 = vmatprep.mubr.f32.mxu0 %v16936_v13  ;;  %13483 = vmatpush1.bf16.msra.mxu0 %v13482_v0  ;;  %v13514_v0 = vpack.c.bf16 %v6786_v51, %v6782_v1 }
 0xc7d   :  { %13485 = vmatprep.subr.bf16.mxu0 %v13484_v58  ;;  %v13516_v58 = vpack.c.bf16 %v6795_v41, %v6791_v3 }
 0xc7f   :  { %11825 = vmatmul.mubr.msk.f32.gmra.mrb[42].mxu0 %vm184_vm0, %v5907_v61  ;;  %v6553_v61 = vld [vmem:[#allocation2 + $0x2b] sm:$0xff] }
 0xc80   :  { %6313 = vmatprep.mubr.f32.mxu0 %v16936_v13  ;;  %13487 = vmatpush1.bf16.msra.mxu0 %v13486_v63  ;;  %v13518_v63 = vpack.c.bf16 %v6794_v34, %v6790_v8 }
 0xc81   :  { %13489 = vmatprep.subr.bf16.mxu0 %v13488_v54  ;;  %v13520_v54 = vpack.c.bf16 %v6789_v46, %v6785_v10 }
 0xc83   :  { %11826 = vmatmul.mubr.msk.f32.gmra.mrb[44].mxu0 %vm184_vm0, %v5908_v62  ;;  %v6554_v62 = vld [vmem:[#allocation2 + $0x33] sm:$0xff] }
 0xc84   :  { %6319 = vmatprep.mubr.f32.mxu0 %v16936_v13 }
 0xc87   :  { %11827 = vmatmul.mubr.msk.f32.gmra.mrb[46].mxu0 %vm184_vm0, %v5909_v9  ;;  %v6555_v9 = vld [vmem:[#allocation2 + $0x3b] sm:$0xf] }
 0xc88   :  { %6422 = vmatprep.mubr.f32.mxu0 %v16936_v13 }
 0xc8b   :  { %11828 = vmatmul.mubr.msk.f32.vlgmr.msra.gmra.mrb[32].mxu0 %vm184_vm0, %v6326_v6 }
 0xc8c   :  { %6428 = vmatprep.mubr.f32.mxu0 %v16936_v13  ;;  %13491 = vmatpush1.bf16.msra.mxu0 %v13490_v4  ;;  %v13522_v4 = vpack.c.bf16 %v6788_v14, %v6784_v48  ;;  %v7058_v14 = vld [vmem:[#allocation12] sm:$0xff] }
 0xc8d   :  { %13493 = vmatprep.subr.bf16.mxu0 %v13492_v5  ;;  %v13524_v5 = vpack.c.bf16 %v6797_v17, %v6793_v15 }
 0xc8f   :  { %11829 = vmatmul.mubr.msk.f32.gmra.mrb[34].mxu0 %vm184_vm0, %v6327_v12 }
 0xc90   :  { %6434 = vmatprep.mubr.f32.mxu0 %v16936_v13  ;;  %13495 = vmatpush1.bf16.msra.mxu0 %v13494_v11  ;;  %v6780_v11 = vld [vmem:[#allocation2 + $0x34] sm:$0xff] }
 0xc91   :  { %13497 = vmatprep.subr.bf16.mxu0 %v13496_v39  ;;  %v6781_v39 = vld [vmem:[#allocation2 + $0x3c] sm:$0xf] }
 0xc93   :  { %11830 = vmatmul.mubr.msk.f32.gmra.mrb[36].mxu0 %vm184_vm0, %v6328_v24 }
 0xc94   :  { %6440 = vmatprep.mubr.f32.mxu0 %v16936_v13 }
 0xc97   :  { %11831 = vmatmul.mubr.msk.f32.gmra.mrb[38].mxu0 %vm184_vm0, %v6329_v16 }
 0xc98   :  { %6511 = vmatprep.mubr.f32.mxu0 %v16936_v13 }
 0xc9b   :  { %11832 = vmatmul.mubr.msk.f32.vlgmr.msra.gmra.mrb[40].mxu0 %vm184_vm0, %v6326_v6  ;;  %v6778_v6 = vld [vmem:[#allocation2 + $0x24] sm:$0xff] }
 0xc9c   :  { %6517 = vmatprep.mubr.f32.mxu0 %v16936_v13  ;;  %13499 = vmatpush1.bf16.msra.mxu0 %v13498_v35 }
 0xc9d   :  { %13501 = vmatprep.subr.bf16.mxu0 %v13500_v37 }
 0xc9f   :  { %11833 = vmatmul.mubr.msk.f32.gmra.mrb[42].mxu0 %vm184_vm0, %v6327_v12  ;;  %v5144_v12 = vld [vmem:[#allocation21] sm:$0x1] }
 0xca0   :  { %6523 = vmatprep.mubr.f32.mxu0 %v16936_v13  ;;  %13503 = vmatpush1.bf16.msra.mxu0 %v13502_v43 }
 0xca1   :  { %13505 = vmatprep.subr.bf16.mxu0 %v13504_v22 }
 0xca3   :  { %11834 = vmatmul.mubr.msk.f32.gmra.mrb[44].mxu0 %vm184_vm0, %v6328_v24 }
 0xca4   :  { %6529 = vmatprep.mubr.f32.mxu0 %v16936_v13 }
 0xca7   :  { %11835 = vmatmul.mubr.msk.f32.gmra.mrb[46].mxu0 %vm184_vm0, %v6329_v16  ;;  %v7004_v16 = vld [vmem:[#allocation7] sm:$0xf] }
 0xca8   :  { %6648 = vmatprep.mubr.f32.mxu0 %v16936_v13  ;;  %v7009_v18 = vrot.slane %v7004_v16, %v15867_v25  ;;  %v7013_v35 = vrot.slane %v7004_v16, %v15871_v28  ;;  %v7017_v51 = vrot.slane %v7004_v16, %v15869_v26 }
 0xcab   :  { %11836 = vmatmul.mubr.msk.f32.vlgmr.msra.gmra.mrb[32].mxu0 %vm184_vm0, %v6552_v57 }
 0xcac   :  { %6654 = vmatprep.mubr.f32.mxu0 %v16936_v13  ;;  %13507 = vmatpush1.bf16.msra.mxu0 %v13506_v36 }
 0xcad   :  { %13509 = vmatprep.subr.bf16.mxu0 %v13508_v55 }
 0xcaf   :  { %11837 = vmatmul.mubr.msk.f32.gmra.mrb[34].mxu0 %vm184_vm0, %v6553_v61 }
 0xcb0   :  { %6660 = vmatprep.mubr.f32.mxu0 %v16936_v13  ;;  %13511 = vmatpush1.bf16.msra.mxu0 %v13510_v59 }
 0xcb1   :  { %13513 = vmatprep.subr.bf16.mxu0 %v13512_v60 }
 0xcb3   :  { %11838 = vmatmul.mubr.msk.f32.gmra.mrb[36].mxu0 %vm184_vm0, %v6554_v62 }
 0xcb4   :  { %6666 = vmatprep.mubr.f32.mxu0 %v16936_v13 }
 0xcb7   :  { %11839 = vmatmul.mubr.msk.f32.gmra.mrb[38].mxu0 %vm184_vm0, %v6555_v9 }
 0xcb8   :  { %6737 = vmatprep.mubr.f32.mxu0 %v16936_v13 }
 0xcbb   :  { %11840 = vmatmul.mubr.msk.f32.vlgmr.msra.gmra.mrb[40].mxu0 %vm184_vm0, %v6552_v57 }
 0xcbc   :  { %6743 = vmatprep.mubr.f32.mxu0 %v16936_v13  ;;  %13515 = vmatpush1.bf16.msra.mxu0 %v13514_v0  ;;  %v7021_v0 = vrot.slane %v7004_v16, %v15873_v29 }
 0xcbd   :  { %13517 = vmatprep.subr.bf16.mxu0 %v13516_v58 }
 0xcbf   :  { %11841 = vmatmul.mubr.msk.f32.gmra.mrb[42].mxu0 %vm184_vm0, %v6553_v61 }
 0xcc0   :  { %6749 = vmatprep.mubr.f32.mxu0 %v16936_v13  ;;  %13519 = vmatpush1.bf16.msra.mxu0 %v13518_v63 }
 0xcc1   :  { %13521 = vmatprep.subr.bf16.mxu0 %v13520_v54 }
 0xcc3   :  { %11842 = vmatmul.mubr.msk.f32.gmra.mrb[44].mxu0 %vm184_vm0, %v6554_v62 }
 0xcc4   :  { %6755 = vmatprep.mubr.f32.mxu0 %v16936_v13 }
 0xcc7   :  { %11843 = vmatmul.mubr.msk.f32.gmra.mrb[46].mxu0 %vm184_vm0, %v6555_v9 }
 0xcc8   :  { %6874 = vmatprep.mubr.f32.mxu0 %v16936_v13 }
 0xccb   :  { %11844 = vmatmul.mubr.msk.f32.vlgmr.msra.gmra.mrb[32].mxu0 %vm184_vm0, %v6778_v6 }
 0xccc   :  { %6880 = vmatprep.mubr.f32.mxu0 %v16936_v13  ;;  %13523 = vmatpush1.bf16.msra.mxu0 %v13522_v4 }
 0xccd   :  { %13525 = vmatprep.subr.bf16.mxu0 %v13524_v5 }
 0xccf   :  { %11845 = vmatmul.mubr.msk.f32.gmra.mrb[34].mxu0 %vm184_vm0, %v6779_v50 }
 0xcd0   :  { %6886 = vmatprep.mubr.f32.mxu0 %v16936_v13  ;;  %13527 = vmatpush1.bf16.msra.mxu0 %v13526_v2 }
 0xcd3   :  { %11846 = vmatmul.mubr.msk.f32.gmra.mrb[36].mxu0 %vm184_vm0, %v6780_v11 }
 0xcd4   :  { %6892 = vmatprep.mubr.f32.mxu0 %v16936_v13 }
 0xcd7   :  { %11847 = vmatmul.mubr.msk.f32.gmra.mrb[38].mxu0 %vm184_vm0, %v6781_v39 }
 0xcd8   :  { %6963 = vmatprep.mubr.f32.mxu0 %v16936_v13 }
 0xcdb   :  { %11848 = vmatmul.mubr.msk.f32.vlgmr.msra.gmra.mrb[40].mxu0 %vm184_vm0, %v6778_v6 }
 0xcdc   :  { %6969 = vmatprep.mubr.f32.mxu0 %v16936_v13 }
 0xcdf   :  { %11849 = vmatmul.mubr.msk.f32.gmra.mrb[42].mxu0 %vm184_vm0, %v6779_v50  ;;  %v7059_v50 = vld [vmem:[#allocation12 + $0x8] sm:$0x3f] }
 0xce0   :  { %6975 = vmatprep.mubr.f32.mxu0 %v16936_v13 }
 0xce3   :  { %11850 = vmatmul.mubr.msk.f32.gmra.mrb[44].mxu0 %vm184_vm0, %v6780_v11 }
 0xce4   :  { %6981 = vmatprep.mubr.f32.mxu0 %v16936_v13 }
 0xce7   :  { %11851 = vmatmul.mubr.msk.f32.gmra.mrb[46].mxu0 %vm184_vm0, %v6781_v39 }
 0xd16   :  { %v5873_v24 = vpop.f32.mrb[30].mxu0 }
 0xd17   :  { %v14822_v30 = vadd.f32 %v5873_v24, %v5144_v12  ;;  %v5875_v31 = vpop.f32.mrb[31].mxu0 }
 0xd19   :  { %5879 = vst.msk [vmem:[#allocation22] sm:$0x1] %vm5878_vm1, %v14822_v30 }
 0xd9e   :  { %v6876_v33 = vpop.f32.mrb[32].mxu0 }
 0xd9f   :  { %v6878_v37 = vpop.f32.mrb[33].mxu0  ;;  %v7026_v38 = vadd.f32 %v7009_v18, %v6876_v33 }
 0xda0   :  { %v7027_v20 = vadd.f32 %v7013_v35, %v6878_v37 }
 0xda1   :  { %v7042_v44 = vmax.f32 %v7026_v38, 0.0 }
 0xda2   :  { %v6882_v40 = vpop.f32.mrb[34].mxu0  ;;  %v7043_v52 = vmax.f32 %v7027_v20, 0.0 }
 0xda3   :  { %v7030_v42 = vadd.f32 %v7009_v18, %v6882_v40  ;;  %v6884_v43 = vpop.f32.mrb[35].mxu0  ;;  %v7232_v40 = vld [vmem:[#allocation13] sm:$0xff] }
 0xda4   :  { %v7031_v22 = vadd.f32 %v7013_v35, %v6884_v43  ;;  %v7449_v43 = vld [vmem:[#allocation15 + $0x8] sm:$0xff] }
 0xda5   :  { %v7046_v47 = vmax.f32 %v7030_v42, 0.0  ;;  %v7233_v42 = vld [vmem:[#allocation13 + $0x8] sm:$0x3f] }
 0xda6   :  { %v7047_v53 = vmax.f32 %v7031_v22, 0.0  ;;  %v6888_v36 = vpop.f32.mrb[36].mxu0  ;;  %v7451_v22 = vld [vmem:[#allocation15 + $0x18] sm:$0xff] }
 0xda7   :  { %v13530_v55 = vpack.c.bf16 %v7046_v47, %v7042_v44  ;;  %v6890_v56 = vpop.f32.mrb[37].mxu0  ;;  %v7034_v57 = vadd.f32 %v7009_v18, %v6888_v36  ;;  %v7448_v44 = vld [vmem:[#allocation15] sm:$0xff]  ;;  %v13568_v47 = vpack.c.bf16 %v7451_v22, %v7449_v43  ;;  %v7455_v36 = vld [vmem:[#allocation15 + $0x38] sm:$0xff]  ;;  %v7486_v43 = vld [vmem:[#allocation15 + $0x130] sm:$0xff] }
 0xda8   :  { %v13528_v23 = vpack.c.bf16 %v7047_v53, %v7043_v52  ;;  %v7035_v32 = vadd.f32 %v7013_v35, %v6890_v56  ;;  %v7450_v52 = vld [vmem:[#allocation15 + $0x10] sm:$0xff]  ;;  %v7453_v53 = vld [vmem:[#allocation15 + $0x28] sm:$0xff] }
 0xda9   :  { %v7050_v62 = vmax.f32 %v7034_v57, 0.0  ;;  %v13572_v56 = vpack.c.bf16 %v7455_v36, %v7453_v53  ;;  %v7457_v57 = vld [vmem:[#allocation15 + $0x48] sm:$0xff]  ;;  %v7488_v53 = vld [vmem:[#allocation15 + $0x140] sm:$0xff]  ;;  %v7490_v36 = vld [vmem:[#allocation15 + $0x150] sm:$0xff] }
 0xdaa   :  { %v6894_v45 = vpop.f32.mrb[38].mxu0  ;;  %13529 = vmatprep.subr.bf16.mxu1 %v13528_v23  ;;  %v7051_v9 = vmax.f32 %v7035_v32, 0.0  ;;  %v7459_v32 = vld [vmem:[#allocation15 + $0x58] sm:$0xff]  ;;  %v7489_v22 = vld [vmem:[#allocation15 + $0x148] sm:$0xff] }
 0xdab   :  { %v7038_v59 = vadd.f32 %v7009_v18, %v6894_v45  ;;  %v6896_v60 = vpop.f32.mrb[39].mxu0  ;;  %13531 = vmatpush1.bf16.msra.mxu1 %v13530_v55 }
 0xdac   :  { %v7039_v61 = vadd.f32 %v7013_v35, %v6896_v60  ;;  %v7458_v60 = vld [vmem:[#allocation15 + $0x50] sm:$0xff] }
 0xdad   :  { %v7054_v1 = vmax.f32 %v7038_v59, 0.0  ;;  %v7456_v59 = vld [vmem:[#allocation15 + $0x40] sm:$0xff] }
 0xdae   :  { %v7055_v3 = vmax.f32 %v7039_v61, 0.0  ;;  %v6965_v41 = vpop.f32.mrb[40].mxu0  ;;  %v7461_v61 = vld [vmem:[#allocation15 + $0x68] sm:$0xff] }
 0xdaf   :  { %v13535_v58 = vpack.c.bf16 %v7054_v1, %v7050_v62  ;;  %v6967_v8 = vpop.f32.mrb[41].mxu0  ;;  %v7028_v10 = vadd.f32 %v7017_v51, %v6965_v41  ;;  %v7463_v62 = vld [vmem:[#allocation15 + $0x78] sm:$0xff]  ;;  %v13578_v1 = vpack.c.bf16 %v7458_v60, %v7456_v59  ;;  %v7465_v41 = vld [vmem:[#allocation15 + $0x88] sm:$0xff] }
 0xdb0   :  { %v13532_v34 = vpack.c.bf16 %v7055_v3, %v7051_v9  ;;  %v7029_v46 = vadd.f32 %v7021_v0, %v6967_v8  ;;  %v7460_v9 = vld [vmem:[#allocation15 + $0x60] sm:$0xff]  ;;  %v7462_v3 = vld [vmem:[#allocation15 + $0x70] sm:$0xff] }
 0xdb1   :  { %v7044_v17 = vmax.f32 %v7028_v10, 0.0  ;;  %v7466_v10 = vld [vmem:[#allocation15 + $0x90] sm:$0xff] }
 0xdb2   :  { %v6971_v63 = vpop.f32.mrb[42].mxu0  ;;  %13534 = vmatprep.subr.msk.bf16.mxu1 %vm15881_vm5, %v13532_v34  ;;  %v7045_v5 = vmax.f32 %v7029_v46, 0.0  ;;  %v7469_v46 = vld [vmem:[#allocation15 + $0xa8] sm:$0xff] }
 0xdb3   :  { %v7032_v54 = vadd.f32 %v7017_v51, %v6971_v63  ;;  %v6973_v48 = vpop.f32.mrb[43].mxu0  ;;  %13537 = vmatpush1.bf16.msk.msra.mxu1 %vm15881_vm5, %v13535_v58  ;;  %v7471_v63 = vld [vmem:[#allocation15 + $0xb8] sm:$0xff] }
 0xdb4   :  { %v7033_v15 = vadd.f32 %v7021_v0, %v6973_v48  ;;  %v13588_v48 = vpack.c.bf16 %v7471_v63, %v7469_v46  ;;  %v7500_v46 = vld [vmem:[#allocation15 + $0x1a0] sm:$0xff]  ;;  %v7502_v63 = vld [vmem:[#allocation15 + $0x1b0] sm:$0xff] }
 0xdb5   :  { %v7048_v4 = vmax.f32 %v7032_v54, 0.0 }
 0xdb6   :  { %v7049_v21 = vmax.f32 %v7033_v15, 0.0  ;;  %v6977_v7 = vpop.f32.mrb[44].mxu0  ;;  %11854 = vmatmul.mubr.msk.f32.vlgmr.msra.gmra.mrb[28].mxu1 %vm1396_vm6, %v7058_v14  ;;  %v7470_v15 = vld [vmem:[#allocation15 + $0xb0] sm:$0xff] }
 0xdb7   :  { %v13540_v6 = vpack.c.bf16 %v7048_v4, %v7044_v17  ;;  %v6979_v2 = vpop.f32.mrb[45].mxu0  ;;  %7148 = vmatprep.mubr.f32.mxu1 %v16936_v13  ;;  %v7036_v39 = vadd.f32 %v7017_v51, %v6977_v7  ;;  %v7473_v17 = vld [vmem:[#allocation15 + $0xc8] sm:$0xff]  ;;  %v7475_v4 = vld [vmem:[#allocation15 + $0xd8] sm:$0xff]  ;;  %v7472_v7 = vld [vmem:[#allocation15 + $0xc0] sm:$0xff] }
 0xdb8   :  { %v13538_v11 = vpack.c.bf16 %v7049_v21, %v7045_v5  ;;  %v7037_v12 = vadd.f32 %v7021_v0, %v6979_v2  ;;  %v13592_v21 = vpack.c.bf16 %v7475_v4, %v7473_v17  ;;  %v7477_v2 = vld [vmem:[#allocation15 + $0xe8] sm:$0xff]  ;;  %v7506_v17 = vld [vmem:[#allocation15 + $0x1d0] sm:$0xff] }
 0xdb9   :  { %v7052_v18 = vmax.f32 %v7036_v39, 0.0 }
 0xdba   :  { %v6983_v24 = vpop.f32.mrb[46].mxu0  ;;  %13539 = vmatprep.subr.bf16.mxu1 %v13538_v11  ;;  %11855 = vmatmul.mubr.msk.f32.gmra.mrb[30].mxu1 %vm1396_vm6, %v7059_v50  ;;  %v7053_v35 = vmax.f32 %v7037_v12, 0.0  ;;  %v7476_v12 = vld [vmem:[#allocation15 + $0xe0] sm:$0xff] }
 0xdbb   :  { %v7040_v30 = vadd.f32 %v7017_v51, %v6983_v24  ;;  %v6985_v31 = vpop.f32.mrb[47].mxu0  ;;  %13541 = vmatpush1.bf16.msra.mxu1 %v13540_v6  ;;  %7219 = vmatprep.mubr.f32.mxu1 %v16936_v13  ;;  %v13580_v51 = vpack.c.bf16 %v7463_v62, %v7461_v61  ;;  %v7478_v24 = vld [vmem:[#allocation15 + $0xf0] sm:$0xff] }
 0xdbc   :  { %v7041_v16 = vadd.f32 %v7021_v0, %v6985_v31  ;;  %v7467_v0 = vld [vmem:[#allocation15 + $0x98] sm:$0xff] }
 0xdbd   :  { %v7056_v33 = vmax.f32 %v7040_v30, 0.0  ;;  %v13584_v8 = vpack.c.bf16 %v7467_v0, %v7465_v41  ;;  %v7481_v30 = vld [vmem:[#allocation15 + $0x108] sm:$0xff]  ;;  %v7483_v31 = vld [vmem:[#allocation15 + $0x118] sm:$0xff] }
 0xdbe   :  { %v7057_v37 = vmax.f32 %v7041_v16, 0.0  ;;  %v13598_v16 = vpack.c.bf16 %v7478_v24, %v7476_v12  ;;  %v7501_v41 = vld [vmem:[#allocation15 + $0x1a8] sm:$0xff]  ;;  %v7508_v24 = vld [vmem:[#allocation15 + $0x1e0] sm:$0xff] }
 0xdbf   :  { %v13545_v38 = vpack.c.bf16 %v7056_v33, %v7052_v18  ;;  %v13600_v18 = vpack.c.bf16 %v7483_v31, %v7481_v30  ;;  %v7480_v33 = vld [vmem:[#allocation15 + $0x100] sm:$0xff]  ;;  %v7510_v30 = vld [vmem:[#allocation15 + $0x1f0] sm:$0xff] }
 0xdc0   :  { %v13542_v20 = vpack.c.bf16 %v7057_v37, %v7053_v35  ;;  %v7482_v35 = vld [vmem:[#allocation15 + $0x110] sm:$0xff]  ;;  %v7485_v37 = vld [vmem:[#allocation15 + $0x128] sm:$0xff] }
 0xdc2   :  { %13544 = vmatprep.subr.msk.bf16.mxu1 %vm15881_vm5, %v13542_v20 }
 0xdc3   :  { %13547 = vmatpush1.bf16.msk.msra.mxu1 %vm15881_vm5, %v13545_v38 }
 0xdc4   :  { %13549 = vmatprep.subr.bf16.mxu1 %v13528_v23  ;;  %v7452_v23 = vld [vmem:[#allocation15 + $0x20] sm:$0xff] }
 0xdc5   :  { %v13574_v45 = vpack.c.bf16 %v7454_v27, %v7452_v23  ;;  %v13610_v23 = vpack.c.bf16 %v7490_v36, %v7488_v53 }
 0xdc6   :  { %11858 = vmatmul.mubr.msk.f32.vlgmr.msra.gmra.mrb[32].mxu1 %vm1396_vm6, %v7058_v14  ;;  %v7468_v14 = vld [vmem:[#allocation15 + $0xa0] sm:$0xff] }
 0xdc7   :  { %13551 = vmatpush1.bf16.msra.mxu1 %v13530_v55  ;;  %7225 = vmatprep.mubr.f32.mxu1 %v16936_v13  ;;  %v13570_v55 = vpack.c.bf16 %v7450_v52, %v7448_v44  ;;  %v13590_v5 = vpack.c.bf16 %v7470_v15, %v7468_v14  ;;  %v7491_v44 = vld [vmem:[#allocation15 + $0x158] sm:$0xff]  ;;  %v7504_v15 = vld [vmem:[#allocation15 + $0x1c0] sm:$0xff] }
 0xdc8   :  { %13554 = vmatprep.subr.msk.bf16.mxu1 %vm15881_vm5, %v13532_v34  ;;  %v7464_v34 = vld [vmem:[#allocation15 + $0x80] sm:$0xff]  ;;  %v13608_v52 = vpack.c.bf16 %v7491_v44, %v7489_v22  ;;  %v7507_v14 = vld [vmem:[#allocation15 + $0x1d8] sm:$0xff] }
 0xdc9   :  { %v13586_v54 = vpack.c.bf16 %v7466_v10, %v7464_v34 }
 0xdca   :  { %11859 = vmatmul.mubr.msk.f32.gmra.mrb[34].mxu1 %vm1396_vm6, %v7059_v50  ;;  %v7479_v50 = vld [vmem:[#allocation15 + $0xf8] sm:$0xff] }
 0xdcb   :  { %13557 = vmatpush1.bf16.msk.msra.mxu1 %vm15881_vm5, %v13535_v58  ;;  %7304 = vmatprep.mubr.f32.mxu1 %v16936_v13  ;;  %v13582_v58 = vpack.c.bf16 %v7462_v3, %v7460_v9  ;;  %v13596_v39 = vpack.c.bf16 %v7479_v50, %v7477_v2  ;;  %v7496_v9 = vld [vmem:[#allocation15 + $0x180] sm:$0xff]  ;;  %v7498_v3 = vld [vmem:[#allocation15 + $0x190] sm:$0xff]  ;;  %v7509_v2 = vld [vmem:[#allocation15 + $0x1e8] sm:$0xff] }
 0xdcc   :  { %13559 = vmatprep.subr.bf16.mxu1 %v13538_v11  ;;  %v13618_v0 = vpack.c.bf16 %v7498_v3, %v7496_v9  ;;  %v7511_v50 = vld [vmem:[#allocation15 + $0x1f8] sm:$0xff] }
 0xdcd   :  { %v13628_v12 = vpack.c.bf16 %v7511_v50, %v7509_v2  ;;  %v7525_v2 = vld [vmem:[#allocation15 + $0x268] sm:$0xff]  ;;  %v7527_v50 = vld [vmem:[#allocation15 + $0x278] sm:$0xff] }
 0xdce   :  { %11862 = vmatmul.mubr.msk.f32.vlgmr.msra.gmra.mrb[36].mxu1 %vm1396_vm6, %v7232_v40 }
 0xdcf   :  { %13561 = vmatpush1.bf16.msra.mxu1 %v13540_v6  ;;  %7310 = vmatprep.mubr.f32.mxu1 %v16936_v13  ;;  %v7474_v6 = vld [vmem:[#allocation15 + $0xd0] sm:$0xff] }
 0xdd0   :  { %13564 = vmatprep.subr.msk.bf16.mxu1 %vm15881_vm5, %v13542_v20  ;;  %v13594_v11 = vpack.c.bf16 %v7474_v6, %v7472_v7  ;;  %v13602_v20 = vpack.c.bf16 %v7482_v35, %v7480_v33  ;;  %v7513_v33 = vld [vmem:[#allocation15 + $0x208] sm:$0xff]  ;;  %v7515_v35 = vld [vmem:[#allocation15 + $0x218] sm:$0xff] }
 0xdd2   :  { %11863 = vmatmul.mubr.msk.f32.gmra.mrb[38].mxu1 %vm1396_vm6, %v7233_v42 }
 0xdd3   :  { %13567 = vmatpush1.bf16.msk.msra.mxu1 %vm15881_vm5, %v13545_v38  ;;  %7381 = vmatprep.mubr.f32.mxu1 %v16936_v13  ;;  %v7487_v38 = vld [vmem:[#allocation15 + $0x138] sm:$0xff]  ;;  %vm18110_vm5 = vmmov %vm18109_vm2 }
 0xdd4   :  { %13569 = vmatprep.subr.bf16.mxu1 %v13568_v47 }
 0xdd6   :  { %11866 = vmatmul.mubr.msk.f32.vlgmr.msra.gmra.mrb[40].mxu1 %vm1396_vm6, %v7232_v40  ;;  %v13604_v40 = vpack.c.bf16 %v7487_v38, %v7485_v37 }
 0xdd7   :  { %7387 = vmatprep.mubr.f32.mxu1 %v16936_v13  ;;  %13571 = vmatpush1.bf16.msra.mxu1 %v13570_v55  ;;  %v13576_v13 = vpack.c.bf16 %v7459_v32, %v7457_v57  ;;  %v7493_v55 = vld [vmem:[#allocation15 + $0x168] sm:$0xff]  ;;  %v7492_v57 = vld [vmem:[#allocation15 + $0x160] sm:$0xff]  ;;  %v7494_v32 = vld [vmem:[#allocation15 + $0x170] sm:$0xff] }
 0xdd8   :  { %13573 = vmatprep.subr.bf16.mxu1 %v13572_v56  ;;  %v7495_v56 = vld [vmem:[#allocation15 + $0x178] sm:$0xff]  ;;  %v13614_v59 = vpack.c.bf16 %v7494_v32, %v7492_v57 }
 0xdd9   :  { %v13612_v27 = vpack.c.bf16 %v7495_v56, %v7493_v55 }
 0xdda   :  { %11867 = vmatmul.mubr.msk.f32.gmra.mrb[42].mxu1 %vm1396_vm6, %v7233_v42  ;;  %v7484_v42 = vld [vmem:[#allocation15 + $0x120] sm:$0xff]  ;;  %vm18111_vm6 = vmmov %vm18109_vm2 }
 0xddb   :  { %13575 = vmatpush1.bf16.msra.mxu1 %v13574_v45  ;;  %v13606_v47 = vpack.c.bf16 %v7486_v43, %v7484_v42  ;;  %v7497_v45 = vld [vmem:[#allocation15 + $0x188] sm:$0xff] }
 0xddc   :  { %13577 = vmatprep.subr.bf16.mxu1 %v13576_v13  ;;  %v7499_v13 = vld [vmem:[#allocation15 + $0x198] sm:$0xff] }
 0xddd   :  { %v13616_v60 = vpack.c.bf16 %v7499_v13, %v7497_v45  ;;  %v7512_v45 = vld [vmem:[#allocation15 + $0x200] sm:$0xff]  ;;  %v7514_v13 = vld [vmem:[#allocation15 + $0x210] sm:$0xff] }
 0xdde   :  { %v13634_v3 = vpack.c.bf16 %v7514_v13, %v7512_v45  ;;  %v7543_v45 = vld [vmem:[#allocation15 + $0x2f8] sm:$0xff] }
 0xddf   :  { %13579 = vmatpush1.bf16.msra.mxu1 %v13578_v1 }
 0xde0   :  { %13581 = vmatprep.subr.bf16.mxu1 %v13580_v51 }
 0xde3   :  { %13583 = vmatpush1.bf16.msra.mxu1 %v13582_v58  ;;  %v7503_v58 = vld [vmem:[#allocation15 + $0x1b8] sm:$0xff] }
 0xde4   :  { %13585 = vmatprep.subr.bf16.mxu1 %v13584_v8  ;;  %v13620_v8 = vpack.c.bf16 %v7503_v58, %v7501_v41 }
 0xde7   :  { %13587 = vmatpush1.bf16.msra.mxu1 %v13586_v54  ;;  %v7505_v54 = vld [vmem:[#allocation15 + $0x1c8] sm:$0xff] }
 0xde8   :  { %13589 = vmatprep.subr.bf16.mxu1 %v13588_v48  ;;  %v13622_v48 = vpack.c.bf16 %v7502_v63, %v7500_v46  ;;  %v13624_v4 = vpack.c.bf16 %v7507_v14, %v7505_v54  ;;  %v7521_v46 = vld [vmem:[#allocation15 + $0x248] sm:$0xff]  ;;  %v7523_v63 = vld [vmem:[#allocation15 + $0x258] sm:$0xff] }
 0xdeb   :  { %13591 = vmatpush1.bf16.msra.mxu1 %v13590_v5 }
 0xdec   :  { %13593 = vmatprep.subr.bf16.mxu1 %v13592_v21  ;;  %v13626_v21 = vpack.c.bf16 %v7506_v17, %v7504_v15 }
 0xdef   :  { %13595 = vmatpush1.bf16.msra.mxu1 %v13594_v11 }
 0xdf0   :  { %13597 = vmatprep.subr.bf16.mxu1 %v13596_v39 }
 0xdf3   :  { %13599 = vmatpush1.bf16.msra.mxu1 %v13598_v16  ;;  %v13630_v16 = vpack.c.bf16 %v7510_v30, %v7508_v24  ;;  %v7526_v24 = vld [vmem:[#allocation15 + $0x270] sm:$0xff]  ;;  %v7529_v30 = vld [vmem:[#allocation15 + $0x288] sm:$0xff] }
 0xdf4   :  { %13601 = vmatprep.subr.bf16.mxu1 %v13600_v18 }
 0xdf7   :  { %13603 = vmatpush1.bf16.msra.mxu1 %v13602_v20  ;;  %v13632_v20 = vpack.c.bf16 %v7515_v35, %v7513_v33  ;;  %v7528_v33 = vld [vmem:[#allocation15 + $0x280] sm:$0xff]  ;;  %v7530_v35 = vld [vmem:[#allocation15 + $0x290] sm:$0xff] }
 0xdf8   :  { %13605 = vmatprep.subr.bf16.mxu1 %v13604_v40 }
 0xdfb   :  { %13607 = vmatpush1.bf16.msra.mxu1 %v13606_v47 }
 0xdfc   :  { %13609 = vmatprep.subr.bf16.mxu1 %v13608_v52 }
 0xdff   :  { %13611 = vmatpush1.bf16.msra.mxu1 %v13610_v23 }
 0xe00   :  { %13613 = vmatprep.subr.bf16.mxu1 %v13612_v27 }
 0xe03   :  { %13615 = vmatpush1.bf16.msra.mxu1 %v13614_v59  ;;  %v7517_v59 = vld [vmem:[#allocation15 + $0x228] sm:$0xff] }
 0xe04   :  { %13617 = vmatprep.subr.bf16.mxu1 %v13616_v60  ;;  %v7519_v60 = vld [vmem:[#allocation15 + $0x238] sm:$0xff] }
 0xe05   :  { %v13636_v58 = vpack.c.bf16 %v7519_v60, %v7517_v59  ;;  %v7540_v60 = vld [vmem:[#allocation15 + $0x2e0] sm:$0xff] }
 0xe07   :  { %13619 = vmatpush1.bf16.msra.mxu1 %v13618_v0 }
 0xe08   :  { %13621 = vmatprep.subr.bf16.mxu1 %v13620_v8  ;;  %v7516_v8 = vld [vmem:[#allocation15 + $0x220] sm:$0xff] }
 0xe0b   :  { %13623 = vmatpush1.bf16.msra.mxu1 %v13622_v48 }
 0xe0c   :  { %13625 = vmatprep.subr.bf16.mxu1 %v13624_v4 }
 0xe0f   :  { %13627 = vmatpush1.bf16.msra.mxu1 %v13626_v21  ;;  %v13640_v21 = vpack.c.bf16 %v7523_v63, %v7521_v46  ;;  %v7548_v63 = vld [vmem:[#allocation15 + $0x320] sm:$0xff] }
 0xe10   :  { %13629 = vmatprep.subr.bf16.mxu1 %v13628_v12  ;;  %v7524_v12 = vld [vmem:[#allocation15 + $0x260] sm:$0xff] }
 0xe13   :  { %13631 = vmatpush1.bf16.msra.mxu1 %v13630_v16  ;;  %v13646_v16 = vpack.c.bf16 %v7526_v24, %v7524_v12  ;;  %v17100_v24 = vld [vmem:[#allocation3 + $0x48] sm:$0xff] }
 0xe14   :  { %13633 = vmatprep.subr.bf16.mxu1 %v13632_v20  ;;  %v13650_v20 = vpack.c.bf16 %v7530_v35, %v7528_v33  ;;  %v7918_v33 = vld [vmem:[#allocation9 + $0x508] sm:$0xff] }
 0xe15   :  { %v7922_v35 = vld [vmem:[#allocation9 + $0x528] sm:$0xff] }
 0xe89   :  { %v7144_v61 = vpop.f32.mrb[28].mxu1 }
 0xe8a   :  { %v7146_v62 = vpop.f32.mrb[29].mxu1 }
 0xe8d   :  { %v7150_v1 = vpop.f32.mrb[30].mxu1 }
 0xe8e   :  { %v7152_v51 = vpop.f32.mrb[31].mxu1 }
 0xe99   :  { %v7221_v34 = vpop.f32.mrb[32].mxu1 }
 0xe9a   :  { %v7223_v10 = vpop.f32.mrb[33].mxu1 }
 0xe9d   :  { %v7227_v5 = vpop.f32.mrb[34].mxu1 }
 0xe9e   :  { %v7229_v7 = vpop.f32.mrb[35].mxu1 }
 0xea1   :  { %v7306_v6 = vpop.f32.mrb[36].mxu1 }
 0xea2   :  { %v7394_v11 = vmax.f32 %v7144_v61, %v7306_v6  ;;  %v7308_v39 = vpop.f32.mrb[37].mxu1  ;;  %v7522_v6 = vld [vmem:[#allocation15 + $0x250] sm:$0xff] }
 0xea3   :  { %v7395_v31 = vmax.f32 %v7146_v62, %v7308_v39  ;;  %v13644_v39 = vpack.c.bf16 %v7527_v50, %v7525_v2 }
 0xea4   :  { %7410 = vrot.lane.b32.xlu1 %v7394_v11, %s15497_s6 }
 0xea5   :  { %v7312_v18 = vpop.f32.mrb[38].mxu1 }
 0xea6   :  { %v7398_v37 = vmax.f32 %v7150_v1, %v7312_v18  ;;  %v7314_v38 = vpop.f32.mrb[39].mxu1 }
 0xea7   :  { %v7399_v40 = vmax.f32 %v7152_v51, %v7314_v38  ;;  %v7535_v38 = vld [vmem:[#allocation15 + $0x2b8] sm:$0xff] }
 0xea8   :  { %7418 = vrot.lane.b32.xlu1 %v7398_v37, %s15497_s6 }
 0xea9   :  { %v7383_v42 = vpop.f32.mrb[40].mxu1 }
 0xeaa   :  { %v17056_v43 = vmax.f32 %v7221_v34, %v7383_v42  ;;  %v7385_v22 = vpop.f32.mrb[41].mxu1  ;;  %v7518_v34 = vld [vmem:[#allocation15 + $0x230] sm:$0xff]  ;;  %v7532_v42 = vld [vmem:[#allocation15 + $0x2a0] sm:$0xff] }
 0xeab   :  { %v7397_v44 = vmax.f32 %v7223_v10, %v7385_v22  ;;  %v13638_v4 = vpack.c.bf16 %v7518_v34, %v7516_v8  ;;  %v7534_v22 = vld [vmem:[#allocation15 + $0x2b0] sm:$0xff]  ;;  %v7549_v8 = vld [vmem:[#allocation15 + $0x328] sm:$0xff]  ;;  %v7551_v34 = vld [vmem:[#allocation15 + $0x338] sm:$0xff] }
 0xeac   :  { %v15172_v47 = vpack.i.bf16 %v17056_v43, %v7395_v31  ;;  %v13668_v46 = vpack.c.bf16 %v7551_v34, %v7549_v8  ;;  %v7949_v34 = vld [vmem:[#allocation9 + $0x600] sm:$0xff] }
 0xead   :  { %v7389_v52 = vpop.f32.mrb[42].mxu1 }
 0xeae   :  { %v17059_v53 = vmax.f32 %v7227_v5, %v7389_v52  ;;  %15173 = vrot.lane.b32.xlu0 %v15172_v47, %s15497_s6  ;;  %v7391_v36 = vpop.f32.mrb[43].mxu1  ;;  %v7539_v47 = vld [vmem:[#allocation15 + $0x2d8] sm:$0xff]  ;;  %v13654_v52 = vpack.c.bf16 %v7534_v22, %v7532_v42  ;;  %v7930_v42 = vld [vmem:[#allocation9 + $0x568] sm:$0xff] }
 0xeaf   :  { %v17062_v55 = vmax.f32 %v7229_v7, %v7391_v36  ;;  %v7520_v7 = vld [vmem:[#allocation15 + $0x240] sm:$0xff] }
 0xeb0   :  { %v15177_v56 = vpack.i.bf16 %v17059_v53, %v7399_v40 }
 0xeb1   :  { %7424 = vrot.lane.b32.xlu1 %v17062_v55, %s15497_s6 }
 0xeb2   :  { %15178 = vrot.lane.b32.xlu0 %v15177_v56, %s15497_s6  ;;  %v7536_v56 = vld [vmem:[#allocation15 + $0x2c0] sm:$0xff] }
 0xeb6   :  { %7416 = vrot.lane.b32.xlu0 %v7397_v44, %s15497_s6 }
 0xf16   :  { %v7411_v23 = vpop.permute.xlu1 %7410 }
 0xf1a   :  { %v7419_v10 = vpop.permute.xlu1 %7418 }
 0xf20   :  { %v17069_v27 = vpop.permute.xlu0 %15173 }
 0xf21   :  { %v15176_v57 = vunpack.i.h.bf16 %v17069_v27  ;;  %v15175_v32 = vunpack.i.l.bf16 %v17069_v27  ;;  %v7902_v27 = vld [vmem:[#allocation9 + $0x488] sm:$0xff] }
 0xf23   :  { %v7426_v61 = vsel %vm1764_vm7, %v7411_v23, %v15175_v32  ;;  %v7427_v62 = vsel %vm1764_vm7, %v15175_v32, %v15176_v57  ;;  %v7538_v23 = vld [vmem:[#allocation15 + $0x2d0] sm:$0xff]  ;;  %v7541_v32 = vld [vmem:[#allocation15 + $0x2e8] sm:$0xff]  ;;  %v7425_v2 = vpop.permute.xlu1 %7424 }
 0xf24   :  { %v7440_v1 = vmax.f32 %v7394_v11, %v7426_v61  ;;  %v17077_v51 = vpop.permute.xlu0 %15178  ;;  %v7441_v9 = vmax.f32 %v7395_v31, %v7427_v62  ;;  %v13642_v11 = vpack.c.bf16 %v7522_v6, %v7520_v7  ;;  %v7531_v31 = vld [vmem:[#allocation15 + $0x298] sm:$0xff]  ;;  %v13658_v13 = vpack.c.bf16 %v7538_v23, %v7536_v56  ;;  %v7542_v61 = vld [vmem:[#allocation15 + $0x2f0] sm:$0xff]  ;;  %v7545_v62 = vld [vmem:[#allocation15 + $0x308] sm:$0xff] }
 0xf25   :  { %v15181_v41 = vunpack.i.h.bf16 %v17077_v51  ;;  %v15180_v0 = vunpack.i.l.bf16 %v17077_v51  ;;  %v13648_v18 = vpack.c.bf16 %v7531_v31, %v7529_v30  ;;  %v13660_v59 = vpack.c.bf16 %v7543_v45, %v7541_v32  ;;  %v7905_v30 = vld [vmem:[#allocation9 + $0x4a0] sm:$0xff]  ;;  %v7914_v31 = vld [vmem:[#allocation9 + $0x4e8] sm:$0xff] }
 0xf26   :  { %7626 = vmatprep.mubr.f32.mxu1 %v7441_v9  ;;  %v13662_v9 = vpack.c.bf16 %v7542_v61, %v7540_v60  ;;  %v7938_v56 = vld [vmem:[#allocation9 + $0x5a8] sm:$0xff]  ;;  %v7933_v45 = vld [vmem:[#allocation9 + $0x580] sm:$0xff] }
 0xf27   :  { %7627 = vmatmul.mubr.f32.vlgmr.msra.gmra.mrb[44].mxu1 %v7440_v1  ;;  %v7430_v54 = vsel %vm1764_vm7, %v15180_v0, %v15181_v41  ;;  %v7429_v48 = vsel %vm1764_vm7, %v7419_v10, %v15180_v0  ;;  %v7547_v1 = vld [vmem:[#allocation15 + $0x318] sm:$0xff]  ;;  %v7544_v0 = vld [vmem:[#allocation15 + $0x300] sm:$0xff] }
 0xf28   :  { %13635 = vmatpush1.bf16.msra.mxu1 %v13634_v3  ;;  %v17085_v14 = vpop.permute.xlu0 %7416  ;;  %v7445_v15 = vmax.f32 %v7399_v40, %v7430_v54  ;;  %v7444_v17 = vmax.f32 %v7398_v37, %v7429_v48  ;;  %v7533_v37 = vld [vmem:[#allocation15 + $0x2a8] sm:$0xff]  ;;  %v13664_v3 = vpack.c.bf16 %v7547_v1, %v7545_v62  ;;  %v7550_v54 = vld [vmem:[#allocation15 + $0x330] sm:$0xff]  ;;  %v7941_v1 = vld [vmem:[#allocation9 + $0x5c0] sm:$0xff] }
 0xf29   :  { %v7443_v5 = vmax.f32 %v7397_v44, %v17085_v14  ;;  %13637 = vmatprep.subr.bf16.mxu1 %v13636_v58  ;;  %v13652_v40 = vpack.c.bf16 %v7535_v38, %v7533_v37  ;;  %v7537_v44 = vld [vmem:[#allocation15 + $0x2c8] sm:$0xff]  ;;  %v7546_v58 = vld [vmem:[#allocation15 + $0x310] sm:$0xff]  ;;  %v7428_v6 = vsel %vm1764_vm7, %v15176_v57, %v17085_v14  ;;  %v7901_v14 = vld [vmem:[#allocation9 + $0x480] sm:$0xff]  ;;  %v13684_v37 = vpack.c.bf16 %v7922_v35, %v7918_v33 }
 0xf2a   :  { %7632 = vmatprep.mubr.f32.mxu1 %v7445_v15  ;;  %v13656_v36 = vpack.c.bf16 %v7539_v47, %v7537_v44  ;;  %v13666_v10 = vpack.c.bf16 %v7546_v58, %v7544_v0  ;;  %v7553_v48 = vld [vmem:[#allocation15 + $0x348] sm:$0xff]  ;;  %v7555_v15 = vld [vmem:[#allocation15 + $0x358] sm:$0xff]  ;;  %v7442_v50 = vmax.f32 %v17056_v43, %v7428_v6  ;;  %v13678_v51 = vpack.c.bf16 %v7905_v30, %v7901_v14 }
 0xf2b   :  { %7633 = vmatmul.mubr.f32.gmra.mrb[46].mxu1 %v7444_v17  ;;  %v13670_v17 = vpack.c.bf16 %v7550_v54, %v7548_v63  ;;  %v7906_v57 = vld [vmem:[#allocation9 + $0x4a8] sm:$0xff]  ;;  %v7917_v38 = vld [vmem:[#allocation9 + $0x500] sm:$0xff] }
 0xf2c   :  { %13639 = vmatpush1.bf16.msra.mxu1 %v13638_v4  ;;  %11868 = vmatprep.mubr.msk.f32.mxu1 %vm1895_vm8, %v7443_v5  ;;  %v13672_v4 = vpack.c.bf16 %v7555_v15, %v7553_v48  ;;  %v7552_v5 = vld [vmem:[#allocation15 + $0x340] sm:$0xff]  ;;  %v13676_v43 = vpack.c.bf16 %v7906_v57, %v7902_v27 }
 0xf2d   :  { %13641 = vmatprep.subr.bf16.mxu1 %v13640_v21  ;;  %v7554_v21 = vld [vmem:[#allocation15 + $0x350] sm:$0xff]  ;;  %v7925_v47 = vld [vmem:[#allocation9 + $0x540] sm:$0xff]  ;;  %v7946_v60 = vld [vmem:[#allocation9 + $0x5e8] sm:$0xff] }
 0xf2e   :  { %v13674_v7 = vpack.c.bf16 %v7554_v21, %v7552_v5  ;;  %13677 = vmatprep.subr.bf16.mxu0 %v13676_v43  ;;  %v7954_v0 = vld [vmem:[#allocation9 + $0x628] sm:$0xff]  ;;  %v7957_v15 = vld [vmem:[#allocation9 + $0x640] sm:$0xff] }
 0xf2f   :  { %13679 = vmatpush1.bf16.msra.mxu0 %v13678_v51  ;;  %v7962_v63 = vld [vmem:[#allocation9 + $0x668] sm:$0xff]  ;;  %v7965_v6 = vld [vmem:[#allocation9 + $0x680] sm:$0xff] }
 0xf30   :  { %13643 = vmatpush1.bf16.msra.mxu1 %v13642_v11  ;;  %v7447_v11 = vmax.f32 %v17062_v55, %v7425_v2  ;;  %v7910_v55 = vld [vmem:[#allocation9 + $0x4c8] sm:$0xff]  ;;  %v7973_v27 = vld [vmem:[#allocation9 + $0x6c0] sm:$0xff] }
 0xf31   :  { %13645 = vmatprep.subr.bf16.mxu1 %v13644_v39  ;;  %v7431_v39 = vsel %vm1764_vm7, %v15181_v41, %v7425_v2  ;;  %v7909_v41 = vld [vmem:[#allocation9 + $0x4c0] sm:$0xff]  ;;  %v7970_v5 = vld [vmem:[#allocation9 + $0x6a8] sm:$0xff]  ;;  %vm18112_vm7 = vmmov %vm18109_vm2 }
 0xf32   :  { %v7446_v12 = vmax.f32 %v17059_v53, %v7431_v39  ;;  %v7969_v2 = vld [vmem:[#allocation9 + $0x6a0] sm:$0xff]  ;;  %v7982_v14 = vld [vmem:[#allocation9 + $0x708] sm:$0xff] }
 0xf33   :  { %v13710_v39 = vpack.c.bf16 %v7969_v2, %v7965_v6  ;;  %v7977_v57 = vld [vmem:[#allocation9 + $0x6e0] sm:$0xff]  ;;  %v7986_v43 = vld [vmem:[#allocation9 + $0x728] sm:$0xff] }
 0xf34   :  { %13647 = vmatpush1.bf16.msra.mxu1 %v13646_v16  ;;  %v13680_v16 = vpack.c.bf16 %v7914_v31, %v7910_v55  ;;  %v13714_v30 = vpack.c.bf16 %v7977_v57, %v7973_v27  ;;  %v13716_v55 = vpack.c.bf16 %v7986_v43, %v7982_v14  ;;  %v7981_v31 = vld [vmem:[#allocation9 + $0x700] sm:$0xff] }
 0xf35   :  { %13649 = vmatprep.subr.bf16.mxu1 %v13648_v18  ;;  %v7913_v18 = vld [vmem:[#allocation9 + $0x4e0] sm:$0xff] }
 0xf36   :  { %v13682_v53 = vpack.c.bf16 %v7913_v18, %v7909_v41  ;;  %13681 = vmatprep.subr.bf16.mxu0 %v13680_v16  ;;  %v7985_v51 = vld [vmem:[#allocation9 + $0x720] sm:$0xff]  ;;  %v7990_v16 = vld [vmem:[#allocation9 + $0x748] sm:$0xff] }
 0xf37   :  { %v7994_v41 = vld [vmem:[#allocation9 + $0x768] sm:$0xff]  ;;  %v13718_v18 = vpack.c.bf16 %v7985_v51, %v7981_v31  ;;  %v7989_v35 = vld [vmem:[#allocation9 + $0x740] sm:$0xff] }
 0xf38   :  { %13651 = vmatpush1.bf16.msra.mxu1 %v13650_v20  ;;  %v7921_v20 = vld [vmem:[#allocation9 + $0x520] sm:$0xff]  ;;  %13683 = vmatpush1.bf16.msra.mxu0 %v13682_v53  ;;  %v13720_v33 = vpack.c.bf16 %v7994_v41, %v7990_v16  ;;  %v8038_v16 = vld [vmem:[#allocation9 + $0x8c8] sm:$0xff] }
 0xf39   :  { %13653 = vmatprep.subr.bf16.mxu1 %v13652_v40  ;;  %v7926_v40 = vld [vmem:[#allocation9 + $0x548] sm:$0xff]  ;;  %v13686_v22 = vpack.c.bf16 %v7921_v20, %v7917_v38  ;;  %13685 = vmatprep.subr.bf16.mxu0 %v13684_v37  ;;  %v7993_v53 = vld [vmem:[#allocation9 + $0x760] sm:$0xff] }
 0xf3a   :  { %v13688_v44 = vpack.c.bf16 %v7930_v42, %v7926_v40  ;;  %v13722_v37 = vpack.c.bf16 %v7993_v53, %v7989_v35  ;;  %v7998_v38 = vld [vmem:[#allocation9 + $0x788] sm:$0xff]  ;;  %v7997_v42 = vld [vmem:[#allocation9 + $0x780] sm:$0xff] }
 0xf3b   :  { %v8002_v20 = vld [vmem:[#allocation9 + $0x7a8] sm:$0xff] }
 0xf3c   :  { %13655 = vmatpush1.bf16.msra.mxu1 %v13654_v52  ;;  %v7929_v52 = vld [vmem:[#allocation9 + $0x560] sm:$0xff]  ;;  %13687 = vmatpush1.bf16.msra.mxu0 %v13686_v22  ;;  %v13724_v40 = vpack.c.bf16 %v8002_v20, %v7998_v38  ;;  %v8042_v41 = vld [vmem:[#allocation9 + $0x8e8] sm:$0xff] }
 0xf3d   :  { %13657 = vmatprep.subr.bf16.mxu1 %v13656_v36  ;;  %v7934_v36 = vld [vmem:[#allocation9 + $0x588] sm:$0xff]  ;;  %v13690_v23 = vpack.c.bf16 %v7929_v52, %v7925_v47  ;;  %13689 = vmatprep.subr.bf16.mxu0 %v13688_v44  ;;  %v8001_v22 = vld [vmem:[#allocation9 + $0x7a0] sm:$0xff]  ;;  %v13744_v20 = vpack.c.bf16 %v8042_v41, %v8038_v16  ;;  %v7951_v16 = vld [vmem:[#allocation9 + $0x610] sm:$0xff] }
 0xf3e   :  { %v13692_v32 = vpack.c.bf16 %v7938_v56, %v7934_v36  ;;  %v13726_v44 = vpack.c.bf16 %v8001_v22, %v7997_v42  ;;  %v8006_v47 = vld [vmem:[#allocation9 + $0x7c8] sm:$0xff]  ;;  %v8005_v56 = vld [vmem:[#allocation9 + $0x7c0] sm:$0xff]  ;;  %v7955_v41 = vld [vmem:[#allocation9 + $0x630] sm:$0xff] }
 0xf3f   :  { %v8010_v52 = vld [vmem:[#allocation9 + $0x7e8] sm:$0xff]  ;;  %v7900_v22 = vld [vmem:[#allocation3 + $0x70] sm:$0x7f] }
 0xf40   :  { %13659 = vmatpush1.bf16.msra.mxu1 %v13658_v13  ;;  %v7937_v13 = vld [vmem:[#allocation9 + $0x5a0] sm:$0xff]  ;;  %13691 = vmatpush1.bf16.msra.mxu0 %v13690_v23  ;;  %v13728_v36 = vpack.c.bf16 %v8010_v52, %v8006_v47  ;;  %v7904_v47 = vld [vmem:[#allocation9 + $0x498] sm:$0xff] }
 0xf41   :  { %13661 = vmatprep.subr.bf16.mxu1 %v13660_v59  ;;  %v7942_v59 = vld [vmem:[#allocation9 + $0x5c8] sm:$0xff]  ;;  %v13694_v61 = vpack.c.bf16 %v7937_v13, %v7933_v45  ;;  %13693 = vmatprep.subr.bf16.mxu0 %v13692_v32  ;;  %v8009_v23 = vld [vmem:[#allocation9 + $0x7e0] sm:$0xff]  ;;  %v7908_v52 = vld [vmem:[#allocation9 + $0x4b8] sm:$0xff] }
 0xf42   :  { %v13696_v62 = vpack.c.bf16 %v7946_v60, %v7942_v59  ;;  %v13730_v32 = vpack.c.bf16 %v8009_v23, %v8005_v56  ;;  %v8014_v45 = vld [vmem:[#allocation9 + $0x808] sm:$0xff]  ;;  %v8013_v59 = vld [vmem:[#allocation9 + $0x800] sm:$0xff]  ;;  %v17125_v23 = vrot.slane %v7900_v22, 1 }
 0xf43   :  { %v8018_v13 = vld [vmem:[#allocation9 + $0x828] sm:$0xff] }
 0xf44   :  { %13663 = vmatpush1.bf16.msra.mxu1 %v13662_v9  ;;  %v7945_v9 = vld [vmem:[#allocation9 + $0x5e0] sm:$0xff]  ;;  %13695 = vmatpush1.bf16.msra.mxu0 %v13694_v61  ;;  %v13732_v60 = vpack.c.bf16 %v8018_v13, %v8014_v45  ;;  %v7903_v45 = vld [vmem:[#allocation9 + $0x490] sm:$0xff] }
 0xf45   :  { %13665 = vmatprep.subr.bf16.mxu1 %v13664_v3  ;;  %v7950_v3 = vld [vmem:[#allocation9 + $0x608] sm:$0xff]  ;;  %v13698_v58 = vpack.c.bf16 %v7945_v9, %v7941_v1  ;;  %13697 = vmatprep.subr.bf16.mxu0 %v13696_v62  ;;  %v8017_v61 = vld [vmem:[#allocation9 + $0x820] sm:$0xff]  ;;  %v7907_v13 = vld [vmem:[#allocation9 + $0x4b0] sm:$0xff] }
 0xf46   :  { %v13700_v8 = vpack.c.bf16 %v7954_v0, %v7950_v3  ;;  %v8022_v62 = vld [vmem:[#allocation9 + $0x848] sm:$0xff]  ;;  %v13734_v9 = vpack.c.bf16 %v8017_v61, %v8013_v59  ;;  %v8021_v0 = vld [vmem:[#allocation9 + $0x840] sm:$0xff]  ;;  %v7912_v59 = vld [vmem:[#allocation9 + $0x4d8] sm:$0xff] }
 0xf47   :  { %v8026_v1 = vld [vmem:[#allocation9 + $0x868] sm:$0xff] }
 0xf48   :  { %13667 = vmatpush1.bf16.msra.mxu1 %v13666_v10  ;;  %v7953_v10 = vld [vmem:[#allocation9 + $0x620] sm:$0xff]  ;;  %13699 = vmatpush1.bf16.msra.mxu0 %v13698_v58  ;;  %v13736_v3 = vpack.c.bf16 %v8026_v1, %v8022_v62  ;;  %v13750_v62 = vpack.c.bf16 %v7907_v13, %v7903_v45 }
 0xf49   :  { %13669 = vmatprep.subr.bf16.mxu1 %v13668_v46  ;;  %v7958_v46 = vld [vmem:[#allocation9 + $0x648] sm:$0xff]  ;;  %v13702_v54 = vpack.c.bf16 %v7953_v10, %v7949_v34  ;;  %13701 = vmatprep.subr.bf16.mxu0 %v13700_v8  ;;  %v8025_v58 = vld [vmem:[#allocation9 + $0x860] sm:$0xff] }
 0xf4a   :  { %v13704_v48 = vpack.c.bf16 %v7962_v63, %v7958_v46  ;;  %v13738_v63 = vpack.c.bf16 %v8025_v58, %v8021_v0  ;;  %v7897_v42 = vld [vmem:[#allocation3 + $0x58] sm:$0xfe]  ;;  %v7920_v0 = vld [vmem:[#allocation9 + $0x518] sm:$0xff] }
 0xf4b   :  { %v8057_v56 = vrot.slane %v7897_v42, 1  ;;  %v7924_v58 = vld [vmem:[#allocation9 + $0x538] sm:$0xff] }
 0xf4c   :  { %13671 = vmatpush1.bf16.msra.mxu1 %v13670_v17  ;;  %v7961_v17 = vld [vmem:[#allocation9 + $0x660] sm:$0xff]  ;;  %13703 = vmatpush1.bf16.msra.mxu0 %v13702_v54  ;;  %v7972_v42 = vld [vmem:[#allocation9 + $0x6b8] sm:$0xff] }
 0xf4d   :  { %13673 = vmatprep.subr.bf16.mxu1 %v13672_v4  ;;  %v7966_v4 = vld [vmem:[#allocation9 + $0x688] sm:$0xff]  ;;  %v13706_v21 = vpack.c.bf16 %v7961_v17, %v7957_v15  ;;  %13705 = vmatprep.subr.bf16.mxu0 %v13704_v48  ;;  %v17131_v61 = vsel %vm2394_vm12, %v8057_v56, %v17125_v23  ;;  %v7976_v56 = vld [vmem:[#allocation9 + $0x6d8] sm:$0xff] }
 0xf50   :  { %13675 = vmatpush1.bf16.msra.mxu1 %v13674_v7  ;;  %v13708_v7 = vpack.c.bf16 %v7970_v5, %v7966_v4  ;;  %13707 = vmatpush1.bf16.msra.mxu0 %v13706_v21  ;;  %v8030_v4 = vld [vmem:[#allocation9 + $0x888] sm:$0xff] }
 0xf51   :  { %v8034_v5 = vld [vmem:[#allocation9 + $0x8a8] sm:$0xff] }
 0xf52   :  { %13709 = vmatprep.subr.bf16.mxu0 %v13708_v7  ;;  %v13740_v7 = vpack.c.bf16 %v8034_v5, %v8030_v4  ;;  %v7931_v4 = vld [vmem:[#allocation9 + $0x570] sm:$0xff]  ;;  %v7936_v5 = vld [vmem:[#allocation9 + $0x598] sm:$0xff] }
 0xf53   :  { %7704 = vmatmul.mubr.f32.vlgmr.msra.gmra.mrb[44].mxu1 %v7442_v50  ;;  %v7974_v50 = vld [vmem:[#allocation9 + $0x6c8] sm:$0xff] }
 0xf54   :  { %11869 = vmatprep.mubr.msk.f32.mxu1 %vm1895_vm8, %v7447_v11  ;;  %v7978_v11 = vld [vmem:[#allocation9 + $0x6e8] sm:$0xff]  ;;  %13711 = vmatpush1.bf16.msra.mxu0 %v13710_v39  ;;  %vm18113_vm8 = vmmov %vm18109_vm2 }
 0xf57   :  { %7710 = vmatmul.mubr.f32.gmra.mrb[46].mxu1 %v7446_v12  ;;  %v13712_v12 = vpack.c.bf16 %v7978_v11, %v7974_v50 }
 0xf58   :  { %10293 = vmatprep.mubr.f32.mxu1 %v17100_v24 }
 0xf59   :  { %13713 = vmatprep.subr.bf16.mxu0 %v13712_v12 }
 0xf5a   :  { %13715 = vmatpush1.bf16.msra.mxu0 %v13714_v30  ;;  %v8029_v30 = vld [vmem:[#allocation9 + $0x880] sm:$0xff] }
 0xf5b   :  { %13717 = vmatprep.subr.bf16.mxu0 %v13716_v55  ;;  %v8033_v55 = vld [vmem:[#allocation9 + $0x8a0] sm:$0xff] }
 0xf5c   :  { %v13742_v53 = vpack.c.bf16 %v8033_v55, %v8029_v30  ;;  %v7956_v30 = vld [vmem:[#allocation9 + $0x638] sm:$0xff] }
 0xf5e   :  { %13719 = vmatpush1.bf16.msra.mxu0 %v13718_v18 }
 0xf5f   :  { %13721 = vmatprep.subr.bf16.mxu0 %v13720_v33 }
 0xf62   :  { %13723 = vmatpush1.bf16.msra.mxu0 %v13722_v37  ;;  %v8037_v37 = vld [vmem:[#allocation9 + $0x8c0] sm:$0xff] }
 0xf63   :  { %13725 = vmatprep.subr.bf16.mxu0 %v13724_v40  ;;  %v8041_v40 = vld [vmem:[#allocation9 + $0x8e0] sm:$0xff] }
 0xf66   :  { %13727 = vmatpush1.bf16.msra.mxu0 %v13726_v44 }
 0xf67   :  { %13729 = vmatprep.subr.bf16.mxu0 %v13728_v36  ;;  %v13746_v36 = vpack.c.bf16 %v8041_v40, %v8037_v37  ;;  %v7968_v40 = vld [vmem:[#allocation9 + $0x698] sm:$0xff] }
 0xf6a   :  { %13731 = vmatpush1.bf16.msra.mxu0 %v13730_v32  ;;  %v13748_v32 = vpack.c.bf16 %v7908_v52, %v7904_v47  ;;  %v13780_v47 = vpack.c.bf16 %v7972_v42, %v7968_v40  ;;  %v7967_v52 = vld [vmem:[#allocation9 + $0x690] sm:$0xff] }
 0xf6b   :  { %13733 = vmatprep.subr.bf16.mxu0 %v13732_v60  ;;  %v7916_v60 = vld [vmem:[#allocation9 + $0x4f8] sm:$0xff]  ;;  %v8031_v40 = vld [vmem:[#allocation9 + $0x890] sm:$0xff] }
 0xf6c   :  { %v13752_v1 = vpack.c.bf16 %v7916_v60, %v7912_v59  ;;  %v7975_v59 = vld [vmem:[#allocation9 + $0x6d0] sm:$0xff] }
 0xf6d   :  { %v7979_v60 = vld [vmem:[#allocation9 + $0x6f0] sm:$0xff] }
 0xf6e   :  { %13735 = vmatpush1.bf16.msra.mxu0 %v13734_v9  ;;  %v7911_v9 = vld [vmem:[#allocation9 + $0x4d0] sm:$0xff] }
 0xf6f   :  { %13737 = vmatprep.subr.bf16.mxu0 %v13736_v3  ;;  %v7915_v3 = vld [vmem:[#allocation9 + $0x4f0] sm:$0xff] }
 0xf70   :  { %v8035_v42 = vld [vmem:[#allocation9 + $0x8b0] sm:$0xff] }
 0xf72   :  { %13739 = vmatpush1.bf16.msra.mxu0 %v13738_v63  ;;  %v7928_v63 = vld [vmem:[#allocation9 + $0x558] sm:$0xff] }
 0xf73   :  { %13741 = vmatprep.subr.bf16.mxu0 %v13740_v7 }
0x1026   :  { %v7705_v8 = vpop.f32.mrb[44].mxu1 }
0x1027   :  { %v7720_v34 = vrot.slane %v7705_v8, 6  ;;  %v7707_v10 = vpop.f32.mrb[45].mxu1  ;;  %v13754_v8 = vpack.c.bf16 %v7915_v3, %v7911_v9  ;;  %v13786_v9 = vpack.c.bf16 %v7979_v60, %v7975_v59 }
0x1028   :  { %v7721_v46 = vrot.slane %v7707_v10, 6  ;;  %v7919_v10 = vld [vmem:[#allocation9 + $0x510] sm:$0xff] }
0x1029   :  { %7726 = vrot.lane.b32.xlu0 %v7720_v34, %s15488_s23 }
0x102a   :  { %7728 = vrot.lane.b32.xlu1 %v7721_v46, %s15488_s23  ;;  %v7711_v54 = vpop.f32.mrb[46].mxu1 }
0x102b   :  { %v7722_v48 = vrot.slane %v7711_v54, 6  ;;  %v7713_v15 = vpop.f32.mrb[47].mxu1  ;;  %v7932_v54 = vld [vmem:[#allocation9 + $0x578] sm:$0xff] }
0x102c   :  { %v7724_v17 = vrot.slane %v7713_v15, 6  ;;  %v13760_v15 = vpack.c.bf16 %v7932_v54, %v7928_v63  ;;  %v7991_v63 = vld [vmem:[#allocation9 + $0x750] sm:$0xff] }
0x102d   :  { %v7723_v21 = vsel %vm2060_vm9, %v7720_v34, %v7722_v48  ;;  %v13756_v34 = vpack.c.bf16 %v7924_v58, %v7920_v0  ;;  %v7983_v0 = vld [vmem:[#allocation9 + $0x710] sm:$0xff] }
0x102e   :  { %7730 = vrot.lane.b32.xlu0 %v7723_v21, %s15488_s23  ;;  %v7725_v6 = vsel %vm2060_vm9, %v7721_v46, %v7724_v17  ;;  %v7923_v46 = vld [vmem:[#allocation9 + $0x530] sm:$0xff]  ;;  %v7940_v21 = vld [vmem:[#allocation9 + $0x5b8] sm:$0xff]  ;;  %vm18114_vm9 = vmmov %vm18109_vm2 }
0x102f   :  { %7732 = vrot.lane.b32.xlu1 %v7725_v6, %s15488_s23  ;;  %v13758_v48 = vpack.c.bf16 %v7923_v46, %v7919_v10  ;;  %v7927_v17 = vld [vmem:[#allocation9 + $0x550] sm:$0xff]  ;;  %v13764_v6 = vpack.c.bf16 %v7940_v21, %v7936_v5 }
0x1030   :  { %v13762_v7 = vpack.c.bf16 %v7931_v4, %v7927_v17  ;;  %v7987_v58 = vld [vmem:[#allocation9 + $0x730] sm:$0xff] }
0x1031   :  { %v13790_v10 = vpack.c.bf16 %v7987_v58, %v7983_v0  ;;  %v7995_v54 = vld [vmem:[#allocation9 + $0x770] sm:$0xff] }
0x1032   :  { %v13794_v17 = vpack.c.bf16 %v7995_v54, %v7991_v63  ;;  %v7999_v5 = vld [vmem:[#allocation9 + $0x790] sm:$0xff]  ;;  %v7771_v63 = vld [vmem:[#allocation9 + $0xa0] sm:$0xff]  ;;  %v7776_v54 = vld [vmem:[#allocation9 + $0xc8] sm:$0xff] }
0x1033   :  { %v8003_v21 = vld [vmem:[#allocation9 + $0x7b0] sm:$0xff] }
0x109b   :  { %v7727_v2 = vpop.permute.xlu0 %7726 }
0x109c   :  { %7741 = vst.msk [vmem:[#allocation3 + $0x48] sm:$0xfc] %vm2081_vm10, %v7727_v2  ;;  %v7729_v50 = vpop.permute.xlu1 %7728 }
0x109d   :  { %v7734_v11 = vsel %vm184_vm0, %v7727_v2, %v7729_v50  ;;  %v7935_v2 = vld [vmem:[#allocation9 + $0x590] sm:$0xff] }
0x109e   :  { %7742 = vst [vmem:[#allocation3 + $0x50] sm:$0xfc] %v7734_v11  ;;  %v7939_v50 = vld [vmem:[#allocation9 + $0x5b0] sm:$0xff]  ;;  %v7944_v11 = vld [vmem:[#allocation9 + $0x5d8] sm:$0xff] }
0x10a0   :  { %v7731_v39 = vpop.permute.xlu0 %7730 }
0x10a1   :  { %7743 = vst.msk [vmem:[#allocation3 + $0x60] sm:$0xff] %vm2084_vm11, %v7731_v39  ;;  %v7733_v12 = vpop.permute.xlu1 %7732 }
0x10a2   :  { %v7735_v27 = vsel %vm184_vm0, %v7731_v39, %v7733_v12  ;;  %v7948_v39 = vld [vmem:[#allocation9 + $0x5f8] sm:$0xff]  ;;  %v13766_v12 = vpack.c.bf16 %v7939_v50, %v7935_v2  ;;  %v13798_v2 = vpack.c.bf16 %v8003_v21, %v7999_v5  ;;  %v7779_v5 = vld [vmem:[#allocation9 + $0xe0] sm:$0xff]  ;;  %v7784_v21 = vld [vmem:[#allocation9 + $0x108] sm:$0xff] }
0x10a3   :  { %7744 = vst [vmem:[#allocation3 + $0x68] sm:$0xff] %v7735_v27  ;;  %v7895_v43 = vld [vmem:[#allocation3 + $0x48] sm:$0xfe]  ;;  %v13768_v27 = vpack.c.bf16 %v7948_v39, %v7944_v11 }
0x10a4   :  { %v8051_v35 = vrot.slane %v7895_v43, 1  ;;  %v7952_v43 = vld [vmem:[#allocation9 + $0x618] sm:$0xff]  ;;  %v8007_v11 = vld [vmem:[#allocation9 + $0x7d0] sm:$0xff] }
0x10a5   :  { %v7896_v57 = vld [vmem:[#allocation3 + $0x50] sm:$0xfe]  ;;  %v8011_v39 = vld [vmem:[#allocation9 + $0x7f0] sm:$0xff] }
0x10a6   :  { %v8054_v18 = vrot.slane %v7896_v57, 1  ;;  %v7943_v57 = vld [vmem:[#allocation9 + $0x5d0] sm:$0xff] }
0x10a8   :  { %v7898_v14 = vld [vmem:[#allocation3 + $0x60] sm:$0x7f] }
0x10a9   :  { %v17113_v51 = vrot.slane %v7898_v14, 1  ;;  %v7947_v14 = vld [vmem:[#allocation9 + $0x5f0] sm:$0xff] }
0x10aa   :  { %v7899_v31 = vld [vmem:[#allocation3 + $0x68] sm:$0x7f]  ;;  %v13770_v55 = vpack.c.bf16 %v7947_v14, %v7943_v57  ;;  %v13802_v57 = vpack.c.bf16 %v8011_v39, %v8007_v11  ;;  %v7787_v11 = vld [vmem:[#allocation9 + $0x120] sm:$0xff]  ;;  %v7792_v39 = vld [vmem:[#allocation9 + $0x148] sm:$0xff] }
0x10ab   :  { %v17115_v33 = vrot.slane %v7899_v31, 1  ;;  %v17121_v44 = vsel %vm2394_vm12, %v8051_v35, %v17113_v51  ;;  %v13772_v31 = vpack.c.bf16 %v7956_v30, %v7952_v43  ;;  %v7964_v35 = vld [vmem:[#allocation9 + $0x678] sm:$0xff]  ;;  %v8015_v43 = vld [vmem:[#allocation9 + $0x810] sm:$0xff] }
0x10ac   :  { %v8019_v30 = vld [vmem:[#allocation9 + $0x830] sm:$0xff] }
0x10ad   :  { %v8056_v38 = vsel %vm2394_vm12, %v8054_v18, %v17115_v33  ;;  %v7960_v18 = vld [vmem:[#allocation9 + $0x658] sm:$0xff] }
0x10ae   :  { %8132 = vmatprep.mubr.f32.mxu0 %v8056_v38  ;;  %v13776_v37 = vpack.c.bf16 %v7964_v35, %v7960_v18  ;;  %v8023_v18 = vld [vmem:[#allocation9 + $0x850] sm:$0xff] }
0x10af   :  { %8133 = vmatmul.mubr.f32.vlgmr.msra.gmra.mrb[48].mxu0 %v17121_v44  ;;  %v8027_v35 = vld [vmem:[#allocation9 + $0x870] sm:$0xff] }
0x10b0   :  { %13743 = vmatpush1.bf16.msra.mxu0 %v13742_v53  ;;  %8138 = vmatprep.mubr.f32.mxu0 %v17115_v33  ;;  %v13774_v53 = vpack.c.bf16 %v7955_v41, %v7951_v16  ;;  %v13806_v16 = vpack.c.bf16 %v8019_v30, %v8015_v43  ;;  %v7800_v43 = vld [vmem:[#allocation9 + $0x188] sm:$0xff] }
0x10b1   :  { %13745 = vmatprep.subr.bf16.mxu0 %v13744_v20  ;;  %v7963_v20 = vld [vmem:[#allocation9 + $0x670] sm:$0xff]  ;;  %v7804_v30 = vld [vmem:[#allocation9 + $0x1a8] sm:$0xff] }
0x10b3   :  { %8139 = vmatmul.mubr.f32.gmra.mrb[50].mxu0 %v17113_v51 }
0x10b4   :  { %13747 = vmatpush1.bf16.msra.mxu0 %v13746_v36  ;;  %8209 = vmatprep.mubr.f32.mxu0 %v17100_v24  ;;  %v7971_v36 = vld [vmem:[#allocation9 + $0x6b0] sm:$0xff] }
0x10b5   :  { %13749 = vmatprep.subr.bf16.mxu0 %v13748_v32  ;;  %v7980_v32 = vld [vmem:[#allocation9 + $0x6f8] sm:$0xff]  ;;  %v13782_v45 = vpack.c.bf16 %v7971_v36, %v7967_v52  ;;  %v13814_v52 = vpack.c.bf16 %v8035_v42, %v8031_v40  ;;  %v7816_v40 = vld [vmem:[#allocation9 + $0x208] sm:$0xff] }
0x10b6   :  { %v13784_v13 = vpack.c.bf16 %v7980_v32, %v7976_v56  ;;  %v8039_v56 = vld [vmem:[#allocation9 + $0x8d0] sm:$0xff]  ;;  %v7820_v42 = vld [vmem:[#allocation9 + $0x228] sm:$0xff] }
0x10b7   :  { %11870 = vmatmul.mubr.msk.f32.vlgmr.msra.gmra.mrb[48].mxu0 %vm184_vm0, %v17131_v61  ;;  %v8043_v32 = vld [vmem:[#allocation9 + $0x8f0] sm:$0xff] }
0x10b8   :  { %13751 = vmatpush1.bf16.msra.mxu0 %v13750_v62  ;;  %8215 = vmatprep.mubr.f32.mxu0 %v17100_v24  ;;  %v7984_v62 = vld [vmem:[#allocation9 + $0x718] sm:$0xff]  ;;  %v13818_v59 = vpack.c.bf16 %v8043_v32, %v8039_v56  ;;  %v7824_v56 = vld [vmem:[#allocation9 + $0x248] sm:$0xff] }
0x10b9   :  { %13753 = vmatprep.subr.bf16.mxu0 %v13752_v1  ;;  %v7988_v1 = vld [vmem:[#allocation9 + $0x738] sm:$0xff]  ;;  %v7828_v32 = vld [vmem:[#allocation9 + $0x268] sm:$0xff] }
0x10ba   :  { %v13788_v3 = vpack.c.bf16 %v7988_v1, %v7984_v62  ;;  %v7751_v62 = vld [vmem:[#allocation9] sm:$0xff] }
0x10bb   :  { %11871 = vmatmul.mubr.msk.f32.gmra.mrb[50].mxu0 %vm184_vm0, %v17125_v23  ;;  %v7755_v1 = vld [vmem:[#allocation9 + $0x20] sm:$0xff] }
0x10bc   :  { %13755 = vmatpush1.bf16.msra.mxu0 %v13754_v8  ;;  %8286 = vmatprep.mubr.f32.mxu0 %v8056_v38  ;;  %v7959_v38 = vld [vmem:[#allocation9 + $0x650] sm:$0xff]  ;;  %v7992_v8 = vld [vmem:[#allocation9 + $0x758] sm:$0xff]  ;;  %v13822_v0 = vpack.c.bf16 %v7755_v1, %v7751_v62  ;;  %v7832_v62 = vld [vmem:[#allocation9 + $0x288] sm:$0xff] }
0x10bd   :  { %13757 = vmatprep.subr.bf16.mxu0 %v13756_v34  ;;  %v13778_v22 = vpack.c.bf16 %v7963_v20, %v7959_v38  ;;  %v7996_v34 = vld [vmem:[#allocation9 + $0x778] sm:$0xff]  ;;  %v13810_v38 = vpack.c.bf16 %v8027_v35, %v8023_v18  ;;  %v7808_v18 = vld [vmem:[#allocation9 + $0x1c8] sm:$0xff] }
0x10be   :  { %v13792_v46 = vpack.c.bf16 %v7996_v34, %v7992_v8  ;;  %v7759_v8 = vld [vmem:[#allocation9 + $0x40] sm:$0xff]  ;;  %v7768_v34 = vld [vmem:[#allocation9 + $0x88] sm:$0xff] }
0x10bf   :  { %v7812_v35 = vld [vmem:[#allocation9 + $0x1e8] sm:$0xff] }
0x10c0   :  { %13759 = vmatpush1.bf16.msra.mxu0 %v13758_v48  ;;  %v8000_v48 = vld [vmem:[#allocation9 + $0x798] sm:$0xff]  ;;  %v7836_v1 = vld [vmem:[#allocation9 + $0x2a8] sm:$0xff] }
0x10c1   :  { %13761 = vmatprep.subr.bf16.mxu0 %v13760_v15  ;;  %v8004_v15 = vld [vmem:[#allocation9 + $0x7b8] sm:$0xff] }
0x10c2   :  { %v13796_v4 = vpack.c.bf16 %v8004_v15, %v8000_v48  ;;  %v7780_v48 = vld [vmem:[#allocation9 + $0xe8] sm:$0xff]  ;;  %v17147_v15 = vld [vmem:[#allocation3 + $0x50] sm:$0xff] }
0x10c4   :  { %13763 = vmatpush1.bf16.msra.mxu0 %v13762_v7  ;;  %v8008_v7 = vld [vmem:[#allocation9 + $0x7d8] sm:$0xff] }
0x10c5   :  { %13765 = vmatprep.subr.bf16.mxu0 %v13764_v6  ;;  %v8012_v6 = vld [vmem:[#allocation9 + $0x7f8] sm:$0xff] }
0x10c6   :  { %v13800_v50 = vpack.c.bf16 %v8012_v6, %v8008_v7  ;;  %v7788_v7 = vld [vmem:[#allocation9 + $0x128] sm:$0xff] }
0x10c8   :  { %13767 = vmatpush1.bf16.msra.mxu0 %v13766_v12  ;;  %v8016_v12 = vld [vmem:[#allocation9 + $0x818] sm:$0xff] }
0x10c9   :  { %13769 = vmatprep.subr.bf16.mxu0 %v13768_v27  ;;  %v8020_v27 = vld [vmem:[#allocation9 + $0x838] sm:$0xff] }
0x10ca   :  { %v13804_v14 = vpack.c.bf16 %v8020_v27, %v8016_v12 }
0x10cc   :  { %13771 = vmatpush1.bf16.msra.mxu0 %v13770_v55  ;;  %v8024_v55 = vld [vmem:[#allocation9 + $0x858] sm:$0xff] }
0x10cd   :  { %13773 = vmatprep.subr.bf16.mxu0 %v13772_v31  ;;  %v8028_v31 = vld [vmem:[#allocation9 + $0x878] sm:$0xff] }
0x10ce   :  { %v13808_v41 = vpack.c.bf16 %v8028_v31, %v8024_v55  ;;  %v13844_v31 = vpack.c.bf16 %v7804_v30, %v7800_v43 }
0x10d0   :  { %13775 = vmatpush1.bf16.msra.mxu0 %v13774_v53  ;;  %v8032_v53 = vld [vmem:[#allocation9 + $0x898] sm:$0xff] }
0x10d1   :  { %13777 = vmatprep.subr.bf16.mxu0 %v13776_v37  ;;  %v8036_v37 = vld [vmem:[#allocation9 + $0x8b8] sm:$0xff] }
0x10d2   :  { %v13812_v20 = vpack.c.bf16 %v8036_v37, %v8032_v53  ;;  %v13848_v37 = vpack.c.bf16 %v7812_v35, %v7808_v18 }
0x10d4   :  { %13779 = vmatpush1.bf16.msra.mxu0 %v13778_v22  ;;  %v8040_v22 = vld [vmem:[#allocation9 + $0x8d8] sm:$0xff] }
0x10d5   :  { %13781 = vmatprep.subr.bf16.mxu0 %v13780_v47  ;;  %v8044_v47 = vld [vmem:[#allocation9 + $0x8f8] sm:$0xff] }
0x10d6   :  { %v13816_v36 = vpack.c.bf16 %v8044_v47, %v8040_v22  ;;  %v13852_v47 = vpack.c.bf16 %v7820_v42, %v7816_v40 }
0x10d8   :  { %13783 = vmatpush1.bf16.msra.mxu0 %v13782_v45  ;;  %v7752_v45 = vld [vmem:[#allocation9 + $0x8] sm:$0xff] }
0x10d9   :  { %13785 = vmatprep.subr.bf16.mxu0 %v13784_v13  ;;  %v7756_v13 = vld [vmem:[#allocation9 + $0x28] sm:$0xff] }
0x10da   :  { %v13820_v60 = vpack.c.bf16 %v7756_v13, %v7752_v45  ;;  %v13856_v13 = vpack.c.bf16 %v7828_v32, %v7824_v56  ;;  %v7758_v56 = vld [vmem:[#allocation9 + $0x38] sm:$0xff] }
0x10db   :  { %v17153_v32 = vld [vmem:[#allocation3 + $0x68] sm:$0x3f] }
0x10dc   :  { %13787 = vmatpush1.bf16.msra.mxu0 %v13786_v9  ;;  %v7760_v9 = vld [vmem:[#allocation9 + $0x48] sm:$0xff] }
0x10dd   :  { %13789 = vmatprep.subr.bf16.mxu0 %v13788_v3  ;;  %v7764_v3 = vld [vmem:[#allocation9 + $0x68] sm:$0xff] }
0x10de   :  { %v13824_v58 = vpack.c.bf16 %v7764_v3, %v7760_v9  ;;  %v13860_v3 = vpack.c.bf16 %v7836_v1, %v7832_v62  ;;  %v17156_v62 = vld [vmem:[#allocation3 + $0x60] sm:$0x3f]  ;;  %v7762_v1 = vld [vmem:[#allocation9 + $0x58] sm:$0xff] }
0x10e0   :  { %13791 = vmatpush1.bf16.msra.mxu0 %v13790_v10 }
0x10e1   :  { %13793 = vmatprep.subr.bf16.mxu0 %v13792_v46 }
0x10e4   :  { %13795 = vmatpush1.bf16.msra.mxu0 %v13794_v17 }
0x10e5   :  { %13797 = vmatprep.subr.bf16.mxu0 %v13796_v4  ;;  %v7775_v4 = vld [vmem:[#allocation9 + $0xc0] sm:$0xff] }
0x10e6   :  { %v13834_v6 = vpack.c.bf16 %v7779_v5, %v7775_v4  ;;  %v7856_v4 = vld [vmem:[#allocation9 + $0x348] sm:$0xff] }
0x10e7   :  { %v7860_v5 = vld [vmem:[#allocation9 + $0x368] sm:$0xff] }
0x10e8   :  { %13799 = vmatpush1.bf16.msra.mxu0 %v13798_v2  ;;  %v13836_v2 = vpack.c.bf16 %v7788_v7, %v7784_v21  ;;  %v13872_v7 = vpack.c.bf16 %v7860_v5, %v7856_v4  ;;  %v7777_v5 = vld [vmem:[#allocation9 + $0xd0] sm:$0xff] }
0x10e9   :  { %13801 = vmatprep.subr.bf16.mxu0 %v13800_v50  ;;  %v7783_v50 = vld [vmem:[#allocation9 + $0x100] sm:$0xff] }
0x10ea   :  { %v13838_v12 = vpack.c.bf16 %v7787_v11, %v7783_v50  ;;  %v7864_v50 = vld [vmem:[#allocation9 + $0x388] sm:$0xff] }
0x10eb   :  { %v7868_v11 = vld [vmem:[#allocation9 + $0x3a8] sm:$0xff] }
0x10ec   :  { %13803 = vmatpush1.bf16.msra.mxu0 %v13802_v57  ;;  %v7791_v57 = vld [vmem:[#allocation9 + $0x140] sm:$0xff] }
0x10ed   :  { %13805 = vmatprep.subr.bf16.mxu0 %v13804_v14  ;;  %v7795_v14 = vld [vmem:[#allocation9 + $0x160] sm:$0xff] }
0x10ee   :  { %v13842_v55 = vpack.c.bf16 %v7795_v14, %v7791_v57  ;;  %v7872_v57 = vld [vmem:[#allocation9 + $0x3c8] sm:$0xff] }
0x10ef   :  { %v7876_v14 = vld [vmem:[#allocation9 + $0x3e8] sm:$0xff] }
0x10f0   :  { %13807 = vmatpush1.bf16.msra.mxu0 %v13806_v16  ;;  %v7799_v16 = vld [vmem:[#allocation9 + $0x180] sm:$0xff]  ;;  %v13880_v30 = vpack.c.bf16 %v7876_v14, %v7872_v57  ;;  %v7797_v14 = vld [vmem:[#allocation9 + $0x170] sm:$0xff] }
0x10f1   :  { %13809 = vmatprep.subr.bf16.mxu0 %v13808_v41  ;;  %v7803_v41 = vld [vmem:[#allocation9 + $0x1a0] sm:$0xff] }
0x10f2   :  { %v13846_v53 = vpack.c.bf16 %v7803_v41, %v7799_v16  ;;  %v7880_v16 = vld [vmem:[#allocation9 + $0x408] sm:$0xff] }
0x10f3   :  { %v7884_v41 = vld [vmem:[#allocation9 + $0x428] sm:$0xff] }
0x10f4   :  { %13811 = vmatpush1.bf16.msra.mxu0 %v13810_v38  ;;  %v7807_v38 = vld [vmem:[#allocation9 + $0x1c0] sm:$0xff]  ;;  %v13884_v35 = vpack.c.bf16 %v7884_v41, %v7880_v16  ;;  %v7801_v16 = vld [vmem:[#allocation9 + $0x190] sm:$0xff] }
0x10f5   :  { %13813 = vmatprep.subr.bf16.mxu0 %v13812_v20  ;;  %v7811_v20 = vld [vmem:[#allocation9 + $0x1e0] sm:$0xff]  ;;  %v7805_v41 = vld [vmem:[#allocation9 + $0x1b0] sm:$0xff] }
0x10f6   :  { %v13850_v22 = vpack.c.bf16 %v7811_v20, %v7807_v38  ;;  %v7888_v38 = vld [vmem:[#allocation9 + $0x448] sm:$0xff] }
0x10f7   :  { %8287 = vmatmul.mubr.f32.vlgmr.msra.gmra.mrb[52].mxu0 %v17121_v44  ;;  %v7763_v44 = vld [vmem:[#allocation9 + $0x60] sm:$0xff]  ;;  %v7892_v20 = vld [vmem:[#allocation9 + $0x468] sm:$0xff] }
0x10f8   :  { %8292 = vmatprep.mubr.f32.mxu0 %v17115_v33  ;;  %13815 = vmatpush1.bf16.msra.mxu0 %v13814_v52  ;;  %v7772_v33 = vld [vmem:[#allocation9 + $0xa8] sm:$0xff]  ;;  %v13826_v10 = vpack.c.bf16 %v7763_v44, %v7759_v8  ;;  %v7815_v52 = vld [vmem:[#allocation9 + $0x200] sm:$0xff]  ;;  %v13888_v42 = vpack.c.bf16 %v7892_v20, %v7888_v38  ;;  %v7809_v38 = vld [vmem:[#allocation9 + $0x1d0] sm:$0xff] }
0x10f9   :  { %13817 = vmatprep.subr.bf16.mxu0 %v13816_v36  ;;  %v13828_v46 = vpack.c.bf16 %v7772_v33, %v7768_v34  ;;  %v7819_v36 = vld [vmem:[#allocation9 + $0x220] sm:$0xff]  ;;  %v7840_v8 = vld [vmem:[#allocation9 + $0x2c8] sm:$0xff]  ;;  %v7813_v20 = vld [vmem:[#allocation9 + $0x1f0] sm:$0xff] }
0x10fa   :  { %v13854_v45 = vpack.c.bf16 %v7819_v36, %v7815_v52  ;;  %v7844_v44 = vld [vmem:[#allocation9 + $0x2e8] sm:$0xff]  ;;  %v17150_v52 = vld [vmem:[#allocation3 + $0x48] sm:$0xff] }
0x10fb   :  { %8293 = vmatmul.mubr.f32.gmra.mrb[54].mxu0 %v17113_v51  ;;  %v7767_v51 = vld [vmem:[#allocation9 + $0x80] sm:$0xff]  ;;  %v13864_v33 = vpack.c.bf16 %v7844_v44, %v7840_v8  ;;  %v7754_v36 = vld [vmem:[#allocation9 + $0x18] sm:$0xff]  ;;  %v7761_v8 = vld [vmem:[#allocation9 + $0x50] sm:$0xff] }
0x10fc   :  { %13819 = vmatpush1.bf16.msra.mxu0 %v13818_v59  ;;  %8363 = vmatprep.mubr.f32.mxu0 %v17100_v24  ;;  %v13830_v17 = vpack.c.bf16 %v7771_v63, %v7767_v51  ;;  %v7823_v59 = vld [vmem:[#allocation9 + $0x240] sm:$0xff]  ;;  %v7848_v51 = vld [vmem:[#allocation9 + $0x308] sm:$0xff]  ;;  %v7765_v44 = vld [vmem:[#allocation9 + $0x70] sm:$0xff] }
0x10fd   :  { %13821 = vmatprep.subr.bf16.mxu0 %v13820_v60  ;;  %v7827_v60 = vld [vmem:[#allocation9 + $0x260] sm:$0xff]  ;;  %v7852_v63 = vld [vmem:[#allocation9 + $0x328] sm:$0xff] }
0x10fe   :  { %v13858_v9 = vpack.c.bf16 %v7827_v60, %v7823_v59  ;;  %v7753_v59 = vld [vmem:[#allocation9 + $0x10] sm:$0xff] }
0x10ff   :  { %11872 = vmatmul.mubr.msk.f32.vlgmr.msra.gmra.mrb[52].mxu0 %vm184_vm0, %v17131_v61  ;;  %v13832_v61 = vpack.c.bf16 %v7780_v48, %v7776_v54  ;;  %v13868_v48 = vpack.c.bf16 %v7852_v63, %v7848_v51  ;;  %v7757_v60 = vld [vmem:[#allocation9 + $0x30] sm:$0xff] }
0x1100   :  { %13823 = vmatpush1.bf16.msra.mxu0 %v13822_v0  ;;  %8369 = vmatprep.mubr.f32.mxu0 %v17100_v24  ;;  %v7831_v0 = vld [vmem:[#allocation9 + $0x280] sm:$0xff]  ;;  %v7769_v63 = vld [vmem:[#allocation9 + $0x90] sm:$0xff] }
0x1101   :  { %13825 = vmatprep.subr.bf16.mxu0 %v13824_v58  ;;  %v7835_v58 = vld [vmem:[#allocation9 + $0x2a0] sm:$0xff] }
0x1102   :  { %v13862_v34 = vpack.c.bf16 %v7835_v58, %v7831_v0  ;;  %v13894_v0 = vpack.c.bf16 %v7757_v60, %v7753_v59 }
0x1103   :  { %11873 = vmatmul.mubr.msk.f32.gmra.mrb[54].mxu0 %vm184_vm0, %v17125_v23  ;;  %v7796_v23 = vld [vmem:[#allocation9 + $0x168] sm:$0xff] }
0x1104   :  { %13827 = vmatpush1.bf16.msra.mxu0 %v13826_v10  ;;  %8446 = vmatprep.mubr.f32.mxu0 %v17147_v15  ;;  %v13840_v27 = vpack.c.bf16 %v7796_v23, %v7792_v39  ;;  %v7839_v10 = vld [vmem:[#allocation9 + $0x2c0] sm:$0xff]  ;;  %v13876_v23 = vpack.c.bf16 %v7868_v11, %v7864_v50  ;;  %v7785_v11 = vld [vmem:[#allocation9 + $0x110] sm:$0xff] }
0x1105   :  { %13829 = vmatprep.subr.bf16.mxu0 %v13828_v46  ;;  %v7843_v46 = vld [vmem:[#allocation9 + $0x2e0] sm:$0xff] }
0x1106   :  { %v13866_v54 = vpack.c.bf16 %v7843_v46, %v7839_v10  ;;  %v17165_v10 = vld [vmem:[#allocation3 + $0x70] sm:$0x3f]  ;;  %v13898_v46 = vpack.c.bf16 %v7765_v44, %v7761_v8 }
0x1108   :  { %13831 = vmatpush1.bf16.msra.mxu0 %v13830_v17  ;;  %v7847_v17 = vld [vmem:[#allocation9 + $0x300] sm:$0xff] }
0x1109   :  { %13833 = vmatprep.subr.bf16.mxu0 %v13832_v61  ;;  %v7851_v61 = vld [vmem:[#allocation9 + $0x320] sm:$0xff] }
0x110a   :  { %v13870_v21 = vpack.c.bf16 %v7851_v61, %v7847_v17  ;;  %v7782_v17 = vld [vmem:[#allocation9 + $0xf8] sm:$0xff] }
0x110c   :  { %13835 = vmatpush1.bf16.msra.mxu0 %v13834_v6  ;;  %v7855_v6 = vld [vmem:[#allocation9 + $0x340] sm:$0xff] }
0x110d   :  { %13837 = vmatprep.subr.bf16.mxu0 %v13836_v2  ;;  %v7859_v2 = vld [vmem:[#allocation9 + $0x360] sm:$0xff] }
0x110e   :  { %v13874_v39 = vpack.c.bf16 %v7859_v2, %v7855_v6  ;;  %v7790_v6 = vld [vmem:[#allocation9 + $0x138] sm:$0xff] }
0x1110   :  { %13839 = vmatpush1.bf16.msra.mxu0 %v13838_v12  ;;  %v7863_v12 = vld [vmem:[#allocation9 + $0x380] sm:$0xff] }
0x1111   :  { %13841 = vmatprep.subr.bf16.mxu0 %v13840_v27  ;;  %v7867_v27 = vld [vmem:[#allocation9 + $0x3a0] sm:$0xff] }
0x1112   :  { %v13878_v43 = vpack.c.bf16 %v7867_v27, %v7863_v12  ;;  %v7798_v12 = vld [vmem:[#allocation9 + $0x178] sm:$0xff] }
0x1114   :  { %13843 = vmatpush1.bf16.msra.mxu0 %v13842_v55  ;;  %v7871_v55 = vld [vmem:[#allocation9 + $0x3c0] sm:$0xff] }
0x1115   :  { %13845 = vmatprep.subr.bf16.mxu0 %v13844_v31  ;;  %v7875_v31 = vld [vmem:[#allocation9 + $0x3e0] sm:$0xff] }
0x1116   :  { %v13882_v18 = vpack.c.bf16 %v7875_v31, %v7871_v55 }
0x1118   :  { %13847 = vmatpush1.bf16.msra.mxu0 %v13846_v53  ;;  %v7879_v53 = vld [vmem:[#allocation9 + $0x400] sm:$0xff] }
0x1119   :  { %13849 = vmatprep.subr.bf16.mxu0 %v13848_v37  ;;  %v7883_v37 = vld [vmem:[#allocation9 + $0x420] sm:$0xff] }
0x111a   :  { %v13886_v40 = vpack.c.bf16 %v7883_v37, %v7879_v53  ;;  %v13918_v53 = vpack.c.bf16 %v7805_v41, %v7801_v16 }
0x111c   :  { %13851 = vmatpush1.bf16.msra.mxu0 %v13850_v22  ;;  %v7887_v22 = vld [vmem:[#allocation9 + $0x440] sm:$0xff] }
0x111d   :  { %13853 = vmatprep.subr.bf16.mxu0 %v13852_v47  ;;  %v7891_v47 = vld [vmem:[#allocation9 + $0x460] sm:$0xff] }
0x1120   :  { %13855 = vmatpush1.bf16.msra.mxu0 %v13854_v45  ;;  %v13890_v45 = vpack.c.bf16 %v7891_v47, %v7887_v22  ;;  %v13922_v22 = vpack.c.bf16 %v7813_v20, %v7809_v38 }
0x1121   :  { %13857 = vmatprep.subr.bf16.mxu0 %v13856_v13  ;;  %v13892_v13 = vpack.c.bf16 %v7758_v56, %v7754_v36  ;;  %v7817_v36 = vld [vmem:[#allocation9 + $0x210] sm:$0xff] }
0x1122   :  { %v7821_v56 = vld [vmem:[#allocation9 + $0x230] sm:$0xff] }
0x1123   :  { %v13926_v59 = vpack.c.bf16 %v7821_v56, %v7817_v36 }
0x1124   :  { %13859 = vmatpush1.bf16.msra.mxu0 %v13858_v9  ;;  %v7766_v9 = vld [vmem:[#allocation9 + $0x78] sm:$0xff] }
0x1125   :  { %13861 = vmatprep.subr.bf16.mxu0 %v13860_v3  ;;  %v17160_v3 = vld [vmem:[#allocation3 + $0x58] sm:$0xff]  ;;  %v13896_v58 = vpack.c.bf16 %v7766_v9, %v7762_v1  ;;  %v7825_v1 = vld [vmem:[#allocation9 + $0x250] sm:$0xff] }
0x1126   :  { %v7829_v9 = vld [vmem:[#allocation9 + $0x270] sm:$0xff] }
0x1127   :  { %v13930_v8 = vpack.c.bf16 %v7829_v9, %v7825_v1 }
0x1128   :  { %13863 = vmatpush1.bf16.msra.mxu0 %v13862_v34  ;;  %v7770_v34 = vld [vmem:[#allocation9 + $0x98] sm:$0xff] }
0x1129   :  { %13865 = vmatprep.subr.bf16.mxu0 %v13864_v33  ;;  %v7774_v33 = vld [vmem:[#allocation9 + $0xb8] sm:$0xff] }
0x112a   :  { %v13900_v51 = vpack.c.bf16 %v7774_v33, %v7770_v34  ;;  %v7833_v34 = vld [vmem:[#allocation9 + $0x290] sm:$0xff] }
0x112b   :  { %v7837_v33 = vld [vmem:[#allocation9 + $0x2b0] sm:$0xff] }
0x112c   :  { %13867 = vmatpush1.bf16.msra.mxu0 %v13866_v54  ;;  %v7773_v54 = vld [vmem:[#allocation9 + $0xb0] sm:$0xff] }
0x112d   :  { %13869 = vmatprep.subr.bf16.mxu0 %v13868_v48  ;;  %v7778_v48 = vld [vmem:[#allocation9 + $0xd8] sm:$0xff]  ;;  %v13902_v61 = vpack.c.bf16 %v7773_v54, %v7769_v63  ;;  %v13934_v63 = vpack.c.bf16 %v7837_v33, %v7833_v34 }
0x112e   :  { %v13904_v4 = vpack.c.bf16 %v7782_v17, %v7778_v48  ;;  %v7841_v48 = vld [vmem:[#allocation9 + $0x2d0] sm:$0xff] }
0x112f   :  { %v7845_v17 = vld [vmem:[#allocation9 + $0x2f0] sm:$0xff] }
0x1130   :  { %13871 = vmatpush1.bf16.msra.mxu0 %v13870_v21  ;;  %v7781_v21 = vld [vmem:[#allocation9 + $0xf0] sm:$0xff] }
0x1131   :  { %13873 = vmatprep.subr.bf16.mxu0 %v13872_v7  ;;  %v7786_v7 = vld [vmem:[#allocation9 + $0x118] sm:$0xff]  ;;  %v13906_v2 = vpack.c.bf16 %v7781_v21, %v7777_v5  ;;  %v13938_v5 = vpack.c.bf16 %v7845_v17, %v7841_v48 }
0x1132   :  { %v13908_v50 = vpack.c.bf16 %v7790_v6, %v7786_v7  ;;  %v7849_v7 = vld [vmem:[#allocation9 + $0x310] sm:$0xff] }
0x1133   :  { %v7853_v6 = vld [vmem:[#allocation9 + $0x330] sm:$0xff] }
0x1134   :  { %13875 = vmatpush1.bf16.msra.mxu0 %v13874_v39  ;;  %v7789_v39 = vld [vmem:[#allocation9 + $0x130] sm:$0xff] }
0x1135   :  { %13877 = vmatprep.subr.bf16.mxu0 %v13876_v23  ;;  %v7794_v23 = vld [vmem:[#allocation9 + $0x158] sm:$0xff]  ;;  %v13910_v27 = vpack.c.bf16 %v7789_v39, %v7785_v11  ;;  %v13942_v11 = vpack.c.bf16 %v7853_v6, %v7849_v7  ;;  %v8725_v7 = vld [vmem:[#allocation9 + $0x9e8] sm:$0xff] }
0x1136   :  { %v13912_v57 = vpack.c.bf16 %v7798_v12, %v7794_v23  ;;  %v7857_v23 = vld [vmem:[#allocation9 + $0x350] sm:$0xff] }
0x1137   :  { %v7861_v12 = vld [vmem:[#allocation9 + $0x370] sm:$0xff] }
0x1138   :  { %13879 = vmatpush1.bf16.msra.mxu0 %v13878_v43  ;;  %v7802_v43 = vld [vmem:[#allocation9 + $0x198] sm:$0xff] }
0x1139   :  { %13881 = vmatprep.subr.bf16.mxu0 %v13880_v30  ;;  %v7806_v30 = vld [vmem:[#allocation9 + $0x1b8] sm:$0xff] }
0x113a   :  { %v13916_v31 = vpack.c.bf16 %v7806_v30, %v7802_v43  ;;  %v7865_v43 = vld [vmem:[#allocation9 + $0x390] sm:$0xff] }
0x113b   :  { %v7869_v30 = vld [vmem:[#allocation9 + $0x3b0] sm:$0xff] }
0x113c   :  { %13883 = vmatpush1.bf16.msra.mxu0 %v13882_v18  ;;  %v7810_v18 = vld [vmem:[#allocation9 + $0x1d8] sm:$0xff]  ;;  %v13950_v16 = vpack.c.bf16 %v7869_v30, %v7865_v43 }
0x113d   :  { %13885 = vmatprep.subr.bf16.mxu0 %v13884_v35  ;;  %v7814_v35 = vld [vmem:[#allocation9 + $0x1f8] sm:$0xff] }
0x113e   :  { %v13920_v37 = vpack.c.bf16 %v7814_v35, %v7810_v18  ;;  %v7873_v18 = vld [vmem:[#allocation9 + $0x3d0] sm:$0xff] }
0x113f   :  { %8447 = vmatmul.mubr.f32.vlgmr.msra.gmra.mrb[48].mxu0 %v17150_v52  ;;  %v7877_v35 = vld [vmem:[#allocation9 + $0x3f0] sm:$0xff] }
0x1140   :  { %8452 = vmatprep.mubr.f32.mxu0 %v17153_v32  ;;  %13887 = vmatpush1.bf16.msra.mxu0 %v13886_v40  ;;  %v7818_v40 = vld [vmem:[#allocation9 + $0x218] sm:$0xff]  ;;  %v13954_v38 = vpack.c.bf16 %v7877_v35, %v7873_v18 }
0x1141   :  { %13889 = vmatprep.subr.bf16.mxu0 %v13888_v42  ;;  %v7822_v42 = vld [vmem:[#allocation9 + $0x238] sm:$0xff] }
0x1142   :  { %v13924_v47 = vpack.c.bf16 %v7822_v42, %v7818_v40  ;;  %v7881_v40 = vld [vmem:[#allocation9 + $0x410] sm:$0xff] }
0x1143   :  { %8453 = vmatmul.mubr.f32.gmra.mrb[50].mxu0 %v17156_v62  ;;  %v7885_v42 = vld [vmem:[#allocation9 + $0x430] sm:$0xff] }
0x1144   :  { %13891 = vmatpush1.bf16.msra.mxu0 %v13890_v45  ;;  %8523 = vmatprep.mubr.f32.mxu0 %v17100_v24  ;;  %v7826_v45 = vld [vmem:[#allocation9 + $0x258] sm:$0xff]  ;;  %v13958_v36 = vpack.c.bf16 %v7885_v42, %v7881_v40 }
0x1145   :  { %13893 = vmatprep.subr.bf16.mxu0 %v13892_v13  ;;  %v7830_v13 = vld [vmem:[#allocation9 + $0x278] sm:$0xff] }
0x1146   :  { %v13928_v60 = vpack.c.bf16 %v7830_v13, %v7826_v45  ;;  %v7889_v45 = vld [vmem:[#allocation9 + $0x450] sm:$0xff] }
0x1147   :  { %11874 = vmatmul.mubr.msk.f32.vlgmr.msra.gmra.mrb[48].mxu0 %vm184_vm0, %v17160_v3  ;;  %v7893_v13 = vld [vmem:[#allocation9 + $0x470] sm:$0xff] }
0x1148   :  { %13895 = vmatpush1.bf16.msra.mxu0 %v13894_v0  ;;  %8529 = vmatprep.mubr.f32.mxu0 %v17100_v24  ;;  %v7834_v0 = vld [vmem:[#allocation9 + $0x298] sm:$0xff]  ;;  %v13962_v1 = vpack.c.bf16 %v7893_v13, %v7889_v45 }
0x1149   :  { %13897 = vmatprep.subr.bf16.mxu0 %v13896_v58  ;;  %v7838_v58 = vld [vmem:[#allocation9 + $0x2b8] sm:$0xff] }
0x114a   :  { %v13932_v44 = vpack.c.bf16 %v7838_v58, %v7834_v0  ;;  %v8696_v0 = vld [vmem:[#allocation9 + $0x900] sm:$0xff]  ;;  %v17174_v33 = vld [vmem:[#allocation3 + $0x68] sm:$0xff] }
0x114b   :  { %11875 = vmatmul.mubr.msk.f32.gmra.mrb[50].mxu0 %vm184_vm0, %v17165_v10  ;;  %v8700_v58 = vld [vmem:[#allocation9 + $0x920] sm:$0xff]  ;;  %v17179_v48 = vrot.slane %v17174_v33, 2 }
0x114c   :  { %13899 = vmatpush1.bf16.msra.mxu0 %v13898_v46  ;;  %8600 = vmatprep.mubr.f32.mxu0 %v17147_v15  ;;  %v7793_v15 = vld [vmem:[#allocation9 + $0x150] sm:$0xff]  ;;  %v7842_v46 = vld [vmem:[#allocation9 + $0x2d8] sm:$0xff]  ;;  %v13966_v34 = vpack.c.bf16 %v8700_v58, %v8696_v0 }
0x114d   :  { %13901 = vmatprep.subr.bf16.mxu0 %v13900_v51  ;;  %v13914_v55 = vpack.c.bf16 %v7797_v14, %v7793_v15  ;;  %v7846_v51 = vld [vmem:[#allocation9 + $0x2f8] sm:$0xff]  ;;  %v13946_v15 = vpack.c.bf16 %v7861_v12, %v7857_v23  ;;  %v8733_v23 = vld [vmem:[#allocation9 + $0xa28] sm:$0xff] }
0x114e   :  { %v13936_v54 = vpack.c.bf16 %v7846_v51, %v7842_v46  ;;  %v8704_v46 = vld [vmem:[#allocation9 + $0x940] sm:$0xff] }
0x114f   :  { %v8691_v51 = vld [vmem:[#allocation3 + $0x50] sm:$0xfc] }
0x1150   :  { %13903 = vmatpush1.bf16.msra.mxu0 %v13902_v61  ;;  %v7850_v61 = vld [vmem:[#allocation9 + $0x318] sm:$0xff]  ;;  %v8849_v17 = vrot.slane %v8691_v51, 2  ;;  %v8776_v51 = vld [vmem:[#allocation9 + $0xb80] sm:$0xff] }
0x1151   :  { %13905 = vmatprep.subr.bf16.mxu0 %v13904_v4  ;;  %v7854_v4 = vld [vmem:[#allocation9 + $0x338] sm:$0xff] }
0x1152   :  { %v13940_v21 = vpack.c.bf16 %v7854_v4, %v7850_v61  ;;  %v8712_v4 = vld [vmem:[#allocation9 + $0x980] sm:$0xff] }
0x1154   :  { %13907 = vmatpush1.bf16.msra.mxu0 %v13906_v2  ;;  %v7858_v2 = vld [vmem:[#allocation9 + $0x358] sm:$0xff] }
0x1155   :  { %13909 = vmatprep.subr.bf16.mxu0 %v13908_v50  ;;  %v7862_v50 = vld [vmem:[#allocation9 + $0x378] sm:$0xff] }
0x1156   :  { %v13944_v39 = vpack.c.bf16 %v7862_v50, %v7858_v2  ;;  %v8720_v50 = vld [vmem:[#allocation9 + $0x9c0] sm:$0xff] }
0x1158   :  { %13911 = vmatpush1.bf16.msra.mxu0 %v13910_v27  ;;  %v7866_v27 = vld [vmem:[#allocation9 + $0x398] sm:$0xff] }
0x1159   :  { %13913 = vmatprep.subr.bf16.mxu0 %v13912_v57  ;;  %v7870_v57 = vld [vmem:[#allocation9 + $0x3b8] sm:$0xff] }
0x115a   :  { %v13948_v14 = vpack.c.bf16 %v7870_v57, %v7866_v27  ;;  %v8728_v57 = vld [vmem:[#allocation9 + $0xa00] sm:$0xff] }
0x115c   :  { %13915 = vmatpush1.bf16.msra.mxu0 %v13914_v55  ;;  %v7874_v55 = vld [vmem:[#allocation9 + $0x3d8] sm:$0xff] }
0x115d   :  { %13917 = vmatprep.subr.bf16.mxu0 %v13916_v31  ;;  %v7878_v31 = vld [vmem:[#allocation9 + $0x3f8] sm:$0xff] }
0x115e   :  { %v13952_v41 = vpack.c.bf16 %v7878_v31, %v7874_v55  ;;  %v8736_v55 = vld [vmem:[#allocation9 + $0xa40] sm:$0xff] }
0x115f   :  { %v8740_v31 = vld [vmem:[#allocation9 + $0xa60] sm:$0xff] }
0x1160   :  { %13919 = vmatpush1.bf16.msra.mxu0 %v13918_v53  ;;  %v7882_v53 = vld [vmem:[#allocation9 + $0x418] sm:$0xff]  ;;  %v13986_v18 = vpack.c.bf16 %v8740_v31, %v8736_v55  ;;  %v8808_v55 = vld [vmem:[#allocation9 + $0xc80] sm:$0xff] }
0x1161   :  { %13921 = vmatprep.subr.bf16.mxu0 %v13920_v37  ;;  %v7886_v37 = vld [vmem:[#allocation9 + $0x438] sm:$0xff]  ;;  %v8812_v31 = vld [vmem:[#allocation9 + $0xca0] sm:$0xff] }
0x1162   :  { %v13956_v20 = vpack.c.bf16 %v7886_v37, %v7882_v53  ;;  %v8744_v53 = vld [vmem:[#allocation9 + $0xa80] sm:$0xff] }
0x1163   :  { %v8748_v37 = vld [vmem:[#allocation9 + $0xaa0] sm:$0xff] }
0x1164   :  { %13923 = vmatpush1.bf16.msra.mxu0 %v13922_v22  ;;  %v7890_v22 = vld [vmem:[#allocation9 + $0x458] sm:$0xff]  ;;  %v13990_v40 = vpack.c.bf16 %v8748_v37, %v8744_v53  ;;  %v8816_v53 = vld [vmem:[#allocation9 + $0xcc0] sm:$0xff] }
0x1165   :  { %13925 = vmatprep.subr.bf16.mxu0 %v13924_v47  ;;  %v7894_v47 = vld [vmem:[#allocation9 + $0x478] sm:$0xff]  ;;  %v8820_v37 = vld [vmem:[#allocation9 + $0xce0] sm:$0xff] }
0x1166   :  { %v13960_v56 = vpack.c.bf16 %v7894_v47, %v7890_v22  ;;  %v8752_v22 = vld [vmem:[#allocation9 + $0xac0] sm:$0xff] }
0x1167   :  { %v8756_v47 = vld [vmem:[#allocation9 + $0xae0] sm:$0xff] }
0x1168   :  { %13927 = vmatpush1.bf16.msra.mxu0 %v13926_v59  ;;  %v8697_v59 = vld [vmem:[#allocation9 + $0x908] sm:$0xff]  ;;  %v13994_v45 = vpack.c.bf16 %v8756_v47, %v8752_v22  ;;  %v8690_v22 = vld [vmem:[#allocation3 + $0x48] sm:$0xfc] }
0x1169   :  { %13929 = vmatprep.subr.bf16.mxu0 %v13928_v60  ;;  %v8701_v60 = vld [vmem:[#allocation9 + $0x928] sm:$0xff] }
0x116a   :  { %v13964_v9 = vpack.c.bf16 %v8701_v60, %v8697_v59  ;;  %v8760_v59 = vld [vmem:[#allocation9 + $0xb00] sm:$0xff] }
0x116b   :  { %v8764_v60 = vld [vmem:[#allocation9 + $0xb20] sm:$0xff] }
0x116c   :  { %13931 = vmatpush1.bf16.msra.mxu0 %v13930_v8  ;;  %v8705_v8 = vld [vmem:[#allocation9 + $0x948] sm:$0xff]  ;;  %v13998_v0 = vpack.c.bf16 %v8764_v60, %v8760_v59  ;;  %v8846_v60 = vrot.slane %v8690_v22, 2  ;;  %v8747_v22 = vld [vmem:[#allocation9 + $0xa98] sm:$0xff] }
0x116d   :  { %13933 = vmatprep.subr.bf16.mxu0 %v13932_v44  ;;  %v8709_v44 = vld [vmem:[#allocation9 + $0x968] sm:$0xff] }
0x116e   :  { %v8837_v59 = vld [vmem:[#allocation9 + $0xd68] sm:$0xff] }
0x1170   :  { %13935 = vmatpush1.bf16.msra.mxu0 %v13934_v63  ;;  %v8713_v63 = vld [vmem:[#allocation9 + $0x988] sm:$0xff] }
0x1171   :  { %13937 = vmatprep.subr.bf16.mxu0 %v13936_v54  ;;  %v8717_v54 = vld [vmem:[#allocation9 + $0x9a8] sm:$0xff] }
0x1172   :  { %v13972_v61 = vpack.c.bf16 %v8717_v54, %v8713_v63  ;;  %v8780_v63 = vld [vmem:[#allocation9 + $0xba0] sm:$0xff]  ;;  %v8785_v54 = vld [vmem:[#allocation9 + $0xbc8] sm:$0xff] }
0x1174   :  { %13939 = vmatpush1.bf16.msra.mxu0 %v13938_v5  ;;  %v8716_v5 = vld [vmem:[#allocation9 + $0x9a0] sm:$0xff] }
0x1175   :  { %13941 = vmatprep.subr.bf16.mxu0 %v13940_v21  ;;  %v8721_v21 = vld [vmem:[#allocation9 + $0x9c8] sm:$0xff]  ;;  %v13974_v6 = vpack.c.bf16 %v8716_v5, %v8712_v4  ;;  %v8784_v4 = vld [vmem:[#allocation9 + $0xbc0] sm:$0xff] }
0x1176   :  { %v13976_v2 = vpack.c.bf16 %v8725_v7, %v8721_v21  ;;  %v8788_v5 = vld [vmem:[#allocation9 + $0xbe0] sm:$0xff]  ;;  %v8793_v21 = vld [vmem:[#allocation9 + $0xc08] sm:$0xff] }
0x1177   :  { %v8797_v7 = vld [vmem:[#allocation9 + $0xc28] sm:$0xff] }
0x1178   :  { %13943 = vmatpush1.bf16.msra.mxu0 %v13942_v11  ;;  %v8724_v11 = vld [vmem:[#allocation9 + $0x9e0] sm:$0xff] }
0x1179   :  { %13945 = vmatprep.subr.bf16.mxu0 %v13944_v39  ;;  %v8729_v39 = vld [vmem:[#allocation9 + $0xa08] sm:$0xff]  ;;  %v13978_v12 = vpack.c.bf16 %v8724_v11, %v8720_v50  ;;  %v8792_v50 = vld [vmem:[#allocation9 + $0xc00] sm:$0xff] }
0x117a   :  { %v13980_v27 = vpack.c.bf16 %v8733_v23, %v8729_v39  ;;  %v8796_v11 = vld [vmem:[#allocation9 + $0xc20] sm:$0xff]  ;;  %v8801_v39 = vld [vmem:[#allocation9 + $0xc48] sm:$0xff] }
0x117b   :  { %v8805_v23 = vld [vmem:[#allocation9 + $0xc68] sm:$0xff] }
0x117c   :  { %13947 = vmatpush1.bf16.msra.mxu0 %v13946_v15  ;;  %v8737_v15 = vld [vmem:[#allocation9 + $0xa48] sm:$0xff] }
0x117d   :  { %13949 = vmatprep.subr.bf16.mxu0 %v13948_v14  ;;  %v8741_v14 = vld [vmem:[#allocation9 + $0xa68] sm:$0xff] }
0x117e   :  { %v13984_v30 = vpack.c.bf16 %v8741_v14, %v8737_v15  ;;  %v8809_v15 = vld [vmem:[#allocation9 + $0xc88] sm:$0xff] }
0x117f   :  { %v8813_v14 = vld [vmem:[#allocation9 + $0xca8] sm:$0xff] }
0x1180   :  { %13951 = vmatpush1.bf16.msra.mxu0 %v13950_v16  ;;  %v8745_v16 = vld [vmem:[#allocation9 + $0xa88] sm:$0xff] }
0x1181   :  { %13953 = vmatprep.subr.bf16.mxu0 %v13952_v41  ;;  %v8749_v41 = vld [vmem:[#allocation9 + $0xaa8] sm:$0xff] }
0x1182   :  { %v13988_v35 = vpack.c.bf16 %v8749_v41, %v8745_v16  ;;  %v8817_v16 = vld [vmem:[#allocation9 + $0xcc8] sm:$0xff] }
0x1183   :  { %v8821_v41 = vld [vmem:[#allocation9 + $0xce8] sm:$0xff] }
0x1184   :  { %13955 = vmatpush1.bf16.msra.mxu0 %v13954_v38  ;;  %v8753_v38 = vld [vmem:[#allocation9 + $0xac8] sm:$0xff] }
0x1185   :  { %13957 = vmatprep.subr.bf16.mxu0 %v13956_v20  ;;  %v8757_v20 = vld [vmem:[#allocation9 + $0xae8] sm:$0xff] }
0x1186   :  { %v13992_v42 = vpack.c.bf16 %v8757_v20, %v8753_v38  ;;  %v8825_v38 = vld [vmem:[#allocation9 + $0xd08] sm:$0xff] }
0x1187   :  { %8601 = vmatmul.mubr.f32.vlgmr.msra.gmra.mrb[52].mxu0 %v17150_v52  ;;  %v13968_v52 = vpack.c.bf16 %v8709_v44, %v8705_v8  ;;  %v8768_v8 = vld [vmem:[#allocation9 + $0xb40] sm:$0xff]  ;;  %v8829_v20 = vld [vmem:[#allocation9 + $0xd28] sm:$0xff] }
0x1188   :  { %8606 = vmatprep.mubr.f32.mxu0 %v17153_v32  ;;  %13959 = vmatpush1.bf16.msra.mxu0 %v13958_v36  ;;  %v8708_v32 = vld [vmem:[#allocation9 + $0x960] sm:$0xff]  ;;  %v8761_v36 = vld [vmem:[#allocation9 + $0xb08] sm:$0xff]  ;;  %v14028_v47 = vpack.c.bf16 %v8829_v20, %v8825_v38 }
0x1189   :  { %13961 = vmatprep.subr.bf16.mxu0 %v13960_v56  ;;  %v8765_v56 = vld [vmem:[#allocation9 + $0xb28] sm:$0xff]  ;;  %v8772_v44 = vld [vmem:[#allocation9 + $0xb60] sm:$0xff] }
0x118a   :  { %v13996_v13 = vpack.c.bf16 %v8765_v56, %v8761_v36  ;;  %v8824_v36 = vld [vmem:[#allocation9 + $0xd00] sm:$0xff] }
0x118b   :  { %8607 = vmatmul.mubr.f32.gmra.mrb[54].mxu0 %v17156_v62  ;;  %v13970_v62 = vpack.c.bf16 %v8708_v32, %v8704_v46  ;;  %v14002_v46 = vpack.c.bf16 %v8772_v44, %v8768_v8  ;;  %v8828_v56 = vld [vmem:[#allocation9 + $0xd20] sm:$0xff] }
0x118c   :  { %13963 = vmatpush1.bf16.msra.mxu0 %v13962_v1  ;;  %8677 = vmatprep.mubr.f32.mxu0 %v17100_v24  ;;  %v8769_v1 = vld [vmem:[#allocation9 + $0xb48] sm:$0xff]  ;;  %v17194_v44 = vld [vmem:[#allocation3 + $0x70] sm:$0xff] }
0x118d   :  { %13965 = vmatprep.subr.bf16.mxu0 %v13964_v9  ;;  %v8773_v9 = vld [vmem:[#allocation9 + $0xb68] sm:$0xff] }
0x118e   :  { %v14000_v58 = vpack.c.bf16 %v8773_v9, %v8769_v1  ;;  %v14030_v1 = vpack.c.bf16 %v8828_v56, %v8824_v36  ;;  %v8832_v9 = vld [vmem:[#allocation9 + $0xd40] sm:$0xff] }
0x118f   :  { %11876 = vmatmul.mubr.msk.f32.vlgmr.msra.gmra.mrb[52].mxu0 %vm184_vm0, %v17160_v3  ;;  %v17186_v3 = vsel %vm3191_vm13, %v8849_v17, %v17179_v48  ;;  %v14006_v17 = vpack.c.bf16 %v8780_v63, %v8776_v51  ;;  %v8692_v8 = vld [vmem:[#allocation3 + $0x58] sm:$0xfc]  ;;  %v17203_v63 = vrot.slane %v17194_v44, 2 }
0x1190   :  { %13967 = vmatpush1.bf16.msra.mxu0 %v13966_v34  ;;  %8683 = vmatprep.mubr.f32.mxu0 %v17100_v24  ;;  %v8777_v34 = vld [vmem:[#allocation9 + $0xb88] sm:$0xff]  ;;  %v8852_v51 = vrot.slane %v8692_v8, 2  ;;  %v8758_v8 = vld [vmem:[#allocation9 + $0xaf0] sm:$0xff] }
0x1191   :  { %13969 = vmatprep.subr.bf16.mxu0 %v13968_v52  ;;  %v8781_v52 = vld [vmem:[#allocation9 + $0xba8] sm:$0xff] }
0x1192   :  { %v14004_v32 = vpack.c.bf16 %v8781_v52, %v8777_v34  ;;  %v8699_v52 = vld [vmem:[#allocation9 + $0x918] sm:$0xff] }
0x1193   :  { %11877 = vmatmul.mubr.msk.f32.gmra.mrb[54].mxu0 %vm184_vm0, %v17165_v10  ;;  %v8732_v10 = vld [vmem:[#allocation9 + $0xa20] sm:$0xff] }
0x1194   :  { %13971 = vmatpush1.bf16.msra.mxu0 %v13970_v62  ;;  %8927 = vmatprep.mubr.f32.mxu0 %v17186_v3  ;;  %v13982_v43 = vpack.c.bf16 %v8732_v10, %v8728_v57  ;;  %v8789_v62 = vld [vmem:[#allocation9 + $0xbe8] sm:$0xff]  ;;  %v8800_v57 = vld [vmem:[#allocation9 + $0xc40] sm:$0xff] }
0x1195   :  { %13973 = vmatprep.subr.bf16.mxu0 %v13972_v61  ;;  %v14008_v61 = vpack.c.bf16 %v8789_v62, %v8785_v54  ;;  %v8804_v10 = vld [vmem:[#allocation9 + $0xc60] sm:$0xff]  ;;  %v8698_v62 = vld [vmem:[#allocation9 + $0x910] sm:$0xff] }
0x1198   :  { %13975 = vmatpush1.bf16.msra.mxu0 %v13974_v6  ;;  %v14010_v6 = vpack.c.bf16 %v8788_v5, %v8784_v4  ;;  %v8711_v4 = vld [vmem:[#allocation9 + $0x978] sm:$0xff]  ;;  %v17209_v5 = vsel %vm3191_vm13, %v8852_v51, %v17203_v63 }
0x1199   :  { %13977 = vmatprep.subr.bf16.mxu0 %v13976_v2  ;;  %v14012_v2 = vpack.c.bf16 %v8797_v7, %v8793_v21 }
0x119c   :  { %13979 = vmatpush1.bf16.msra.mxu0 %v13978_v12  ;;  %v14014_v12 = vpack.c.bf16 %v8796_v11, %v8792_v50  ;;  %v8715_v50 = vld [vmem:[#allocation9 + $0x998] sm:$0xff] }
0x119d   :  { %13981 = vmatprep.subr.bf16.mxu0 %v13980_v27  ;;  %v14016_v27 = vpack.c.bf16 %v8805_v23, %v8801_v39  ;;  %v8719_v11 = vld [vmem:[#allocation9 + $0x9b8] sm:$0xff] }
0x119e   :  { %v14044_v23 = vpack.c.bf16 %v8719_v11, %v8715_v50  ;;  %v8783_v50 = vld [vmem:[#allocation9 + $0xbb8] sm:$0xff] }
0x11a0   :  { %13983 = vmatpush1.bf16.msra.mxu0 %v13982_v43  ;;  %v14018_v43 = vpack.c.bf16 %v8804_v10, %v8800_v57  ;;  %v8723_v57 = vld [vmem:[#allocation9 + $0x9d8] sm:$0xff] }
0x11a1   :  { %13985 = vmatprep.subr.bf16.mxu0 %v13984_v30  ;;  %v14020_v30 = vpack.c.bf16 %v8813_v14, %v8809_v15  ;;  %v8727_v10 = vld [vmem:[#allocation9 + $0x9f8] sm:$0xff] }
0x11a2   :  { %v14048_v14 = vpack.c.bf16 %v8727_v10, %v8723_v57  ;;  %v8791_v57 = vld [vmem:[#allocation9 + $0xbf8] sm:$0xff] }
0x11a4   :  { %13987 = vmatpush1.bf16.msra.mxu0 %v13986_v18  ;;  %v14022_v18 = vpack.c.bf16 %v8812_v31, %v8808_v55  ;;  %v8731_v55 = vld [vmem:[#allocation9 + $0xa18] sm:$0xff] }
0x11a5   :  { %13989 = vmatprep.subr.bf16.mxu0 %v13988_v35  ;;  %v14024_v35 = vpack.c.bf16 %v8821_v41, %v8817_v16  ;;  %v8735_v31 = vld [vmem:[#allocation9 + $0xa38] sm:$0xff] }
0x11a6   :  { %v14052_v41 = vpack.c.bf16 %v8735_v31, %v8731_v55  ;;  %v8799_v55 = vld [vmem:[#allocation9 + $0xc38] sm:$0xff] }
0x11a8   :  { %13991 = vmatpush1.bf16.msra.mxu0 %v13990_v40  ;;  %v17189_v40 = vld [vmem:[#allocation3 + $0x60] sm:$0xff] }
0x11a9   :  { %13993 = vmatprep.subr.bf16.mxu0 %v13992_v42  ;;  %v14026_v42 = vpack.c.bf16 %v8820_v37, %v8816_v53  ;;  %v8739_v53 = vld [vmem:[#allocation9 + $0xa58] sm:$0xff] }
0x11aa   :  { %v8743_v37 = vld [vmem:[#allocation9 + $0xa78] sm:$0xff] }
0x11ab   :  { %v14056_v20 = vpack.c.bf16 %v8743_v37, %v8739_v53  ;;  %v8807_v53 = vld [vmem:[#allocation9 + $0xc78] sm:$0xff] }
0x11ac   :  { %13995 = vmatpush1.bf16.msra.mxu0 %v13994_v45  ;;  %v17192_v45 = vrot.slane %v17189_v40, 2 }
0x11ad   :  { %13997 = vmatprep.subr.bf16.mxu0 %v13996_v13  ;;  %v8833_v13 = vld [vmem:[#allocation9 + $0xd48] sm:$0xff] }
0x11ae   :  { %v17198_v34 = vsel %vm3191_vm13, %v8846_v60, %v17192_v45  ;;  %v8755_v60 = vld [vmem:[#allocation9 + $0xad8] sm:$0xff] }
0x11b0   :  { %13999 = vmatpush1.bf16.msra.mxu0 %v13998_v0  ;;  %v14032_v0 = vpack.c.bf16 %v8837_v59, %v8833_v13  ;;  %v8746_v13 = vld [vmem:[#allocation9 + $0xa90] sm:$0xff] }
0x11b1   :  { %14001 = vmatprep.subr.bf16.mxu0 %v14000_v58  ;;  %v8836_v58 = vld [vmem:[#allocation9 + $0xd60] sm:$0xff]  ;;  %v8750_v59 = vld [vmem:[#allocation9 + $0xab0] sm:$0xff] }
0x11b4   :  { %14003 = vmatpush1.bf16.msra.mxu0 %v14002_v46  ;;  %v8703_v46 = vld [vmem:[#allocation9 + $0x938] sm:$0xff] }
0x11b5   :  { %14005 = vmatprep.subr.bf16.mxu0 %v14004_v32  ;;  %v14034_v32 = vpack.c.bf16 %v8836_v58, %v8832_v9  ;;  %v14036_v54 = vpack.c.bf16 %v8703_v46, %v8699_v52  ;;  %v14062_v9 = vpack.c.bf16 %v8750_v59, %v8746_v13  ;;  %v8754_v58 = vld [vmem:[#allocation9 + $0xad0] sm:$0xff]  ;;  %v8763_v52 = vld [vmem:[#allocation9 + $0xb18] sm:$0xff] }
0x11b6   :  { %v8767_v46 = vld [vmem:[#allocation9 + $0xb38] sm:$0xff]  ;;  %v8814_v13 = vld [vmem:[#allocation9 + $0xcb0] sm:$0xff] }
0x11b7   :  { %v14068_v51 = vpack.c.bf16 %v8767_v46, %v8763_v52  ;;  %v8819_v59 = vld [vmem:[#allocation9 + $0xcd8] sm:$0xff] }
0x11b8   :  { %14007 = vmatpush1.bf16.msra.mxu0 %v14006_v17  ;;  %v8702_v17 = vld [vmem:[#allocation9 + $0x930] sm:$0xff]  ;;  %v8831_v52 = vld [vmem:[#allocation9 + $0xd38] sm:$0xff] }
0x11b9   :  { %14009 = vmatprep.subr.bf16.mxu0 %v14008_v61  ;;  %v8707_v61 = vld [vmem:[#allocation9 + $0x958] sm:$0xff]  ;;  %v14038_v21 = vpack.c.bf16 %v8702_v17, %v8698_v62  ;;  %v8766_v62 = vld [vmem:[#allocation9 + $0xb30] sm:$0xff] }
0x11ba   :  { %v14040_v7 = vpack.c.bf16 %v8711_v4, %v8707_v61  ;;  %v8771_v17 = vld [vmem:[#allocation9 + $0xb58] sm:$0xff] }
0x11bb   :  { %v8775_v61 = vld [vmem:[#allocation9 + $0xb78] sm:$0xff] }
0x11bc   :  { %14011 = vmatpush1.bf16.msra.mxu0 %v14010_v6  ;;  %v8706_v6 = vld [vmem:[#allocation9 + $0x950] sm:$0xff] }
0x11bd   :  { %14013 = vmatprep.subr.bf16.mxu0 %v14012_v2  ;;  %v8710_v2 = vld [vmem:[#allocation9 + $0x970] sm:$0xff] }
0x11be   :  { %v14042_v39 = vpack.c.bf16 %v8710_v2, %v8706_v6  ;;  %v8774_v6 = vld [vmem:[#allocation9 + $0xb70] sm:$0xff]  ;;  %v8779_v2 = vld [vmem:[#allocation9 + $0xb98] sm:$0xff] }
0x11c0   :  { %14015 = vmatpush1.bf16.msra.mxu0 %v14014_v12  ;;  %v8714_v12 = vld [vmem:[#allocation9 + $0x990] sm:$0xff] }
0x11c1   :  { %14017 = vmatprep.subr.bf16.mxu0 %v14016_v27  ;;  %v8718_v27 = vld [vmem:[#allocation9 + $0x9b0] sm:$0xff] }
0x11c2   :  { %v14046_v15 = vpack.c.bf16 %v8718_v27, %v8714_v12  ;;  %v8782_v12 = vld [vmem:[#allocation9 + $0xbb0] sm:$0xff]  ;;  %v8787_v27 = vld [vmem:[#allocation9 + $0xbd8] sm:$0xff] }
0x11c4   :  { %14019 = vmatpush1.bf16.msra.mxu0 %v14018_v43  ;;  %v8722_v43 = vld [vmem:[#allocation9 + $0x9d0] sm:$0xff] }
0x11c5   :  { %14021 = vmatprep.subr.bf16.mxu0 %v14020_v30  ;;  %v8726_v30 = vld [vmem:[#allocation9 + $0x9f0] sm:$0xff] }
0x11c6   :  { %v14050_v16 = vpack.c.bf16 %v8726_v30, %v8722_v43  ;;  %v8790_v43 = vld [vmem:[#allocation9 + $0xbf0] sm:$0xff]  ;;  %v8795_v30 = vld [vmem:[#allocation9 + $0xc18] sm:$0xff] }
0x11c8   :  { %14023 = vmatpush1.bf16.msra.mxu0 %v14022_v18  ;;  %v8730_v18 = vld [vmem:[#allocation9 + $0xa10] sm:$0xff] }
0x11c9   :  { %14025 = vmatprep.subr.bf16.mxu0 %v14024_v35  ;;  %v8734_v35 = vld [vmem:[#allocation9 + $0xa30] sm:$0xff] }
0x11ca   :  { %v14054_v38 = vpack.c.bf16 %v8734_v35, %v8730_v18  ;;  %v8798_v18 = vld [vmem:[#allocation9 + $0xc30] sm:$0xff]  ;;  %v8803_v35 = vld [vmem:[#allocation9 + $0xc58] sm:$0xff] }
0x11cc   :  { %14027 = vmatpush1.bf16.msra.mxu0 %v14026_v42  ;;  %v8742_v42 = vld [vmem:[#allocation9 + $0xa70] sm:$0xff] }
0x11cd   :  { %14029 = vmatprep.subr.bf16.mxu0 %v14028_v47  ;;  %v8751_v47 = vld [vmem:[#allocation9 + $0xab8] sm:$0xff] }
0x11ce   :  { %v14060_v56 = vpack.c.bf16 %v8751_v47, %v8747_v22  ;;  %v8815_v22 = vld [vmem:[#allocation9 + $0xcb8] sm:$0xff] }
0x11cf   :  { %8928 = vmatmul.mubr.f32.vlgmr.msra.gmra.mrb[48].mxu0 %v17198_v34 }
0x11d0   :  { %8933 = vmatprep.mubr.f32.mxu0 %v17179_v48  ;;  %14031 = vmatpush1.bf16.msra.mxu0 %v14030_v1  ;;  %v8759_v1 = vld [vmem:[#allocation9 + $0xaf8] sm:$0xff] }
0x11d1   :  { %14033 = vmatprep.subr.bf16.mxu0 %v14032_v0  ;;  %v14064_v0 = vpack.c.bf16 %v8759_v1, %v8755_v60  ;;  %v8823_v60 = vld [vmem:[#allocation9 + $0xcf8] sm:$0xff] }
0x11d3   :  { %8934 = vmatmul.mubr.f32.gmra.mrb[50].mxu0 %v17192_v45 }
0x11d4   :  { %14035 = vmatpush1.bf16.msra.mxu0 %v14034_v32  ;;  %9004 = vmatprep.mubr.f32.mxu0 %v17100_v24  ;;  %v14066_v32 = vpack.c.bf16 %v8758_v8, %v8754_v58  ;;  %v8822_v58 = vld [vmem:[#allocation9 + $0xcf0] sm:$0xff]  ;;  %v8827_v8 = vld [vmem:[#allocation9 + $0xd18] sm:$0xff] }
0x11d5   :  { %14037 = vmatprep.subr.bf16.mxu0 %v14036_v54  ;;  %v8762_v54 = vld [vmem:[#allocation9 + $0xb10] sm:$0xff] }
0x11d6   :  { %v14070_v4 = vpack.c.bf16 %v8766_v62, %v8762_v54  ;;  %v8830_v54 = vld [vmem:[#allocation9 + $0xd30] sm:$0xff]  ;;  %v8835_v62 = vld [vmem:[#allocation9 + $0xd58] sm:$0xff] }
0x11d7   :  { %11878 = vmatmul.mubr.msk.f32.vlgmr.msra.gmra.mrb[48].mxu0 %vm184_vm0, %v17209_v5 }
0x11d8   :  { %14039 = vmatpush1.bf16.msra.mxu0 %v14038_v21  ;;  %9010 = vmatprep.mubr.f32.mxu0 %v17100_v24  ;;  %v14072_v21 = vpack.c.bf16 %v8775_v61, %v8771_v17  ;;  %v8839_v17 = vld [vmem:[#allocation9 + $0xd78] sm:$0xff] }
0x11d9   :  { %14041 = vmatprep.subr.bf16.mxu0 %v14040_v7  ;;  %v8770_v7 = vld [vmem:[#allocation9 + $0xb50] sm:$0xff] }
0x11da   :  { %v14074_v11 = vpack.c.bf16 %v8774_v6, %v8770_v7  ;;  %v8838_v7 = vld [vmem:[#allocation9 + $0xd70] sm:$0xff]  ;;  %v9189_v6 = vld [vmem:[#allocation9 + $0xd88] sm:$0xff] }
0x11db   :  { %11879 = vmatmul.mubr.msk.f32.gmra.mrb[50].mxu0 %vm184_vm0, %v17203_v63 }
0x11dc   :  { %14043 = vmatpush1.bf16.msra.mxu0 %v14042_v39  ;;  %9081 = vmatprep.mubr.f32.mxu0 %v17186_v3  ;;  %v8738_v3 = vld [vmem:[#allocation9 + $0xa50] sm:$0xff]  ;;  %v14076_v39 = vpack.c.bf16 %v8783_v50, %v8779_v2  ;;  %v9193_v2 = vld [vmem:[#allocation9 + $0xda8] sm:$0xff] }
0x11dd   :  { %14045 = vmatprep.subr.bf16.mxu0 %v14044_v23  ;;  %v14058_v36 = vpack.c.bf16 %v8742_v42, %v8738_v3  ;;  %v8778_v23 = vld [vmem:[#allocation9 + $0xb90] sm:$0xff]  ;;  %v8811_v42 = vld [vmem:[#allocation9 + $0xc98] sm:$0xff] }
0x11de   :  { %v14078_v10 = vpack.c.bf16 %v8782_v12, %v8778_v23  ;;  %v8806_v3 = vld [vmem:[#allocation9 + $0xc70] sm:$0xff]  ;;  %v9192_v23 = vld [vmem:[#allocation9 + $0xda0] sm:$0xff]  ;;  %v9197_v12 = vld [vmem:[#allocation9 + $0xdc8] sm:$0xff] }
0x11e0   :  { %14047 = vmatpush1.bf16.msra.mxu0 %v14046_v15  ;;  %v14080_v15 = vpack.c.bf16 %v8791_v57, %v8787_v27  ;;  %v9201_v27 = vld [vmem:[#allocation9 + $0xde8] sm:$0xff] }
0x11e1   :  { %14049 = vmatprep.subr.bf16.mxu0 %v14048_v14  ;;  %v8786_v14 = vld [vmem:[#allocation9 + $0xbd0] sm:$0xff] }
0x11e2   :  { %v14082_v31 = vpack.c.bf16 %v8790_v43, %v8786_v14  ;;  %v9180_v14 = vld [vmem:[#allocation3 + $0x50] sm:$0xf8]  ;;  %v9209_v43 = vld [vmem:[#allocation9 + $0xe28] sm:$0xff] }
0x11e4   :  { %14051 = vmatpush1.bf16.msra.mxu0 %v14050_v16  ;;  %v14084_v16 = vpack.c.bf16 %v8799_v55, %v8795_v30  ;;  %v9345_v30 = vrot.slane %v17174_v33, 3  ;;  %v9344_v55 = vrot.slane %v9180_v14, 3  ;;  %v9203_v33 = vld [vmem:[#allocation9 + $0xdf8] sm:$0xff] }
0x11e5   :  { %14053 = vmatprep.subr.bf16.mxu0 %v14052_v41  ;;  %v8794_v41 = vld [vmem:[#allocation9 + $0xc10] sm:$0xff] }
0x11e6   :  { %v14086_v37 = vpack.c.bf16 %v8798_v18, %v8794_v41  ;;  %v9208_v41 = vld [vmem:[#allocation9 + $0xe20] sm:$0xff]  ;;  %v9213_v18 = vld [vmem:[#allocation9 + $0xe48] sm:$0xff] }
0x11e8   :  { %14055 = vmatpush1.bf16.msra.mxu0 %v14054_v38  ;;  %v14088_v38 = vpack.c.bf16 %v8807_v53, %v8803_v35  ;;  %v9217_v35 = vld [vmem:[#allocation9 + $0xe68] sm:$0xff] }
0x11e9   :  { %14057 = vmatprep.subr.bf16.mxu0 %v14056_v20  ;;  %v8802_v20 = vld [vmem:[#allocation9 + $0xc50] sm:$0xff] }
0x11ea   :  { %v14090_v47 = vpack.c.bf16 %v8806_v3, %v8802_v20  ;;  %v9216_v20 = vld [vmem:[#allocation9 + $0xe60] sm:$0xff]  ;;  %v9221_v3 = vld [vmem:[#allocation9 + $0xe88] sm:$0xff] }
0x11ec   :  { %14059 = vmatpush1.bf16.msra.mxu0 %v14058_v36  ;;  %v14092_v36 = vpack.c.bf16 %v8815_v22, %v8811_v42  ;;  %v9225_v42 = vld [vmem:[#allocation9 + $0xea8] sm:$0xff] }
0x11ed   :  { %14061 = vmatprep.subr.bf16.mxu0 %v14060_v56  ;;  %v8810_v56 = vld [vmem:[#allocation9 + $0xc90] sm:$0xff] }
0x11ee   :  { %v14094_v1 = vpack.c.bf16 %v8814_v13, %v8810_v56  ;;  %v9229_v56 = vld [vmem:[#allocation9 + $0xec8] sm:$0xff] }
0x11ef   :  { %v9233_v13 = vld [vmem:[#allocation9 + $0xee8] sm:$0xff] }
0x11f0   :  { %14063 = vmatpush1.bf16.msra.mxu0 %v14062_v9  ;;  %v14096_v9 = vpack.c.bf16 %v8823_v60, %v8819_v59  ;;  %v14128_v60 = vpack.c.bf16 %v9233_v13, %v9229_v56  ;;  %v9292_v56 = vld [vmem:[#allocation9 + $0x10c0] sm:$0xff] }
0x11f1   :  { %14065 = vmatprep.subr.bf16.mxu0 %v14064_v0  ;;  %v8818_v0 = vld [vmem:[#allocation9 + $0xcd0] sm:$0xff]  ;;  %v9296_v13 = vld [vmem:[#allocation9 + $0x10e0] sm:$0xff] }
0x11f2   :  { %v14098_v46 = vpack.c.bf16 %v8822_v58, %v8818_v0  ;;  %v9237_v0 = vld [vmem:[#allocation9 + $0xf08] sm:$0xff] }
0x11f3   :  { %v9241_v58 = vld [vmem:[#allocation9 + $0xf28] sm:$0xff] }
0x11f4   :  { %14067 = vmatpush1.bf16.msra.mxu0 %v14066_v32  ;;  %v14100_v32 = vpack.c.bf16 %v8831_v52, %v8827_v8  ;;  %v14132_v52 = vpack.c.bf16 %v9241_v58, %v9237_v0  ;;  %v9300_v0 = vld [vmem:[#allocation9 + $0x1100] sm:$0xff] }
0x11f5   :  { %14069 = vmatprep.subr.bf16.mxu0 %v14068_v51  ;;  %v8826_v51 = vld [vmem:[#allocation9 + $0xd10] sm:$0xff]  ;;  %v9304_v58 = vld [vmem:[#allocation9 + $0x1120] sm:$0xff] }
0x11f6   :  { %v14102_v61 = vpack.c.bf16 %v8830_v54, %v8826_v51  ;;  %v9245_v51 = vld [vmem:[#allocation9 + $0xf48] sm:$0xff] }
0x11f7   :  { %v9249_v54 = vld [vmem:[#allocation9 + $0xf68] sm:$0xff] }
0x11f8   :  { %14071 = vmatpush1.bf16.msra.mxu0 %v14070_v4  ;;  %v14104_v4 = vpack.c.bf16 %v8839_v17, %v8835_v62  ;;  %v14136_v17 = vpack.c.bf16 %v9249_v54, %v9245_v51  ;;  %v9308_v51 = vld [vmem:[#allocation9 + $0x1140] sm:$0xff] }
0x11f9   :  { %14073 = vmatprep.subr.bf16.mxu0 %v14072_v21  ;;  %v8834_v21 = vld [vmem:[#allocation9 + $0xd50] sm:$0xff]  ;;  %v9312_v54 = vld [vmem:[#allocation9 + $0x1160] sm:$0xff] }
0x11fa   :  { %v14106_v50 = vpack.c.bf16 %v8838_v7, %v8834_v21  ;;  %v9253_v21 = vld [vmem:[#allocation9 + $0xf88] sm:$0xff] }
0x11fb   :  { %v9257_v7 = vld [vmem:[#allocation9 + $0xfa8] sm:$0xff] }
0x11fc   :  { %14075 = vmatpush1.bf16.msra.mxu0 %v14074_v11  ;;  %v14108_v11 = vpack.c.bf16 %v9193_v2, %v9189_v6  ;;  %v14140_v2 = vpack.c.bf16 %v9257_v7, %v9253_v21  ;;  %v9179_v21 = vld [vmem:[#allocation3 + $0x48] sm:$0xf8] }
0x11fd   :  { %14077 = vmatprep.subr.bf16.mxu0 %v14076_v39  ;;  %v9188_v39 = vld [vmem:[#allocation9 + $0xd80] sm:$0xff] }
0x11fe   :  { %v14110_v57 = vpack.c.bf16 %v9192_v23, %v9188_v39  ;;  %v9261_v39 = vld [vmem:[#allocation9 + $0xfc8] sm:$0xff] }
0x11ff   :  { %v9265_v23 = vld [vmem:[#allocation9 + $0xfe8] sm:$0xff] }
0x1200   :  { %14079 = vmatpush1.bf16.msra.mxu0 %v14078_v10  ;;  %v14112_v10 = vpack.c.bf16 %v9201_v27, %v9197_v12  ;;  %v14144_v27 = vpack.c.bf16 %v9265_v23, %v9261_v39  ;;  %v9329_v39 = vld [vmem:[#allocation9 + $0x11e8] sm:$0xff] }
0x1201   :  { %14081 = vmatprep.subr.bf16.mxu0 %v14080_v15  ;;  %v9196_v15 = vld [vmem:[#allocation9 + $0xdc0] sm:$0xff] }
0x1204   :  { %14083 = vmatpush1.bf16.msra.mxu0 %v14082_v31 }
0x1205   :  { %14085 = vmatprep.subr.bf16.mxu0 %v14084_v16  ;;  %v9204_v16 = vld [vmem:[#allocation9 + $0xe00] sm:$0xff] }
0x1206   :  { %v14118_v53 = vpack.c.bf16 %v9208_v41, %v9204_v16 }
0x1208   :  { %14087 = vmatpush1.bf16.msra.mxu0 %v14086_v37  ;;  %v14120_v37 = vpack.c.bf16 %v9217_v35, %v9213_v18  ;;  %v9276_v18 = vld [vmem:[#allocation9 + $0x1040] sm:$0xff] }
0x1209   :  { %14089 = vmatprep.subr.bf16.mxu0 %v14088_v38  ;;  %v9212_v38 = vld [vmem:[#allocation9 + $0xe40] sm:$0xff] }
0x120a   :  { %v14122_v22 = vpack.c.bf16 %v9216_v20, %v9212_v38  ;;  %v9280_v35 = vld [vmem:[#allocation9 + $0x1060] sm:$0xff] }
0x120b   :  { %v14154_v38 = vpack.c.bf16 %v9280_v35, %v9276_v18  ;;  %v9190_v35 = vld [vmem:[#allocation9 + $0xd90] sm:$0xff] }
0x120c   :  { %14091 = vmatpush1.bf16.msra.mxu0 %v14090_v47  ;;  %v14124_v47 = vpack.c.bf16 %v9225_v42, %v9221_v3  ;;  %v9284_v3 = vld [vmem:[#allocation9 + $0x1080] sm:$0xff] }
0x120d   :  { %14093 = vmatprep.subr.bf16.mxu0 %v14092_v36  ;;  %v9224_v36 = vld [vmem:[#allocation9 + $0xea0] sm:$0xff] }
0x120e   :  { %v9288_v42 = vld [vmem:[#allocation9 + $0x10a0] sm:$0xff] }
0x1210   :  { %14095 = vmatpush1.bf16.msra.mxu0 %v14094_v1  ;;  %v9228_v1 = vld [vmem:[#allocation9 + $0xec0] sm:$0xff] }
0x1211   :  { %14097 = vmatprep.subr.bf16.mxu0 %v14096_v9  ;;  %v9232_v9 = vld [vmem:[#allocation9 + $0xee0] sm:$0xff] }
0x1212   :  { %v14130_v8 = vpack.c.bf16 %v9232_v9, %v9228_v1  ;;  %v14162_v1 = vpack.c.bf16 %v9296_v13, %v9292_v56 }
0x1214   :  { %14099 = vmatpush1.bf16.msra.mxu0 %v14098_v46  ;;  %v9236_v46 = vld [vmem:[#allocation9 + $0xf00] sm:$0xff] }
0x1215   :  { %14101 = vmatprep.subr.bf16.mxu0 %v14100_v32  ;;  %v9240_v32 = vld [vmem:[#allocation9 + $0xf20] sm:$0xff] }
0x1216   :  { %v14134_v62 = vpack.c.bf16 %v9240_v32, %v9236_v46  ;;  %v14166_v46 = vpack.c.bf16 %v9304_v58, %v9300_v0  ;;  %v9219_v0 = vld [vmem:[#allocation9 + $0xe78] sm:$0xff] }
0x1217   :  { %9082 = vmatmul.mubr.f32.vlgmr.msra.gmra.mrb[52].mxu0 %v17198_v34  ;;  %v9200_v34 = vld [vmem:[#allocation9 + $0xde0] sm:$0xff] }
0x1218   :  { %9087 = vmatprep.mubr.f32.mxu0 %v17179_v48  ;;  %14103 = vmatpush1.bf16.msra.mxu0 %v14102_v61  ;;  %v9205_v48 = vld [vmem:[#allocation9 + $0xe08] sm:$0xff]  ;;  %v9244_v61 = vld [vmem:[#allocation9 + $0xf40] sm:$0xff] }
0x1219   :  { %14105 = vmatprep.subr.bf16.mxu0 %v14104_v4  ;;  %v14116_v31 = vpack.c.bf16 %v9209_v43, %v9205_v48  ;;  %v9248_v4 = vld [vmem:[#allocation9 + $0xf60] sm:$0xff] }
0x121a   :  { %v14138_v6 = vpack.c.bf16 %v9248_v4, %v9244_v61  ;;  %v9268_v43 = vld [vmem:[#allocation9 + $0x1000] sm:$0xff]  ;;  %v14170_v61 = vpack.c.bf16 %v9312_v54, %v9308_v51  ;;  %v9186_v4 = vld [vmem:[#allocation3 + $0x80] sm:$0x1]  ;;  %v9227_v51 = vld [vmem:[#allocation9 + $0xeb8] sm:$0xff] }
0x121b   :  { %9088 = vmatmul.mubr.f32.gmra.mrb[54].mxu0 %v17192_v45  ;;  %v14114_v45 = vpack.c.bf16 %v9200_v34, %v9196_v15  ;;  %v9269_v15 = vld [vmem:[#allocation9 + $0x1008] sm:$0xff]  ;;  %v9352_v23 = vrot.slane %v9186_v4, 3  ;;  %v9231_v4 = vld [vmem:[#allocation9 + $0xed8] sm:$0xff] }
0x121c   :  { %14107 = vmatpush1.bf16.msra.mxu0 %v14106_v50  ;;  %9158 = vmatprep.mubr.f32.mxu0 %v17100_v24  ;;  %v9252_v50 = vld [vmem:[#allocation9 + $0xf80] sm:$0xff]  ;;  %v9273_v34 = vld [vmem:[#allocation9 + $0x1028] sm:$0xff] }
0x121d   :  { %14109 = vmatprep.subr.bf16.mxu0 %v14108_v11  ;;  %v9256_v11 = vld [vmem:[#allocation9 + $0xfa0] sm:$0xff]  ;;  %v14148_v48 = vpack.c.bf16 %v9273_v34, %v9269_v15 }
0x121e   :  { %v14142_v12 = vpack.c.bf16 %v9256_v11, %v9252_v50  ;;  %v9342_v50 = vrot.slane %v17189_v40, 3  ;;  %v9325_v11 = vld [vmem:[#allocation9 + $0x11c8] sm:$0xff]  ;;  %v9324_v15 = vld [vmem:[#allocation9 + $0x11c0] sm:$0xff]  ;;  %v17241_v40 = vsel %vm3688_vm15, %v9345_v30, %v9352_v23 }
0x121f   :  { %11880 = vmatmul.mubr.msk.f32.vlgmr.msra.gmra.mrb[52].mxu0 %vm184_vm0, %v17209_v5  ;;  %v17230_v5 = vsel %vm3688_vm15, %v9344_v55, %v9345_v30  ;;  %v9277_v55 = vld [vmem:[#allocation9 + $0x1048] sm:$0xff]  ;;  %v9328_v34 = vld [vmem:[#allocation9 + $0x11e0] sm:$0xff] }
0x1220   :  { %14111 = vmatpush1.bf16.msra.mxu0 %v14110_v57  ;;  %9164 = vmatprep.mubr.f32.mxu0 %v17100_v24  ;;  %v9260_v57 = vld [vmem:[#allocation9 + $0xfc0] sm:$0xff] }
0x1221   :  { %14113 = vmatprep.subr.bf16.mxu0 %v14112_v10  ;;  %v9264_v10 = vld [vmem:[#allocation9 + $0xfe0] sm:$0xff] }
0x1222   :  { %v14146_v14 = vpack.c.bf16 %v9264_v10, %v9260_v57  ;;  %v14176_v10 = vpack.c.bf16 %v9329_v39, %v9325_v11  ;;  %v9243_v11 = vld [vmem:[#allocation9 + $0xf38] sm:$0xff] }
0x1223   :  { %11881 = vmatmul.mubr.msk.f32.gmra.mrb[54].mxu0 %vm184_vm0, %v17203_v63  ;;  %v9220_v63 = vld [vmem:[#allocation9 + $0xe80] sm:$0xff] }
0x1224   :  { %14115 = vmatpush1.bf16.msra.mxu0 %v14114_v45  ;;  %9428 = vmatprep.mubr.f32.mxu0 %v17230_v5  ;;  %v14126_v59 = vpack.c.bf16 %v9224_v36, %v9220_v63  ;;  %v9272_v45 = vld [vmem:[#allocation9 + $0x1020] sm:$0xff]  ;;  %v14158_v63 = vpack.c.bf16 %v9288_v42, %v9284_v3 }
0x1225   :  { %14117 = vmatprep.subr.bf16.mxu0 %v14116_v31  ;;  %v9281_v31 = vld [vmem:[#allocation9 + $0x1068] sm:$0xff]  ;;  %v14150_v16 = vpack.c.bf16 %v9272_v45, %v9268_v43  ;;  %v9191_v45 = vld [vmem:[#allocation9 + $0xd98] sm:$0xff] }
0x1226   :  { %v14152_v41 = vpack.c.bf16 %v9281_v31, %v9277_v55  ;;  %v9195_v55 = vld [vmem:[#allocation9 + $0xdb8] sm:$0xff]  ;;  %v14178_v31 = vpack.c.bf16 %v9328_v34, %v9324_v15 }
0x1227   :  { %v14180_v18 = vpack.c.bf16 %v9195_v55, %v9191_v45  ;;  %v9255_v45 = vld [vmem:[#allocation9 + $0xf98] sm:$0xff] }
0x1228   :  { %14119 = vmatpush1.bf16.msra.mxu0 %v14118_v53  ;;  %v9285_v53 = vld [vmem:[#allocation9 + $0x1088] sm:$0xff]  ;;  %v9259_v55 = vld [vmem:[#allocation9 + $0xfb8] sm:$0xff] }
0x1229   :  { %14121 = vmatprep.subr.bf16.mxu0 %v14120_v37  ;;  %v9289_v37 = vld [vmem:[#allocation9 + $0x10a8] sm:$0xff] }
0x122a   :  { %v14156_v20 = vpack.c.bf16 %v9289_v37, %v9285_v53  ;;  %v9194_v53 = vld [vmem:[#allocation9 + $0xdb0] sm:$0xff] }
0x122b   :  { %v9187_v37 = vld [vmem:[#allocation3 + $0x88] sm:$0x1]  ;;  %v14182_v3 = vpack.c.bf16 %v9194_v53, %v9190_v35  ;;  %v9263_v35 = vld [vmem:[#allocation9 + $0xfd8] sm:$0xff] }
0x122c   :  { %14123 = vmatpush1.bf16.msra.mxu0 %v14122_v22  ;;  %v9293_v22 = vld [vmem:[#allocation9 + $0x10c8] sm:$0xff]  ;;  %v9267_v53 = vld [vmem:[#allocation9 + $0xff8] sm:$0xff] }
0x122d   :  { %14125 = vmatprep.subr.bf16.mxu0 %v14124_v47  ;;  %v9297_v47 = vld [vmem:[#allocation9 + $0x10e8] sm:$0xff] }
0x122e   :  { %v14160_v36 = vpack.c.bf16 %v9297_v47, %v9293_v22  ;;  %v9198_v22 = vld [vmem:[#allocation9 + $0xdd0] sm:$0xff] }
0x122f   :  { %v9202_v47 = vld [vmem:[#allocation9 + $0xdf0] sm:$0xff] }
0x1230   :  { %14127 = vmatpush1.bf16.msra.mxu0 %v14126_v59  ;;  %v9301_v59 = vld [vmem:[#allocation9 + $0x1108] sm:$0xff]  ;;  %v14186_v13 = vpack.c.bf16 %v9202_v47, %v9198_v22 }
0x1231   :  { %14129 = vmatprep.subr.bf16.mxu0 %v14128_v60  ;;  %v9305_v60 = vld [vmem:[#allocation9 + $0x1128] sm:$0xff] }
0x1232   :  { %v14164_v9 = vpack.c.bf16 %v9305_v60, %v9301_v59  ;;  %v9206_v60 = vld [vmem:[#allocation9 + $0xe10] sm:$0xff] }
0x1234   :  { %14131 = vmatpush1.bf16.msra.mxu0 %v14130_v8  ;;  %v9309_v8 = vld [vmem:[#allocation9 + $0x1148] sm:$0xff] }
0x1235   :  { %14133 = vmatprep.subr.bf16.mxu0 %v14132_v52  ;;  %v9313_v52 = vld [vmem:[#allocation9 + $0x1168] sm:$0xff] }
0x1236   :  { %v14168_v32 = vpack.c.bf16 %v9313_v52, %v9309_v8  ;;  %v9214_v52 = vld [vmem:[#allocation9 + $0xe50] sm:$0xff] }
0x1238   :  { %14135 = vmatpush1.bf16.msra.mxu0 %v14134_v62  ;;  %v9317_v62 = vld [vmem:[#allocation9 + $0x1188] sm:$0xff] }
0x1239   :  { %14137 = vmatprep.subr.bf16.mxu0 %v14136_v17  ;;  %v9321_v17 = vld [vmem:[#allocation9 + $0x11a8] sm:$0xff] }
0x123a   :  { %v14172_v7 = vpack.c.bf16 %v9321_v17, %v9317_v62  ;;  %v9222_v17 = vld [vmem:[#allocation9 + $0xe90] sm:$0xff] }
0x123c   :  { %14139 = vmatpush1.bf16.msra.mxu0 %v14138_v6  ;;  %v9316_v6 = vld [vmem:[#allocation9 + $0x1180] sm:$0xff] }
0x123d   :  { %14141 = vmatprep.subr.bf16.mxu0 %v14140_v2  ;;  %v9320_v2 = vld [vmem:[#allocation9 + $0x11a0] sm:$0xff] }
0x123e   :  { %v14174_v57 = vpack.c.bf16 %v9320_v2, %v9316_v6  ;;  %v9234_v2 = vld [vmem:[#allocation9 + $0xef0] sm:$0xff] }
0x1240   :  { %14143 = vmatpush1.bf16.msra.mxu0 %v14142_v12  ;;  %v9185_v12 = vld [vmem:[#allocation3 + $0x78] sm:$0x1] }
0x1241   :  { %14145 = vmatprep.subr.bf16.mxu0 %v14144_v27  ;;  %v9341_v27 = vrot.slane %v9179_v21, 3  ;;  %v9350_v43 = vrot.slane %v9185_v12, 3  ;;  %v9235_v21 = vld [vmem:[#allocation9 + $0xef8] sm:$0xff]  ;;  %v9238_v12 = vld [vmem:[#allocation9 + $0xf10] sm:$0xff] }
0x1242   :  { %v14200_v6 = vpack.c.bf16 %v9235_v21, %v9231_v4  ;;  %v9294_v4 = vld [vmem:[#allocation9 + $0x10d0] sm:$0xff] }
0x1243   :  { %v9298_v21 = vld [vmem:[#allocation9 + $0x10f0] sm:$0xff] }
0x1244   :  { %14147 = vmatpush1.bf16.msra.mxu0 %v14146_v14  ;;  %v9181_v14 = vld [vmem:[#allocation3 + $0x58] sm:$0xf8] }
0x1245   :  { %14149 = vmatprep.subr.bf16.mxu0 %v14148_v48  ;;  %v17235_v48 = vsel %vm3688_vm15, %v9341_v27, %v9342_v50  ;;  %v9242_v27 = vld [vmem:[#allocation9 + $0xf30] sm:$0xff] }
0x1246   :  { %v14206_v15 = vpack.c.bf16 %v9242_v27, %v9238_v12 }
0x1248   :  { %14151 = vmatpush1.bf16.msra.mxu0 %v14150_v16  ;;  %v9347_v16 = vrot.slane %v9181_v14, 3  ;;  %v9246_v14 = vld [vmem:[#allocation9 + $0xf50] sm:$0xff] }
0x1249   :  { %14153 = vmatprep.subr.bf16.mxu0 %v14152_v41  ;;  %v9348_v41 = vrot.slane %v17194_v44, 3  ;;  %v9354_v44 = vrot.slane %v9187_v37, 3 }
0x124b   :  { %v17251_v30 = vsel %vm3688_vm15, %v9347_v16, %v9348_v41  ;;  %v17257_v56 = vsel %vm3688_vm15, %v9348_v41, %v9354_v44  ;;  %v14212_v16 = vpack.c.bf16 %v9259_v55, %v9255_v45  ;;  %v9254_v41 = vld [vmem:[#allocation9 + $0xf90] sm:$0xff]  ;;  %v9271_v44 = vld [vmem:[#allocation9 + $0x1018] sm:$0xff] }
0x124c   :  { %14155 = vmatpush1.bf16.msra.mxu0 %v14154_v38  ;;  %v17246_v38 = vsel %vm3688_vm15, %v9342_v50, %v9350_v43  ;;  %v9239_v50 = vld [vmem:[#allocation9 + $0xf18] sm:$0xff]  ;;  %v9250_v43 = vld [vmem:[#allocation9 + $0xf70] sm:$0xff] }
0x124d   :  { %14157 = vmatprep.subr.bf16.mxu0 %v14156_v20  ;;  %v9199_v20 = vld [vmem:[#allocation9 + $0xdd8] sm:$0xff]  ;;  %v14204_v23 = vpack.c.bf16 %v9243_v11, %v9239_v50  ;;  %v9302_v50 = vld [vmem:[#allocation9 + $0x1110] sm:$0xff] }
0x124e   :  { %v14184_v42 = vpack.c.bf16 %v9203_v33, %v9199_v20  ;;  %v14216_v20 = vpack.c.bf16 %v9267_v53, %v9263_v35  ;;  %v9262_v33 = vld [vmem:[#allocation9 + $0xfd0] sm:$0xff] }
0x124f   :  { %v9306_v11 = vld [vmem:[#allocation9 + $0x1130] sm:$0xff] }
0x1250   :  { %14159 = vmatpush1.bf16.msra.mxu0 %v14158_v63  ;;  %v9207_v63 = vld [vmem:[#allocation9 + $0xe18] sm:$0xff]  ;;  %v14238_v12 = vpack.c.bf16 %v9306_v11, %v9302_v50  ;;  %v9318_v45 = vld [vmem:[#allocation9 + $0x1190] sm:$0xff] }
0x1251   :  { %14161 = vmatprep.subr.bf16.mxu0 %v14160_v36  ;;  %v9211_v36 = vld [vmem:[#allocation9 + $0xe38] sm:$0xff]  ;;  %v9322_v55 = vld [vmem:[#allocation9 + $0x11b0] sm:$0xff] }
0x1252   :  { %v14188_v59 = vpack.c.bf16 %v9211_v36, %v9207_v63  ;;  %v9270_v63 = vld [vmem:[#allocation9 + $0x1010] sm:$0xff] }
0x1253   :  { %v9274_v36 = vld [vmem:[#allocation9 + $0x1030] sm:$0xff] }
0x1254   :  { %14163 = vmatpush1.bf16.msra.mxu0 %v14162_v1  ;;  %v9210_v1 = vld [vmem:[#allocation9 + $0xe30] sm:$0xff] }
0x1255   :  { %14165 = vmatprep.subr.bf16.mxu0 %v14164_v9  ;;  %v9215_v9 = vld [vmem:[#allocation9 + $0xe58] sm:$0xff]  ;;  %v14190_v58 = vpack.c.bf16 %v9210_v1, %v9206_v60  ;;  %v14222_v60 = vpack.c.bf16 %v9274_v36, %v9270_v63  ;;  %v9326_v35 = vld [vmem:[#allocation9 + $0x11d0] sm:$0xff] }
0x1256   :  { %v14192_v8 = vpack.c.bf16 %v9219_v0, %v9215_v9  ;;  %v9278_v9 = vld [vmem:[#allocation9 + $0x1050] sm:$0xff] }
0x1257   :  { %v9282_v0 = vld [vmem:[#allocation9 + $0x1070] sm:$0xff] }
0x1258   :  { %14167 = vmatpush1.bf16.msra.mxu0 %v14166_v46  ;;  %v9218_v46 = vld [vmem:[#allocation9 + $0xe70] sm:$0xff] }
0x1259   :  { %14169 = vmatprep.subr.bf16.mxu0 %v14168_v32  ;;  %v9223_v32 = vld [vmem:[#allocation9 + $0xe98] sm:$0xff]  ;;  %v14194_v54 = vpack.c.bf16 %v9218_v46, %v9214_v52  ;;  %v14226_v52 = vpack.c.bf16 %v9282_v0, %v9278_v9  ;;  %v9330_v53 = vld [vmem:[#allocation9 + $0x11f0] sm:$0xff] }
0x125a   :  { %v14196_v62 = vpack.c.bf16 %v9227_v51, %v9223_v32  ;;  %v9286_v32 = vld [vmem:[#allocation9 + $0x1090] sm:$0xff] }
0x125b   :  { %v9290_v51 = vld [vmem:[#allocation9 + $0x10b0] sm:$0xff] }
0x125c   :  { %14171 = vmatpush1.bf16.msra.mxu0 %v14170_v61  ;;  %v9226_v61 = vld [vmem:[#allocation9 + $0xeb0] sm:$0xff] }
0x125d   :  { %14173 = vmatprep.subr.bf16.mxu0 %v14172_v7  ;;  %v14198_v7 = vpack.c.bf16 %v9226_v61, %v9222_v17  ;;  %v14230_v17 = vpack.c.bf16 %v9290_v51, %v9286_v32  ;;  %v9715_v32 = vld [vmem:[#allocation9 + $0x12e8] sm:$0xff] }
0x125f   :  { %9429 = vmatmul.mubr.f32.vlgmr.msra.gmra.mrb[48].mxu0 %v17235_v48 }
0x1260   :  { %9434 = vmatprep.mubr.f32.mxu0 %v17241_v40  ;;  %14175 = vmatpush1.bf16.msra.mxu0 %v14174_v57  ;;  %v9247_v57 = vld [vmem:[#allocation9 + $0xf58] sm:$0xff] }
0x1261   :  { %14177 = vmatprep.subr.bf16.mxu0 %v14176_v10  ;;  %v9251_v10 = vld [vmem:[#allocation9 + $0xf78] sm:$0xff] }
0x1262   :  { %v14208_v34 = vpack.c.bf16 %v9251_v10, %v9247_v57  ;;  %v9310_v57 = vld [vmem:[#allocation9 + $0x1150] sm:$0xff] }
0x1263   :  { %9435 = vmatmul.mubr.f32.gmra.mrb[50].mxu0 %v17246_v38  ;;  %v9314_v10 = vld [vmem:[#allocation9 + $0x1170] sm:$0xff] }
0x1264   :  { %14179 = vmatpush1.bf16.msra.mxu0 %v14178_v31  ;;  %9505 = vmatprep.mubr.f32.mxu0 %v17100_v24  ;;  %v14210_v31 = vpack.c.bf16 %v9250_v43, %v9246_v14  ;;  %v14242_v14 = vpack.c.bf16 %v9314_v10, %v9310_v57 }
0x1265   :  { %14181 = vmatprep.subr.bf16.mxu0 %v14180_v18  ;;  %v9258_v18 = vld [vmem:[#allocation9 + $0xfb0] sm:$0xff] }
0x1266   :  { %v14214_v37 = vpack.c.bf16 %v9258_v18, %v9254_v41  ;;  %v14246_v41 = vpack.c.bf16 %v9322_v55, %v9318_v45 }
0x1267   :  { %11882 = vmatmul.mubr.msk.f32.vlgmr.msra.gmra.mrb[48].mxu0 %vm184_vm0, %v17251_v30 }
0x1268   :  { %14183 = vmatpush1.bf16.msra.mxu0 %v14182_v3  ;;  %9511 = vmatprep.mubr.f32.mxu0 %v17100_v24  ;;  %v9266_v3 = vld [vmem:[#allocation9 + $0xff0] sm:$0xff] }
0x1269   :  { %14185 = vmatprep.subr.bf16.mxu0 %v14184_v42  ;;  %v9275_v42 = vld [vmem:[#allocation9 + $0x1038] sm:$0xff]  ;;  %v14218_v22 = vpack.c.bf16 %v9266_v3, %v9262_v33  ;;  %v14250_v33 = vpack.c.bf16 %v9330_v53, %v9326_v35 }
0x126a   :  { %v14220_v47 = vpack.c.bf16 %v9275_v42, %v9271_v44  ;;  %v9686_v44 = vld [vmem:[#allocation9 + $0x1200] sm:$0xff] }
0x126b   :  { %11883 = vmatmul.mubr.msk.f32.gmra.mrb[50].mxu0 %vm184_vm0, %v17257_v56  ;;  %v9690_v42 = vld [vmem:[#allocation9 + $0x1220] sm:$0xff] }
0x126c   :  { %14187 = vmatpush1.bf16.msra.mxu0 %v14186_v13  ;;  %9582 = vmatprep.mubr.f32.mxu0 %v17230_v5  ;;  %v9230_v5 = vld [vmem:[#allocation9 + $0xed0] sm:$0xff]  ;;  %v9279_v13 = vld [vmem:[#allocation9 + $0x1058] sm:$0xff]  ;;  %v14254_v63 = vpack.c.bf16 %v9690_v42, %v9686_v44 }
0x126d   :  { %14189 = vmatprep.subr.bf16.mxu0 %v14188_v59  ;;  %v14202_v39 = vpack.c.bf16 %v9234_v2, %v9230_v5  ;;  %v9283_v59 = vld [vmem:[#allocation9 + $0x1078] sm:$0xff]  ;;  %v14234_v5 = vpack.c.bf16 %v9298_v21, %v9294_v4  ;;  %v9723_v4 = vld [vmem:[#allocation9 + $0x1328] sm:$0xff] }
0x126e   :  { %v14224_v1 = vpack.c.bf16 %v9283_v59, %v9279_v13  ;;  %v9694_v13 = vld [vmem:[#allocation9 + $0x1240] sm:$0xff] }
0x126f   :  { %v9681_v59 = vld [vmem:[#allocation3 + $0x50] sm:$0xf0] }
0x1270   :  { %14191 = vmatpush1.bf16.msra.mxu0 %v14190_v58  ;;  %v9287_v58 = vld [vmem:[#allocation9 + $0x1098] sm:$0xff]  ;;  %v9839_v0 = vrot.slane %v9681_v59, 4  ;;  %v9766_v59 = vld [vmem:[#allocation9 + $0x1480] sm:$0xff] }
0x1271   :  { %14193 = vmatprep.subr.bf16.mxu0 %v14192_v8  ;;  %v9291_v8 = vld [vmem:[#allocation9 + $0x10b8] sm:$0xff] }
0x1272   :  { %v14228_v46 = vpack.c.bf16 %v9291_v8, %v9287_v58  ;;  %v9702_v8 = vld [vmem:[#allocation9 + $0x1280] sm:$0xff] }
0x1274   :  { %14195 = vmatpush1.bf16.msra.mxu0 %v14194_v54  ;;  %v9295_v54 = vld [vmem:[#allocation9 + $0x10d8] sm:$0xff] }
0x1275   :  { %14197 = vmatprep.subr.bf16.mxu0 %v14196_v62  ;;  %v9299_v62 = vld [vmem:[#allocation9 + $0x10f8] sm:$0xff] }
0x1276   :  { %v14232_v61 = vpack.c.bf16 %v9299_v62, %v9295_v54  ;;  %v9710_v62 = vld [vmem:[#allocation9 + $0x12c0] sm:$0xff] }
0x1278   :  { %14199 = vmatpush1.bf16.msra.mxu0 %v14198_v7  ;;  %v9303_v7 = vld [vmem:[#allocation9 + $0x1118] sm:$0xff] }
0x1279   :  { %14201 = vmatprep.subr.bf16.mxu0 %v14200_v6  ;;  %v9307_v6 = vld [vmem:[#allocation9 + $0x1138] sm:$0xff] }
0x127a   :  { %v14236_v2 = vpack.c.bf16 %v9307_v6, %v9303_v7  ;;  %v9722_v6 = vld [vmem:[#allocation9 + $0x1320] sm:$0xff] }
0x127c   :  { %14203 = vmatpush1.bf16.msra.mxu0 %v14202_v39  ;;  %v9311_v39 = vld [vmem:[#allocation9 + $0x1158] sm:$0xff] }
0x127d   :  { %14205 = vmatprep.subr.bf16.mxu0 %v14204_v23  ;;  %v9315_v23 = vld [vmem:[#allocation9 + $0x1178] sm:$0xff] }
0x127e   :  { %v14240_v27 = vpack.c.bf16 %v9315_v23, %v9311_v39  ;;  %v9726_v39 = vld [vmem:[#allocation9 + $0x1340] sm:$0xff] }
0x127f   :  { %v9730_v23 = vld [vmem:[#allocation9 + $0x1360] sm:$0xff] }
0x1280   :  { %14207 = vmatpush1.bf16.msra.mxu0 %v14206_v15  ;;  %v9319_v15 = vld [vmem:[#allocation9 + $0x1198] sm:$0xff]  ;;  %v14274_v57 = vpack.c.bf16 %v9730_v23, %v9726_v39  ;;  %v9798_v39 = vld [vmem:[#allocation9 + $0x1580] sm:$0xff] }
0x1281   :  { %14209 = vmatprep.subr.bf16.mxu0 %v14208_v34  ;;  %v9323_v34 = vld [vmem:[#allocation9 + $0x11b8] sm:$0xff]  ;;  %v9802_v23 = vld [vmem:[#allocation9 + $0x15a0] sm:$0xff] }
0x1282   :  { %v14244_v43 = vpack.c.bf16 %v9323_v34, %v9319_v15  ;;  %v9734_v15 = vld [vmem:[#allocation9 + $0x1380] sm:$0xff] }
0x1283   :  { %v9738_v34 = vld [vmem:[#allocation9 + $0x13a0] sm:$0xff] }
0x1284   :  { %14211 = vmatpush1.bf16.msra.mxu0 %v14210_v31  ;;  %v9327_v31 = vld [vmem:[#allocation9 + $0x11d8] sm:$0xff]  ;;  %v14278_v45 = vpack.c.bf16 %v9738_v34, %v9734_v15  ;;  %v9806_v15 = vld [vmem:[#allocation9 + $0x15c0] sm:$0xff] }
0x1285   :  { %14213 = vmatprep.subr.bf16.mxu0 %v14212_v16  ;;  %v9331_v16 = vld [vmem:[#allocation9 + $0x11f8] sm:$0xff]  ;;  %v9810_v34 = vld [vmem:[#allocation9 + $0x15e0] sm:$0xff] }
0x1286   :  { %v14248_v18 = vpack.c.bf16 %v9331_v16, %v9327_v31  ;;  %v9742_v31 = vld [vmem:[#allocation9 + $0x13c0] sm:$0xff] }
0x1287   :  { %v9746_v16 = vld [vmem:[#allocation9 + $0x13e0] sm:$0xff] }
0x1288   :  { %14215 = vmatpush1.bf16.msra.mxu0 %v14214_v37  ;;  %v9687_v37 = vld [vmem:[#allocation9 + $0x1208] sm:$0xff]  ;;  %v14282_v35 = vpack.c.bf16 %v9746_v16, %v9742_v31  ;;  %v9680_v31 = vld [vmem:[#allocation3 + $0x48] sm:$0xf0] }
0x1289   :  { %14217 = vmatprep.subr.bf16.mxu0 %v14216_v20  ;;  %v9691_v20 = vld [vmem:[#allocation9 + $0x1228] sm:$0xff] }
0x128a   :  { %v14252_v3 = vpack.c.bf16 %v9691_v20, %v9687_v37  ;;  %v9750_v37 = vld [vmem:[#allocation9 + $0x1400] sm:$0xff] }
0x128b   :  { %v9754_v20 = vld [vmem:[#allocation9 + $0x1420] sm:$0xff] }
0x128c   :  { %14219 = vmatpush1.bf16.msra.mxu0 %v14218_v22  ;;  %v9695_v22 = vld [vmem:[#allocation9 + $0x1248] sm:$0xff]  ;;  %v14286_v44 = vpack.c.bf16 %v9754_v20, %v9750_v37 }
0x128d   :  { %14221 = vmatprep.subr.bf16.mxu0 %v14220_v47  ;;  %v9699_v47 = vld [vmem:[#allocation9 + $0x1268] sm:$0xff] }
0x128e   :  { %v14256_v36 = vpack.c.bf16 %v9699_v47, %v9695_v22  ;;  %v9758_v22 = vld [vmem:[#allocation9 + $0x1440] sm:$0xff]  ;;  %v9823_v37 = vld [vmem:[#allocation9 + $0x1648] sm:$0xff] }
0x128f   :  { %v9762_v47 = vld [vmem:[#allocation9 + $0x1460] sm:$0xff]  ;;  %v9827_v20 = vld [vmem:[#allocation9 + $0x1668] sm:$0xff] }
0x1290   :  { %14223 = vmatpush1.bf16.msra.mxu0 %v14222_v60  ;;  %v9707_v60 = vld [vmem:[#allocation9 + $0x12a8] sm:$0xff] }
0x1291   :  { %14225 = vmatprep.subr.bf16.mxu0 %v14224_v1  ;;  %v17268_v1 = vld [vmem:[#allocation3 + $0x68] sm:$0xff] }
0x1292   :  { %v9840_v9 = vrot.slane %v17268_v1, 4  ;;  %v9701_v1 = vld [vmem:[#allocation9 + $0x1278] sm:$0xff] }
0x1294   :  { %14227 = vmatpush1.bf16.msra.mxu0 %v14226_v52  ;;  %v9706_v52 = vld [vmem:[#allocation9 + $0x12a0] sm:$0xff] }
0x1295   :  { %14229 = vmatprep.subr.bf16.mxu0 %v14228_v46  ;;  %v9711_v46 = vld [vmem:[#allocation9 + $0x12c8] sm:$0xff]  ;;  %v14262_v51 = vpack.c.bf16 %v9706_v52, %v9702_v8  ;;  %v9774_v8 = vld [vmem:[#allocation9 + $0x14c0] sm:$0xff] }
0x1296   :  { %v14264_v54 = vpack.c.bf16 %v9715_v32, %v9711_v46  ;;  %v9778_v52 = vld [vmem:[#allocation9 + $0x14e0] sm:$0xff]  ;;  %v9783_v46 = vld [vmem:[#allocation9 + $0x1508] sm:$0xff] }
0x1297   :  { %v9787_v32 = vld [vmem:[#allocation9 + $0x1528] sm:$0xff] }
0x1298   :  { %14231 = vmatpush1.bf16.msra.mxu0 %v14230_v17  ;;  %v9714_v17 = vld [vmem:[#allocation9 + $0x12e0] sm:$0xff] }
0x1299   :  { %14233 = vmatprep.subr.bf16.mxu0 %v14232_v61  ;;  %v9719_v61 = vld [vmem:[#allocation9 + $0x1308] sm:$0xff]  ;;  %v14266_v21 = vpack.c.bf16 %v9714_v17, %v9710_v62  ;;  %v9782_v62 = vld [vmem:[#allocation9 + $0x1500] sm:$0xff] }
0x129a   :  { %v14268_v7 = vpack.c.bf16 %v9723_v4, %v9719_v61  ;;  %v9786_v17 = vld [vmem:[#allocation9 + $0x1520] sm:$0xff]  ;;  %v9791_v61 = vld [vmem:[#allocation9 + $0x1548] sm:$0xff] }
0x129b   :  { %v9795_v4 = vld [vmem:[#allocation9 + $0x1568] sm:$0xff] }
0x129c   :  { %14235 = vmatpush1.bf16.msra.mxu0 %v14234_v5  ;;  %v9727_v5 = vld [vmem:[#allocation9 + $0x1348] sm:$0xff] }
0x129d   :  { %14237 = vmatprep.subr.bf16.mxu0 %v14236_v2  ;;  %v9731_v2 = vld [vmem:[#allocation9 + $0x1368] sm:$0xff] }
0x129e   :  { %v14272_v11 = vpack.c.bf16 %v9731_v2, %v9727_v5  ;;  %v9799_v5 = vld [vmem:[#allocation9 + $0x1588] sm:$0xff] }
0x129f   :  { %v9803_v2 = vld [vmem:[#allocation9 + $0x15a8] sm:$0xff] }
0x12a0   :  { %14239 = vmatpush1.bf16.msra.mxu0 %v14238_v12  ;;  %v9735_v12 = vld [vmem:[#allocation9 + $0x1388] sm:$0xff] }
0x12a1   :  { %14241 = vmatprep.subr.bf16.mxu0 %v14240_v27  ;;  %v9739_v27 = vld [vmem:[#allocation9 + $0x13a8] sm:$0xff] }
0x12a2   :  { %v14276_v10 = vpack.c.bf16 %v9739_v27, %v9735_v12  ;;  %v9807_v12 = vld [vmem:[#allocation9 + $0x15c8] sm:$0xff] }
0x12a3   :  { %v9811_v27 = vld [vmem:[#allocation9 + $0x15e8] sm:$0xff] }
0x12a4   :  { %14243 = vmatpush1.bf16.msra.mxu0 %v14242_v14  ;;  %v9743_v14 = vld [vmem:[#allocation9 + $0x13c8] sm:$0xff] }
0x12a5   :  { %14245 = vmatprep.subr.bf16.mxu0 %v14244_v43  ;;  %v9747_v43 = vld [vmem:[#allocation9 + $0x13e8] sm:$0xff] }
0x12a6   :  { %v14280_v55 = vpack.c.bf16 %v9747_v43, %v9743_v14  ;;  %v9815_v14 = vld [vmem:[#allocation9 + $0x1608] sm:$0xff] }
0x12a7   :  { %9583 = vmatmul.mubr.f32.vlgmr.msra.gmra.mrb[52].mxu0 %v17235_v48  ;;  %v9698_v48 = vld [vmem:[#allocation9 + $0x1260] sm:$0xff]  ;;  %v9819_v43 = vld [vmem:[#allocation9 + $0x1628] sm:$0xff] }
0x12a8   :  { %9588 = vmatprep.mubr.f32.mxu0 %v17241_v40  ;;  %14247 = vmatpush1.bf16.msra.mxu0 %v14246_v41  ;;  %v9703_v40 = vld [vmem:[#allocation9 + $0x1288] sm:$0xff]  ;;  %v14316_v16 = vpack.c.bf16 %v9819_v43, %v9815_v14  ;;  %v9725_v14 = vld [vmem:[#allocation9 + $0x1338] sm:$0xff] }
0x12a9   :  { %14249 = vmatprep.subr.bf16.mxu0 %v14248_v18  ;;  %v14260_v58 = vpack.c.bf16 %v9707_v60, %v9703_v40  ;;  %v9751_v41 = vld [vmem:[#allocation9 + $0x1408] sm:$0xff]  ;;  %v9770_v40 = vld [vmem:[#allocation9 + $0x14a0] sm:$0xff] }
0x12aa   :  { %v9755_v18 = vld [vmem:[#allocation9 + $0x1428] sm:$0xff] }
0x12ab   :  { %9589 = vmatmul.mubr.f32.gmra.mrb[54].mxu0 %v17246_v38  ;;  %v14258_v38 = vpack.c.bf16 %v9698_v48, %v9694_v13  ;;  %v14284_v53 = vpack.c.bf16 %v9755_v18, %v9751_v41  ;;  %v14290_v13 = vpack.c.bf16 %v9762_v47, %v9758_v22  ;;  %v9775_v60 = vld [vmem:[#allocation9 + $0x14c8] sm:$0xff]  ;;  %v9814_v41 = vld [vmem:[#allocation9 + $0x1600] sm:$0xff]  ;;  %v14320_v22 = vpack.c.bf16 %v9827_v20, %v9823_v37  ;;  %v9737_v37 = vld [vmem:[#allocation9 + $0x1398] sm:$0xff] }
0x12ac   :  { %14251 = vmatpush1.bf16.msra.mxu0 %v14250_v33  ;;  %9659 = vmatprep.mubr.f32.mxu0 %v17100_v24  ;;  %v9759_v33 = vld [vmem:[#allocation9 + $0x1448] sm:$0xff]  ;;  %v9818_v18 = vld [vmem:[#allocation9 + $0x1620] sm:$0xff]  ;;  %v9741_v20 = vld [vmem:[#allocation9 + $0x13b8] sm:$0xff] }
0x12ad   :  { %14253 = vmatprep.subr.bf16.mxu0 %v14252_v3  ;;  %v9763_v3 = vld [vmem:[#allocation9 + $0x1468] sm:$0xff]  ;;  %v9822_v47 = vld [vmem:[#allocation9 + $0x1640] sm:$0xff] }
0x12ae   :  { %v14288_v42 = vpack.c.bf16 %v9763_v3, %v9759_v33  ;;  %v9683_v3 = vld [vmem:[#allocation3 + $0x78] sm:$0x3] }
0x12af   :  { %11884 = vmatmul.mubr.msk.f32.vlgmr.msra.gmra.mrb[52].mxu0 %vm184_vm0, %v17251_v30  ;;  %v17277_v30 = vsel %vm18109_vm2, %v9839_v0, %v9840_v9  ;;  %v14294_v0 = vpack.c.bf16 %v9770_v40, %v9766_v59  ;;  %v9689_v59 = vld [vmem:[#allocation9 + $0x1218] sm:$0xff] }
0x12b0   :  { %14255 = vmatpush1.bf16.msra.mxu0 %v14254_v63  ;;  %9665 = vmatprep.mubr.f32.mxu0 %v17100_v24  ;;  %v9767_v63 = vld [vmem:[#allocation9 + $0x1488] sm:$0xff]  ;;  %v9693_v40 = vld [vmem:[#allocation9 + $0x1238] sm:$0xff] }
0x12b1   :  { %14257 = vmatprep.subr.bf16.mxu0 %v14256_v36  ;;  %v9771_v36 = vld [vmem:[#allocation9 + $0x14a8] sm:$0xff] }
0x12b2   :  { %v14292_v48 = vpack.c.bf16 %v9771_v36, %v9767_v63  ;;  %v9826_v63 = vld [vmem:[#allocation9 + $0x1660] sm:$0xff]  ;;  %v9682_v36 = vld [vmem:[#allocation3 + $0x58] sm:$0xf0] }
0x12b3   :  { %11885 = vmatmul.mubr.msk.f32.gmra.mrb[54].mxu0 %vm184_vm0, %v17257_v56  ;;  %v9718_v56 = vld [vmem:[#allocation9 + $0x1300] sm:$0xff] }
0x12b4   :  { %14259 = vmatpush1.bf16.msra.mxu0 %v14258_v38  ;;  %9923 = vmatprep.mubr.f32.mxu0 %v17277_v30  ;;  %v14270_v50 = vpack.c.bf16 %v9722_v6, %v9718_v56  ;;  %v9779_v38 = vld [vmem:[#allocation9 + $0x14e8] sm:$0xff]  ;;  %v9790_v56 = vld [vmem:[#allocation9 + $0x1540] sm:$0xff] }
0x12b5   :  { %14261 = vmatprep.subr.bf16.mxu0 %v14260_v58  ;;  %v14296_v58 = vpack.c.bf16 %v9779_v38, %v9775_v60  ;;  %v9794_v6 = vld [vmem:[#allocation9 + $0x1560] sm:$0xff]  ;;  %v14322_v38 = vpack.c.bf16 %v9826_v63, %v9822_v47  ;;  %v9749_v47 = vld [vmem:[#allocation9 + $0x13f8] sm:$0xff] }
0x12b8   :  { %14263 = vmatpush1.bf16.msra.mxu0 %v14262_v51  ;;  %v14298_v51 = vpack.c.bf16 %v9778_v52, %v9774_v8  ;;  %v14324_v52 = vpack.c.bf16 %v9693_v40, %v9689_v59  ;;  %v9748_v59 = vld [vmem:[#allocation9 + $0x13f0] sm:$0xff]  ;;  %v9753_v40 = vld [vmem:[#allocation9 + $0x1418] sm:$0xff] }
0x12b9   :  { %14265 = vmatprep.subr.bf16.mxu0 %v14264_v54  ;;  %v14300_v54 = vpack.c.bf16 %v9787_v32, %v9783_v46  ;;  %v9688_v46 = vld [vmem:[#allocation9 + $0x1210] sm:$0xff] }
0x12ba   :  { %v9692_v32 = vld [vmem:[#allocation9 + $0x1230] sm:$0xff] }
0x12bc   :  { %14267 = vmatpush1.bf16.msra.mxu0 %v14266_v21  ;;  %v14302_v21 = vpack.c.bf16 %v9786_v17, %v9782_v62  ;;  %v9697_v62 = vld [vmem:[#allocation9 + $0x1258] sm:$0xff]  ;;  %v14326_v17 = vpack.c.bf16 %v9692_v32, %v9688_v46 }
0x12bd   :  { %14269 = vmatprep.subr.bf16.mxu0 %v14268_v7  ;;  %v14304_v7 = vpack.c.bf16 %v9795_v4, %v9791_v61  ;;  %v14328_v4 = vpack.c.bf16 %v9701_v1, %v9697_v62  ;;  %v9761_v46 = vld [vmem:[#allocation9 + $0x1458] sm:$0xff]  ;;  %v9760_v1 = vld [vmem:[#allocation9 + $0x1450] sm:$0xff] }
0x12be   :  { %v9765_v32 = vld [vmem:[#allocation9 + $0x1478] sm:$0xff] }
0x12bf   :  { %v14360_v62 = vpack.c.bf16 %v9765_v32, %v9761_v46  ;;  %v9824_v46 = vld [vmem:[#allocation9 + $0x1650] sm:$0xff] }
0x12c0   :  { %14271 = vmatpush1.bf16.msra.mxu0 %v14270_v50  ;;  %v14306_v50 = vpack.c.bf16 %v9794_v6, %v9790_v56  ;;  %v9705_v56 = vld [vmem:[#allocation9 + $0x1298] sm:$0xff]  ;;  %v9828_v32 = vld [vmem:[#allocation9 + $0x1670] sm:$0xff] }
0x12c1   :  { %14273 = vmatprep.subr.bf16.mxu0 %v14272_v11  ;;  %v14308_v11 = vpack.c.bf16 %v9803_v2, %v9799_v5  ;;  %v9709_v6 = vld [vmem:[#allocation9 + $0x12b8] sm:$0xff] }
0x12c4   :  { %14275 = vmatpush1.bf16.msra.mxu0 %v14274_v57  ;;  %v14310_v57 = vpack.c.bf16 %v9802_v23, %v9798_v39  ;;  %v9708_v39 = vld [vmem:[#allocation9 + $0x12b0] sm:$0xff]  ;;  %v9713_v23 = vld [vmem:[#allocation9 + $0x12d8] sm:$0xff] }
0x12c5   :  { %14277 = vmatprep.subr.bf16.mxu0 %v14276_v10  ;;  %v14312_v10 = vpack.c.bf16 %v9811_v27, %v9807_v12  ;;  %v9717_v12 = vld [vmem:[#allocation9 + $0x12f8] sm:$0xff] }
0x12c8   :  { %14279 = vmatpush1.bf16.msra.mxu0 %v14278_v45  ;;  %v14314_v45 = vpack.c.bf16 %v9810_v34, %v9806_v15  ;;  %v9716_v15 = vld [vmem:[#allocation9 + $0x12f0] sm:$0xff]  ;;  %v9721_v34 = vld [vmem:[#allocation9 + $0x1318] sm:$0xff] }
0x12c9   :  { %14281 = vmatprep.subr.bf16.mxu0 %v14280_v55  ;;  %v9684_v55 = vld [vmem:[#allocation3 + $0x80] sm:$0x3] }
0x12ca   :  { %v9847_v33 = vrot.slane %v9684_v55, 4  ;;  %v9720_v55 = vld [vmem:[#allocation9 + $0x1310] sm:$0xff] }
0x12cc   :  { %14283 = vmatpush1.bf16.msra.mxu0 %v14282_v35  ;;  %v15197_v35 = vld [vmem:[#allocation3 + $0x60] sm:$0xff]  ;;  %v17287_v60 = vsel %vm18111_vm6, %v9840_v9, %v9847_v33 }
0x12cd   :  { %14285 = vmatprep.subr.bf16.mxu0 %v14284_v53  ;;  %v9837_v53 = vrot.slane %v15197_v35, 4 }
0x12d0   :  { %14287 = vmatpush1.bf16.msra.mxu0 %v14286_v44  ;;  %v9836_v44 = vrot.slane %v9680_v31, 4  ;;  %v9724_v31 = vld [vmem:[#allocation9 + $0x1330] sm:$0xff] }
0x12d1   :  { %14289 = vmatprep.subr.bf16.mxu0 %v14288_v42  ;;  %v14318_v42 = vpack.c.bf16 %v9818_v18, %v9814_v41  ;;  %v9733_v41 = vld [vmem:[#allocation9 + $0x1378] sm:$0xff]  ;;  %v14342_v18 = vpack.c.bf16 %v9724_v31, %v9720_v55 }
0x12d4   :  { %14291 = vmatpush1.bf16.msra.mxu0 %v14290_v13  ;;  %v17281_v13 = vsel %vm18110_vm5, %v9836_v44, %v9837_v53  ;;  %v9736_v44 = vld [vmem:[#allocation9 + $0x1390] sm:$0xff] }
0x12d5   :  { %14293 = vmatprep.subr.bf16.mxu0 %v14292_v48  ;;  %v9845_v48 = vrot.slane %v9683_v3, 4  ;;  %v14348_v3 = vpack.c.bf16 %v9741_v20, %v9737_v37  ;;  %v9800_v37 = vld [vmem:[#allocation9 + $0x1590] sm:$0xff] }
0x12d6   :  { %v9804_v20 = vld [vmem:[#allocation9 + $0x15b0] sm:$0xff] }
0x12d8   :  { %14295 = vmatpush1.bf16.msra.mxu0 %v14294_v0  ;;  %v9842_v0 = vrot.slane %v9682_v36, 4 }
0x12d9   :  { %14297 = vmatprep.subr.bf16.mxu0 %v14296_v58  ;;  %v15198_v58 = vld [vmem:[#allocation3 + $0x70] sm:$0xff] }
0x12da   :  { %v9843_v8 = vrot.slane %v15198_v58, 4 }
0x12dc   :  { %14299 = vmatpush1.bf16.msra.mxu0 %v14298_v51  ;;  %v9685_v51 = vld [vmem:[#allocation3 + $0x88] sm:$0x3]  ;;  %v17296_v9 = vsel %vm18113_vm8, %v9842_v0, %v9843_v8 }
0x12dd   :  { %14301 = vmatprep.subr.bf16.mxu0 %v14300_v54  ;;  %v17291_v54 = vsel %vm18112_vm7, %v9837_v53, %v9845_v48  ;;  %v9849_v61 = vrot.slane %v9685_v51, 4  ;;  %v9732_v53 = vld [vmem:[#allocation9 + $0x1370] sm:$0xff] }
0x12de   :  { %v9744_v48 = vld [vmem:[#allocation9 + $0x13d0] sm:$0xff] }
0x12df   :  { %v17302_v5 = vsel %vm18114_vm9, %v9843_v8, %v9849_v61  ;;  %v14354_v0 = vpack.c.bf16 %v9748_v59, %v9744_v48  ;;  %v9752_v8 = vld [vmem:[#allocation9 + $0x1410] sm:$0xff]  ;;  %v9769_v61 = vld [vmem:[#allocation9 + $0x1498] sm:$0xff] }
0x12e0   :  { %14303 = vmatpush1.bf16.msra.mxu0 %v14302_v21  ;;  %v9696_v21 = vld [vmem:[#allocation9 + $0x1250] sm:$0xff] }
0x12e1   :  { %14305 = vmatprep.subr.bf16.mxu0 %v14304_v7  ;;  %v9700_v7 = vld [vmem:[#allocation9 + $0x1270] sm:$0xff] }
0x12e2   :  { %v14330_v2 = vpack.c.bf16 %v9700_v7, %v9696_v21 }
0x12e4   :  { %14307 = vmatpush1.bf16.msra.mxu0 %v14306_v50  ;;  %v14332_v50 = vpack.c.bf16 %v9709_v6, %v9705_v56  ;;  %v9768_v56 = vld [vmem:[#allocation9 + $0x1490] sm:$0xff] }
0x12e5   :  { %14309 = vmatprep.subr.bf16.mxu0 %v14308_v11  ;;  %v9704_v11 = vld [vmem:[#allocation9 + $0x1290] sm:$0xff] }
0x12e6   :  { %v14334_v27 = vpack.c.bf16 %v9708_v39, %v9704_v11  ;;  %v9772_v6 = vld [vmem:[#allocation9 + $0x14b0] sm:$0xff] }
0x12e7   :  { %v14366_v11 = vpack.c.bf16 %v9772_v6, %v9768_v56 }
0x12e8   :  { %14311 = vmatpush1.bf16.msra.mxu0 %v14310_v57  ;;  %v14336_v57 = vpack.c.bf16 %v9717_v12, %v9713_v23  ;;  %v9776_v23 = vld [vmem:[#allocation9 + $0x14d0] sm:$0xff] }
0x12e9   :  { %14313 = vmatprep.subr.bf16.mxu0 %v14312_v10  ;;  %v9712_v10 = vld [vmem:[#allocation9 + $0x12d0] sm:$0xff] }
0x12ea   :  { %v14338_v43 = vpack.c.bf16 %v9716_v15, %v9712_v10  ;;  %v9780_v12 = vld [vmem:[#allocation9 + $0x14f0] sm:$0xff] }
0x12eb   :  { %v14370_v10 = vpack.c.bf16 %v9780_v12, %v9776_v23 }
0x12ec   :  { %14315 = vmatpush1.bf16.msra.mxu0 %v14314_v45  ;;  %v14340_v45 = vpack.c.bf16 %v9725_v14, %v9721_v34  ;;  %v9784_v34 = vld [vmem:[#allocation9 + $0x1510] sm:$0xff] }
0x12ed   :  { %14317 = vmatprep.subr.bf16.mxu0 %v14316_v16  ;;  %v9729_v16 = vld [vmem:[#allocation9 + $0x1358] sm:$0xff]  ;;  %v9788_v14 = vld [vmem:[#allocation9 + $0x1530] sm:$0xff] }
0x12ee   :  { %v14344_v35 = vpack.c.bf16 %v9733_v41, %v9729_v16  ;;  %v14374_v55 = vpack.c.bf16 %v9788_v14, %v9784_v34  ;;  %v9792_v16 = vld [vmem:[#allocation9 + $0x1550] sm:$0xff] }
0x12ef   :  { %9924 = vmatmul.mubr.f32.vlgmr.msra.gmra.mrb[48].mxu0 %v17281_v13  ;;  %v9796_v41 = vld [vmem:[#allocation9 + $0x1570] sm:$0xff] }
0x12f0   :  { %9929 = vmatprep.mubr.f32.mxu0 %v17287_v60  ;;  %14319 = vmatpush1.bf16.msra.mxu0 %v14318_v42  ;;  %v9740_v42 = vld [vmem:[#allocation9 + $0x13b0] sm:$0xff] }
0x12f1   :  { %14321 = vmatprep.subr.bf16.mxu0 %v14320_v22  ;;  %v9745_v22 = vld [vmem:[#allocation9 + $0x13d8] sm:$0xff]  ;;  %v14350_v63 = vpack.c.bf16 %v9740_v42, %v9736_v44  ;;  %v14382_v44 = vpack.c.bf16 %v9804_v20, %v9800_v37  ;;  %v10551_v20 = vld [vmem:[#allocation19 + $0x38] sm:$0xff] }
0x12f2   :  { %v14352_v36 = vpack.c.bf16 %v9749_v47, %v9745_v22  ;;  %v9808_v22 = vld [vmem:[#allocation9 + $0x15d0] sm:$0xff]  ;;  %v10549_v37 = vld [vmem:[#allocation19 + $0x28] sm:$0xff] }
0x12f3   :  { %9930 = vmatmul.mubr.f32.gmra.mrb[50].mxu0 %v17291_v54  ;;  %v9812_v47 = vld [vmem:[#allocation9 + $0x15f0] sm:$0xff] }
0x12f4   :  { %14323 = vmatpush1.bf16.msra.mxu0 %v14322_v38  ;;  %10000 = vmatprep.mubr.f32.mxu0 %v17100_v24  ;;  %v9757_v38 = vld [vmem:[#allocation9 + $0x1438] sm:$0xff]  ;;  %v14386_v48 = vpack.c.bf16 %v9812_v47, %v9808_v22  ;;  %v10555_v47 = vld [vmem:[#allocation19 + $0x58] sm:$0xff] }
0x12f5   :  { %14325 = vmatprep.subr.bf16.mxu0 %v14324_v52  ;;  %v14356_v58 = vpack.c.bf16 %v9757_v38, %v9753_v40  ;;  %v9756_v52 = vld [vmem:[#allocation9 + $0x1430] sm:$0xff]  ;;  %v10553_v22 = vld [vmem:[#allocation19 + $0x48] sm:$0xff] }
0x12f6   :  { %v14358_v51 = vpack.c.bf16 %v9756_v52, %v9752_v8  ;;  %v9816_v40 = vld [vmem:[#allocation9 + $0x1610] sm:$0xff] }
0x12f7   :  { %11886 = vmatmul.mubr.msk.f32.vlgmr.msra.gmra.mrb[48].mxu0 %vm184_vm0, %v17296_v9  ;;  %v9820_v38 = vld [vmem:[#allocation9 + $0x1630] sm:$0xff] }
0x12f8   :  { %14327 = vmatpush1.bf16.msra.mxu0 %v14326_v17  ;;  %10006 = vmatprep.mubr.f32.mxu0 %v17100_v24  ;;  %v9764_v17 = vld [vmem:[#allocation9 + $0x1470] sm:$0xff]  ;;  %v14390_v8 = vpack.c.bf16 %v9820_v38, %v9816_v40 }
0x12f9   :  { %14329 = vmatprep.subr.bf16.mxu0 %v14328_v4  ;;  %v9773_v4 = vld [vmem:[#allocation9 + $0x14b8] sm:$0xff]  ;;  %v14362_v21 = vpack.c.bf16 %v9764_v17, %v9760_v1 }
0x12fa   :  { %v14364_v7 = vpack.c.bf16 %v9773_v4, %v9769_v61 }
0x12fb   :  { %11887 = vmatmul.mubr.msk.f32.gmra.mrb[50].mxu0 %vm184_vm0, %v17302_v5 }
0x12fc   :  { %14331 = vmatpush1.bf16.msra.mxu0 %v14330_v2  ;;  %10077 = vmatprep.mubr.f32.mxu0 %v17277_v30  ;;  %v9728_v30 = vld [vmem:[#allocation9 + $0x1350] sm:$0xff]  ;;  %v9777_v2 = vld [vmem:[#allocation9 + $0x14d8] sm:$0xff] }
0x12fd   :  { %14333 = vmatprep.subr.bf16.mxu0 %v14332_v50  ;;  %v14346_v33 = vpack.c.bf16 %v9732_v53, %v9728_v30  ;;  %v9781_v50 = vld [vmem:[#allocation9 + $0x14f8] sm:$0xff]  ;;  %v14378_v30 = vpack.c.bf16 %v9796_v41, %v9792_v16 }
0x12fe   :  { %v14368_v39 = vpack.c.bf16 %v9781_v50, %v9777_v2 }
0x1300   :  { %14335 = vmatpush1.bf16.msra.mxu0 %v14334_v27  ;;  %v9785_v27 = vld [vmem:[#allocation9 + $0x1518] sm:$0xff] }
0x1301   :  { %14337 = vmatprep.subr.bf16.mxu0 %v14336_v57  ;;  %v9789_v57 = vld [vmem:[#allocation9 + $0x1538] sm:$0xff] }
0x1302   :  { %v14372_v15 = vpack.c.bf16 %v9789_v57, %v9785_v27 }
0x1304   :  { %14339 = vmatpush1.bf16.msra.mxu0 %v14338_v43  ;;  %v9793_v43 = vld [vmem:[#allocation9 + $0x1558] sm:$0xff] }
0x1305   :  { %14341 = vmatprep.subr.bf16.mxu0 %v14340_v45  ;;  %v9797_v45 = vld [vmem:[#allocation9 + $0x1578] sm:$0xff] }
0x1306   :  { %v14376_v31 = vpack.c.bf16 %v9797_v45, %v9793_v43 }
0x1308   :  { %14343 = vmatpush1.bf16.msra.mxu0 %v14342_v18  ;;  %v9801_v18 = vld [vmem:[#allocation9 + $0x1598] sm:$0xff] }
0x1309   :  { %14345 = vmatprep.subr.bf16.mxu0 %v14344_v35  ;;  %v9805_v35 = vld [vmem:[#allocation9 + $0x15b8] sm:$0xff] }
0x130a   :  { %v14380_v53 = vpack.c.bf16 %v9805_v35, %v9801_v18  ;;  %v10547_v18 = vld [vmem:[#allocation19 + $0x18] sm:$0xff]  ;;  %v10544_v35 = vld [vmem:[#allocation19] sm:$0xff] }
0x130c   :  { %14347 = vmatpush1.bf16.msra.mxu0 %v14346_v33  ;;  %v9809_v33 = vld [vmem:[#allocation9 + $0x15d8] sm:$0xff] }
0x130d   :  { %14349 = vmatprep.subr.bf16.mxu0 %v14348_v3  ;;  %v9813_v3 = vld [vmem:[#allocation9 + $0x15f8] sm:$0xff] }
0x130e   :  { %v14384_v42 = vpack.c.bf16 %v9813_v3, %v9809_v33  ;;  %v14424_v3 = vpack.c.bf16 %v10551_v20, %v10549_v37 }
0x1310   :  { %14351 = vmatpush1.bf16.msra.mxu0 %v14350_v63  ;;  %v9817_v63 = vld [vmem:[#allocation9 + $0x1618] sm:$0xff] }
0x1311   :  { %14353 = vmatprep.subr.bf16.mxu0 %v14352_v36  ;;  %v9821_v36 = vld [vmem:[#allocation9 + $0x1638] sm:$0xff] }
0x1312   :  { %v14388_v59 = vpack.c.bf16 %v9821_v36, %v9817_v63  ;;  %v10552_v63 = vld [vmem:[#allocation19 + $0x40] sm:$0xff]  ;;  %v10554_v36 = vld [vmem:[#allocation19 + $0x50] sm:$0xff] }
0x1313   :  { %v14430_v40 = vpack.c.bf16 %v10554_v36, %v10552_v63  ;;  %v10594_v63 = vld [vmem:[#allocation19 + $0x190] sm:$0xff]  ;;  %v10597_v36 = vld [vmem:[#allocation19 + $0x1a8] sm:$0xff] }
0x1314   :  { %14355 = vmatpush1.bf16.msra.mxu0 %v14354_v0  ;;  %v9825_v0 = vld [vmem:[#allocation9 + $0x1658] sm:$0xff] }
0x1315   :  { %14357 = vmatprep.subr.bf16.mxu0 %v14356_v58  ;;  %v9829_v58 = vld [vmem:[#allocation9 + $0x1678] sm:$0xff] }
0x1316   :  { %v14392_v52 = vpack.c.bf16 %v9829_v58, %v9825_v0  ;;  %v10556_v0 = vld [vmem:[#allocation19 + $0x60] sm:$0xff]  ;;  %v10558_v58 = vld [vmem:[#allocation19 + $0x70] sm:$0xff] }
0x1318   :  { %14359 = vmatpush1.bf16.msra.mxu0 %v14358_v51  ;;  %v14394_v51 = vpack.c.bf16 %v9828_v32, %v9824_v46  ;;  %v14434_v46 = vpack.c.bf16 %v10558_v58, %v10556_v0  ;;  %v10598_v0 = vld [vmem:[#allocation19 + $0x1b0] sm:$0xff]  ;;  %v10601_v58 = vld [vmem:[#allocation19 + $0x1c8] sm:$0xff] }
0x1319   :  { %14361 = vmatprep.subr.bf16.mxu0 %v14360_v62  ;;  %v10175_v62 = vld [vmem:[#allocation10] sm:$0xf] }
0x131a   :  { %v10184_v1 = vrot.slane %v10175_v62, %v15871_v28  ;;  %v10188_v28 = vrot.slane %v10175_v62, %v15869_v26  ;;  %v10192_v23 = vrot.slane %v10175_v62, %v15873_v29  ;;  %v10371_v26 = vld [vmem:[#allocation18] sm:$0x7f]  ;;  %v10545_v29 = vld [vmem:[#allocation19 + $0x8] sm:$0xff] }
0x131c   :  { %14363 = vmatpush1.bf16.msra.mxu0 %v14362_v21 }
0x131d   :  { %14365 = vmatprep.subr.bf16.mxu0 %v14364_v7 }
0x1320   :  { %14367 = vmatpush1.bf16.msra.mxu0 %v14366_v11 }
0x1321   :  { %14369 = vmatprep.subr.bf16.mxu0 %v14368_v39 }
0x1324   :  { %14371 = vmatpush1.bf16.msra.mxu0 %v14370_v10 }
0x1325   :  { %14373 = vmatprep.subr.bf16.mxu0 %v14372_v15 }
0x1328   :  { %14375 = vmatpush1.bf16.msra.mxu0 %v14374_v55 }
0x1329   :  { %14377 = vmatprep.subr.bf16.mxu0 %v14376_v31 }
0x132c   :  { %14379 = vmatpush1.bf16.msra.mxu0 %v14378_v30  ;;  %v14420_v30 = vpack.c.bf16 %v10547_v18, %v10545_v29  ;;  %v10584_v29 = vld [vmem:[#allocation19 + $0x140] sm:$0xff]  ;;  %v10586_v18 = vld [vmem:[#allocation19 + $0x150] sm:$0xff] }
0x132d   :  { %14381 = vmatprep.subr.bf16.mxu0 %v14380_v53  ;;  %v10546_v53 = vld [vmem:[#allocation19 + $0x10] sm:$0xff]  ;;  %v14462_v20 = vpack.c.bf16 %v10586_v18, %v10584_v29 }
0x132e   :  { %v14422_v33 = vpack.c.bf16 %v10546_v53, %v10544_v35  ;;  %v10589_v35 = vld [vmem:[#allocation19 + $0x168] sm:$0xff] }
0x1330   :  { %14383 = vmatpush1.bf16.msra.mxu0 %v14382_v44  ;;  %v10548_v44 = vld [vmem:[#allocation19 + $0x20] sm:$0xff] }
0x1331   :  { %14385 = vmatprep.subr.bf16.mxu0 %v14384_v42  ;;  %v10550_v42 = vld [vmem:[#allocation19 + $0x30] sm:$0xff] }
0x1332   :  { %v14426_v19 = vpack.c.bf16 %v10550_v42, %v10548_v44  ;;  %v10590_v44 = vld [vmem:[#allocation19 + $0x170] sm:$0xff]  ;;  %v10593_v42 = vld [vmem:[#allocation19 + $0x188] sm:$0xff] }
0x1334   :  { %14387 = vmatpush1.bf16.msra.mxu0 %v14386_v48  ;;  %v10557_v48 = vld [vmem:[#allocation19 + $0x68] sm:$0xff] }
0x1335   :  { %14389 = vmatprep.subr.bf16.mxu0 %v14388_v59  ;;  %v10559_v59 = vld [vmem:[#allocation19 + $0x78] sm:$0xff] }
0x1336   :  { %v14432_v38 = vpack.c.bf16 %v10559_v59, %v10557_v48  ;;  %v10599_v48 = vld [vmem:[#allocation19 + $0x1b8] sm:$0xff] }
0x1337   :  { %10078 = vmatmul.mubr.f32.vlgmr.msra.gmra.mrb[52].mxu0 %v17281_v13  ;;  %v10180_v13 = vrot.slane %v10175_v62, %v15867_v25  ;;  %v10213_v25 = vld [vmem:[#allocation16] sm:$0x7f] }
0x1338   :  { %10083 = vmatprep.mubr.f32.mxu0 %v17287_v60  ;;  %14391 = vmatpush1.bf16.msra.mxu0 %v14390_v8  ;;  %v10561_v8 = vld [vmem:[#allocation19 + $0x88] sm:$0xff]  ;;  %v10562_v62 = vld [vmem:[#allocation19 + $0x90] sm:$0xff] }
0x1339   :  { %14393 = vmatprep.subr.bf16.mxu0 %v14392_v52  ;;  %v10563_v52 = vld [vmem:[#allocation19 + $0x98] sm:$0xff] }
0x133a   :  { %v14436_v32 = vpack.c.bf16 %v10563_v52, %v10561_v8  ;;  %v10603_v52 = vld [vmem:[#allocation19 + $0x1d8] sm:$0xff] }
0x133b   :  { %10084 = vmatmul.mubr.f32.gmra.mrb[54].mxu0 %v17291_v54 }
0x133c   :  { %14395 = vmatpush1.bf16.msra.mxu0 %v14394_v51  ;;  %10154 = vmatprep.mubr.f32.mxu0 %v17100_v24  ;;  %v10560_v51 = vld [vmem:[#allocation19 + $0x80] sm:$0xff] }
0x133f   :  { %11888 = vmatmul.mubr.msk.f32.vlgmr.msra.gmra.mrb[52].mxu0 %vm184_vm0, %v17296_v9 }
0x1340   :  { %10160 = vmatprep.mubr.f32.mxu0 %v17100_v24 }
0x1343   :  { %11889 = vmatmul.mubr.msk.f32.gmra.mrb[54].mxu0 %vm184_vm0, %v17302_v5 }
0x13ca   :  { %v10002_v60 = vpop.f32.mrb[48].mxu0 }
0x13cb   :  { %v10004_v17 = vpop.f32.mrb[49].mxu0  ;;  %v10197_v61 = vadd.f32 %v10180_v13, %v10002_v60  ;;  %v10567_v60 = vld [vmem:[#allocation19 + $0xb8] sm:$0xff] }
0x13cc   :  { %v10198_v54 = vadd.f32 %v10184_v1, %v10004_v17 }
0x13cd   :  { %v10205_v6 = vmax.f32 %v10197_v61, 0.0  ;;  %v10564_v61 = vld [vmem:[#allocation19 + $0xa0] sm:$0xff] }
0x13ce   :  { %v10008_v4 = vpop.f32.mrb[50].mxu0  ;;  %v10206_v2 = vmax.f32 %v10198_v54, 0.0  ;;  %v10566_v54 = vld [vmem:[#allocation19 + $0xb0] sm:$0xff] }
0x13cf   :  { %v10201_v21 = vadd.f32 %v10180_v13, %v10008_v4  ;;  %v10010_v7 = vpop.f32.mrb[51].mxu0  ;;  %v10565_v13 = vld [vmem:[#allocation19 + $0xa8] sm:$0xff] }
0x13d0   :  { %v10202_v56 = vadd.f32 %v10184_v1, %v10010_v7  ;;  %v14438_v1 = vpack.c.bf16 %v10562_v62, %v10560_v51  ;;  %v14440_v17 = vpack.c.bf16 %v10567_v60, %v10565_v13  ;;  %v10569_v4 = vld [vmem:[#allocation19 + $0xc8] sm:$0xff]  ;;  %v14442_v7 = vpack.c.bf16 %v10566_v54, %v10564_v61  ;;  %v10604_v54 = vld [vmem:[#allocation19 + $0x1e0] sm:$0xff] }
0x13d1   :  { %v10209_v9 = vmax.f32 %v10201_v21, 0.0  ;;  %v10571_v21 = vld [vmem:[#allocation19 + $0xd8] sm:$0xff]  ;;  %v14476_v51 = vpack.c.bf16 %v10603_v52, %v10601_v58  ;;  %v10629_v58 = vld [vmem:[#allocation19 + $0x2a8] sm:$0xff] }
0x13d2   :  { %v10210_v50 = vmax.f32 %v10202_v56, 0.0  ;;  %v14444_v56 = vpack.c.bf16 %v10571_v21, %v10569_v4  ;;  %v10606_v4 = vld [vmem:[#allocation19 + $0x1f0] sm:$0xff] }
0x13d3   :  { %v14399_v11 = vpack.c.bf16 %v10209_v9, %v10205_v6  ;;  %v10568_v6 = vld [vmem:[#allocation19 + $0xc0] sm:$0xff]  ;;  %v10570_v9 = vld [vmem:[#allocation19 + $0xd0] sm:$0xff] }
0x13d4   :  { %v14396_v39 = vpack.c.bf16 %v10210_v50, %v10206_v2  ;;  %v10573_v2 = vld [vmem:[#allocation19 + $0xe8] sm:$0xff]  ;;  %v10575_v50 = vld [vmem:[#allocation19 + $0xf8] sm:$0xff] }
0x13d6   :  { %14398 = vmatprep.subr.msk.bf16.mxu1 %vm16155_vm14, %v14396_v39 }
0x13d7   :  { %14401 = vmatpush1.bf16.msk.msra.mxu1 %vm16155_vm14, %v14399_v11 }
0x13da   :  { %11892 = vmatmul.mubr.msk.f32.vlgmr.msra.gmra.mrb[48].mxu1 %vm4563_vm3, %v10213_v25 }
0x13db   :  { %10364 = vmatprep.mubr.f32.mxu1 %v17100_v24 }
0x1412   :  { %v10156_v5 = vpop.f32.mrb[52].mxu0 }
0x1413   :  { %v10158_v12 = vpop.f32.mrb[53].mxu0  ;;  %v10199_v27 = vadd.f32 %v10188_v28, %v10156_v5  ;;  %v10577_v5 = vld [vmem:[#allocation19 + $0x108] sm:$0xff] }
0x1414   :  { %v10200_v57 = vadd.f32 %v10192_v23, %v10158_v12 }
0x1415   :  { %v10207_v43 = vmax.f32 %v10199_v27, 0.0 }
0x1416   :  { %v10162_v10 = vpop.f32.mrb[54].mxu0  ;;  %v10208_v55 = vmax.f32 %v10200_v57, 0.0  ;;  %v10576_v57 = vld [vmem:[#allocation19 + $0x100] sm:$0xff] }
0x1417   :  { %v10203_v15 = vadd.f32 %v10188_v28, %v10162_v10  ;;  %v10164_v34 = vpop.f32.mrb[55].mxu0  ;;  %v10574_v28 = vld [vmem:[#allocation19 + $0xf0] sm:$0xff] }
0x1418   :  { %v10204_v14 = vadd.f32 %v10192_v23, %v10164_v34  ;;  %v10579_v23 = vld [vmem:[#allocation19 + $0x118] sm:$0xff]  ;;  %v10578_v10 = vld [vmem:[#allocation19 + $0x110] sm:$0xff] }
0x1419   :  { %v10211_v45 = vmax.f32 %v10203_v15, 0.0  ;;  %v14452_v27 = vpack.c.bf16 %v10579_v23, %v10577_v5  ;;  %v10581_v15 = vld [vmem:[#allocation19 + $0x128] sm:$0xff]  ;;  %v10583_v34 = vld [vmem:[#allocation19 + $0x138] sm:$0xff] }
0x141a   :  { %v10212_v31 = vmax.f32 %v10204_v14, 0.0  ;;  %v14454_v14 = vpack.c.bf16 %v10578_v10, %v10576_v57  ;;  %v10608_v10 = vld [vmem:[#allocation19 + $0x200] sm:$0xff] }
0x141b   :  { %v14405_v16 = vpack.c.bf16 %v10211_v45, %v10207_v43  ;;  %v14456_v43 = vpack.c.bf16 %v10583_v34, %v10581_v15  ;;  %v10580_v45 = vld [vmem:[#allocation19 + $0x120] sm:$0xff]  ;;  %v10610_v15 = vld [vmem:[#allocation19 + $0x210] sm:$0xff] }
0x141c   :  { %v14402_v41 = vpack.c.bf16 %v10212_v31, %v10208_v55  ;;  %v10582_v55 = vld [vmem:[#allocation19 + $0x130] sm:$0xff]  ;;  %v10585_v31 = vld [vmem:[#allocation19 + $0x148] sm:$0xff] }
0x141e   :  { %14404 = vmatprep.subr.msk.bf16.mxu1 %vm16155_vm14, %v14402_v41 }
0x141f   :  { %14407 = vmatpush1.bf16.msk.msra.mxu1 %vm16155_vm14, %v14405_v16 }
0x1420   :  { %14410 = vmatprep.subr.msk.bf16.mxu1 %vm16155_vm14, %v14396_v39  ;;  %v14448_v39 = vpack.c.bf16 %v10575_v50, %v10573_v2  ;;  %v10611_v2 = vld [vmem:[#allocation19 + $0x218] sm:$0xff] }
0x1422   :  { %11895 = vmatmul.mubr.msk.f32.vlgmr.msra.gmra.mrb[50].mxu1 %vm4563_vm3, %v10213_v25  ;;  %v10572_v25 = vld [vmem:[#allocation19 + $0xe0] sm:$0xff] }
0x1423   :  { %14413 = vmatpush1.bf16.msk.msra.mxu1 %vm16155_vm14, %v14399_v11  ;;  %10439 = vmatprep.mubr.f32.mxu1 %v17100_v24  ;;  %v14446_v11 = vpack.c.bf16 %v10570_v9, %v10568_v6  ;;  %v14450_v12 = vpack.c.bf16 %v10574_v28, %v10572_v25  ;;  %v10609_v9 = vld [vmem:[#allocation19 + $0x208] sm:$0xff] }
0x1424   :  { %14416 = vmatprep.subr.msk.bf16.mxu1 %vm16155_vm14, %v14402_v41  ;;  %v14458_v41 = vpack.c.bf16 %v10582_v55, %v10580_v45 }
0x1426   :  { %11898 = vmatmul.mubr.msk.f32.vlgmr.msra.gmra.mrb[52].mxu1 %vm4563_vm3, %v10371_v26 }
0x1427   :  { %14419 = vmatpush1.bf16.msk.msra.mxu1 %vm16155_vm14, %v14405_v16  ;;  %10510 = vmatprep.mubr.f32.mxu1 %v17100_v24  ;;  %v14428_v24 = vpack.c.bf16 %v10555_v47, %v10553_v22  ;;  %v10587_v16 = vld [vmem:[#allocation19 + $0x158] sm:$0xff] }
0x1428   :  { %14421 = vmatprep.subr.bf16.mxu1 %v14420_v30  ;;  %v10591_v30 = vld [vmem:[#allocation19 + $0x178] sm:$0xff] }
0x1429   :  { %v10595_v22 = vld [vmem:[#allocation19 + $0x198] sm:$0xff] }
0x142a   :  { %11901 = vmatmul.mubr.msk.f32.vlgmr.msra.gmra.mrb[54].mxu1 %vm4563_vm3, %v10371_v26  ;;  %v14460_v26 = vpack.c.bf16 %v10587_v16, %v10585_v31 }
0x142b   :  { %14423 = vmatpush1.bf16.msra.mxu1 %v14422_v33  ;;  %v14464_v33 = vpack.c.bf16 %v10591_v30, %v10589_v35  ;;  %v10612_v35 = vld [vmem:[#allocation19 + $0x220] sm:$0xff]  ;;  %v10614_v30 = vld [vmem:[#allocation19 + $0x230] sm:$0xff] }
0x142c   :  { %14425 = vmatprep.subr.bf16.mxu1 %v14424_v3  ;;  %v10588_v3 = vld [vmem:[#allocation19 + $0x160] sm:$0xff] }
0x142d   :  { %v14466_v47 = vpack.c.bf16 %v10590_v44, %v10588_v3  ;;  %v10616_v3 = vld [vmem:[#allocation19 + $0x240] sm:$0xff]  ;;  %v10618_v44 = vld [vmem:[#allocation19 + $0x250] sm:$0xff] }
0x142f   :  { %14427 = vmatpush1.bf16.msra.mxu1 %v14426_v19  ;;  %v14468_v19 = vpack.c.bf16 %v10595_v22, %v10593_v42  ;;  %v10621_v42 = vld [vmem:[#allocation19 + $0x268] sm:$0xff]  ;;  %v10623_v22 = vld [vmem:[#allocation19 + $0x278] sm:$0xff] }
0x1430   :  { %14429 = vmatprep.subr.bf16.mxu1 %v14428_v24  ;;  %v10592_v24 = vld [vmem:[#allocation19 + $0x180] sm:$0xff] }
0x1431   :  { %v14470_v59 = vpack.c.bf16 %v10594_v63, %v10592_v24  ;;  %v10620_v24 = vld [vmem:[#allocation19 + $0x260] sm:$0xff]  ;;  %v10622_v63 = vld [vmem:[#allocation19 + $0x270] sm:$0xff] }
0x1433   :  { %14431 = vmatpush1.bf16.msra.mxu1 %v14430_v40  ;;  %v14472_v40 = vpack.c.bf16 %v10599_v48, %v10597_v36  ;;  %v10625_v36 = vld [vmem:[#allocation19 + $0x288] sm:$0xff]  ;;  %v10627_v48 = vld [vmem:[#allocation19 + $0x298] sm:$0xff] }
0x1434   :  { %14433 = vmatprep.subr.bf16.mxu1 %v14432_v38  ;;  %v10596_v38 = vld [vmem:[#allocation19 + $0x1a0] sm:$0xff] }
0x1435   :  { %v14474_v8 = vpack.c.bf16 %v10598_v0, %v10596_v38  ;;  %v10624_v38 = vld [vmem:[#allocation19 + $0x280] sm:$0xff]  ;;  %v10626_v0 = vld [vmem:[#allocation19 + $0x290] sm:$0xff] }
0x1436   :  { %v14502_v52 = vpack.c.bf16 %v10626_v0, %v10624_v38  ;;  %v10813_v38 = vld [vmem:[%s18101_s11 + $0x98] sm:$0xff] }
0x1437   :  { %14435 = vmatpush1.bf16.msra.mxu1 %v14434_v46  ;;  %v10600_v46 = vld [vmem:[#allocation19 + $0x1c0] sm:$0xff] }
0x1438   :  { %14437 = vmatprep.subr.bf16.mxu1 %v14436_v32  ;;  %v10602_v32 = vld [vmem:[#allocation19 + $0x1d0] sm:$0xff] }
0x1439   :  { %v14478_v62 = vpack.c.bf16 %v10602_v32, %v10600_v46  ;;  %v10628_v32 = vld [vmem:[#allocation19 + $0x2a0] sm:$0xff] }
0x143b   :  { %14439 = vmatpush1.bf16.msra.mxu1 %v14438_v1  ;;  %v10605_v1 = vld [vmem:[#allocation19 + $0x1e8] sm:$0xff] }
0x143c   :  { %14441 = vmatprep.subr.bf16.mxu1 %v14440_v17  ;;  %v10607_v17 = vld [vmem:[#allocation19 + $0x1f8] sm:$0xff] }
0x143d   :  { %v14480_v61 = vpack.c.bf16 %v10607_v17, %v10605_v1  ;;  %v10632_v17 = vld [vmem:[#allocation19 + $0x2c0] sm:$0xff] }
0x143f   :  { %14443 = vmatpush1.bf16.msra.mxu1 %v14442_v7  ;;  %v14482_v7 = vpack.c.bf16 %v10606_v4, %v10604_v54  ;;  %v10637_v54 = vld [vmem:[#allocation19 + $0x2e8] sm:$0xff]  ;;  %v10639_v4 = vld [vmem:[#allocation19 + $0x2f8] sm:$0xff] }
0x1440   :  { %14445 = vmatprep.subr.bf16.mxu1 %v14444_v56 }
0x1443   :  { %14447 = vmatpush1.bf16.msra.mxu1 %v14446_v11  ;;  %v14484_v11 = vpack.c.bf16 %v10611_v2, %v10609_v9  ;;  %v10641_v9 = vld [vmem:[#allocation19 + $0x308] sm:$0xff]  ;;  %v10643_v2 = vld [vmem:[#allocation19 + $0x318] sm:$0xff] }
0x1444   :  { %14449 = vmatprep.subr.bf16.mxu1 %v14448_v39 }
0x1447   :  { %14451 = vmatpush1.bf16.msra.mxu1 %v14450_v12 }
0x1448   :  { %14453 = vmatprep.subr.bf16.mxu1 %v14452_v27 }
0x144b   :  { %14455 = vmatpush1.bf16.msra.mxu1 %v14454_v14  ;;  %v10613_v14 = vld [vmem:[#allocation19 + $0x228] sm:$0xff] }
0x144c   :  { %14457 = vmatprep.subr.bf16.mxu1 %v14456_v43  ;;  %v10615_v43 = vld [vmem:[#allocation19 + $0x238] sm:$0xff] }
0x144d   :  { %v14488_v18 = vpack.c.bf16 %v10615_v43, %v10613_v14  ;;  %v10794_v43 = vld [vmem:[%s18101_s11] sm:$0xff] }
0x144f   :  { %14459 = vmatpush1.bf16.msra.mxu1 %v14458_v41 }
0x1450   :  { %14461 = vmatprep.subr.bf16.mxu1 %v14460_v26  ;;  %v14486_v26 = vpack.c.bf16 %v10610_v15, %v10608_v10  ;;  %v10644_v15 = vld [vmem:[#allocation19 + $0x320] sm:$0xff] }
0x1453   :  { %14463 = vmatpush1.bf16.msra.mxu1 %v14462_v20  ;;  %v14490_v20 = vpack.c.bf16 %v10614_v30, %v10612_v35  ;;  %v10801_v35 = vld [vmem:[%s18101_s11 + $0x38] sm:$0xff] }
0x1454   :  { %14465 = vmatprep.subr.bf16.mxu1 %v14464_v33 }
0x1457   :  { %14467 = vmatpush1.bf16.msra.mxu1 %v14466_v47  ;;  %v14494_v47 = vpack.c.bf16 %v10618_v44, %v10616_v3  ;;  %v10805_v3 = vld [vmem:[%s18101_s11 + $0x58] sm:$0xff] }
0x1458   :  { %14469 = vmatprep.subr.bf16.mxu1 %v14468_v19  ;;  %v14496_v19 = vpack.c.bf16 %v10623_v22, %v10621_v42  ;;  %v10806_v42 = vld [vmem:[%s18101_s11 + $0x60] sm:$0xff]  ;;  %v10807_v22 = vld [vmem:[%s18101_s11 + $0x68] sm:$0xff] }
0x145b   :  { %14471 = vmatpush1.bf16.msra.mxu1 %v14470_v59  ;;  %v14498_v59 = vpack.c.bf16 %v10622_v63, %v10620_v24  ;;  %v10809_v24 = vld [vmem:[%s18101_s11 + $0x78] sm:$0xff] }
0x145c   :  { %14473 = vmatprep.subr.bf16.mxu1 %v14472_v40  ;;  %v14500_v40 = vpack.c.bf16 %v10627_v48, %v10625_v36  ;;  %v10810_v36 = vld [vmem:[%s18101_s11 + $0x80] sm:$0xff]  ;;  %v10811_v48 = vld [vmem:[%s18101_s11 + $0x88] sm:$0xff] }
0x145f   :  { %14475 = vmatpush1.bf16.msra.mxu1 %v14474_v8  ;;  %v10631_v8 = vld [vmem:[#allocation19 + $0x2b8] sm:$0xff] }
0x1460   :  { %14477 = vmatprep.subr.bf16.mxu1 %v14476_v51  ;;  %v14504_v46 = vpack.c.bf16 %v10631_v8, %v10629_v58  ;;  %v10630_v51 = vld [vmem:[#allocation19 + $0x2b0] sm:$0xff]  ;;  %v10814_v58 = vld [vmem:[%s18101_s11 + $0xa0] sm:$0xff]  ;;  %v10815_v8 = vld [vmem:[%s18101_s11 + $0xa8] sm:$0xff] }
0x1463   :  { %14479 = vmatpush1.bf16.msra.mxu1 %v14478_v62  ;;  %v10633_v62 = vld [vmem:[#allocation19 + $0x2c8] sm:$0xff] }
0x1464   :  { %14481 = vmatprep.subr.bf16.mxu1 %v14480_v61  ;;  %v10634_v61 = vld [vmem:[#allocation19 + $0x2d0] sm:$0xff] }
0x1467   :  { %14483 = vmatpush1.bf16.msra.mxu1 %v14482_v7  ;;  %v14512_v7 = vpack.c.bf16 %v10639_v4, %v10637_v54  ;;  %v11904_v54 = vld [vmem:[%s18101_s11 + $0xe0] sm:$0xff]  ;;  %v11905_v4 = vld [vmem:[%s18101_s11 + $0xe8] sm:$0xff] }
0x1468   :  { %14485 = vmatprep.subr.bf16.mxu1 %v14484_v11  ;;  %v14516_v11 = vpack.c.bf16 %v10643_v2, %v10641_v9  ;;  %v11907_v9 = vld [vmem:[%s18101_s11 + $0xf8] sm:$0xff] }
0x14ad   :  { %v10295_v53 = vpop.f32.mrb[48].mxu1 }
0x14ae   :  { %v10297_v37 = vpop.f32.mrb[49].mxu1 }
0x14f5   :  { %v10366_v13 = vpop.f32.mrb[50].mxu1 }
0x14f6   :  { %v10368_v60 = vpop.f32.mrb[51].mxu1 }
0x14f9   :  { %v10441_v21 = vpop.f32.mrb[52].mxu1 }
0x14fa   :  { %v10517_v56 = vmax.f32 %v10295_v53, %v10441_v21  ;;  %v10443_v6 = vpop.f32.mrb[53].mxu1  ;;  %v10617_v53 = vld [vmem:[#allocation19 + $0x248] sm:$0xff]  ;;  %v14510_v21 = vpack.c.bf16 %v10634_v61, %v10632_v17  ;;  %v10821_v17 = vld [vmem:[%s18101_s11 + $0xd8] sm:$0xff] }
0x14fb   :  { %v10518_v50 = vmax.f32 %v10297_v37, %v10443_v6  ;;  %v10619_v37 = vld [vmem:[#allocation19 + $0x258] sm:$0xff]  ;;  %v10638_v6 = vld [vmem:[#allocation19 + $0x2f0] sm:$0xff] }
0x14fc   :  { %10525 = vrot.lane.b32.xlu1 %v10517_v56, %s15498_s3  ;;  %v14492_v33 = vpack.c.bf16 %v10619_v37, %v10617_v53  ;;  %v10802_v53 = vld [vmem:[%s18101_s11 + $0x40] sm:$0xff]  ;;  %v10803_v37 = vld [vmem:[%s18101_s11 + $0x48] sm:$0xff] }
0x14fd   :  { %v10512_v39 = vpop.f32.mrb[54].mxu1 }
0x14fe   :  { %v17344_v25 = vmax.f32 %v10366_v13, %v10512_v39  ;;  %v10514_v28 = vpop.f32.mrb[55].mxu1  ;;  %v10635_v13 = vld [vmem:[#allocation19 + $0x2d8] sm:$0xff]  ;;  %v10640_v39 = vld [vmem:[#allocation19 + $0x300] sm:$0xff] }
0x14ff   :  { %v10520_v5 = vmax.f32 %v10368_v60, %v10514_v28  ;;  %v14506_v60 = vpack.c.bf16 %v10630_v51, %v10628_v32  ;;  %v14508_v1 = vpack.c.bf16 %v10635_v13, %v10633_v62  ;;  %v10642_v28 = vld [vmem:[#allocation19 + $0x310] sm:$0xff]  ;;  %v10818_v62 = vld [vmem:[%s18101_s11 + $0xc0] sm:$0xff]  ;;  %v10819_v13 = vld [vmem:[%s18101_s11 + $0xc8] sm:$0xff] }
0x1500   :  { %v15182_v23 = vpack.i.bf16 %v17344_v25, %v10518_v50  ;;  %v10817_v32 = vld [vmem:[%s18101_s11 + $0xb8] sm:$0xff] }
0x1502   :  { %15183 = vrot.lane.b32.xlu0 %v15182_v23, %s15498_s3  ;;  %v10647_v23 = vld [vmem:[#allocation19 + $0x338] sm:$0xff] }
0x1506   :  { %10531 = vrot.lane.b32.xlu0 %v10520_v5, %s15498_s3 }
0x156e   :  { %v10526_v34 = vpop.permute.xlu1 %10525 }
0x1574   :  { %v17349_v12 = vpop.permute.xlu0 %15183 }
0x1575   :  { %v15186_v27 = vunpack.i.h.bf16 %v17349_v12  ;;  %v15185_v57 = vunpack.i.l.bf16 %v17349_v12  ;;  %v10798_v12 = vld [vmem:[%s18101_s11 + $0x20] sm:$0xff] }
0x1577   :  { %v10533_v45 = vsel %vm4883_vm4, %v10526_v34, %v15185_v57  ;;  %v10534_v55 = vsel %vm4883_vm4, %v15185_v57, %v15186_v27  ;;  %v14518_v57 = vpack.c.bf16 %v10642_v28, %v10640_v39  ;;  %v10646_v34 = vld [vmem:[#allocation19 + $0x330] sm:$0xff]  ;;  %v11909_v39 = vld [vmem:[%s18101_s11 + $0x108] sm:$0xff] }
0x1578   :  { %v10540_v31 = vmax.f32 %v10517_v56, %v10533_v45  ;;  %v17357_v16 = vpop.permute.xlu0 %10531  ;;  %v10541_v41 = vmax.f32 %v10518_v50, %v10534_v55  ;;  %v10636_v56 = vld [vmem:[#allocation19 + $0x2e0] sm:$0xff]  ;;  %v14522_v14 = vpack.c.bf16 %v10646_v34, %v10644_v15 }
0x1579   :  { %v10543_v29 = vmax.f32 %v10520_v5, %v17357_v16  ;;  %v14514_v50 = vpack.c.bf16 %v10638_v6, %v10636_v56  ;;  %v10645_v5 = vld [vmem:[#allocation19 + $0x328] sm:$0xff]  ;;  %v10795_v45 = vld [vmem:[%s18101_s11 + $0x8] sm:$0xff]  ;;  %v10535_v55 = vsel %vm4883_vm4, %v15186_v27, %v17357_v16 }
0x157a   :  { %10715 = vmatprep.mubr.f32.mxu1 %v10541_v41  ;;  %v14520_v10 = vpack.c.bf16 %v10647_v23, %v10645_v5  ;;  %v10542_v41 = vmax.f32 %v17344_v25, %v10535_v55  ;;  %v10799_v25 = vld [vmem:[%s18101_s11 + $0x28] sm:$0xff]  ;;  %v10800_v16 = vld [vmem:[%s18101_s11 + $0x30] sm:$0xff]  ;;  %v11911_v23 = vld [vmem:[%s18101_s11 + $0x118] sm:$0xff] }
0x157b   :  { %10716 = vmatmul.mubr.f32.vlgmr.msra.gmra.mrb[56].mxu1 %v10540_v31  ;;  %v14525_v31 = vpack.c.bf16 %v10795_v45, %v10794_v43  ;;  %v14531_v27 = vpack.c.bf16 %v10799_v25, %v10798_v12  ;;  %v14534_v30 = vpack.c.bf16 %v10801_v35, %v10800_v16  ;;  %v11906_v6 = vld [vmem:[%s18101_s11 + $0xf0] sm:$0xff]  ;;  %v11913_v15 = vld [vmem:[%s18101_s11 + $0x128] sm:$0xff]  ;;  %v11915_v43 = vld [vmem:[%s18101_s11 + $0x138] sm:$0xff] }
0x157c   :  { %14487 = vmatpush1.bf16.msra.mxu1 %v14486_v26  ;;  %11902 = vmatprep.mubr.msk.f32.mxu1 %vm184_vm0, %v10543_v29  ;;  %v10796_v26 = vld [vmem:[%s18101_s11 + $0x10] sm:$0xff]  ;;  %v10797_v29 = vld [vmem:[%s18101_s11 + $0x18] sm:$0xff]  ;;  %v11916_v55 = vld [vmem:[%s18101_s11 + $0x140] sm:$0xff] }
0x157d   :  { %14489 = vmatprep.subr.bf16.mxu1 %v14488_v18  ;;  %v14528_v18 = vpack.c.bf16 %v10797_v29, %v10796_v26  ;;  %v11910_v5 = vld [vmem:[%s18101_s11 + $0x110] sm:$0xff]  ;;  %v11919_v29 = vld [vmem:[%s18101_s11 + $0x158] sm:$0xff]  ;;  %v11920_v12 = vld [vmem:[%s18101_s11 + $0x160] sm:$0xff] }
0x157e   :  { %v11918_v26 = vld [vmem:[%s18101_s11 + $0x150] sm:$0xff]  ;;  %v11921_v25 = vld [vmem:[%s18101_s11 + $0x168] sm:$0xff]  ;;  %v11923_v35 = vld [vmem:[%s18101_s11 + $0x178] sm:$0xff] }
0x157f   :  { %v11922_v16 = vld [vmem:[%s18101_s11 + $0x170] sm:$0xff] }
0x1580   :  { %14491 = vmatpush1.bf16.msra.mxu1 %v14490_v20  ;;  %v14537_v20 = vpack.c.bf16 %v10803_v37, %v10802_v53  ;;  %v11924_v53 = vld [vmem:[%s18101_s11 + $0x180] sm:$0xff]  ;;  %v11925_v37 = vld [vmem:[%s18101_s11 + $0x188] sm:$0xff] }
0x1581   :  { %14493 = vmatprep.subr.bf16.mxu1 %v14492_v33  ;;  %v10804_v33 = vld [vmem:[%s18101_s11 + $0x50] sm:$0xff] }
0x1582   :  { %v14540_v44 = vpack.c.bf16 %v10805_v3, %v10804_v33  ;;  %v11926_v33 = vld [vmem:[%s18101_s11 + $0x190] sm:$0xff]  ;;  %v11927_v3 = vld [vmem:[%s18101_s11 + $0x198] sm:$0xff] }
0x1584   :  { %14495 = vmatpush1.bf16.msra.mxu1 %v14494_v47  ;;  %v14543_v47 = vpack.c.bf16 %v10807_v22, %v10806_v42  ;;  %v11928_v42 = vld [vmem:[%s18101_s11 + $0x1a0] sm:$0xff]  ;;  %v11929_v22 = vld [vmem:[%s18101_s11 + $0x1a8] sm:$0xff] }
0x1585   :  { %14497 = vmatprep.subr.bf16.mxu1 %v14496_v19  ;;  %v10808_v19 = vld [vmem:[%s18101_s11 + $0x70] sm:$0xff] }
0x1586   :  { %v14546_v63 = vpack.c.bf16 %v10809_v24, %v10808_v19  ;;  %v11930_v19 = vld [vmem:[%s18101_s11 + $0x1b0] sm:$0xff]  ;;  %v11931_v24 = vld [vmem:[%s18101_s11 + $0x1b8] sm:$0xff] }
0x1588   :  { %14499 = vmatpush1.bf16.msra.mxu1 %v14498_v59  ;;  %v14549_v59 = vpack.c.bf16 %v10811_v48, %v10810_v36  ;;  %v11933_v36 = vld [vmem:[%s18101_s11 + $0x1c0] sm:$0xff]  ;;  %v11934_v48 = vld [vmem:[%s18101_s11 + $0x1c8] sm:$0xff] }
0x1589   :  { %14501 = vmatprep.subr.bf16.mxu1 %v14500_v40  ;;  %v10812_v40 = vld [vmem:[%s18101_s11 + $0x90] sm:$0xff] }
0x158a   :  { %v14552_v0 = vpack.c.bf16 %v10813_v38, %v10812_v40  ;;  %v11935_v38 = vld [vmem:[%s18101_s11 + $0x1d0] sm:$0xff] }
0x158c   :  { %14503 = vmatpush1.bf16.msra.mxu1 %v14502_v52  ;;  %v14555_v52 = vpack.c.bf16 %v10815_v8, %v10814_v58 }
0x158d   :  { %14505 = vmatprep.subr.bf16.mxu1 %v14504_v46  ;;  %v10816_v46 = vld [vmem:[%s18101_s11 + $0xb0] sm:$0xff] }
0x158e   :  { %v14558_v51 = vpack.c.bf16 %v10817_v32, %v10816_v46  ;;  %v11938_v46 = vld [vmem:[%s18101_s11 + $0x1e8] sm:$0xff] }
0x1590   :  { %14507 = vmatpush1.bf16.msra.mxu1 %v14506_v60  ;;  %v14561_v60 = vpack.c.bf16 %v10819_v13, %v10818_v62  ;;  %v11940_v62 = vld [vmem:[%s18101_s11 + $0x1f8] sm:$0xff] }
0x1591   :  { %14509 = vmatprep.subr.bf16.mxu1 %v14508_v1  ;;  %v10820_v1 = vld [vmem:[%s18101_s11 + $0xd0] sm:$0xff] }
0x1592   :  { %v14564_v61 = vpack.c.bf16 %v10821_v17, %v10820_v1  ;;  %v11942_v1 = vld [vmem:[%s18101_s11 + $0x208] sm:$0xff] }
0x1594   :  { %14511 = vmatpush1.bf16.msra.mxu1 %v14510_v21 }
0x1595   :  { %14513 = vmatprep.subr.bf16.mxu1 %v14512_v7  ;;  %v14567_v7 = vpack.c.bf16 %v11905_v4, %v11904_v54  ;;  %v11944_v54 = vld [vmem:[%s18101_s11 + $0x218] sm:$0xff] }
0x1598   :  { %14515 = vmatpush1.bf16.msra.mxu1 %v14514_v50  ;;  %v14570_v50 = vpack.c.bf16 %v11907_v9, %v11906_v6  ;;  %v11946_v6 = vld [vmem:[%s18101_s11 + $0x228] sm:$0xff] }
0x1599   :  { %14517 = vmatprep.subr.bf16.mxu1 %v14516_v11  ;;  %v11908_v11 = vld [vmem:[%s18101_s11 + $0x100] sm:$0xff] }
0x159a   :  { %v14573_v28 = vpack.c.bf16 %v11909_v39, %v11908_v11  ;;  %v11949_v39 = vld [vmem:[%s18101_s11 + $0x240] sm:$0xff] }
0x159c   :  { %14519 = vmatpush1.bf16.msra.mxu1 %v14518_v57  ;;  %v14576_v57 = vpack.c.bf16 %v11911_v23, %v11910_v5  ;;  %v11951_v23 = vld [vmem:[%s18101_s11 + $0x250] sm:$0xff] }
0x159d   :  { %14521 = vmatprep.subr.bf16.mxu1 %v14520_v10  ;;  %v11912_v10 = vld [vmem:[%s18101_s11 + $0x120] sm:$0xff] }
0x159e   :  { %v14579_v34 = vpack.c.bf16 %v11913_v15, %v11912_v10  ;;  %v11953_v15 = vld [vmem:[%s18101_s11 + $0x260] sm:$0xff] }
0x15a0   :  { %14523 = vmatpush1.bf16.msra.mxu1 %v14522_v14  ;;  %v11914_v14 = vld [vmem:[%s18101_s11 + $0x130] sm:$0xff] }
0x15a1   :  { %14524 = vmatprep.subr.bf16.mxu1 %v15499_v49  ;;  %v14582_v45 = vpack.c.bf16 %v11915_v43, %v11914_v14  ;;  %v11955_v43 = vld [vmem:[%s18101_s11 + $0x270] sm:$0xff] }
0x15a3   :  { %10787 = vmatmul.mubr.f32.vlgmr.msra.gmra.mrb[56].mxu1 %v10542_v41 }
0x15a4   :  { %14526 = vmatpush1.bf16.msra.mxu1 %v14525_v31  ;;  %v11917_v31 = vld [vmem:[%s18101_s11 + $0x148] sm:$0xff] }
0x15a5   :  { %14527 = vmatprep.subr.bf16.mxu1 %v15499_v49  ;;  %v14585_v41 = vpack.c.bf16 %v11917_v31, %v11916_v55  ;;  %v11957_v31 = vld [vmem:[%s18101_s11 + $0x280] sm:$0xff] }
0x15a8   :  { %14529 = vmatpush1.bf16.msra.mxu1 %v14528_v18  ;;  %v14588_v18 = vpack.c.bf16 %v11919_v29, %v11918_v26  ;;  %v11959_v29 = vld [vmem:[%s18101_s11 + $0x290] sm:$0xff] }
0x15a9   :  { %14530 = vmatprep.subr.bf16.mxu1 %v15499_v49 }
0x15ac   :  { %14532 = vmatpush1.bf16.msra.mxu1 %v14531_v27  ;;  %v14591_v27 = vpack.c.bf16 %v11921_v25, %v11920_v12  ;;  %v11962_v25 = vld [vmem:[%s18101_s11 + $0x2a0] sm:$0xff] }
0x15ad   :  { %14533 = vmatprep.subr.bf16.mxu1 %v15499_v49 }
0x15b0   :  { %14535 = vmatpush1.bf16.msra.mxu1 %v14534_v30  ;;  %v14594_v30 = vpack.c.bf16 %v11923_v35, %v11922_v16 }
0x15b1   :  { %14536 = vmatprep.subr.bf16.mxu1 %v15499_v49 }
0x15b4   :  { %14538 = vmatpush1.bf16.msra.mxu1 %v14537_v20  ;;  %v14597_v20 = vpack.c.bf16 %v11925_v37, %v11924_v53  ;;  %v11965_v53 = vld [vmem:[%s18101_s11 + $0x2b8] sm:$0xff] }
0x15b5   :  { %14539 = vmatprep.subr.bf16.mxu1 %v15499_v49 }
0x15b8   :  { %14541 = vmatpush1.bf16.msra.mxu1 %v14540_v44  ;;  %v14600_v44 = vpack.c.bf16 %v11927_v3, %v11926_v33  ;;  %v11966_v33 = vld [vmem:[%s18101_s11 + $0x2c0] sm:$0xff]  ;;  %v11967_v3 = vld [vmem:[%s18101_s11 + $0x2c8] sm:$0xff] }
0x15b9   :  { %14542 = vmatprep.subr.bf16.mxu1 %v15499_v49 }
0x15bc   :  { %14544 = vmatpush1.bf16.msra.mxu1 %v14543_v47  ;;  %v14603_v47 = vpack.c.bf16 %v11929_v22, %v11928_v42  ;;  %v11968_v42 = vld [vmem:[%s18101_s11 + $0x2d0] sm:$0xff]  ;;  %v11969_v22 = vld [vmem:[%s18101_s11 + $0x2d8] sm:$0xff] }
0x15bd   :  { %14545 = vmatprep.subr.bf16.mxu1 %v15499_v49 }
0x15c0   :  { %14547 = vmatpush1.bf16.msra.mxu1 %v14546_v63  ;;  %v14606_v63 = vpack.c.bf16 %v11931_v24, %v11930_v19  ;;  %v11970_v19 = vld [vmem:[%s18101_s11 + $0x2e0] sm:$0xff]  ;;  %v11971_v24 = vld [vmem:[%s18101_s11 + $0x2e8] sm:$0xff] }
0x15c1   :  { %14548 = vmatprep.subr.bf16.mxu1 %v15499_v49 }
0x15c4   :  { %14550 = vmatpush1.bf16.msra.mxu1 %v14549_v59  ;;  %v14609_v59 = vpack.c.bf16 %v11934_v48, %v11933_v36  ;;  %v11972_v36 = vld [vmem:[%s18101_s11 + $0x2f0] sm:$0xff]  ;;  %v11973_v48 = vld [vmem:[%s18101_s11 + $0x2f8] sm:$0xff] }
0x15c5   :  { %14551 = vmatprep.subr.bf16.mxu1 %v15499_v49 }
0x15c8   :  { %14553 = vmatpush1.bf16.msra.mxu1 %v14552_v0  ;;  %v11936_v0 = vld [vmem:[%s18101_s11 + $0x1d8] sm:$0xff] }
0x15c9   :  { %14554 = vmatprep.subr.bf16.mxu1 %v15499_v49  ;;  %v14612_v8 = vpack.c.bf16 %v11936_v0, %v11935_v38  ;;  %v11975_v38 = vld [vmem:[%s18101_s11 + $0x308] sm:$0xff] }
0x15cc   :  { %14556 = vmatpush1.bf16.msra.mxu1 %v14555_v52  ;;  %v11937_v52 = vld [vmem:[%s18101_s11 + $0x1e0] sm:$0xff] }
0x15cd   :  { %14557 = vmatprep.subr.bf16.mxu1 %v15499_v49  ;;  %v14615_v32 = vpack.c.bf16 %v11938_v46, %v11937_v52  ;;  %v11978_v46 = vld [vmem:[%s18101_s11 + $0x320] sm:$0xff] }
0x15d0   :  { %14559 = vmatpush1.bf16.msra.mxu1 %v14558_v51  ;;  %v11939_v51 = vld [vmem:[%s18101_s11 + $0x1f0] sm:$0xff] }
0x15d1   :  { %14560 = vmatprep.subr.bf16.mxu1 %v15499_v49  ;;  %v14618_v13 = vpack.c.bf16 %v11940_v62, %v11939_v51  ;;  %v11980_v62 = vld [vmem:[%s18101_s11 + $0x330] sm:$0xff] }
0x15d4   :  { %14562 = vmatpush1.bf16.msra.mxu1 %v14561_v60  ;;  %v11941_v60 = vld [vmem:[%s18101_s11 + $0x200] sm:$0xff] }
0x15d5   :  { %14563 = vmatprep.subr.bf16.mxu1 %v15499_v49  ;;  %v14621_v17 = vpack.c.bf16 %v11942_v1, %v11941_v60  ;;  %v11982_v1 = vld [vmem:[%s18101_s11 + $0x340] sm:$0xff] }
0x15d8   :  { %14565 = vmatpush1.bf16.msra.mxu1 %v14564_v61  ;;  %v11943_v61 = vld [vmem:[%s18101_s11 + $0x210] sm:$0xff] }
0x15d9   :  { %14566 = vmatprep.subr.bf16.mxu1 %v15499_v49  ;;  %v14624_v4 = vpack.c.bf16 %v11944_v54, %v11943_v61  ;;  %v11984_v54 = vld [vmem:[%s18101_s11 + $0x350] sm:$0xff] }
0x1676   :  { %v17471_v21 = vpop.f32.mrb[56].mxu1 }
0x1677   :  { %v17473_v56 = vpop.f32.mrb[57].mxu1  ;;  %v10925_v40 = vrot.slane %v17471_v21, 1  ;;  %v11029_v35 = vrot.slane %v17471_v21, 2 }
0x1678   :  { %11903 = vmatprep.mubr.msk.f32.mxu1 %vm4883_vm4, %v17473_v56  ;;  %v10926_v2 = vrot.slane %v17473_v56, 1  ;;  %v11030_v58 = vrot.slane %v17473_v56, 2  ;;  %v11134_v37 = vrot.slane %v17473_v56, 3 }
0x1679   :  { %10890 = vmatmul.mubr.f32.vlgmr.msra.gmra.mrb[58].mxu1 %v17471_v21 }
0x167a   :  { %14568 = vmatpush1.bf16.msra.mxu1 %v14567_v7  ;;  %11932 = vmatprep.mubr.msk.f32.mxu1 %vm4883_vm4, %v10926_v2  ;;  %v11945_v7 = vld [vmem:[%s18101_s11 + $0x220] sm:$0xff]  ;;  %v11947_v2 = vld [vmem:[%s18101_s11 + $0x230] sm:$0xff] }
0x167b   :  { %14569 = vmatprep.subr.bf16.mxu1 %v15499_v49  ;;  %v14627_v9 = vpack.c.bf16 %v11946_v6, %v11945_v7  ;;  %v11986_v6 = vld [vmem:[%s18101_s11 + $0x360] sm:$0xff] }
0x167e   :  { %14571 = vmatpush1.bf16.msra.mxu1 %v14570_v50  ;;  %v11948_v50 = vld [vmem:[%s18101_s11 + $0x238] sm:$0xff] }
0x167f   :  { %14572 = vmatprep.subr.bf16.mxu1 %v15499_v49  ;;  %v14630_v11 = vpack.c.bf16 %v11948_v50, %v11947_v2  ;;  %v11988_v50 = vld [vmem:[%s18101_s11 + $0x370] sm:$0xff] }
0x1682   :  { %14574 = vmatpush1.bf16.msra.mxu1 %v14573_v28  ;;  %v11950_v28 = vld [vmem:[%s18101_s11 + $0x248] sm:$0xff] }
0x1683   :  { %14575 = vmatprep.subr.bf16.mxu1 %v15499_v49  ;;  %v14633_v5 = vpack.c.bf16 %v11950_v28, %v11949_v39  ;;  %v11991_v28 = vld [vmem:[%s18101_s11 + $0x380] sm:$0xff] }
0x1686   :  { %14577 = vmatpush1.bf16.msra.mxu1 %v14576_v57  ;;  %v11952_v57 = vld [vmem:[%s18101_s11 + $0x258] sm:$0xff] }
0x1687   :  { %14578 = vmatprep.subr.bf16.mxu1 %v15499_v49  ;;  %v14636_v10 = vpack.c.bf16 %v11952_v57, %v11951_v23  ;;  %v11133_v57 = vrot.slane %v17471_v21, 3 }
0x168a   :  { %14580 = vmatpush1.bf16.msra.mxu1 %v14579_v34  ;;  %v11954_v34 = vld [vmem:[%s18101_s11 + $0x268] sm:$0xff] }
0x168b   :  { %14581 = vmatprep.subr.bf16.mxu1 %v15499_v49  ;;  %v14639_v14 = vpack.c.bf16 %v11954_v34, %v11953_v15  ;;  %v11994_v15 = vld [vmem:[%s18101_s11 + $0x398] sm:$0xff]  ;;  %v11238_v34 = vrot.slane %v17473_v56, 4 }
0x168e   :  { %14583 = vmatpush1.bf16.msra.mxu1 %v14582_v45  ;;  %v11956_v45 = vld [vmem:[%s18101_s11 + $0x278] sm:$0xff] }
0x168f   :  { %14584 = vmatprep.subr.bf16.mxu1 %v15499_v49  ;;  %v14642_v55 = vpack.c.bf16 %v11956_v45, %v11955_v43  ;;  %v11995_v43 = vld [vmem:[%s18101_s11 + $0x3a0] sm:$0xff]  ;;  %v11996_v45 = vld [vmem:[%s18101_s11 + $0x3a8] sm:$0xff] }
0x1692   :  { %14586 = vmatpush1.bf16.msra.mxu1 %v14585_v41  ;;  %v11958_v41 = vld [vmem:[%s18101_s11 + $0x288] sm:$0xff] }
0x1693   :  { %14587 = vmatprep.subr.bf16.mxu1 %v15499_v49  ;;  %v14645_v26 = vpack.c.bf16 %v11958_v41, %v11957_v31  ;;  %v11997_v31 = vld [vmem:[%s18101_s11 + $0x3b0] sm:$0xff]  ;;  %v11998_v41 = vld [vmem:[%s18101_s11 + $0x3b8] sm:$0xff] }
0x1696   :  { %14589 = vmatpush1.bf16.msra.mxu1 %v14588_v18  ;;  %v11960_v18 = vld [vmem:[%s18101_s11 + $0x298] sm:$0xff] }
0x1697   :  { %14590 = vmatprep.subr.bf16.mxu1 %v15499_v49  ;;  %v14648_v12 = vpack.c.bf16 %v11960_v18, %v11959_v29  ;;  %v11999_v29 = vld [vmem:[%s18101_s11 + $0x3c0] sm:$0xff]  ;;  %v12000_v18 = vld [vmem:[%s18101_s11 + $0x3c8] sm:$0xff] }
0x169a   :  { %14592 = vmatpush1.bf16.msra.mxu1 %v14591_v27  ;;  %v11963_v27 = vld [vmem:[%s18101_s11 + $0x2a8] sm:$0xff] }
0x169b   :  { %14593 = vmatprep.subr.bf16.mxu1 %v15499_v49  ;;  %v14651_v16 = vpack.c.bf16 %v11963_v27, %v11962_v25  ;;  %v12001_v25 = vld [vmem:[%s18101_s11 + $0x3d0] sm:$0xff]  ;;  %v12002_v27 = vld [vmem:[%s18101_s11 + $0x3d8] sm:$0xff] }
0x169e   :  { %14595 = vmatpush1.bf16.msra.mxu1 %v14594_v30  ;;  %v11964_v30 = vld [vmem:[%s18101_s11 + $0x2b0] sm:$0xff] }
0x169f   :  { %14596 = vmatprep.subr.bf16.mxu1 %v15499_v49 }
0x16a2   :  { %14598 = vmatpush1.bf16.msra.mxu1 %v14597_v20  ;;  %v14654_v20 = vpack.c.bf16 %v11965_v53, %v11964_v30  ;;  %v12004_v30 = vld [vmem:[%s18101_s11 + $0x3e8] sm:$0xff] }
0x16a3   :  { %14599 = vmatprep.subr.bf16.mxu1 %v15499_v49 }
0x16a6   :  { %14601 = vmatpush1.bf16.msra.mxu1 %v14600_v44  ;;  %v14657_v44 = vpack.c.bf16 %v11967_v3, %v11966_v33  ;;  %v12007_v3 = vld [vmem:[%s18101_s11 + $0x400] sm:$0xff] }
0x16a7   :  { %14602 = vmatprep.subr.bf16.mxu1 %v15499_v49 }
0x16aa   :  { %14604 = vmatpush1.bf16.msra.mxu1 %v14603_v47  ;;  %v14660_v47 = vpack.c.bf16 %v11969_v22, %v11968_v42  ;;  %v12009_v22 = vld [vmem:[%s18101_s11 + $0x410] sm:$0xff] }
0x16ab   :  { %14605 = vmatprep.subr.bf16.mxu1 %v15499_v49 }
0x16ae   :  { %14607 = vmatpush1.bf16.msra.mxu1 %v14606_v63  ;;  %v14663_v63 = vpack.c.bf16 %v11971_v24, %v11970_v19  ;;  %v12011_v24 = vld [vmem:[%s18101_s11 + $0x420] sm:$0xff] }
0x16af   :  { %14608 = vmatprep.subr.bf16.mxu1 %v15499_v49 }
0x16b1   :  { %10995 = vmatmul.mubr.f32.vlgmr.msra.gmra.mrb[58].mxu1 %v10925_v40  ;;  %v11974_v40 = vld [vmem:[%s18101_s11 + $0x300] sm:$0xff] }
0x16b2   :  { %14610 = vmatpush1.bf16.msra.mxu1 %v14609_v59  ;;  %11961 = vmatprep.mubr.msk.f32.mxu1 %vm4883_vm4, %v11030_v58  ;;  %v14666_v59 = vpack.c.bf16 %v11973_v48, %v11972_v36  ;;  %v14669_v0 = vpack.c.bf16 %v11975_v38, %v11974_v40  ;;  %v11976_v58 = vld [vmem:[%s18101_s11 + $0x310] sm:$0xff]  ;;  %v12015_v38 = vld [vmem:[%s18101_s11 + $0x440] sm:$0xff] }
0x16b3   :  { %14611 = vmatprep.subr.bf16.mxu1 %v15499_v49  ;;  %v12013_v48 = vld [vmem:[%s18101_s11 + $0x430] sm:$0xff] }
0x16b6   :  { %14613 = vmatpush1.bf16.msra.mxu1 %v14612_v8  ;;  %v11977_v8 = vld [vmem:[%s18101_s11 + $0x318] sm:$0xff] }
0x16b7   :  { %14614 = vmatprep.subr.bf16.mxu1 %v15499_v49  ;;  %v14672_v52 = vpack.c.bf16 %v11977_v8, %v11976_v58  ;;  %v12017_v8 = vld [vmem:[%s18101_s11 + $0x450] sm:$0xff] }
0x16ba   :  { %14616 = vmatpush1.bf16.msra.mxu1 %v14615_v32  ;;  %v11979_v32 = vld [vmem:[%s18101_s11 + $0x328] sm:$0xff] }
0x16bb   :  { %14617 = vmatprep.subr.bf16.mxu1 %v15499_v49  ;;  %v14675_v51 = vpack.c.bf16 %v11979_v32, %v11978_v46  ;;  %v12020_v32 = vld [vmem:[%s18101_s11 + $0x460] sm:$0xff] }
0x16be   :  { %14619 = vmatpush1.bf16.msra.mxu1 %v14618_v13  ;;  %v11981_v13 = vld [vmem:[%s18101_s11 + $0x338] sm:$0xff] }
0x16bf   :  { %14620 = vmatprep.subr.bf16.mxu1 %v15499_v49  ;;  %v14678_v60 = vpack.c.bf16 %v11981_v13, %v11980_v62  ;;  %v11237_v13 = vrot.slane %v17471_v21, 4 }
0x16c2   :  { %14622 = vmatpush1.bf16.msra.mxu1 %v14621_v17  ;;  %v11983_v17 = vld [vmem:[%s18101_s11 + $0x348] sm:$0xff] }
0x16c3   :  { %14623 = vmatprep.subr.bf16.mxu1 %v15499_v49  ;;  %v14681_v61 = vpack.c.bf16 %v11983_v17, %v11982_v1  ;;  %v12023_v1 = vld [vmem:[%s18101_s11 + $0x478] sm:$0xff]  ;;  %v11342_v17 = vrot.slane %v17473_v56, 5 }
0x16c6   :  { %14625 = vmatpush1.bf16.msra.mxu1 %v14624_v4  ;;  %v11985_v4 = vld [vmem:[%s18101_s11 + $0x358] sm:$0xff] }
0x16c7   :  { %14626 = vmatprep.subr.bf16.mxu1 %v15499_v49  ;;  %v14684_v7 = vpack.c.bf16 %v11985_v4, %v11984_v54  ;;  %v12024_v54 = vld [vmem:[%s18101_s11 + $0x480] sm:$0xff]  ;;  %v12025_v4 = vld [vmem:[%s18101_s11 + $0x488] sm:$0xff] }
0x16ca   :  { %14628 = vmatpush1.bf16.msra.mxu1 %v14627_v9  ;;  %v11987_v9 = vld [vmem:[%s18101_s11 + $0x368] sm:$0xff] }
0x16cb   :  { %14629 = vmatprep.subr.bf16.mxu1 %v15499_v49  ;;  %v14687_v2 = vpack.c.bf16 %v11987_v9, %v11986_v6  ;;  %v12026_v6 = vld [vmem:[%s18101_s11 + $0x490] sm:$0xff]  ;;  %v12027_v9 = vld [vmem:[%s18101_s11 + $0x498] sm:$0xff] }
0x16ce   :  { %14631 = vmatpush1.bf16.msra.mxu1 %v14630_v11  ;;  %v11989_v11 = vld [vmem:[%s18101_s11 + $0x378] sm:$0xff] }
0x16cf   :  { %14632 = vmatprep.subr.bf16.mxu1 %v15499_v49  ;;  %v14690_v39 = vpack.c.bf16 %v11989_v11, %v11988_v50  ;;  %v12028_v50 = vld [vmem:[%s18101_s11 + $0x4a0] sm:$0xff]  ;;  %v12029_v11 = vld [vmem:[%s18101_s11 + $0x4a8] sm:$0xff] }
0x16d2   :  { %14634 = vmatpush1.bf16.msra.mxu1 %v14633_v5  ;;  %v11992_v5 = vld [vmem:[%s18101_s11 + $0x388] sm:$0xff] }
0x16d3   :  { %14635 = vmatprep.subr.bf16.mxu1 %v15499_v49  ;;  %v14693_v23 = vpack.c.bf16 %v11992_v5, %v11991_v28  ;;  %v12030_v28 = vld [vmem:[%s18101_s11 + $0x4b0] sm:$0xff]  ;;  %v12031_v5 = vld [vmem:[%s18101_s11 + $0x4b8] sm:$0xff] }
0x16d6   :  { %14637 = vmatpush1.bf16.msra.mxu1 %v14636_v10  ;;  %v11993_v10 = vld [vmem:[%s18101_s11 + $0x390] sm:$0xff] }
0x16d7   :  { %14638 = vmatprep.subr.bf16.mxu1 %v15499_v49 }
0x16da   :  { %14640 = vmatpush1.bf16.msra.mxu1 %v14639_v14  ;;  %v14696_v14 = vpack.c.bf16 %v11994_v15, %v11993_v10  ;;  %v12033_v10 = vld [vmem:[%s18101_s11 + $0x4c8] sm:$0xff] }
0x16db   :  { %14641 = vmatprep.subr.bf16.mxu1 %v15499_v49 }
0x16de   :  { %14643 = vmatpush1.bf16.msra.mxu1 %v14642_v55  ;;  %v14699_v55 = vpack.c.bf16 %v11996_v45, %v11995_v43  ;;  %v12036_v45 = vld [vmem:[%s18101_s11 + $0x4e0] sm:$0xff] }
0x16df   :  { %14644 = vmatprep.subr.bf16.mxu1 %v15499_v49 }
0x16e2   :  { %14646 = vmatpush1.bf16.msra.mxu1 %v14645_v26  ;;  %v14702_v26 = vpack.c.bf16 %v11998_v41, %v11997_v31  ;;  %v12038_v41 = vld [vmem:[%s18101_s11 + $0x4f0] sm:$0xff] }
0x16e3   :  { %14647 = vmatprep.subr.bf16.mxu1 %v15499_v49 }
0x16e6   :  { %14649 = vmatpush1.bf16.msra.mxu1 %v14648_v12  ;;  %v14705_v12 = vpack.c.bf16 %v12000_v18, %v11999_v29  ;;  %v12040_v18 = vld [vmem:[%s18101_s11 + $0x500] sm:$0xff] }
0x16e7   :  { %14650 = vmatprep.subr.bf16.mxu1 %v15499_v49 }
0x16e9   :  { %11099 = vmatmul.mubr.f32.vlgmr.msra.gmra.mrb[58].mxu1 %v11029_v35  ;;  %v12003_v35 = vld [vmem:[%s18101_s11 + $0x3e0] sm:$0xff] }
0x16ea   :  { %14652 = vmatpush1.bf16.msra.mxu1 %v14651_v16  ;;  %11990 = vmatprep.mubr.msk.f32.mxu1 %vm4883_vm4, %v11134_v37  ;;  %v14708_v16 = vpack.c.bf16 %v12002_v27, %v12001_v25  ;;  %v14711_v53 = vpack.c.bf16 %v12004_v30, %v12003_v35  ;;  %v12005_v37 = vld [vmem:[%s18101_s11 + $0x3f0] sm:$0xff]  ;;  %v12044_v30 = vld [vmem:[%s18101_s11 + $0x520] sm:$0xff] }
0x16eb   :  { %14653 = vmatprep.subr.bf16.mxu1 %v15499_v49  ;;  %v12042_v27 = vld [vmem:[%s18101_s11 + $0x510] sm:$0xff] }
0x16ee   :  { %14655 = vmatpush1.bf16.msra.mxu1 %v14654_v20  ;;  %v12006_v20 = vld [vmem:[%s18101_s11 + $0x3f8] sm:$0xff] }
0x16ef   :  { %14656 = vmatprep.subr.bf16.mxu1 %v15499_v49  ;;  %v14714_v33 = vpack.c.bf16 %v12006_v20, %v12005_v37  ;;  %v12046_v20 = vld [vmem:[%s18101_s11 + $0x530] sm:$0xff] }
0x16f2   :  { %14658 = vmatpush1.bf16.msra.mxu1 %v14657_v44  ;;  %v12008_v44 = vld [vmem:[%s18101_s11 + $0x408] sm:$0xff] }
0x16f3   :  { %14659 = vmatprep.subr.bf16.mxu1 %v15499_v49  ;;  %v14717_v42 = vpack.c.bf16 %v12008_v44, %v12007_v3  ;;  %v12049_v44 = vld [vmem:[%s18101_s11 + $0x540] sm:$0xff] }
0x16f6   :  { %14661 = vmatpush1.bf16.msra.mxu1 %v14660_v47  ;;  %v12010_v47 = vld [vmem:[%s18101_s11 + $0x418] sm:$0xff] }
0x16f7   :  { %14662 = vmatprep.subr.bf16.mxu1 %v15499_v49  ;;  %v14720_v19 = vpack.c.bf16 %v12010_v47, %v12009_v22  ;;  %v11341_v47 = vrot.slane %v17471_v21, 5 }
0x16fa   :  { %14664 = vmatpush1.bf16.msra.mxu1 %v14663_v63  ;;  %v12012_v63 = vld [vmem:[%s18101_s11 + $0x428] sm:$0xff] }
0x16fb   :  { %14665 = vmatprep.subr.bf16.mxu1 %v15499_v49  ;;  %v14723_v36 = vpack.c.bf16 %v12012_v63, %v12011_v24  ;;  %v12052_v24 = vld [vmem:[%s18101_s11 + $0x558] sm:$0xff]  ;;  %v11446_v63 = vrot.slane %v17473_v56, 6  ;;  %v12055_v56 = vld [vmem:[%s18101_s11 + $0x570] sm:$0xff] }
0x16fe   :  { %14667 = vmatpush1.bf16.msra.mxu1 %v14666_v59  ;;  %v12014_v59 = vld [vmem:[%s18101_s11 + $0x438] sm:$0xff] }
0x16ff   :  { %14668 = vmatprep.subr.bf16.mxu1 %v15499_v49  ;;  %v14726_v40 = vpack.c.bf16 %v12014_v59, %v12013_v48  ;;  %v12053_v48 = vld [vmem:[%s18101_s11 + $0x560] sm:$0xff]  ;;  %v12054_v59 = vld [vmem:[%s18101_s11 + $0x568] sm:$0xff] }
0x1702   :  { %14670 = vmatpush1.bf16.msra.mxu1 %v14669_v0  ;;  %v12016_v0 = vld [vmem:[%s18101_s11 + $0x448] sm:$0xff] }
0x1703   :  { %14671 = vmatprep.subr.bf16.mxu1 %v15499_v49  ;;  %v14729_v58 = vpack.c.bf16 %v12016_v0, %v12015_v38  ;;  %v12056_v38 = vld [vmem:[%s18101_s11 + $0x578] sm:$0xff] }
0x1704   :  { %v14786_v0 = vpack.c.bf16 %v12056_v38, %v12055_v56 }
0x1706   :  { %14673 = vmatpush1.bf16.msra.mxu1 %v14672_v52  ;;  %v12018_v52 = vld [vmem:[%s18101_s11 + $0x458] sm:$0xff] }
0x1707   :  { %14674 = vmatprep.subr.bf16.mxu1 %v15499_v49  ;;  %v14732_v46 = vpack.c.bf16 %v12018_v52, %v12017_v8  ;;  %v12058_v8 = vld [vmem:[%s18101_s11 + $0x588] sm:$0xff] }
0x170a   :  { %14676 = vmatpush1.bf16.msra.mxu1 %v14675_v51  ;;  %v12021_v51 = vld [vmem:[%s18101_s11 + $0x468] sm:$0xff] }
0x170b   :  { %14677 = vmatprep.subr.bf16.mxu1 %v15499_v49  ;;  %v14735_v62 = vpack.c.bf16 %v12021_v51, %v12020_v32  ;;  %v12060_v32 = vld [vmem:[%s18101_s11 + $0x598] sm:$0xff] }
0x170e   :  { %14679 = vmatpush1.bf16.msra.mxu1 %v14678_v60  ;;  %v12022_v60 = vld [vmem:[%s18101_s11 + $0x470] sm:$0xff] }
0x170f   :  { %14680 = vmatprep.subr.bf16.mxu1 %v15499_v49 }
0x1712   :  { %14682 = vmatpush1.bf16.msra.mxu1 %v14681_v61  ;;  %v14738_v61 = vpack.c.bf16 %v12023_v1, %v12022_v60  ;;  %v12063_v1 = vld [vmem:[%s18101_s11 + $0x5b0] sm:$0xff] }
0x1713   :  { %14683 = vmatprep.subr.bf16.mxu1 %v15499_v49 }
0x1716   :  { %14685 = vmatpush1.bf16.msra.mxu1 %v14684_v7  ;;  %v14741_v7 = vpack.c.bf16 %v12025_v4, %v12024_v54  ;;  %v12065_v54 = vld [vmem:[%s18101_s11 + $0x5c0] sm:$0xff]  ;;  %v12066_v4 = vld [vmem:[%s18101_s11 + $0x5c8] sm:$0xff] }
0x1717   :  { %14686 = vmatprep.subr.bf16.mxu1 %v15499_v49 }
0x171a   :  { %14688 = vmatpush1.bf16.msra.mxu1 %v14687_v2  ;;  %v14744_v2 = vpack.c.bf16 %v12027_v9, %v12026_v6  ;;  %v12067_v6 = vld [vmem:[%s18101_s11 + $0x5d0] sm:$0xff]  ;;  %v12068_v9 = vld [vmem:[%s18101_s11 + $0x5d8] sm:$0xff] }
0x171b   :  { %14689 = vmatprep.subr.bf16.mxu1 %v15499_v49 }
0x171e   :  { %14691 = vmatpush1.bf16.msra.mxu1 %v14690_v39  ;;  %v14747_v39 = vpack.c.bf16 %v12029_v11, %v12028_v50  ;;  %v12069_v50 = vld [vmem:[%s18101_s11 + $0x5e0] sm:$0xff]  ;;  %v12070_v11 = vld [vmem:[%s18101_s11 + $0x5e8] sm:$0xff] }
0x171f   :  { %14692 = vmatprep.subr.bf16.mxu1 %v15499_v49 }
0x1721   :  { %11203 = vmatmul.mubr.f32.vlgmr.msra.gmra.mrb[58].mxu1 %v11133_v57  ;;  %v12032_v57 = vld [vmem:[%s18101_s11 + $0x4c0] sm:$0xff] }
0x1722   :  { %14694 = vmatpush1.bf16.msra.mxu1 %v14693_v23  ;;  %12019 = vmatprep.mubr.msk.f32.mxu1 %vm4883_vm4, %v11238_v34  ;;  %v14750_v23 = vpack.c.bf16 %v12031_v5, %v12030_v28  ;;  %v14753_v15 = vpack.c.bf16 %v12033_v10, %v12032_v57  ;;  %v12034_v34 = vld [vmem:[%s18101_s11 + $0x4d0] sm:$0xff]  ;;  %v12072_v5 = vld [vmem:[%s18101_s11 + $0x5f8] sm:$0xff]  ;;  %v12073_v57 = vld [vmem:[%s18101_s11 + $0x600] sm:$0xff] }
0x1723   :  { %14695 = vmatprep.subr.bf16.mxu1 %v15499_v49  ;;  %v12071_v28 = vld [vmem:[%s18101_s11 + $0x5f0] sm:$0xff]  ;;  %v12074_v10 = vld [vmem:[%s18101_s11 + $0x608] sm:$0xff] }
0x1726   :  { %14697 = vmatpush1.bf16.msra.mxu1 %v14696_v14  ;;  %v12035_v14 = vld [vmem:[%s18101_s11 + $0x4d8] sm:$0xff] }
0x1727   :  { %14698 = vmatprep.subr.bf16.mxu1 %v15499_v49  ;;  %v14756_v43 = vpack.c.bf16 %v12035_v14, %v12034_v34  ;;  %v12075_v34 = vld [vmem:[%s18101_s11 + $0x610] sm:$0xff]  ;;  %v12076_v14 = vld [vmem:[%s18101_s11 + $0x618] sm:$0xff] }
0x172a   :  { %14700 = vmatpush1.bf16.msra.mxu1 %v14699_v55  ;;  %v12037_v55 = vld [vmem:[%s18101_s11 + $0x4e8] sm:$0xff] }
0x172b   :  { %14701 = vmatprep.subr.bf16.mxu1 %v15499_v49  ;;  %v14759_v31 = vpack.c.bf16 %v12037_v55, %v12036_v45  ;;  %v11445_v45 = vrot.slane %v17471_v21, 6  ;;  %v10793_v55 = vld [vmem:[#allocation21] sm:$0x1] }
0x172e   :  { %14703 = vmatpush1.bf16.msra.mxu1 %v14702_v26  ;;  %v12039_v26 = vld [vmem:[%s18101_s11 + $0x4f8] sm:$0xff] }
0x172f   :  { %14704 = vmatprep.subr.bf16.mxu1 %v15499_v49  ;;  %v14762_v29 = vpack.c.bf16 %v12039_v26, %v12038_v41 }
0x1732   :  { %14706 = vmatpush1.bf16.msra.mxu1 %v14705_v12  ;;  %v12041_v12 = vld [vmem:[%s18101_s11 + $0x508] sm:$0xff] }
0x1733   :  { %14707 = vmatprep.subr.bf16.mxu1 %v15499_v49  ;;  %v14765_v25 = vpack.c.bf16 %v12041_v12, %v12040_v18 }
0x1736   :  { %14709 = vmatpush1.bf16.msra.mxu1 %v14708_v16  ;;  %v12043_v16 = vld [vmem:[%s18101_s11 + $0x518] sm:$0xff] }
0x1737   :  { %14710 = vmatprep.subr.bf16.mxu1 %v15499_v49  ;;  %v14768_v35 = vpack.c.bf16 %v12043_v16, %v12042_v27 }
0x173a   :  { %14712 = vmatpush1.bf16.msra.mxu1 %v14711_v53  ;;  %v12045_v53 = vld [vmem:[%s18101_s11 + $0x528] sm:$0xff] }
0x173b   :  { %14713 = vmatprep.subr.bf16.mxu1 %v15499_v49  ;;  %v14771_v37 = vpack.c.bf16 %v12045_v53, %v12044_v30 }
0x173e   :  { %14715 = vmatpush1.bf16.msra.mxu1 %v14714_v33  ;;  %v12047_v33 = vld [vmem:[%s18101_s11 + $0x538] sm:$0xff] }
0x173f   :  { %14716 = vmatprep.subr.bf16.mxu1 %v15499_v49  ;;  %v14774_v3 = vpack.c.bf16 %v12047_v33, %v12046_v20 }
0x1742   :  { %14718 = vmatpush1.bf16.msra.mxu1 %v14717_v42  ;;  %v12050_v42 = vld [vmem:[%s18101_s11 + $0x548] sm:$0xff] }
0x1743   :  { %14719 = vmatprep.subr.bf16.mxu1 %v15499_v49  ;;  %v14777_v22 = vpack.c.bf16 %v12050_v42, %v12049_v44 }
0x1746   :  { %14721 = vmatpush1.bf16.msra.mxu1 %v14720_v19  ;;  %v12051_v19 = vld [vmem:[%s18101_s11 + $0x550] sm:$0xff] }
0x1747   :  { %14722 = vmatprep.subr.bf16.mxu1 %v15499_v49 }
0x174a   :  { %14724 = vmatpush1.bf16.msra.mxu1 %v14723_v36  ;;  %v14780_v36 = vpack.c.bf16 %v12052_v24, %v12051_v19 }
0x174b   :  { %14725 = vmatprep.subr.bf16.mxu1 %v15499_v49 }
0x174e   :  { %14727 = vmatpush1.bf16.msra.mxu1 %v14726_v40  ;;  %v14783_v40 = vpack.c.bf16 %v12054_v59, %v12053_v48 }
0x174f   :  { %14728 = vmatprep.subr.bf16.mxu1 %v15499_v49 }
0x1752   :  { %14730 = vmatpush1.bf16.msra.mxu1 %v14729_v58  ;;  %v12057_v58 = vld [vmem:[%s18101_s11 + $0x580] sm:$0xff] }
0x1753   :  { %14731 = vmatprep.subr.bf16.mxu1 %v15499_v49  ;;  %v14789_v52 = vpack.c.bf16 %v12058_v8, %v12057_v58 }
0x1756   :  { %14733 = vmatpush1.bf16.msra.mxu1 %v14732_v46  ;;  %v12059_v46 = vld [vmem:[%s18101_s11 + $0x590] sm:$0xff] }
0x1757   :  { %14734 = vmatprep.subr.bf16.mxu1 %v15499_v49  ;;  %v14792_v51 = vpack.c.bf16 %v12060_v32, %v12059_v46 }
0x1759   :  { %11307 = vmatmul.mubr.f32.vlgmr.msra.gmra.mrb[58].mxu1 %v11237_v13  ;;  %v12062_v13 = vld [vmem:[%s18101_s11 + $0x5a8] sm:$0xff] }
0x175a   :  { %14736 = vmatpush1.bf16.msra.mxu1 %v14735_v62  ;;  %12048 = vmatprep.mubr.msk.f32.mxu1 %vm4883_vm4, %v11342_v17  ;;  %v12061_v62 = vld [vmem:[%s18101_s11 + $0x5a0] sm:$0xff]  ;;  %v12064_v17 = vld [vmem:[%s18101_s11 + $0x5b8] sm:$0xff] }
0x175b   :  { %14737 = vmatprep.subr.bf16.mxu1 %v15499_v49  ;;  %v14795_v60 = vpack.c.bf16 %v12062_v13, %v12061_v62 }
0x175e   :  { %14739 = vmatpush1.bf16.msra.mxu1 %v14738_v61  ;;  %v14798_v61 = vpack.c.bf16 %v12064_v17, %v12063_v1 }
0x175f   :  { %14740 = vmatprep.subr.bf16.mxu1 %v15499_v49 }
0x1762   :  { %14742 = vmatpush1.bf16.msra.mxu1 %v14741_v7  ;;  %v14801_v7 = vpack.c.bf16 %v12066_v4, %v12065_v54 }
0x1763   :  { %14743 = vmatprep.subr.bf16.mxu1 %v15499_v49 }
0x1766   :  { %14745 = vmatpush1.bf16.msra.mxu1 %v14744_v2  ;;  %v14804_v2 = vpack.c.bf16 %v12068_v9, %v12067_v6 }
0x1767   :  { %14746 = vmatprep.subr.bf16.mxu1 %v15499_v49 }
0x176a   :  { %14748 = vmatpush1.bf16.msra.mxu1 %v14747_v39  ;;  %v14807_v39 = vpack.c.bf16 %v12070_v11, %v12069_v50 }
0x176b   :  { %14749 = vmatprep.subr.bf16.mxu1 %v15499_v49 }
0x176e   :  { %14751 = vmatpush1.bf16.msra.mxu1 %v14750_v23  ;;  %v14810_v23 = vpack.c.bf16 %v12072_v5, %v12071_v28 }
0x176f   :  { %14752 = vmatprep.subr.bf16.mxu1 %v15499_v49 }
0x1772   :  { %14754 = vmatpush1.bf16.msra.mxu1 %v14753_v15  ;;  %v14813_v15 = vpack.c.bf16 %v12074_v10, %v12073_v57 }
0x1773   :  { %14755 = vmatprep.subr.bf16.mxu1 %v15499_v49 }
0x1776   :  { %14757 = vmatpush1.bf16.msra.mxu1 %v14756_v43  ;;  %v14816_v43 = vpack.c.bf16 %v12076_v14, %v12075_v34 }
0x1777   :  { %14758 = vmatprep.subr.bf16.mxu1 %v15499_v49 }
0x177a   :  { %14760 = vmatpush1.bf16.msra.mxu1 %v14759_v31 }
0x177b   :  { %14761 = vmatprep.subr.bf16.mxu1 %v15499_v49 }
0x177e   :  { %14763 = vmatpush1.bf16.msra.mxu1 %v14762_v29 }
0x177f   :  { %14764 = vmatprep.subr.bf16.mxu1 %v15499_v49 }
0x1782   :  { %14766 = vmatpush1.bf16.msra.mxu1 %v14765_v25 }
0x1783   :  { %14767 = vmatprep.subr.bf16.mxu1 %v15499_v49 }
0x1786   :  { %14769 = vmatpush1.bf16.msra.mxu1 %v14768_v35 }
0x1787   :  { %14770 = vmatprep.subr.bf16.mxu1 %v15499_v49 }
0x178a   :  { %14772 = vmatpush1.bf16.msra.mxu1 %v14771_v37 }
0x178b   :  { %14773 = vmatprep.subr.bf16.mxu1 %v15499_v49 }
0x178e   :  { %14775 = vmatpush1.bf16.msra.mxu1 %v14774_v3 }
0x178f   :  { %14776 = vmatprep.subr.bf16.mxu1 %v15499_v49 }
0x1791   :  { %11411 = vmatmul.mubr.f32.vlgmr.msra.gmra.mrb[58].mxu1 %v11341_v47 }
0x1792   :  { %14778 = vmatpush1.bf16.msra.mxu1 %v14777_v22  ;;  %12077 = vmatprep.mubr.msk.f32.mxu1 %vm4883_vm4, %v11446_v63 }
0x1793   :  { %14779 = vmatprep.subr.bf16.mxu1 %v15499_v49 }
0x1796   :  { %14781 = vmatpush1.bf16.msra.mxu1 %v14780_v36 }
0x1797   :  { %14782 = vmatprep.subr.bf16.mxu1 %v15499_v49 }
0x179a   :  { %14784 = vmatpush1.bf16.msra.mxu1 %v14783_v40 }
0x179b   :  { %14785 = vmatprep.subr.bf16.mxu1 %v15499_v49 }
0x179e   :  { %14787 = vmatpush1.bf16.msra.mxu1 %v14786_v0 }
0x179f   :  { %14788 = vmatprep.subr.bf16.mxu1 %v15499_v49 }
0x17a2   :  { %14790 = vmatpush1.bf16.msra.mxu1 %v14789_v52 }
0x17a3   :  { %14791 = vmatprep.subr.bf16.mxu1 %v15499_v49 }
0x17a6   :  { %14793 = vmatpush1.bf16.msra.mxu1 %v14792_v51 }
0x17a7   :  { %14794 = vmatprep.subr.bf16.mxu1 %v15499_v49 }
0x17aa   :  { %14796 = vmatpush1.bf16.msra.mxu1 %v14795_v60 }
0x17ab   :  { %14797 = vmatprep.subr.bf16.mxu1 %v15499_v49 }
0x17ae   :  { %14799 = vmatpush1.bf16.msra.mxu1 %v14798_v61 }
0x17af   :  { %14800 = vmatprep.subr.bf16.mxu1 %v15499_v49 }
0x17b2   :  { %14802 = vmatpush1.bf16.msra.mxu1 %v14801_v7 }
0x17b3   :  { %14803 = vmatprep.subr.bf16.mxu1 %v15499_v49 }
0x17b6   :  { %14805 = vmatpush1.bf16.msra.mxu1 %v14804_v2 }
0x17b7   :  { %14806 = vmatprep.subr.bf16.mxu1 %v15499_v49 }
0x17ba   :  { %14808 = vmatpush1.bf16.msra.mxu1 %v14807_v39 }
0x17bb   :  { %14809 = vmatprep.subr.bf16.mxu1 %v15499_v49 }
0x17be   :  { %14811 = vmatpush1.bf16.msra.mxu1 %v14810_v23 }
0x17bf   :  { %14812 = vmatprep.subr.bf16.mxu1 %v15499_v49 }
0x17c2   :  { %14814 = vmatpush1.bf16.msra.mxu1 %v14813_v15 }
0x17c3   :  { %14815 = vmatprep.subr.bf16.mxu1 %v15499_v49 }
0x17c6   :  { %14817 = vmatpush1.bf16.msra.mxu1 %v14816_v43 }
0x17c9   :  { %11515 = vmatmul.mubr.f32.vlgmr.msra.gmra.mrb[58].mxu1 %v11445_v45 }
0x189c   :  { %v11516_v31 = vpop.f32.mrb[58].mxu1 }
0x189d   :  { %v14823_v41 = vadd.f32 %v11516_v31, %v10793_v55  ;;  %v11518_v26 = vpop.f32.mrb[59].mxu1 }
0x189f   :  { %11521 = vst.msk [vmem:[#allocation22 + $0x1] sm:$0x1] %vm5878_vm1, %v14823_v41 }
0x18a0   :  { %15452 = shalt.err (!%p15449_p8)
}
0x18a1   :  { %s15453_s14 = scalar_lea.hbm %s18103_s13, 32 }
0x18a2   :  { %p15454_p9 = scmp.ne.s32.totalorder %s18103_s13, %s15453_s14  ;;  %p15457_p10 = scmp.lt.u32.totalorder %s15453_s14, %s18103_s13 }
0x18a4   :  { %p15459_p11 = pnand %p15457_p10, %p15454_p9 }
0x18a6   :  { %15462 = shalt.err (!%p15459_p11)
}
0x18a7   :  { %11531 = dma.vmem_to_hbm [thread:$0]  %s11529_s30, 32, %s18103_s13, [#allocation6]  }
0x18a8   :  { %15475 = dma.done.wait [#allocation6], 32  }
0x18a9   :  { %15476 = vsyncadd [#allocation6], 4294967264 }
0x18aa   :  { %11535 = vsyncpa [#allocation5], 1 }
0x18ab   :  { %11536 = vsyncpa [#allocation8], 1 }
0x18ac   :  { %11537 = vsyncpa [#allocation11], 1 }
0x18ad   :  { %11538 = vsyncpa [#allocation14], 1 }
0x18ae   :  { %11539 = vsyncpa [#allocation17], 1 }
0x18af   :  { %11540 = vsyncpa [#allocation20], 1 }
0x18b0   :  { %11541 = vsyncpa [#allocation6], 1 }

</bundles_post_ra>
